<compile_context>
chip_gen: v6e
topology: v6e:2x2x1
jax: 0.10.0
libtpu: 0.0.40
codegen_flags: <defaults>
</compile_context>

<pallas_src>
import numpy as np
import jax
import jax.numpy as jnp
from jax import lax
from jax.experimental import pallas as pl
from jax.experimental.pallas import tpu as pltpu


# ----------------------------------------------------------------------------
# Host-side structure constants (all iota-derived matrices hoisted here).
# ----------------------------------------------------------------------------
def _shift_matrix(hw, m):
    """S[j, i] = 1 iff j == i + m, so (x @ S)[c, i] = x[c, i + m], zero-filled."""
    j = np.arange(hw)[:, None]
    i = np.arange(hw)[None, :]
    return (j == i + m).astype(np.float32)


def _col_shift_matrix(h, w, s):
    """Column shift by s with the row-wrap mask baked in."""
    hw = h * w
    j = np.arange(hw)[:, None]
    i = np.arange(hw)[None, :]
    col = i % w
    return ((j == i + s) & (col + s >= 0) & (col + s < w)).astype(np.float32)


def _shift_pack(h, w):
    """(8, hw, hw): rows [-2w, -w, +w, +2w] then cols [-2, -1, +1, +2]."""
    hw = h * w
    mats = [_shift_matrix(hw, m) for m in (-2 * w, -w, w, 2 * w)]
    mats += [_col_shift_matrix(h, w, s) for s in (-2, -1, 1, 2)]
    return np.stack(mats, axis=0)


def _pool_gather(h, w):
    """(hw, hw/4): selects the top-left corner of every 2x2 block."""
    hw, wo = h * w, w // 2
    hwo = (h // 2) * wo
    j = np.arange(hw)[:, None]
    io = np.arange(hwo)[None, :]
    src = 2 * (io // wo) * w + 2 * (io % wo)
    return (j == src).astype(np.float32)


def _upsample_mat(h, w):
    """(hw, 4*hw): nearest x2 upsample of an (h, w) flat map."""
    hw = h * w
    wu = 2 * w
    j = np.arange(hw)[:, None]
    i = np.arange(4 * hw)[None, :]
    src = (i // wu // 2) * w + (i % wu) // 2
    return (j == src).astype(np.float32)


def _row_avg_mat(h, w):
    """(hw, h): per-row mean of a flat (h, w) map."""
    j = np.arange(h * w)[:, None]
    k = np.arange(h)[None, :]
    return ((j // w) == k).astype(np.float32) / float(w)


def _row_rep_mat(h, w):
    """(h, hw): replicate a per-row value across its w columns."""
    k = np.arange(h)[:, None]
    j = np.arange(h * w)[None, :]
    return (k == (j // w)).astype(np.float32)


def _band_vec(h):
    start, end = h * 4 // 9, h * 5 // 9
    k = np.arange(h)
    return ((k > start) & (k < end)).astype(np.float32)[None, :]   # (1, h)


def _pad8(n):
    return ((n + 7) // 8) * 8


def _pack_conv_weights(w, cpad):
    """torch (Cout, Cin, 5, 5) -> (5_dw, Cout, 5_dh * cpad), zero K-padding."""
    w = w.astype(jnp.float32)
    cout, cin = w.shape[0], w.shape[1]
    wt = jnp.transpose(w, (3, 0, 2, 1))                       # (dw, co, dh, ci)
    wp = jnp.zeros((5, cout, 5, cpad), jnp.float32).at[..., :cin].set(wt)
    return wp.reshape(5, cout, 5 * cpad)


# ----------------------------------------------------------------------------
# Fused GenMask kernel factory.
# ----------------------------------------------------------------------------
def _make_genmask_kernel(H, W, dim, cpads):
    H2, W2 = H // 2, W // 2
    HW, HW2 = H * W, H2 * W2
    cp1, cp2, cp3, cp4 = cpads

    def kernel(x_ref, sb_ref, ss_ref, g1_ref, g2_ref, u1_ref, u2_ref,
               avg_ref, rep_ref, band_ref,
               w1_ref, b1_ref, w2_ref, b2_ref, w3_ref, b3_ref, w4_ref, b4_ref,
               o_ref, xcat_ref):

        def mm(a, b):
            return jnp.dot(a, b, preferred_element_type=jnp.float32)

        # Zero the stacking scratch once per grid step: its K-padding rows meet
        # zero weights, but 0 * uninitialized-NaN would still poison the sums.
        xcat_ref[...] = jnp.zeros_like(xcat_ref)

        def conv5x5(x, sh_ref, w_ref, b_ref, cin, cpad, hw, act):
            # (1) stack the 5 row-shifted copies of x into the VMEM scratch,
            #     zero-padded to cpad channels so every block is 8-aligned.
            for dh in range(5):
                if dh == 2:
                    xs = x
                else:
                    xs = mm(x, sh_ref[dh if dh < 2 else dh - 1])
                xcat_ref[dh * cpad:dh * cpad + cin, :hw] = xs
            xc = xcat_ref[:5 * cpad, :hw]                      # (5*cpad, hw)
            # (2) one fat weight matmul per horizontal tap; masked column shift
            #     (baked into the precomputed matrix) for the off-center taps.
            acc = None
            for dw in range(5):
                z = mm(w_ref[dw], xc)                          # (cout, hw)
                if dw != 2:
                    z = mm(z, sh_ref[4 + (dw if dw < 2 else dw - 1)])
                acc = z if acc is None else acc + z
            acc = acc + b_ref[...]                             # (cout, 1) bcast
            if act == "relu":
                return jnp.maximum(acc, 0.0)
            return jax.nn.sigmoid(acc)

        def maxpool2(x, sh_ref, g_ref):
            # pairwise col max, pairwise row max, then a stride-2 gather; the
            # +1-column / +1-row shift matrices are already resident.
            cmax = jnp.maximum(x, mm(x, sh_ref[6]))
            rmax = jnp.maximum(cmax, mm(cmax, sh_ref[2]))
            return mm(rmax, g_ref[...])

        # ------------------------------- network -----------------------------
        x0 = x_ref[0]                                                  # (dim, HW)
        a1 = conv5x5(x0, sb_ref, w1_ref, b1_ref, dim, cp1, HW, "relu")
        p1 = maxpool2(a1, sb_ref, g1_ref)                              # (4, HW/4)
        a2 = conv5x5(p1, ss_ref, w2_ref, b2_ref, 4, cp2, HW2, "relu")
        p2 = maxpool2(a2, ss_ref, g2_ref)                              # (16, HW/16)
        u1 = mm(p2, u1_ref[...])                                       # (16, HW/4)
        a3 = conv5x5(u1, ss_ref, w3_ref, b3_ref, 16, cp3, HW2, "relu")
        u2 = mm(a3, u2_ref[...])                                       # (4, HW)
        a4 = conv5x5(u2, sb_ref, w4_ref, b4_ref, 4, cp4, HW, "sigmoid")

        # ------------------------------ mask head ----------------------------
        rmean = mm(a4, avg_ref[...])                                   # (1, H)
        mn = jnp.min(rmean, axis=1, keepdims=True)
        mx = jnp.max(rmean, axis=1, keepdims=True)
        # divide-free (m - mn)/(mx - mn) > 0.5 (mx == mn -> False, matching
        # torch's NaN > 0.5), OR'd with the static row band.
        cond = ((rmean - mn) * 2.0 > (mx - mn)) | (band_ref[...] > 0.5)
        o_ref[0] = mm(jnp.where(cond, 1.0, 0.0), rep_ref[...])         # (1, HW)

    return kernel


# ----------------------------------------------------------------------------
# Wrapper: build constants, pack weights, run the fused kernel.
# ----------------------------------------------------------------------------
def _const_spec(shape):
    zeros = (0,) * len(shape)
    return pl.BlockSpec(tuple(shape), lambda bi, _z=zeros: _z)


def gen_mask_forward(x_nchw, params):
    """GenMask forward: x (B, C, H, W) float32 -> (B, 1, H, W) complex64 mask."""
    B, C, H, W = x_nchw.shape
    assert H % 4 == 0 and W % 4 == 0, "GenMask needs spatial dims divisible by 4"
    hw = H * W
    # The (hw, hw) structure matrices must stay well inside VMEM on every chip
    # generation (v7x: 64 MiB total / 32 MiB default scoped limit).
    assert hw <= 1024, "flat-layout GenMask kernel is sized for small spatial dims"
    H2, W2 = H // 2, W // 2

    x_flat = x_nchw.astype(jnp.float32).reshape(B, C, hw)

    # host-side structure constants (hoisted out of the kernel)
    shifts_b = _shift_pack(H, W)            # (8, hw, hw)
    shifts_s = _shift_pack(H2, W2)          # (8, hw/4, hw/4)
    g1 = _pool_gather(H, W)                 # (hw, hw/4)
    g2 = _pool_gather(H2, W2)               # (hw/4, hw/16)
    u1 = _upsample_mat(H // 4, W // 4)      # (hw/16, hw/4)
    u2 = _upsample_mat(H2, W2)              # (hw/4, hw)
    avg = _row_avg_mat(H, W)                # (hw, H)
    rep = _row_rep_mat(H, W)                # (H, hw)
    band = _band_vec(H)                     # (1, H)

    # lane-dense packed conv weights / biases
    cins = [C, 4, 16, 4]
    cpads = [_pad8(c) for c in cins]
    ws = [_pack_conv_weights(params[f"w{k}"], cpads[k - 1]) for k in range(1, 5)]
    bs = [params[f"b{k}"].astype(jnp.float32).reshape(-1, 1) for k in range(1, 5)]

    args = [x_flat, shifts_b, shifts_s, g1, g2, u1, u2, avg, rep, band]
    in_specs = [pl.BlockSpec((1, C, hw), lambda bi: (bi, 0, 0))]
    in_specs += [_const_spec(a.shape) for a in args[1:]]
    for w, b in zip(ws, bs):
        args += [w, b]
        in_specs += [_const_spec(w.shape), _const_spec(b.shape)]

    scratch_rows = max(5 * cp for cp in cpads)

    out_flat = pl.pallas_call(
        _make_genmask_kernel(H, W, C, cpads),
        out_shape=jax.ShapeDtypeStruct((B, 1, hw), jnp.float32),
        grid=(B,),
        in_specs=in_specs,
        out_specs=pl.BlockSpec((1, 1, hw), lambda bi: (bi, 0, 0)),
        scratch_shapes=[pltpu.VMEM((scratch_rows, hw), jnp.float32)],
        compiler_params=pltpu.CompilerParams(
            dimension_semantics=("parallel",)),
    )(*args)

    mask = out_flat.reshape(B, 1, H, W)
    # TODO(synk): complex dtypes are unsupported inside Pallas TPU kernels; the
    # final .to(torch.complex64) cast stays in plain JAX.
    return mask.astype(jnp.complex64)


# ----------------------------------------------------------------------------
# Pure-JAX reference (for correctness checking only).
# ----------------------------------------------------------------------------
def _reference_forward(x, params):
    def conv(y, w, b, act):
        y = lax.conv_general_dilated(
            y, w, (1, 1), ((2, 2), (2, 2)),
            dimension_numbers=("NCHW", "OIHW", "NCHW"),
            precision=lax.Precision.HIGHEST)
        y = y + b[None, :, None, None]
        return jax.nn.relu(y) if act == "relu" else jax.nn.sigmoid(y)

    def pool(y):
        B, C, H, W = y.shape
        return y.reshape(B, C, H // 2, 2, W // 2, 2).max(axis=(3, 5))

    def up(y):
        return jnp.repeat(jnp.repeat(y, 2, axis=2), 2, axis=3)

    y = pool(conv(x, params["w1"], params["b1"], "relu"))
    y = pool(conv(y, params["w2"], params["b2"], "relu"))
    y = conv(up(y), params["w3"], params["b3"], "relu")
    y = conv(up(y), params["w4"], params["b4"], "sigmoid")

    B, C, H, W = y.shape
    m = y.mean(axis=3)                                        # (B, C, H)
    mn = m.min(axis=2, keepdims=True)
    mx = m.max(axis=2, keepdims=True)
    norm = (m - mn) / (mx - mn)
    start, end = H * 4 // 9, H * 5 // 9
    k = jnp.arange(H)
    cond = (norm > 0.5) | ((k > start) & (k < end))[None, None, :]
    mask = jnp.where(cond, 1.0, 0.0)[..., None]
    mask = jnp.broadcast_to(mask, (B, C, H, W))
    return mask.astype(jnp.complex64), norm


def init_conv_params(key, cin, cout):
    kw, kb = jax.random.split(key)
    bound = 1.0 / float((cin * 25) ** 0.5)                    # PyTorch Conv2d default
    w = jax.random.uniform(kw, (cout, cin, 5, 5), jnp.float32, -bound, bound)
    b = jax.random.uniform(kb, (cout,), jnp.float32, -bound, bound)
    return w, b


if __name__ == "__main__":
    key = jax.random.PRNGKey(0)
    kx, k1, k2, k3, k4 = jax.random.split(key, 5)

    B, dim, H, W = 2, 4, 16, 16                               # GenMask(dim=4)
    params = {}
    params["w1"], params["b1"] = init_conv_params(k1, dim, 4)   # Conv2dBlock(4, 4)
    params["w2"], params["b2"] = init_conv_params(k2, 4, 16)    # Conv2dBlock(4, 16)
    params["w3"], params["b3"] = init_conv_params(k3, 16, 4)    # Conv2dBlock(16, 4)
    params["w4"], params["b4"] = init_conv_params(k4, 4, 1)     # Conv2dBlock(4, 1)

    x = jax.random.normal(kx, (B, dim, H, W), jnp.float32)

    out = jax.jit(gen_mask_forward)(x, params)
    out = jax.block_until_ready(out)

    assert out.shape == (B, 1, H, W), out.shape
    assert out.dtype == jnp.complex64, out.dtype
    assert bool(jnp.all((out.real == 0) | (out.real == 1)))
    assert bool(jnp.all(out.imag == 0))

    ref, norm = _reference_forward(x, params)
    # Exclude rows whose normalized mean sits numerically at the 0.5 threshold:
    # a different (but equally valid) summation order could flip those rows.
    safe = jnp.abs(norm - 0.5) > 1e-4                           # (B, 1, H)
    safe = jnp.broadcast_to(safe[..., None], ref.shape)
    assert bool(jnp.all((out == ref) | ~safe)), "Pallas mask != pure-JAX reference"

    print("KERNEL_OK")
</pallas_src>

<mosaic_0001>
module attributes {stable_mosaic.version = 11 : i64} {
  func.func @kernel(%arg0: i32, %arg1: memref<1x4x256xf32, #tpu.memory_space<vmem>>, %arg2: memref<8x256x256xf32, #tpu.memory_space<vmem>>, %arg3: memref<8x64x64xf32, #tpu.memory_space<vmem>>, %arg4: memref<256x64xf32, #tpu.memory_space<vmem>>, %arg5: memref<64x16xf32, #tpu.memory_space<vmem>>, %arg6: memref<16x64xf32, #tpu.memory_space<vmem>>, %arg7: memref<64x256xf32, #tpu.memory_space<vmem>>, %arg8: memref<256x16xf32, #tpu.memory_space<vmem>>, %arg9: memref<16x256xf32, #tpu.memory_space<vmem>>, %arg10: memref<1x16xf32, #tpu.memory_space<vmem>>, %arg11: memref<5x4x40xf32, #tpu.memory_space<vmem>>, %arg12: memref<4x1xf32, #tpu.memory_space<vmem>>, %arg13: memref<5x16x40xf32, #tpu.memory_space<vmem>>, %arg14: memref<16x1xf32, #tpu.memory_space<vmem>>, %arg15: memref<5x4x80xf32, #tpu.memory_space<vmem>>, %arg16: memref<4x1xf32, #tpu.memory_space<vmem>>, %arg17: memref<5x1x40xf32, #tpu.memory_space<vmem>>, %arg18: memref<1x1xf32, #tpu.memory_space<vmem>>, %arg19: memref<1x1x256xf32, #tpu.memory_space<vmem>>, %arg20: memref<80x256xf32, #tpu.memory_space<vmem>>) attributes {dimension_semantics = [#tpu.dimension_semantics<parallel>], iteration_bounds = array<i64: 2>, scalar_prefetch = 0 : i64, scratch_operands = 1 : i64, tpu.core_type = #tpu.core_type<tc>, window_params = [{transform_indices = @transform_0, window_bounds = array<i64: 1, 4, 256>}, {pipeline_mode = #tpu.pipeline_mode<synchronous>, transform_indices = @transform_1, window_bounds = array<i64: 8, 256, 256>}, {pipeline_mode = #tpu.pipeline_mode<synchronous>, transform_indices = @transform_2, window_bounds = array<i64: 8, 64, 64>}, {pipeline_mode = #tpu.pipeline_mode<synchronous>, transform_indices = @transform_3, window_bounds = array<i64: 256, 64>}, {pipeline_mode = #tpu.pipeline_mode<synchronous>, transform_indices = @transform_4, window_bounds = array<i64: 64, 16>}, {pipeline_mode = #tpu.pipeline_mode<synchronous>, transform_indices = @transform_5, window_bounds = array<i64: 16, 64>}, {pipeline_mode = #tpu.pipeline_mode<synchronous>, transform_indices = @transform_6, window_bounds = array<i64: 64, 256>}, {pipeline_mode = #tpu.pipeline_mode<synchronous>, transform_indices = @transform_7, window_bounds = array<i64: 256, 16>}, {pipeline_mode = #tpu.pipeline_mode<synchronous>, transform_indices = @transform_8, window_bounds = array<i64: 16, 256>}, {pipeline_mode = #tpu.pipeline_mode<synchronous>, transform_indices = @transform_9, window_bounds = array<i64: 1, 16>}, {pipeline_mode = #tpu.pipeline_mode<synchronous>, transform_indices = @transform_10, window_bounds = array<i64: 5, 4, 40>}, {pipeline_mode = #tpu.pipeline_mode<synchronous>, transform_indices = @transform_11, window_bounds = array<i64: 4, 1>}, {pipeline_mode = #tpu.pipeline_mode<synchronous>, transform_indices = @transform_12, window_bounds = array<i64: 5, 16, 40>}, {pipeline_mode = #tpu.pipeline_mode<synchronous>, transform_indices = @transform_13, window_bounds = array<i64: 16, 1>}, {pipeline_mode = #tpu.pipeline_mode<synchronous>, transform_indices = @transform_14, window_bounds = array<i64: 5, 4, 80>}, {pipeline_mode = #tpu.pipeline_mode<synchronous>, transform_indices = @transform_15, window_bounds = array<i64: 4, 1>}, {pipeline_mode = #tpu.pipeline_mode<synchronous>, transform_indices = @transform_16, window_bounds = array<i64: 5, 1, 40>}, {pipeline_mode = #tpu.pipeline_mode<synchronous>, transform_indices = @transform_17, window_bounds = array<i64: 1, 1>}, {transform_indices = @transform_18, window_bounds = array<i64: 1, 1, 256>}]} {
    %cst = arith.constant 0.000000e+00 : f32
    %0 = vector.broadcast %cst : f32 to vector<80x256xf32>
    %c0 = arith.constant 0 : index
    %c0_0 = arith.constant 0 : index
    %1 = vector.load %arg20[%c0, %c0_0] : memref<80x256xf32, #tpu.memory_space<vmem>>, vector<80x256xf32>
    tpu.vector_store %arg20[%c0, %c0_0], %0 {strides = array<i32>} : memref<80x256xf32, #tpu.memory_space<vmem>>, vector<80x256xf32>,
    %c0_1 = arith.constant 0 : index
    %c0_2 = arith.constant 0 : index
    %c0_3 = arith.constant 0 : index
    %2 = vector.load %arg1[%c0_1, %c0_2, %c0_3] : memref<1x4x256xf32, #tpu.memory_space<vmem>>, vector<1x4x256xf32>
    %3 = vector.shape_cast %2 : vector<1x4x256xf32> to vector<4x256xf32>
    %c0_4 = arith.constant 0 : index
    %c0_5 = arith.constant 0 : index
    %c0_6 = arith.constant 0 : index
    %4 = vector.load %arg2[%c0_4, %c0_5, %c0_6] : memref<8x256x256xf32, #tpu.memory_space<vmem>>, vector<1x256x256xf32>
    %5 = vector.shape_cast %4 : vector<1x256x256xf32> to vector<256x256xf32>
    %cst_7 = arith.constant dense<0.000000e+00> : vector<4x256xf32>
    %6 = tpu.matmul %3, %5, %cst_7 {dimension_numbers = #tpu.dot_dimension_numbers<[1], [0], [0], [1], [0, 0, 1, 1], [], []>} : vector<4x256xf32>, vector<256x256xf32>, vector<4x256xf32> -> vector<4x256xf32>
    %c0_8 = arith.constant 0 : index
    %c0_9 = arith.constant 0 : index
    %7 = vector.load %arg20[%c0_8, %c0_9] : memref<80x256xf32, #tpu.memory_space<vmem>>, vector<4x256xf32>
    tpu.vector_store %arg20[%c0_8, %c0_9], %6 {strides = array<i32>} : memref<80x256xf32, #tpu.memory_space<vmem>>, vector<4x256xf32>,
    %c1 = arith.constant 1 : index
    %c0_10 = arith.constant 0 : index
    %c0_11 = arith.constant 0 : index
    %8 = vector.load %arg2[%c1, %c0_10, %c0_11] : memref<8x256x256xf32, #tpu.memory_space<vmem>>, vector<1x256x256xf32>
    %9 = vector.shape_cast %8 : vector<1x256x256xf32> to vector<256x256xf32>
    %cst_12 = arith.constant dense<0.000000e+00> : vector<4x256xf32>
    %10 = tpu.matmul %3, %9, %cst_12 {dimension_numbers = #tpu.dot_dimension_numbers<[1], [0], [0], [1], [0, 0, 1, 1], [], []>} : vector<4x256xf32>, vector<256x256xf32>, vector<4x256xf32> -> vector<4x256xf32>
    %c8 = arith.constant 8 : index
    %c0_13 = arith.constant 0 : index
    %11 = vector.load %arg20[%c8, %c0_13] : memref<80x256xf32, #tpu.memory_space<vmem>>, vector<4x256xf32>
    tpu.vector_store %arg20[%c8, %c0_13], %10 {strides = array<i32>} : memref<80x256xf32, #tpu.memory_space<vmem>>, vector<4x256xf32>,
    %c16 = arith.constant 16 : index
    %c0_14 = arith.constant 0 : index
    %12 = vector.load %arg20[%c16, %c0_14] : memref<80x256xf32, #tpu.memory_space<vmem>>, vector<4x256xf32>
    tpu.vector_store %arg20[%c16, %c0_14], %3 {strides = array<i32>} : memref<80x256xf32, #tpu.memory_space<vmem>>, vector<4x256xf32>,
    %c2 = arith.constant 2 : index
    %c0_15 = arith.constant 0 : index
    %c0_16 = arith.constant 0 : index
    %13 = vector.load %arg2[%c2, %c0_15, %c0_16] : memref<8x256x256xf32, #tpu.memory_space<vmem>>, vector<1x256x256xf32>
    %14 = vector.shape_cast %13 : vector<1x256x256xf32> to vector<256x256xf32>
    %cst_17 = arith.constant dense<0.000000e+00> : vector<4x256xf32>
    %15 = tpu.matmul %3, %14, %cst_17 {dimension_numbers = #tpu.dot_dimension_numbers<[1], [0], [0], [1], [0, 0, 1, 1], [], []>} : vector<4x256xf32>, vector<256x256xf32>, vector<4x256xf32> -> vector<4x256xf32>
    %c24 = arith.constant 24 : index
    %c0_18 = arith.constant 0 : index
    %16 = vector.load %arg20[%c24, %c0_18] : memref<80x256xf32, #tpu.memory_space<vmem>>, vector<4x256xf32>
    tpu.vector_store %arg20[%c24, %c0_18], %15 {strides = array<i32>} : memref<80x256xf32, #tpu.memory_space<vmem>>, vector<4x256xf32>,
    %c3 = arith.constant 3 : index
    %c0_19 = arith.constant 0 : index
    %c0_20 = arith.constant 0 : index
    %17 = vector.load %arg2[%c3, %c0_19, %c0_20] : memref<8x256x256xf32, #tpu.memory_space<vmem>>, vector<1x256x256xf32>
    %18 = vector.shape_cast %17 : vector<1x256x256xf32> to vector<256x256xf32>
    %cst_21 = arith.constant dense<0.000000e+00> : vector<4x256xf32>
    %19 = tpu.matmul %3, %18, %cst_21 {dimension_numbers = #tpu.dot_dimension_numbers<[1], [0], [0], [1], [0, 0, 1, 1], [], []>} : vector<4x256xf32>, vector<256x256xf32>, vector<4x256xf32> -> vector<4x256xf32>
    %c32 = arith.constant 32 : index
    %c0_22 = arith.constant 0 : index
    %20 = vector.load %arg20[%c32, %c0_22] : memref<80x256xf32, #tpu.memory_space<vmem>>, vector<4x256xf32>
    tpu.vector_store %arg20[%c32, %c0_22], %19 {strides = array<i32>} : memref<80x256xf32, #tpu.memory_space<vmem>>, vector<4x256xf32>,
    %c0_23 = arith.constant 0 : index
    %c0_24 = arith.constant 0 : index
    %21 = vector.load %arg20[%c0_23, %c0_24] : memref<80x256xf32, #tpu.memory_space<vmem>>, vector<40x256xf32>
    %c0_25 = arith.constant 0 : index
    %c0_26 = arith.constant 0 : index
    %c0_27 = arith.constant 0 : index
    %22 = vector.load %arg11[%c0_25, %c0_26, %c0_27] : memref<5x4x40xf32, #tpu.memory_space<vmem>>, vector<1x4x40xf32>
    %23 = vector.shape_cast %22 : vector<1x4x40xf32> to vector<4x40xf32>
    %cst_28 = arith.constant dense<0.000000e+00> : vector<4x256xf32>
    %24 = tpu.matmul %23, %21, %cst_28 {dimension_numbers = #tpu.dot_dimension_numbers<[1], [0], [0], [1], [0, 0, 1, 1], [], []>} : vector<4x40xf32>, vector<40x256xf32>, vector<4x256xf32> -> vector<4x256xf32>
    %c4 = arith.constant 4 : index
    %c0_29 = arith.constant 0 : index
    %c0_30 = arith.constant 0 : index
    %25 = vector.load %arg2[%c4, %c0_29, %c0_30] : memref<8x256x256xf32, #tpu.memory_space<vmem>>, vector<1x256x256xf32>
    %26 = vector.shape_cast %25 : vector<1x256x256xf32> to vector<256x256xf32>
    %cst_31 = arith.constant dense<0.000000e+00> : vector<4x256xf32>
    %27 = tpu.matmul %24, %26, %cst_31 {dimension_numbers = #tpu.dot_dimension_numbers<[1], [0], [0], [1], [0, 0, 1, 1], [], []>} : vector<4x256xf32>, vector<256x256xf32>, vector<4x256xf32> -> vector<4x256xf32>
    %c1_32 = arith.constant 1 : index
    %c0_33 = arith.constant 0 : index
    %c0_34 = arith.constant 0 : index
    %28 = vector.load %arg11[%c1_32, %c0_33, %c0_34] : memref<5x4x40xf32, #tpu.memory_space<vmem>>, vector<1x4x40xf32>
    %29 = vector.shape_cast %28 : vector<1x4x40xf32> to vector<4x40xf32>
    %cst_35 = arith.constant dense<0.000000e+00> : vector<4x256xf32>
    %30 = tpu.matmul %29, %21, %cst_35 {dimension_numbers = #tpu.dot_dimension_numbers<[1], [0], [0], [1], [0, 0, 1, 1], [], []>} : vector<4x40xf32>, vector<40x256xf32>, vector<4x256xf32> -> vector<4x256xf32>
    %c5 = arith.constant 5 : index
    %c0_36 = arith.constant 0 : index
    %c0_37 = arith.constant 0 : index
    %31 = vector.load %arg2[%c5, %c0_36, %c0_37] : memref<8x256x256xf32, #tpu.memory_space<vmem>>, vector<1x256x256xf32>
    %32 = vector.shape_cast %31 : vector<1x256x256xf32> to vector<256x256xf32>
    %cst_38 = arith.constant dense<0.000000e+00> : vector<4x256xf32>
    %33 = tpu.matmul %30, %32, %cst_38 {dimension_numbers = #tpu.dot_dimension_numbers<[1], [0], [0], [1], [0, 0, 1, 1], [], []>} : vector<4x256xf32>, vector<256x256xf32>, vector<4x256xf32> -> vector<4x256xf32>
    %34 = arith.addf %27, %33 : vector<4x256xf32>
    %c2_39 = arith.constant 2 : index
    %c0_40 = arith.constant 0 : index
    %c0_41 = arith.constant 0 : index
    %35 = vector.load %arg11[%c2_39, %c0_40, %c0_41] : memref<5x4x40xf32, #tpu.memory_space<vmem>>, vector<1x4x40xf32>
    %36 = vector.shape_cast %35 : vector<1x4x40xf32> to vector<4x40xf32>
    %cst_42 = arith.constant dense<0.000000e+00> : vector<4x256xf32>
    %37 = tpu.matmul %36, %21, %cst_42 {dimension_numbers = #tpu.dot_dimension_numbers<[1], [0], [0], [1], [0, 0, 1, 1], [], []>} : vector<4x40xf32>, vector<40x256xf32>, vector<4x256xf32> -> vector<4x256xf32>
    %38 = arith.addf %34, %37 : vector<4x256xf32>
    %c3_43 = arith.constant 3 : index
    %c0_44 = arith.constant 0 : index
    %c0_45 = arith.constant 0 : index
    %39 = vector.load %arg11[%c3_43, %c0_44, %c0_45] : memref<5x4x40xf32, #tpu.memory_space<vmem>>, vector<1x4x40xf32>
    %40 = vector.shape_cast %39 : vector<1x4x40xf32> to vector<4x40xf32>
    %cst_46 = arith.constant dense<0.000000e+00> : vector<4x256xf32>
    %41 = tpu.matmul %40, %21, %cst_46 {dimension_numbers = #tpu.dot_dimension_numbers<[1], [0], [0], [1], [0, 0, 1, 1], [], []>} : vector<4x40xf32>, vector<40x256xf32>, vector<4x256xf32> -> vector<4x256xf32>
    %c6 = arith.constant 6 : index
    %c0_47 = arith.constant 0 : index
    %c0_48 = arith.constant 0 : index
    %42 = vector.load %arg2[%c6, %c0_47, %c0_48] : memref<8x256x256xf32, #tpu.memory_space<vmem>>, vector<1x256x256xf32>
    %43 = vector.shape_cast %42 : vector<1x256x256xf32> to vector<256x256xf32>
    %cst_49 = arith.constant dense<0.000000e+00> : vector<4x256xf32>
    %44 = tpu.matmul %41, %43, %cst_49 {dimension_numbers = #tpu.dot_dimension_numbers<[1], [0], [0], [1], [0, 0, 1, 1], [], []>} : vector<4x256xf32>, vector<256x256xf32>, vector<4x256xf32> -> vector<4x256xf32>
    %45 = arith.addf %38, %44 : vector<4x256xf32>
    %c4_50 = arith.constant 4 : index
    %c0_51 = arith.constant 0 : index
    %c0_52 = arith.constant 0 : index
    %46 = vector.load %arg11[%c4_50, %c0_51, %c0_52] : memref<5x4x40xf32, #tpu.memory_space<vmem>>, vector<1x4x40xf32>
    %47 = vector.shape_cast %46 : vector<1x4x40xf32> to vector<4x40xf32>
    %cst_53 = arith.constant dense<0.000000e+00> : vector<4x256xf32>
    %48 = tpu.matmul %47, %21, %cst_53 {dimension_numbers = #tpu.dot_dimension_numbers<[1], [0], [0], [1], [0, 0, 1, 1], [], []>} : vector<4x40xf32>, vector<40x256xf32>, vector<4x256xf32> -> vector<4x256xf32>
    %c7 = arith.constant 7 : index
    %c0_54 = arith.constant 0 : index
    %c0_55 = arith.constant 0 : index
    %49 = vector.load %arg2[%c7, %c0_54, %c0_55] : memref<8x256x256xf32, #tpu.memory_space<vmem>>, vector<1x256x256xf32>
    %50 = vector.shape_cast %49 : vector<1x256x256xf32> to vector<256x256xf32>
    %cst_56 = arith.constant dense<0.000000e+00> : vector<4x256xf32>
    %51 = tpu.matmul %48, %50, %cst_56 {dimension_numbers = #tpu.dot_dimension_numbers<[1], [0], [0], [1], [0, 0, 1, 1], [], []>} : vector<4x256xf32>, vector<256x256xf32>, vector<4x256xf32> -> vector<4x256xf32>
    %52 = arith.addf %45, %51 : vector<4x256xf32>
    %c0_57 = arith.constant 0 : index
    %c0_58 = arith.constant 0 : index
    %53 = vector.load %arg12[%c0_57, %c0_58] : memref<4x1xf32, #tpu.memory_space<vmem>>, vector<4x1xf32>
    %54 = vector.broadcast %53 : vector<4x1xf32> to vector<4x256xf32>
    %55 = arith.addf %52, %54 : vector<4x256xf32>
    %cst_59 = arith.constant 0.000000e+00 : f32
    %56 = vector.broadcast %cst_59 : f32 to vector<4x256xf32>
    %57 = arith.maximumf %55, %56 : vector<4x256xf32>
    %c6_60 = arith.constant 6 : index
    %c0_61 = arith.constant 0 : index
    %c0_62 = arith.constant 0 : index
    %58 = vector.load %arg2[%c6_60, %c0_61, %c0_62] : memref<8x256x256xf32, #tpu.memory_space<vmem>>, vector<1x256x256xf32>
    %59 = vector.shape_cast %58 : vector<1x256x256xf32> to vector<256x256xf32>
    %cst_63 = arith.constant dense<0.000000e+00> : vector<4x256xf32>
    %60 = tpu.matmul %57, %59, %cst_63 {dimension_numbers = #tpu.dot_dimension_numbers<[1], [0], [0], [1], [0, 0, 1, 1], [], []>} : vector<4x256xf32>, vector<256x256xf32>, vector<4x256xf32> -> vector<4x256xf32>
    %61 = arith.maximumf %57, %60 : vector<4x256xf32>
    %c2_64 = arith.constant 2 : index
    %c0_65 = arith.constant 0 : index
    %c0_66 = arith.constant 0 : index
    %62 = vector.load %arg2[%c2_64, %c0_65, %c0_66] : memref<8x256x256xf32, #tpu.memory_space<vmem>>, vector<1x256x256xf32>
    %63 = vector.shape_cast %62 : vector<1x256x256xf32> to vector<256x256xf32>
    %cst_67 = arith.constant dense<0.000000e+00> : vector<4x256xf32>
    %64 = tpu.matmul %61, %63, %cst_67 {dimension_numbers = #tpu.dot_dimension_numbers<[1], [0], [0], [1], [0, 0, 1, 1], [], []>} : vector<4x256xf32>, vector<256x256xf32>, vector<4x256xf32> -> vector<4x256xf32>
    %65 = arith.maximumf %61, %64 : vector<4x256xf32>
    %c0_68 = arith.constant 0 : index
    %c0_69 = arith.constant 0 : index
    %66 = vector.load %arg4[%c0_68, %c0_69] : memref<256x64xf32, #tpu.memory_space<vmem>>, vector<256x64xf32>
    %cst_70 = arith.constant dense<0.000000e+00> : vector<4x64xf32>
    %67 = tpu.matmul %65, %66, %cst_70 {dimension_numbers = #tpu.dot_dimension_numbers<[1], [0], [0], [1], [0, 0, 1, 1], [], []>} : vector<4x256xf32>, vector<256x64xf32>, vector<4x64xf32> -> vector<4x64xf32>
    %c0_71 = arith.constant 0 : index
    %c0_72 = arith.constant 0 : index
    %c0_73 = arith.constant 0 : index
    %68 = vector.load %arg3[%c0_71, %c0_72, %c0_73] : memref<8x64x64xf32, #tpu.memory_space<vmem>>, vector<1x64x64xf32>
    %69 = vector.shape_cast %68 : vector<1x64x64xf32> to vector<64x64xf32>
    %cst_74 = arith.constant dense<0.000000e+00> : vector<4x64xf32>
    %70 = tpu.matmul %67, %69, %cst_74 {dimension_numbers = #tpu.dot_dimension_numbers<[1], [0], [0], [1], [0, 0, 1, 1], [], []>} : vector<4x64xf32>, vector<64x64xf32>, vector<4x64xf32> -> vector<4x64xf32>
    %c0_75 = arith.constant 0 : index
    %c0_76 = arith.constant 0 : index
    %71 = vector.load %arg20[%c0_75, %c0_76] : memref<80x256xf32, #tpu.memory_space<vmem>>, vector<4x64xf32>
    tpu.vector_store %arg20[%c0_75, %c0_76], %70 {strides = array<i32>} : memref<80x256xf32, #tpu.memory_space<vmem>>, vector<4x64xf32>,
    %c1_77 = arith.constant 1 : index
    %c0_78 = arith.constant 0 : index
    %c0_79 = arith.constant 0 : index
    %72 = vector.load %arg3[%c1_77, %c0_78, %c0_79] : memref<8x64x64xf32, #tpu.memory_space<vmem>>, vector<1x64x64xf32>
    %73 = vector.shape_cast %72 : vector<1x64x64xf32> to vector<64x64xf32>
    %cst_80 = arith.constant dense<0.000000e+00> : vector<4x64xf32>
    %74 = tpu.matmul %67, %73, %cst_80 {dimension_numbers = #tpu.dot_dimension_numbers<[1], [0], [0], [1], [0, 0, 1, 1], [], []>} : vector<4x64xf32>, vector<64x64xf32>, vector<4x64xf32> -> vector<4x64xf32>
    %c8_81 = arith.constant 8 : index
    %c0_82 = arith.constant 0 : index
    %75 = vector.load %arg20[%c8_81, %c0_82] : memref<80x256xf32, #tpu.memory_space<vmem>>, vector<4x64xf32>
    tpu.vector_store %arg20[%c8_81, %c0_82], %74 {strides = array<i32>} : memref<80x256xf32, #tpu.memory_space<vmem>>, vector<4x64xf32>,
    %c16_83 = arith.constant 16 : index
    %c0_84 = arith.constant 0 : index
    %76 = vector.load %arg20[%c16_83, %c0_84] : memref<80x256xf32, #tpu.memory_space<vmem>>, vector<4x64xf32>
    tpu.vector_store %arg20[%c16_83, %c0_84], %67 {strides = array<i32>} : memref<80x256xf32, #tpu.memory_space<vmem>>, vector<4x64xf32>,
    %c2_85 = arith.constant 2 : index
    %c0_86 = arith.constant 0 : index
    %c0_87 = arith.constant 0 : index
    %77 = vector.load %arg3[%c2_85, %c0_86, %c0_87] : memref<8x64x64xf32, #tpu.memory_space<vmem>>, vector<1x64x64xf32>
    %78 = vector.shape_cast %77 : vector<1x64x64xf32> to vector<64x64xf32>
    %cst_88 = arith.constant dense<0.000000e+00> : vector<4x64xf32>
    %79 = tpu.matmul %67, %78, %cst_88 {dimension_numbers = #tpu.dot_dimension_numbers<[1], [0], [0], [1], [0, 0, 1, 1], [], []>} : vector<4x64xf32>, vector<64x64xf32>, vector<4x64xf32> -> vector<4x64xf32>
    %c24_89 = arith.constant 24 : index
    %c0_90 = arith.constant 0 : index
    %80 = vector.load %arg20[%c24_89, %c0_90] : memref<80x256xf32, #tpu.memory_space<vmem>>, vector<4x64xf32>
    tpu.vector_store %arg20[%c24_89, %c0_90], %79 {strides = array<i32>} : memref<80x256xf32, #tpu.memory_space<vmem>>, vector<4x64xf32>,
    %c3_91 = arith.constant 3 : index
    %c0_92 = arith.constant 0 : index
    %c0_93 = arith.constant 0 : index
    %81 = vector.load %arg3[%c3_91, %c0_92, %c0_93] : memref<8x64x64xf32, #tpu.memory_space<vmem>>, vector<1x64x64xf32>
    %82 = vector.shape_cast %81 : vector<1x64x64xf32> to vector<64x64xf32>
    %cst_94 = arith.constant dense<0.000000e+00> : vector<4x64xf32>
    %83 = tpu.matmul %67, %82, %cst_94 {dimension_numbers = #tpu.dot_dimension_numbers<[1], [0], [0], [1], [0, 0, 1, 1], [], []>} : vector<4x64xf32>, vector<64x64xf32>, vector<4x64xf32> -> vector<4x64xf32>
    %c32_95 = arith.constant 32 : index
    %c0_96 = arith.constant 0 : index
    %84 = vector.load %arg20[%c32_95, %c0_96] : memref<80x256xf32, #tpu.memory_space<vmem>>, vector<4x64xf32>
    tpu.vector_store %arg20[%c32_95, %c0_96], %83 {strides = array<i32>} : memref<80x256xf32, #tpu.memory_space<vmem>>, vector<4x64xf32>,
    %c0_97 = arith.constant 0 : index
    %c0_98 = arith.constant 0 : index
    %85 = vector.load %arg20[%c0_97, %c0_98] : memref<80x256xf32, #tpu.memory_space<vmem>>, vector<40x64xf32>
    %c0_99 = arith.constant 0 : index
    %c0_100 = arith.constant 0 : index
    %c0_101 = arith.constant 0 : index
    %86 = vector.load %arg13[%c0_99, %c0_100, %c0_101] : memref<5x16x40xf32, #tpu.memory_space<vmem>>, vector<1x16x40xf32>
    %87 = vector.shape_cast %86 : vector<1x16x40xf32> to vector<16x40xf32>
    %cst_102 = arith.constant dense<0.000000e+00> : vector<16x64xf32>
    %88 = tpu.matmul %87, %85, %cst_102 {dimension_numbers = #tpu.dot_dimension_numbers<[1], [0], [0], [1], [0, 0, 1, 1], [], []>} : vector<16x40xf32>, vector<40x64xf32>, vector<16x64xf32> -> vector<16x64xf32>
    %c4_103 = arith.constant 4 : index
    %c0_104 = arith.constant 0 : index
    %c0_105 = arith.constant 0 : index
    %89 = vector.load %arg3[%c4_103, %c0_104, %c0_105] : memref<8x64x64xf32, #tpu.memory_space<vmem>>, vector<1x64x64xf32>
    %90 = vector.shape_cast %89 : vector<1x64x64xf32> to vector<64x64xf32>
    %cst_106 = arith.constant dense<0.000000e+00> : vector<16x64xf32>
    %91 = tpu.matmul %88, %90, %cst_106 {dimension_numbers = #tpu.dot_dimension_numbers<[1], [0], [0], [1], [0, 0, 1, 1], [], []>} : vector<16x64xf32>, vector<64x64xf32>, vector<16x64xf32> -> vector<16x64xf32>
    %c1_107 = arith.constant 1 : index
    %c0_108 = arith.constant 0 : index
    %c0_109 = arith.constant 0 : index
    %92 = vector.load %arg13[%c1_107, %c0_108, %c0_109] : memref<5x16x40xf32, #tpu.memory_space<vmem>>, vector<1x16x40xf32>
    %93 = vector.shape_cast %92 : vector<1x16x40xf32> to vector<16x40xf32>
    %cst_110 = arith.constant dense<0.000000e+00> : vector<16x64xf32>
    %94 = tpu.matmul %93, %85, %cst_110 {dimension_numbers = #tpu.dot_dimension_numbers<[1], [0], [0], [1], [0, 0, 1, 1], [], []>} : vector<16x40xf32>, vector<40x64xf32>, vector<16x64xf32> -> vector<16x64xf32>
    %c5_111 = arith.constant 5 : index
    %c0_112 = arith.constant 0 : index
    %c0_113 = arith.constant 0 : index
    %95 = vector.load %arg3[%c5_111, %c0_112, %c0_113] : memref<8x64x64xf32, #tpu.memory_space<vmem>>, vector<1x64x64xf32>
    %96 = vector.shape_cast %95 : vector<1x64x64xf32> to vector<64x64xf32>
    %cst_114 = arith.constant dense<0.000000e+00> : vector<16x64xf32>
    %97 = tpu.matmul %94, %96, %cst_114 {dimension_numbers = #tpu.dot_dimension_numbers<[1], [0], [0], [1], [0, 0, 1, 1], [], []>} : vector<16x64xf32>, vector<64x64xf32>, vector<16x64xf32> -> vector<16x64xf32>
    %98 = arith.addf %91, %97 : vector<16x64xf32>
    %c2_115 = arith.constant 2 : index
    %c0_116 = arith.constant 0 : index
    %c0_117 = arith.constant 0 : index
    %99 = vector.load %arg13[%c2_115, %c0_116, %c0_117] : memref<5x16x40xf32, #tpu.memory_space<vmem>>, vector<1x16x40xf32>
    %100 = vector.shape_cast %99 : vector<1x16x40xf32> to vector<16x40xf32>
    %cst_118 = arith.constant dense<0.000000e+00> : vector<16x64xf32>
    %101 = tpu.matmul %100, %85, %cst_118 {dimension_numbers = #tpu.dot_dimension_numbers<[1], [0], [0], [1], [0, 0, 1, 1], [], []>} : vector<16x40xf32>, vector<40x64xf32>, vector<16x64xf32> -> vector<16x64xf32>
    %102 = arith.addf %98, %101 : vector<16x64xf32>
    %c3_119 = arith.constant 3 : index
    %c0_120 = arith.constant 0 : index
    %c0_121 = arith.constant 0 : index
    %103 = vector.load %arg13[%c3_119, %c0_120, %c0_121] : memref<5x16x40xf32, #tpu.memory_space<vmem>>, vector<1x16x40xf32>
    %104 = vector.shape_cast %103 : vector<1x16x40xf32> to vector<16x40xf32>
    %cst_122 = arith.constant dense<0.000000e+00> : vector<16x64xf32>
    %105 = tpu.matmul %104, %85, %cst_122 {dimension_numbers = #tpu.dot_dimension_numbers<[1], [0], [0], [1], [0, 0, 1, 1], [], []>} : vector<16x40xf32>, vector<40x64xf32>, vector<16x64xf32> -> vector<16x64xf32>
    %c6_123 = arith.constant 6 : index
    %c0_124 = arith.constant 0 : index
    %c0_125 = arith.constant 0 : index
    %106 = vector.load %arg3[%c6_123, %c0_124, %c0_125] : memref<8x64x64xf32, #tpu.memory_space<vmem>>, vector<1x64x64xf32>
    %107 = vector.shape_cast %106 : vector<1x64x64xf32> to vector<64x64xf32>
    %cst_126 = arith.constant dense<0.000000e+00> : vector<16x64xf32>
    %108 = tpu.matmul %105, %107, %cst_126 {dimension_numbers = #tpu.dot_dimension_numbers<[1], [0], [0], [1], [0, 0, 1, 1], [], []>} : vector<16x64xf32>, vector<64x64xf32>, vector<16x64xf32> -> vector<16x64xf32>
    %109 = arith.addf %102, %108 : vector<16x64xf32>
    %c4_127 = arith.constant 4 : index
    %c0_128 = arith.constant 0 : index
    %c0_129 = arith.constant 0 : index
    %110 = vector.load %arg13[%c4_127, %c0_128, %c0_129] : memref<5x16x40xf32, #tpu.memory_space<vmem>>, vector<1x16x40xf32>
    %111 = vector.shape_cast %110 : vector<1x16x40xf32> to vector<16x40xf32>
    %cst_130 = arith.constant dense<0.000000e+00> : vector<16x64xf32>
    %112 = tpu.matmul %111, %85, %cst_130 {dimension_numbers = #tpu.dot_dimension_numbers<[1], [0], [0], [1], [0, 0, 1, 1], [], []>} : vector<16x40xf32>, vector<40x64xf32>, vector<16x64xf32> -> vector<16x64xf32>
    %c7_131 = arith.constant 7 : index
    %c0_132 = arith.constant 0 : index
    %c0_133 = arith.constant 0 : index
    %113 = vector.load %arg3[%c7_131, %c0_132, %c0_133] : memref<8x64x64xf32, #tpu.memory_space<vmem>>, vector<1x64x64xf32>
    %114 = vector.shape_cast %113 : vector<1x64x64xf32> to vector<64x64xf32>
    %cst_134 = arith.constant dense<0.000000e+00> : vector<16x64xf32>
    %115 = tpu.matmul %112, %114, %cst_134 {dimension_numbers = #tpu.dot_dimension_numbers<[1], [0], [0], [1], [0, 0, 1, 1], [], []>} : vector<16x64xf32>, vector<64x64xf32>, vector<16x64xf32> -> vector<16x64xf32>
    %116 = arith.addf %109, %115 : vector<16x64xf32>
    %c0_135 = arith.constant 0 : index
    %c0_136 = arith.constant 0 : index
    %117 = vector.load %arg14[%c0_135, %c0_136] : memref<16x1xf32, #tpu.memory_space<vmem>>, vector<16x1xf32>
    %118 = vector.broadcast %117 : vector<16x1xf32> to vector<16x64xf32>
    %119 = arith.addf %116, %118 : vector<16x64xf32>
    %cst_137 = arith.constant 0.000000e+00 : f32
    %120 = vector.broadcast %cst_137 : f32 to vector<16x64xf32>
    %121 = arith.maximumf %119, %120 : vector<16x64xf32>
    %c6_138 = arith.constant 6 : index
    %c0_139 = arith.constant 0 : index
    %c0_140 = arith.constant 0 : index
    %122 = vector.load %arg3[%c6_138, %c0_139, %c0_140] : memref<8x64x64xf32, #tpu.memory_space<vmem>>, vector<1x64x64xf32>
    %123 = vector.shape_cast %122 : vector<1x64x64xf32> to vector<64x64xf32>
    %cst_141 = arith.constant dense<0.000000e+00> : vector<16x64xf32>
    %124 = tpu.matmul %121, %123, %cst_141 {dimension_numbers = #tpu.dot_dimension_numbers<[1], [0], [0], [1], [0, 0, 1, 1], [], []>} : vector<16x64xf32>, vector<64x64xf32>, vector<16x64xf32> -> vector<16x64xf32>
    %125 = arith.maximumf %121, %124 : vector<16x64xf32>
    %c2_142 = arith.constant 2 : index
    %c0_143 = arith.constant 0 : index
    %c0_144 = arith.constant 0 : index
    %126 = vector.load %arg3[%c2_142, %c0_143, %c0_144] : memref<8x64x64xf32, #tpu.memory_space<vmem>>, vector<1x64x64xf32>
    %127 = vector.shape_cast %126 : vector<1x64x64xf32> to vector<64x64xf32>
    %cst_145 = arith.constant dense<0.000000e+00> : vector<16x64xf32>
    %128 = tpu.matmul %125, %127, %cst_145 {dimension_numbers = #tpu.dot_dimension_numbers<[1], [0], [0], [1], [0, 0, 1, 1], [], []>} : vector<16x64xf32>, vector<64x64xf32>, vector<16x64xf32> -> vector<16x64xf32>
    %129 = arith.maximumf %125, %128 : vector<16x64xf32>
    %c0_146 = arith.constant 0 : index
    %c0_147 = arith.constant 0 : index
    %130 = vector.load %arg5[%c0_146, %c0_147] : memref<64x16xf32, #tpu.memory_space<vmem>>, vector<64x16xf32>
    %cst_148 = arith.constant dense<0.000000e+00> : vector<16x16xf32>
    %131 = tpu.matmul %129, %130, %cst_148 {dimension_numbers = #tpu.dot_dimension_numbers<[1], [0], [0], [1], [0, 0, 1, 1], [], []>} : vector<16x64xf32>, vector<64x16xf32>, vector<16x16xf32> -> vector<16x16xf32>
    %c0_149 = arith.constant 0 : index
    %c0_150 = arith.constant 0 : index
    %132 = vector.load %arg6[%c0_149, %c0_150] : memref<16x64xf32, #tpu.memory_space<vmem>>, vector<16x64xf32>
    %cst_151 = arith.constant dense<0.000000e+00> : vector<16x64xf32>
    %133 = tpu.matmul %131, %132, %cst_151 {dimension_numbers = #tpu.dot_dimension_numbers<[1], [0], [0], [1], [0, 0, 1, 1], [], []>} : vector<16x16xf32>, vector<16x64xf32>, vector<16x64xf32> -> vector<16x64xf32>
    %c0_152 = arith.constant 0 : index
    %c0_153 = arith.constant 0 : index
    %c0_154 = arith.constant 0 : index
    %134 = vector.load %arg3[%c0_152, %c0_153, %c0_154] : memref<8x64x64xf32, #tpu.memory_space<vmem>>, vector<1x64x64xf32>
    %135 = vector.shape_cast %134 : vector<1x64x64xf32> to vector<64x64xf32>
    %cst_155 = arith.constant dense<0.000000e+00> : vector<16x64xf32>
    %136 = tpu.matmul %133, %135, %cst_155 {dimension_numbers = #tpu.dot_dimension_numbers<[1], [0], [0], [1], [0, 0, 1, 1], [], []>} : vector<16x64xf32>, vector<64x64xf32>, vector<16x64xf32> -> vector<16x64xf32>
    %c0_156 = arith.constant 0 : index
    %c0_157 = arith.constant 0 : index
    %137 = vector.load %arg20[%c0_156, %c0_157] : memref<80x256xf32, #tpu.memory_space<vmem>>, vector<16x64xf32>
    tpu.vector_store %arg20[%c0_156, %c0_157], %136 {strides = array<i32>} : memref<80x256xf32, #tpu.memory_space<vmem>>, vector<16x64xf32>,
    %c1_158 = arith.constant 1 : index
    %c0_159 = arith.constant 0 : index
    %c0_160 = arith.constant 0 : index
    %138 = vector.load %arg3[%c1_158, %c0_159, %c0_160] : memref<8x64x64xf32, #tpu.memory_space<vmem>>, vector<1x64x64xf32>
    %139 = vector.shape_cast %138 : vector<1x64x64xf32> to vector<64x64xf32>
    %cst_161 = arith.constant dense<0.000000e+00> : vector<16x64xf32>
    %140 = tpu.matmul %133, %139, %cst_161 {dimension_numbers = #tpu.dot_dimension_numbers<[1], [0], [0], [1], [0, 0, 1, 1], [], []>} : vector<16x64xf32>, vector<64x64xf32>, vector<16x64xf32> -> vector<16x64xf32>
    %c16_162 = arith.constant 16 : index
    %c0_163 = arith.constant 0 : index
    %141 = vector.load %arg20[%c16_162, %c0_163] : memref<80x256xf32, #tpu.memory_space<vmem>>, vector<16x64xf32>
    tpu.vector_store %arg20[%c16_162, %c0_163], %140 {strides = array<i32>} : memref<80x256xf32, #tpu.memory_space<vmem>>, vector<16x64xf32>,
    %c32_164 = arith.constant 32 : index
    %c0_165 = arith.constant 0 : index
    %142 = vector.load %arg20[%c32_164, %c0_165] : memref<80x256xf32, #tpu.memory_space<vmem>>, vector<16x64xf32>
    tpu.vector_store %arg20[%c32_164, %c0_165], %133 {strides = array<i32>} : memref<80x256xf32, #tpu.memory_space<vmem>>, vector<16x64xf32>,
    %c2_166 = arith.constant 2 : index
    %c0_167 = arith.constant 0 : index
    %c0_168 = arith.constant 0 : index
    %143 = vector.load %arg3[%c2_166, %c0_167, %c0_168] : memref<8x64x64xf32, #tpu.memory_space<vmem>>, vector<1x64x64xf32>
    %144 = vector.shape_cast %143 : vector<1x64x64xf32> to vector<64x64xf32>
    %cst_169 = arith.constant dense<0.000000e+00> : vector<16x64xf32>
    %145 = tpu.matmul %133, %144, %cst_169 {dimension_numbers = #tpu.dot_dimension_numbers<[1], [0], [0], [1], [0, 0, 1, 1], [], []>} : vector<16x64xf32>, vector<64x64xf32>, vector<16x64xf32> -> vector<16x64xf32>
    %c48 = arith.constant 48 : index
    %c0_170 = arith.constant 0 : index
    %146 = vector.load %arg20[%c48, %c0_170] : memref<80x256xf32, #tpu.memory_space<vmem>>, vector<16x64xf32>
    tpu.vector_store %arg20[%c48, %c0_170], %145 {strides = array<i32>} : memref<80x256xf32, #tpu.memory_space<vmem>>, vector<16x64xf32>,
    %c3_171 = arith.constant 3 : index
    %c0_172 = arith.constant 0 : index
    %c0_173 = arith.constant 0 : index
    %147 = vector.load %arg3[%c3_171, %c0_172, %c0_173] : memref<8x64x64xf32, #tpu.memory_space<vmem>>, vector<1x64x64xf32>
    %148 = vector.shape_cast %147 : vector<1x64x64xf32> to vector<64x64xf32>
    %cst_174 = arith.constant dense<0.000000e+00> : vector<16x64xf32>
    %149 = tpu.matmul %133, %148, %cst_174 {dimension_numbers = #tpu.dot_dimension_numbers<[1], [0], [0], [1], [0, 0, 1, 1], [], []>} : vector<16x64xf32>, vector<64x64xf32>, vector<16x64xf32> -> vector<16x64xf32>
    %c64 = arith.constant 64 : index
    %c0_175 = arith.constant 0 : index
    %150 = vector.load %arg20[%c64, %c0_175] : memref<80x256xf32, #tpu.memory_space<vmem>>, vector<16x64xf32>
    tpu.vector_store %arg20[%c64, %c0_175], %149 {strides = array<i32>} : memref<80x256xf32, #tpu.memory_space<vmem>>, vector<16x64xf32>,
    %c0_176 = arith.constant 0 : index
    %c0_177 = arith.constant 0 : index
    %151 = vector.load %arg20[%c0_176, %c0_177] : memref<80x256xf32, #tpu.memory_space<vmem>>, vector<80x64xf32>
    %c0_178 = arith.constant 0 : index
    %c0_179 = arith.constant 0 : index
    %c0_180 = arith.constant 0 : index
    %152 = vector.load %arg15[%c0_178, %c0_179, %c0_180] : memref<5x4x80xf32, #tpu.memory_space<vmem>>, vector<1x4x80xf32>
    %153 = vector.shape_cast %152 : vector<1x4x80xf32> to vector<4x80xf32>
    %cst_181 = arith.constant dense<0.000000e+00> : vector<4x64xf32>
    %154 = tpu.matmul %153, %151, %cst_181 {dimension_numbers = #tpu.dot_dimension_numbers<[1], [0], [0], [1], [0, 0, 1, 1], [], []>} : vector<4x80xf32>, vector<80x64xf32>, vector<4x64xf32> -> vector<4x64xf32>
    %c4_182 = arith.constant 4 : index
    %c0_183 = arith.constant 0 : index
    %c0_184 = arith.constant 0 : index
    %155 = vector.load %arg3[%c4_182, %c0_183, %c0_184] : memref<8x64x64xf32, #tpu.memory_space<vmem>>, vector<1x64x64xf32>
    %156 = vector.shape_cast %155 : vector<1x64x64xf32> to vector<64x64xf32>
    %cst_185 = arith.constant dense<0.000000e+00> : vector<4x64xf32>
    %157 = tpu.matmul %154, %156, %cst_185 {dimension_numbers = #tpu.dot_dimension_numbers<[1], [0], [0], [1], [0, 0, 1, 1], [], []>} : vector<4x64xf32>, vector<64x64xf32>, vector<4x64xf32> -> vector<4x64xf32>
    %c1_186 = arith.constant 1 : index
    %c0_187 = arith.constant 0 : index
    %c0_188 = arith.constant 0 : index
    %158 = vector.load %arg15[%c1_186, %c0_187, %c0_188] : memref<5x4x80xf32, #tpu.memory_space<vmem>>, vector<1x4x80xf32>
    %159 = vector.shape_cast %158 : vector<1x4x80xf32> to vector<4x80xf32>
    %cst_189 = arith.constant dense<0.000000e+00> : vector<4x64xf32>
    %160 = tpu.matmul %159, %151, %cst_189 {dimension_numbers = #tpu.dot_dimension_numbers<[1], [0], [0], [1], [0, 0, 1, 1], [], []>} : vector<4x80xf32>, vector<80x64xf32>, vector<4x64xf32> -> vector<4x64xf32>
    %c5_190 = arith.constant 5 : index
    %c0_191 = arith.constant 0 : index
    %c0_192 = arith.constant 0 : index
    %161 = vector.load %arg3[%c5_190, %c0_191, %c0_192] : memref<8x64x64xf32, #tpu.memory_space<vmem>>, vector<1x64x64xf32>
    %162 = vector.shape_cast %161 : vector<1x64x64xf32> to vector<64x64xf32>
    %cst_193 = arith.constant dense<0.000000e+00> : vector<4x64xf32>
    %163 = tpu.matmul %160, %162, %cst_193 {dimension_numbers = #tpu.dot_dimension_numbers<[1], [0], [0], [1], [0, 0, 1, 1], [], []>} : vector<4x64xf32>, vector<64x64xf32>, vector<4x64xf32> -> vector<4x64xf32>
    %164 = arith.addf %157, %163 : vector<4x64xf32>
    %c2_194 = arith.constant 2 : index
    %c0_195 = arith.constant 0 : index
    %c0_196 = arith.constant 0 : index
    %165 = vector.load %arg15[%c2_194, %c0_195, %c0_196] : memref<5x4x80xf32, #tpu.memory_space<vmem>>, vector<1x4x80xf32>
    %166 = vector.shape_cast %165 : vector<1x4x80xf32> to vector<4x80xf32>
    %cst_197 = arith.constant dense<0.000000e+00> : vector<4x64xf32>
    %167 = tpu.matmul %166, %151, %cst_197 {dimension_numbers = #tpu.dot_dimension_numbers<[1], [0], [0], [1], [0, 0, 1, 1], [], []>} : vector<4x80xf32>, vector<80x64xf32>, vector<4x64xf32> -> vector<4x64xf32>
    %168 = arith.addf %164, %167 : vector<4x64xf32>
    %c3_198 = arith.constant 3 : index
    %c0_199 = arith.constant 0 : index
    %c0_200 = arith.constant 0 : index
    %169 = vector.load %arg15[%c3_198, %c0_199, %c0_200] : memref<5x4x80xf32, #tpu.memory_space<vmem>>, vector<1x4x80xf32>
    %170 = vector.shape_cast %169 : vector<1x4x80xf32> to vector<4x80xf32>
    %cst_201 = arith.constant dense<0.000000e+00> : vector<4x64xf32>
    %171 = tpu.matmul %170, %151, %cst_201 {dimension_numbers = #tpu.dot_dimension_numbers<[1], [0], [0], [1], [0, 0, 1, 1], [], []>} : vector<4x80xf32>, vector<80x64xf32>, vector<4x64xf32> -> vector<4x64xf32>
    %c6_202 = arith.constant 6 : index
    %c0_203 = arith.constant 0 : index
    %c0_204 = arith.constant 0 : index
    %172 = vector.load %arg3[%c6_202, %c0_203, %c0_204] : memref<8x64x64xf32, #tpu.memory_space<vmem>>, vector<1x64x64xf32>
    %173 = vector.shape_cast %172 : vector<1x64x64xf32> to vector<64x64xf32>
    %cst_205 = arith.constant dense<0.000000e+00> : vector<4x64xf32>
    %174 = tpu.matmul %171, %173, %cst_205 {dimension_numbers = #tpu.dot_dimension_numbers<[1], [0], [0], [1], [0, 0, 1, 1], [], []>} : vector<4x64xf32>, vector<64x64xf32>, vector<4x64xf32> -> vector<4x64xf32>
    %175 = arith.addf %168, %174 : vector<4x64xf32>
    %c4_206 = arith.constant 4 : index
    %c0_207 = arith.constant 0 : index
    %c0_208 = arith.constant 0 : index
    %176 = vector.load %arg15[%c4_206, %c0_207, %c0_208] : memref<5x4x80xf32, #tpu.memory_space<vmem>>, vector<1x4x80xf32>
    %177 = vector.shape_cast %176 : vector<1x4x80xf32> to vector<4x80xf32>
    %cst_209 = arith.constant dense<0.000000e+00> : vector<4x64xf32>
    %178 = tpu.matmul %177, %151, %cst_209 {dimension_numbers = #tpu.dot_dimension_numbers<[1], [0], [0], [1], [0, 0, 1, 1], [], []>} : vector<4x80xf32>, vector<80x64xf32>, vector<4x64xf32> -> vector<4x64xf32>
    %c7_210 = arith.constant 7 : index
    %c0_211 = arith.constant 0 : index
    %c0_212 = arith.constant 0 : index
    %179 = vector.load %arg3[%c7_210, %c0_211, %c0_212] : memref<8x64x64xf32, #tpu.memory_space<vmem>>, vector<1x64x64xf32>
    %180 = vector.shape_cast %179 : vector<1x64x64xf32> to vector<64x64xf32>
    %cst_213 = arith.constant dense<0.000000e+00> : vector<4x64xf32>
    %181 = tpu.matmul %178, %180, %cst_213 {dimension_numbers = #tpu.dot_dimension_numbers<[1], [0], [0], [1], [0, 0, 1, 1], [], []>} : vector<4x64xf32>, vector<64x64xf32>, vector<4x64xf32> -> vector<4x64xf32>
    %182 = arith.addf %175, %181 : vector<4x64xf32>
    %c0_214 = arith.constant 0 : index
    %c0_215 = arith.constant 0 : index
    %183 = vector.load %arg16[%c0_214, %c0_215] : memref<4x1xf32, #tpu.memory_space<vmem>>, vector<4x1xf32>
    %184 = vector.broadcast %183 : vector<4x1xf32> to vector<4x64xf32>
    %185 = arith.addf %182, %184 : vector<4x64xf32>
    %cst_216 = arith.constant 0.000000e+00 : f32
    %186 = vector.broadcast %cst_216 : f32 to vector<4x64xf32>
    %187 = arith.maximumf %185, %186 : vector<4x64xf32>
    %c0_217 = arith.constant 0 : index
    %c0_218 = arith.constant 0 : index
    %188 = vector.load %arg7[%c0_217, %c0_218] : memref<64x256xf32, #tpu.memory_space<vmem>>, vector<64x256xf32>
    %cst_219 = arith.constant dense<0.000000e+00> : vector<4x256xf32>
    %189 = tpu.matmul %187, %188, %cst_219 {dimension_numbers = #tpu.dot_dimension_numbers<[1], [0], [0], [1], [0, 0, 1, 1], [], []>} : vector<4x64xf32>, vector<64x256xf32>, vector<4x256xf32> -> vector<4x256xf32>
    %c0_220 = arith.constant 0 : index
    %c0_221 = arith.constant 0 : index
    %c0_222 = arith.constant 0 : index
    %190 = vector.load %arg2[%c0_220, %c0_221, %c0_222] : memref<8x256x256xf32, #tpu.memory_space<vmem>>, vector<1x256x256xf32>
    %191 = vector.shape_cast %190 : vector<1x256x256xf32> to vector<256x256xf32>
    %cst_223 = arith.constant dense<0.000000e+00> : vector<4x256xf32>
    %192 = tpu.matmul %189, %191, %cst_223 {dimension_numbers = #tpu.dot_dimension_numbers<[1], [0], [0], [1], [0, 0, 1, 1], [], []>} : vector<4x256xf32>, vector<256x256xf32>, vector<4x256xf32> -> vector<4x256xf32>
    %c0_224 = arith.constant 0 : index
    %c0_225 = arith.constant 0 : index
    %193 = vector.load %arg20[%c0_224, %c0_225] : memref<80x256xf32, #tpu.memory_space<vmem>>, vector<4x256xf32>
    tpu.vector_store %arg20[%c0_224, %c0_225], %192 {strides = array<i32>} : memref<80x256xf32, #tpu.memory_space<vmem>>, vector<4x256xf32>,
    %c1_226 = arith.constant 1 : index
    %c0_227 = arith.constant 0 : index
    %c0_228 = arith.constant 0 : index
    %194 = vector.load %arg2[%c1_226, %c0_227, %c0_228] : memref<8x256x256xf32, #tpu.memory_space<vmem>>, vector<1x256x256xf32>
    %195 = vector.shape_cast %194 : vector<1x256x256xf32> to vector<256x256xf32>
    %cst_229 = arith.constant dense<0.000000e+00> : vector<4x256xf32>
    %196 = tpu.matmul %189, %195, %cst_229 {dimension_numbers = #tpu.dot_dimension_numbers<[1], [0], [0], [1], [0, 0, 1, 1], [], []>} : vector<4x256xf32>, vector<256x256xf32>, vector<4x256xf32> -> vector<4x256xf32>
    %c8_230 = arith.constant 8 : index
    %c0_231 = arith.constant 0 : index
    %197 = vector.load %arg20[%c8_230, %c0_231] : memref<80x256xf32, #tpu.memory_space<vmem>>, vector<4x256xf32>
    tpu.vector_store %arg20[%c8_230, %c0_231], %196 {strides = array<i32>} : memref<80x256xf32, #tpu.memory_space<vmem>>, vector<4x256xf32>,
    %c16_232 = arith.constant 16 : index
    %c0_233 = arith.constant 0 : index
    %198 = vector.load %arg20[%c16_232, %c0_233] : memref<80x256xf32, #tpu.memory_space<vmem>>, vector<4x256xf32>
    tpu.vector_store %arg20[%c16_232, %c0_233], %189 {strides = array<i32>} : memref<80x256xf32, #tpu.memory_space<vmem>>, vector<4x256xf32>,
    %c2_234 = arith.constant 2 : index
    %c0_235 = arith.constant 0 : index
    %c0_236 = arith.constant 0 : index
    %199 = vector.load %arg2[%c2_234, %c0_235, %c0_236] : memref<8x256x256xf32, #tpu.memory_space<vmem>>, vector<1x256x256xf32>
    %200 = vector.shape_cast %199 : vector<1x256x256xf32> to vector<256x256xf32>
    %cst_237 = arith.constant dense<0.000000e+00> : vector<4x256xf32>
    %201 = tpu.matmul %189, %200, %cst_237 {dimension_numbers = #tpu.dot_dimension_numbers<[1], [0], [0], [1], [0, 0, 1, 1], [], []>} : vector<4x256xf32>, vector<256x256xf32>, vector<4x256xf32> -> vector<4x256xf32>
    %c24_238 = arith.constant 24 : index
    %c0_239 = arith.constant 0 : index
    %202 = vector.load %arg20[%c24_238, %c0_239] : memref<80x256xf32, #tpu.memory_space<vmem>>, vector<4x256xf32>
    tpu.vector_store %arg20[%c24_238, %c0_239], %201 {strides = array<i32>} : memref<80x256xf32, #tpu.memory_space<vmem>>, vector<4x256xf32>,
    %c3_240 = arith.constant 3 : index
    %c0_241 = arith.constant 0 : index
    %c0_242 = arith.constant 0 : index
    %203 = vector.load %arg2[%c3_240, %c0_241, %c0_242] : memref<8x256x256xf32, #tpu.memory_space<vmem>>, vector<1x256x256xf32>
    %204 = vector.shape_cast %203 : vector<1x256x256xf32> to vector<256x256xf32>
    %cst_243 = arith.constant dense<0.000000e+00> : vector<4x256xf32>
    %205 = tpu.matmul %189, %204, %cst_243 {dimension_numbers = #tpu.dot_dimension_numbers<[1], [0], [0], [1], [0, 0, 1, 1], [], []>} : vector<4x256xf32>, vector<256x256xf32>, vector<4x256xf32> -> vector<4x256xf32>
    %c32_244 = arith.constant 32 : index
    %c0_245 = arith.constant 0 : index
    %206 = vector.load %arg20[%c32_244, %c0_245] : memref<80x256xf32, #tpu.memory_space<vmem>>, vector<4x256xf32>
    tpu.vector_store %arg20[%c32_244, %c0_245], %205 {strides = array<i32>} : memref<80x256xf32, #tpu.memory_space<vmem>>, vector<4x256xf32>,
    %c0_246 = arith.constant 0 : index
    %c0_247 = arith.constant 0 : index
    %207 = vector.load %arg20[%c0_246, %c0_247] : memref<80x256xf32, #tpu.memory_space<vmem>>, vector<40x256xf32>
    %c0_248 = arith.constant 0 : index
    %c0_249 = arith.constant 0 : index
    %c0_250 = arith.constant 0 : index
    %208 = vector.load %arg17[%c0_248, %c0_249, %c0_250] : memref<5x1x40xf32, #tpu.memory_space<vmem>>, vector<1x1x40xf32>
    %209 = vector.shape_cast %208 : vector<1x1x40xf32> to vector<1x40xf32>
    %cst_251 = arith.constant dense<0.000000e+00> : vector<1x256xf32>
    %210 = tpu.matmul %209, %207, %cst_251 {dimension_numbers = #tpu.dot_dimension_numbers<[1], [0], [0], [1], [0, 0, 1, 1], [], []>} : vector<1x40xf32>, vector<40x256xf32>, vector<1x256xf32> -> vector<1x256xf32>
    %c4_252 = arith.constant 4 : index
    %c0_253 = arith.constant 0 : index
    %c0_254 = arith.constant 0 : index
    %211 = vector.load %arg2[%c4_252, %c0_253, %c0_254] : memref<8x256x256xf32, #tpu.memory_space<vmem>>, vector<1x256x256xf32>
    %212 = vector.shape_cast %211 : vector<1x256x256xf32> to vector<256x256xf32>
    %cst_255 = arith.constant dense<0.000000e+00> : vector<1x256xf32>
    %213 = tpu.matmul %210, %212, %cst_255 {dimension_numbers = #tpu.dot_dimension_numbers<[1], [0], [0], [1], [0, 0, 1, 1], [], []>} : vector<1x256xf32>, vector<256x256xf32>, vector<1x256xf32> -> vector<1x256xf32>
    %c1_256 = arith.constant 1 : index
    %c0_257 = arith.constant 0 : index
    %c0_258 = arith.constant 0 : index
    %214 = vector.load %arg17[%c1_256, %c0_257, %c0_258] : memref<5x1x40xf32, #tpu.memory_space<vmem>>, vector<1x1x40xf32>
    %215 = vector.shape_cast %214 : vector<1x1x40xf32> to vector<1x40xf32>
    %cst_259 = arith.constant dense<0.000000e+00> : vector<1x256xf32>
    %216 = tpu.matmul %215, %207, %cst_259 {dimension_numbers = #tpu.dot_dimension_numbers<[1], [0], [0], [1], [0, 0, 1, 1], [], []>} : vector<1x40xf32>, vector<40x256xf32>, vector<1x256xf32> -> vector<1x256xf32>
    %c5_260 = arith.constant 5 : index
    %c0_261 = arith.constant 0 : index
    %c0_262 = arith.constant 0 : index
    %217 = vector.load %arg2[%c5_260, %c0_261, %c0_262] : memref<8x256x256xf32, #tpu.memory_space<vmem>>, vector<1x256x256xf32>
    %218 = vector.shape_cast %217 : vector<1x256x256xf32> to vector<256x256xf32>
    %cst_263 = arith.constant dense<0.000000e+00> : vector<1x256xf32>
    %219 = tpu.matmul %216, %218, %cst_263 {dimension_numbers = #tpu.dot_dimension_numbers<[1], [0], [0], [1], [0, 0, 1, 1], [], []>} : vector<1x256xf32>, vector<256x256xf32>, vector<1x256xf32> -> vector<1x256xf32>
    %220 = arith.addf %213, %219 : vector<1x256xf32>
    %c2_264 = arith.constant 2 : index
    %c0_265 = arith.constant 0 : index
    %c0_266 = arith.constant 0 : index
    %221 = vector.load %arg17[%c2_264, %c0_265, %c0_266] : memref<5x1x40xf32, #tpu.memory_space<vmem>>, vector<1x1x40xf32>
    %222 = vector.shape_cast %221 : vector<1x1x40xf32> to vector<1x40xf32>
    %cst_267 = arith.constant dense<0.000000e+00> : vector<1x256xf32>
    %223 = tpu.matmul %222, %207, %cst_267 {dimension_numbers = #tpu.dot_dimension_numbers<[1], [0], [0], [1], [0, 0, 1, 1], [], []>} : vector<1x40xf32>, vector<40x256xf32>, vector<1x256xf32> -> vector<1x256xf32>
    %224 = arith.addf %220, %223 : vector<1x256xf32>
    %c3_268 = arith.constant 3 : index
    %c0_269 = arith.constant 0 : index
    %c0_270 = arith.constant 0 : index
    %225 = vector.load %arg17[%c3_268, %c0_269, %c0_270] : memref<5x1x40xf32, #tpu.memory_space<vmem>>, vector<1x1x40xf32>
    %226 = vector.shape_cast %225 : vector<1x1x40xf32> to vector<1x40xf32>
    %cst_271 = arith.constant dense<0.000000e+00> : vector<1x256xf32>
    %227 = tpu.matmul %226, %207, %cst_271 {dimension_numbers = #tpu.dot_dimension_numbers<[1], [0], [0], [1], [0, 0, 1, 1], [], []>} : vector<1x40xf32>, vector<40x256xf32>, vector<1x256xf32> -> vector<1x256xf32>
    %c6_272 = arith.constant 6 : index
    %c0_273 = arith.constant 0 : index
    %c0_274 = arith.constant 0 : index
    %228 = vector.load %arg2[%c6_272, %c0_273, %c0_274] : memref<8x256x256xf32, #tpu.memory_space<vmem>>, vector<1x256x256xf32>
    %229 = vector.shape_cast %228 : vector<1x256x256xf32> to vector<256x256xf32>
    %cst_275 = arith.constant dense<0.000000e+00> : vector<1x256xf32>
    %230 = tpu.matmul %227, %229, %cst_275 {dimension_numbers = #tpu.dot_dimension_numbers<[1], [0], [0], [1], [0, 0, 1, 1], [], []>} : vector<1x256xf32>, vector<256x256xf32>, vector<1x256xf32> -> vector<1x256xf32>
    %231 = arith.addf %224, %230 : vector<1x256xf32>
    %c4_276 = arith.constant 4 : index
    %c0_277 = arith.constant 0 : index
    %c0_278 = arith.constant 0 : index
    %232 = vector.load %arg17[%c4_276, %c0_277, %c0_278] : memref<5x1x40xf32, #tpu.memory_space<vmem>>, vector<1x1x40xf32>
    %233 = vector.shape_cast %232 : vector<1x1x40xf32> to vector<1x40xf32>
    %cst_279 = arith.constant dense<0.000000e+00> : vector<1x256xf32>
    %234 = tpu.matmul %233, %207, %cst_279 {dimension_numbers = #tpu.dot_dimension_numbers<[1], [0], [0], [1], [0, 0, 1, 1], [], []>} : vector<1x40xf32>, vector<40x256xf32>, vector<1x256xf32> -> vector<1x256xf32>
    %c7_280 = arith.constant 7 : index
    %c0_281 = arith.constant 0 : index
    %c0_282 = arith.constant 0 : index
    %235 = vector.load %arg2[%c7_280, %c0_281, %c0_282] : memref<8x256x256xf32, #tpu.memory_space<vmem>>, vector<1x256x256xf32>
    %236 = vector.shape_cast %235 : vector<1x256x256xf32> to vector<256x256xf32>
    %cst_283 = arith.constant dense<0.000000e+00> : vector<1x256xf32>
    %237 = tpu.matmul %234, %236, %cst_283 {dimension_numbers = #tpu.dot_dimension_numbers<[1], [0], [0], [1], [0, 0, 1, 1], [], []>} : vector<1x256xf32>, vector<256x256xf32>, vector<1x256xf32> -> vector<1x256xf32>
    %238 = arith.addf %231, %237 : vector<1x256xf32>
    %c0_284 = arith.constant 0 : index
    %c0_285 = arith.constant 0 : index
    %239 = vector.load %arg18[%c0_284, %c0_285] : memref<1x1xf32, #tpu.memory_space<vmem>>, vector<1x1xf32>
    %240 = vector.broadcast %239 : vector<1x1xf32> to vector<1x256xf32>
    %241 = arith.addf %238, %240 : vector<1x256xf32>
    %242 = arith.negf %241 : vector<1x256xf32>
    %243 = math.exp %242 : vector<1x256xf32>
    %cst_286 = arith.constant 1.000000e+00 : f32
    %244 = vector.broadcast %cst_286 : f32 to vector<1x256xf32>
    %245 = arith.addf %244, %243 : vector<1x256xf32>
    %246 = arith.divf %244, %245 : vector<1x256xf32>
    %c0_287 = arith.constant 0 : index
    %c0_288 = arith.constant 0 : index
    %247 = vector.load %arg8[%c0_287, %c0_288] : memref<256x16xf32, #tpu.memory_space<vmem>>, vector<256x16xf32>
    %cst_289 = arith.constant dense<0.000000e+00> : vector<1x16xf32>
    %248 = tpu.matmul %246, %247, %cst_289 {dimension_numbers = #tpu.dot_dimension_numbers<[1], [0], [0], [1], [0, 0, 1, 1], [], []>} : vector<1x256xf32>, vector<256x16xf32>, vector<1x16xf32> -> vector<1x16xf32>
    %cst_290 = arith.constant dense<0x7F800000> : vector<1xf32>
    %249 = vector.multi_reduction <minimumf>, %248, %cst_290 [1] : vector<1x16xf32> to vector<1xf32>
    %250 = vector.shape_cast %249 : vector<1xf32> to vector<1x1xf32>
    %cst_291 = arith.constant dense<0xFF800000> : vector<1xf32>
    %251 = vector.multi_reduction <maximumf>, %248, %cst_291 [1] : vector<1x16xf32> to vector<1xf32>
    %252 = vector.shape_cast %251 : vector<1xf32> to vector<1x1xf32>
    %253 = vector.broadcast %250 : vector<1x1xf32> to vector<1x16xf32>
    %254 = arith.subf %248, %253 : vector<1x16xf32>
    %cst_292 = arith.constant 2.000000e+00 : f32
    %255 = vector.broadcast %cst_292 : f32 to vector<1x16xf32>
    %256 = arith.mulf %254, %255 : vector<1x16xf32>
    %257 = arith.subf %252, %250 : vector<1x1xf32>
    %258 = vector.broadcast %257 : vector<1x1xf32> to vector<1x16xf32>
    %259 = arith.cmpf ogt, %256, %258 : vector<1x16xf32>
    %c0_293 = arith.constant 0 : index
    %c0_294 = arith.constant 0 : index
    %260 = vector.load %arg10[%c0_293, %c0_294] : memref<1x16xf32, #tpu.memory_space<vmem>>, vector<1x16xf32>
    %cst_295 = arith.constant 5.000000e-01 : f32
    %261 = vector.broadcast %cst_295 : f32 to vector<1x16xf32>
    %262 = arith.cmpf ogt, %260, %261 : vector<1x16xf32>
    %263 = arith.ori %259, %262 : vector<1x16xi1>
    %cst_296 = arith.constant 1.000000e+00 : f32
    %cst_297 = arith.constant 0.000000e+00 : f32
    %264 = vector.broadcast %cst_296 : f32 to vector<1x16xf32>
    %265 = vector.broadcast %cst_297 : f32 to vector<1x16xf32>
    %266 = arith.select %263, %264, %265 : vector<1x16xi1>, vector<1x16xf32>
    %c0_298 = arith.constant 0 : index
    %c0_299 = arith.constant 0 : index
    %267 = vector.load %arg9[%c0_298, %c0_299] : memref<16x256xf32, #tpu.memory_space<vmem>>, vector<16x256xf32>
    %cst_300 = arith.constant dense<0.000000e+00> : vector<1x256xf32>
    %268 = tpu.matmul %266, %267, %cst_300 {dimension_numbers = #tpu.dot_dimension_numbers<[1], [0], [0], [1], [0, 0, 1, 1], [], []>} : vector<1x16xf32>, vector<16x256xf32>, vector<1x256xf32> -> vector<1x256xf32>
    %c0_301 = arith.constant 0 : index
    %c0_302 = arith.constant 0 : index
    %c0_303 = arith.constant 0 : index
    %269 = vector.load %arg19[%c0_301, %c0_302, %c0_303] : memref<1x1x256xf32, #tpu.memory_space<vmem>>, vector<1x1x256xf32>
    %270 = vector.shape_cast %269 : vector<1x1x256xf32> to vector<1x256xf32>
    %271 = vector.shape_cast %268 : vector<1x256xf32> to vector<1x1x256xf32>
    tpu.vector_store %arg19[%c0_301, %c0_302, %c0_303], %271 {strides = array<i32>} : memref<1x1x256xf32, #tpu.memory_space<vmem>>, vector<1x1x256xf32>,
    return
  }
  func.func @transform_0(%arg0: i32) -> (i32, i32, i32) {
    %c0_i32 = arith.constant 0 : i32
    %c0_i32_0 = arith.constant 0 : i32
    %c0_i32_1 = arith.constant 0 : i32
    return %arg0, %c0_i32, %c0_i32_0 : i32, i32, i32
  }
  func.func @transform_1(%arg0: i32) -> (i32, i32, i32) {
    %c0_i32 = arith.constant 0 : i32
    %c0_i32_0 = arith.constant 0 : i32
    %c0_i32_1 = arith.constant 0 : i32
    %c0_i32_2 = arith.constant 0 : i32
    return %c0_i32, %c0_i32_0, %c0_i32_1 : i32, i32, i32
  }
  func.func @transform_2(%arg0: i32) -> (i32, i32, i32) {
    %c0_i32 = arith.constant 0 : i32
    %c0_i32_0 = arith.constant 0 : i32
    %c0_i32_1 = arith.constant 0 : i32
    %c0_i32_2 = arith.constant 0 : i32
    return %c0_i32, %c0_i32_0, %c0_i32_1 : i32, i32, i32
  }
  func.func @transform_3(%arg0: i32) -> (i32, i32) {
    %c0_i32 = arith.constant 0 : i32
    %c0_i32_0 = arith.constant 0 : i32
    %c0_i32_1 = arith.constant 0 : i32
    return %c0_i32, %c0_i32_0 : i32, i32
  }
  func.func @transform_4(%arg0: i32) -> (i32, i32) {
    %c0_i32 = arith.constant 0 : i32
    %c0_i32_0 = arith.constant 0 : i32
    %c0_i32_1 = arith.constant 0 : i32
    return %c0_i32, %c0_i32_0 : i32, i32
  }
  func.func @transform_5(%arg0: i32) -> (i32, i32) {
    %c0_i32 = arith.constant 0 : i32
    %c0_i32_0 = arith.constant 0 : i32
    %c0_i32_1 = arith.constant 0 : i32
    return %c0_i32, %c0_i32_0 : i32, i32
  }
  func.func @transform_6(%arg0: i32) -> (i32, i32) {
    %c0_i32 = arith.constant 0 : i32
    %c0_i32_0 = arith.constant 0 : i32
    %c0_i32_1 = arith.constant 0 : i32
    return %c0_i32, %c0_i32_0 : i32, i32
  }
  func.func @transform_7(%arg0: i32) -> (i32, i32) {
    %c0_i32 = arith.constant 0 : i32
    %c0_i32_0 = arith.constant 0 : i32
    %c0_i32_1 = arith.constant 0 : i32
    return %c0_i32, %c0_i32_0 : i32, i32
  }
  func.func @transform_8(%arg0: i32) -> (i32, i32) {
    %c0_i32 = arith.constant 0 : i32
    %c0_i32_0 = arith.constant 0 : i32
    %c0_i32_1 = arith.constant 0 : i32
    return %c0_i32, %c0_i32_0 : i32, i32
  }
  func.func @transform_9(%arg0: i32) -> (i32, i32) {
    %c0_i32 = arith.constant 0 : i32
    %c0_i32_0 = arith.constant 0 : i32
    %c0_i32_1 = arith.constant 0 : i32
    return %c0_i32, %c0_i32_0 : i32, i32
  }
  func.func @transform_10(%arg0: i32) -> (i32, i32, i32) {
    %c0_i32 = arith.constant 0 : i32
    %c0_i32_0 = arith.constant 0 : i32
    %c0_i32_1 = arith.constant 0 : i32
    %c0_i32_2 = arith.constant 0 : i32
    return %c0_i32, %c0_i32_0, %c0_i32_1 : i32, i32, i32
  }
  func.func @transform_11(%arg0: i32) -> (i32, i32) {
    %c0_i32 = arith.constant 0 : i32
    %c0_i32_0 = arith.constant 0 : i32
    %c0_i32_1 = arith.constant 0 : i32
    return %c0_i32, %c0_i32_0 : i32, i32
  }
  func.func @transform_12(%arg0: i32) -> (i32, i32, i32) {
    %c0_i32 = arith.constant 0 : i32
    %c0_i32_0 = arith.constant 0 : i32
    %c0_i32_1 = arith.constant 0 : i32
    %c0_i32_2 = arith.constant 0 : i32
    return %c0_i32, %c0_i32_0, %c0_i32_1 : i32, i32, i32
  }
  func.func @transform_13(%arg0: i32) -> (i32, i32) {
    %c0_i32 = arith.constant 0 : i32
    %c0_i32_0 = arith.constant 0 : i32
    %c0_i32_1 = arith.constant 0 : i32
    return %c0_i32, %c0_i32_0 : i32, i32
  }
  func.func @transform_14(%arg0: i32) -> (i32, i32, i32) {
    %c0_i32 = arith.constant 0 : i32
    %c0_i32_0 = arith.constant 0 : i32
    %c0_i32_1 = arith.constant 0 : i32
    %c0_i32_2 = arith.constant 0 : i32
    return %c0_i32, %c0_i32_0, %c0_i32_1 : i32, i32, i32
  }
  func.func @transform_15(%arg0: i32) -> (i32, i32) {
    %c0_i32 = arith.constant 0 : i32
    %c0_i32_0 = arith.constant 0 : i32
    %c0_i32_1 = arith.constant 0 : i32
    return %c0_i32, %c0_i32_0 : i32, i32
  }
  func.func @transform_16(%arg0: i32) -> (i32, i32, i32) {
    %c0_i32 = arith.constant 0 : i32
    %c0_i32_0 = arith.constant 0 : i32
    %c0_i32_1 = arith.constant 0 : i32
    %c0_i32_2 = arith.constant 0 : i32
    return %c0_i32, %c0_i32_0, %c0_i32_1 : i32, i32, i32
  }
  func.func @transform_17(%arg0: i32) -> (i32, i32) {
    %c0_i32 = arith.constant 0 : i32
    %c0_i32_0 = arith.constant 0 : i32
    %c0_i32_1 = arith.constant 0 : i32
    return %c0_i32, %c0_i32_0 : i32, i32
  }
  func.func @transform_18(%arg0: i32) -> (i32, i32, i32) {
    %c0_i32 = arith.constant 0 : i32
    %c0_i32_0 = arith.constant 0 : i32
    %c0_i32_1 = arith.constant 0 : i32
    return %arg0, %c0_i32, %c0_i32_0 : i32, i32, i32
  }
}

</mosaic_0001>

<bundles_post_ra>
// kernel: custom-call
= control target key start
LH: loop header
LB: loop body
LE: loop exit
PB: predicated region body
PF: predicated region fallthrough
CT: control target
= control target key end

     0   :  { %s92_s0 = inlined_call_operand.vmem [shape: f32[2,1,16,16], index: 0, kind: input, shape index: {}]   ;;  %s93_s1 = inlined_call_operand.vmem [shape: f32[2,1,16,16], index: 1, kind: input, shape index: {}]   ;;  %s94_s2 = inlined_call_operand.hbm [shape: c64[2,1,16,16], index: 2, kind: output, shape index: {}]  }
   0x1   :  { %s3_s11 = scalar_lea.hbm %s94_s2, 512 }
   0x2   :  { %4 = vsyncpa [#allocation0], 0  ;;  %s5_s14 = sshll.u32 %s92_s0, 4  ;;  %s6_s14 = int_to_ptr.vmem [resolvable:$true] %s5_s14 }
   0x3   :  { %s18_s15 = scalar_lea.vmem %s6_s14, 512  ;;  %p23_p1 = scmp.lt.s32.totalorder %s6_s14, %s6_s14 }
   0x4   :  { %p19_p0 = scmp.ne.s32.totalorder %s6_s14, %s18_s15  ;;  %p24_p2 = scmp.lt.s32.totalorder %s18_s15, %s18_s15 }
   0x6   :  { %p25_p3 = por %p24_p2, %p23_p1 }
   0x8   :  { %p26_p4 = pnand %p25_p3, %p19_p0 }
   0xa   :  { %29 = shalt.err (!%p26_p4)  }
   0xb   :  { %8 = dma.vmem_to_hbm [thread:$0]  %s6_s14, 512, %s94_s2, [#allocation0] }
   0xc   :  { %61 = dma.done.wait [#allocation0], 512  }
   0xd   :  { %62 = vsyncadd [#allocation0], 4294966784 }
   0xe   :  { %10 = vsyncpa [#allocation0], 1 }
   0xf   :  { %11 = vsyncpa [#allocation1], 0  ;;  %s12_s0 = sshll.u32 %s93_s1, 4  ;;  %s13_s0 = int_to_ptr.vmem [resolvable:$true] %s12_s0 }
  0x10   :  { %s38_s20 = scalar_lea.vmem %s13_s0, 512  ;;  %p43_p6 = scmp.lt.s32.totalorder %s13_s0, %s13_s0 }
  0x11   :  { %p39_p5 = scmp.ne.s32.totalorder %s13_s0, %s38_s20  ;;  %p44_p7 = scmp.lt.s32.totalorder %s38_s20, %s38_s20 }
  0x13   :  { %p45_p8 = por %p44_p7, %p43_p6 }
  0x15   :  { %p46_p9 = pnand %p45_p8, %p39_p5 }
  0x17   :  { %49 = shalt.err (!%p46_p9)  }
  0x18   :  { %15 = dma.vmem_to_hbm [thread:$0]  %s13_s0, 512, %s3_s11, [#allocation1] }
  0x19   :  { %63 = dma.done.wait [#allocation1], 512  }
  0x1a   :  { %64 = vsyncadd [#allocation1], 4294966784 }
  0x1b   :  { %17 = vsyncpa [#allocation1], 1 }

// kernel: gen_mask_forward.1
= control target key start
LH: loop header
LB: loop body
LE: loop exit
PB: predicated region body
PF: predicated region fallthrough
CT: control target
= control target key end

     0   :  { %s9910_s0 = inlined_call_operand.vmem [shape: f32[2,4,256], index: 0, kind: input, shape index: {}]   ;;  %s9911_s1 = inlined_call_operand.hbm [shape: f32[8,256,256], index: 1, kind: input, shape index: {}]   ;;  %s9912_s2 = inlined_call_operand.hbm [shape: f32[8,64,64], index: 2, kind: input, shape index: {}]   ;;  %s9913_s3 = inlined_call_operand.hbm [shape: f32[256,64], index: 3, kind: input, shape index: {}]   ;;  %s9914_s4 = inlined_call_operand.hbm [shape: f32[64,16], index: 4, kind: input, shape index: {}]   ;;  %s9915_s5 = inlined_call_operand.hbm [shape: f32[16,64], index: 5, kind: input, shape index: {}]   ;;  %s9916_s6 = inlined_call_operand.hbm [shape: f32[64,256], index: 6, kind: input, shape index: {}]   ;;  %s9917_s7 = inlined_call_operand.hbm [shape: f32[256,16], index: 7, kind: input, shape index: {}]   ;;  %s9918_s8 = inlined_call_operand.hbm [shape: f32[16,256], index: 8, kind: input, shape index: {}]   ;;  %s9919_s9 = inlined_call_operand.vmem [shape: f32[1,16], index: 9, kind: input, shape index: {}]   ;;  %s9920_s10 = inlined_call_operand.vmem [shape: f32[5,4,40], index: 10, kind: input, shape index: {}]   ;;  %s9921_s11 = inlined_call_operand.vmem [shape: f32[4,1], index: 11, kind: input, shape index: {}]   ;;  %s9922_s12 = inlined_call_operand.vmem [shape: f32[5,16,40], index: 12, kind: input, shape index: {}]   ;;  %s9923_s13 = inlined_call_operand.vmem [shape: f32[16,1], index: 13, kind: input, shape index: {}]   ;;  %s9924_s14 = inlined_call_operand.vmem [shape: f32[5,4,80], index: 14, kind: input, shape index: {}]   ;;  %s9925_s15 = inlined_call_operand.vmem [shape: f32[4,1], index: 15, kind: input, shape index: {}]   ;;  %s9926_s16 = inlined_call_operand.vmem [shape: f32[5,1,40], index: 16, kind: input, shape index: {}]   ;;  %s9927_s17 = inlined_call_operand.<no memory space> [shape: f32[1,1], index: 17, kind: input, shape index: {}]   ;;  %s9928_s18 = inlined_call_operand.vmem [shape: f32[2,1,256], index: 18, kind: output, shape index: {}]  }
   0x1   :  { %9966 = sst [smem:[#allocation46_spill]] %s9910_s0  ;;  %v23_v0 = vstv %s9927_s17 }
   0x2   :  { %9967 = sst [smem:[#allocation47_spill]] %s9911_s1  ;;  %24 = vst [vmem:[#allocation3] sm:$0x1] %v23_v0 }
   0x3   :  { %9968 = sst [smem:[#allocation48_spill]] %s9912_s2 }
   0x4   :  { %9969 = sst [smem:[#allocation49_spill]] %s9914_s4 }
   0x5   :  { %25 = vsyncpa [#allocation5], 0 }
   0x6   :  { %26 = vsyncpa [#allocation7], 0 }
   0x7   :  { %27 = vsyncpa [#allocation10], 0 }
   0x8   :  { %28 = vsyncpa [#allocation13], 0 }
   0x9   :  { %29 = vsyncpa [#allocation16], 0  ;;  %s8492_s29 = smov 0  }
   0xa LB: > { %s8378_s30 = smov [#allocation6]   ;;  %s8498_s19 = sadd.s32 4294967295, %s8376_s29   ;;  %s8376_s29 = sphi %s8492_s29, %s35_s29  }
   0xb   : > { %s474_s0 = sshll.u32 %s8378_s30, 4  ;;  %p7029_p0 = scmp.ge.s32.totalorder %s8376_s29, 1  ;;  %s475_s0 = int_to_ptr.vmem [resolvable:$true] %s474_s0 }
   0xc   : > { %p449_p1 = scmp.lt.s32.totalorder %s8376_s29, 3  ;;  %p8086_p2 = scmp.eq.s32.totalorder %s8498_s19, 0 }
   0xd   : > { %s8379_s1 = smov [#allocation9]   ;;  %s8380_s22 = smov [#allocation12]  }
   0xe   : > { %p8503_p3 = pnand %p7029_p0, %p449_p1  ;;  %s500_s20 = sshll.u32 %s8379_s1, 4  ;;  %s8509_s20 = int_to_ptr.vmem [resolvable:$true] %s500_s20 }
   0xf   : > { %s526_s2 = sshll.u32 %s8380_s22, 4  ;;  %s8153_s24 = scalar_lea.vmem %s475_s0, 8192  ;;  %s527_s2 = int_to_ptr.vmem [resolvable:$true] %s526_s2 }
  0x10   : > { %p8061_p4 = pneg %p8503_p3  ;;  %p8154_p7 = scmp.ne.s32.totalorder %s475_s0, %s8153_s24 }
  0x11   : > { %p8161_p10 = scmp.lt.s32.totalorder %s475_s0, %s475_s0  ;;  %p8162_p11 = scmp.lt.s32.totalorder %s8153_s24, %s8153_s24 }
  0x12   : > { %p8513_p5 = pnand %p8086_p2, %p8061_p4 }
  0x13   : > { %p8163_p12 = por %p8162_p11, %p8161_p10 }
  0x14   : > { %p8519_p6 = pneg %p8513_p5 }
  0x16   : > { %p8156_p8 = pnand %p8154_p7, %p8519_p6 }
  0x18   : > { %p8157_p9 = pneg %p8156_p8 }
  0x1a   : > { %p8164_p13 = pnand %p8163_p12, %p8157_p9 }
  0x1c   : > { %8167 = shalt.err (!%p8164_p13)
}
  0x1d   : > { %s9929_s25 = smov 128   ;;  %s9931_s26 = smov 8  }
  0x1e   : > { %s9973_s30 = sld [smem:[#allocation48_spill]]  ;;  %s8179_s1 = scalar_lea.vmem %s8509_s20, 1024 }
  0x1f   : > { %p8180_p0 = scmp.ne.s32.totalorder %s8509_s20, %s8179_s1  ;;  %p8187_p7 = scmp.lt.s32.totalorder %s8509_s20, %s8509_s20 }
  0x20   : > { %p8188_p8 = scmp.lt.s32.totalorder %s8179_s1, %s8179_s1 }
  0x21   : > { %p8182_p1 = pnand %p8180_p0, %p8519_p6 }
  0x22   : > { %p8189_p9 = por %p8188_p8, %p8187_p7 }
  0x23   : > { %p8183_p4 = pneg %p8182_p1 }
  0x24   : > { %8067 = dma.hbm_to_vmem [thread:$0]  (!%p8513_p5), %s9973_s30, 8192, %s475_s0, [#allocation7], %s9929_s25, %s9929_s25, %s9931_s26  }
  0x25   : > { %p8190_p10 = pnand %p8189_p9, %p8183_p4 }
  0x27   : > { %8193 = shalt.err (!%p8190_p10)
}
  0x28   : > { %s9974_s4 = sld [smem:[#allocation49_spill]]  ;;  %s8383_s0 = smov [#allocation4]  }
  0x29   : > { %s461_s27 = sshll.u32 %s8383_s0, 4  ;;  %s8205_s28 = scalar_lea.vmem %s527_s2, 2048  ;;  %s462_s27 = int_to_ptr.vmem [resolvable:$true] %s461_s27 }
  0x2a   : > { %p8206_p11 = scmp.ne.s32.totalorder %s527_s2, %s8205_s28  ;;  %p8213_p0 = scmp.lt.s32.totalorder %s527_s2, %s527_s2 }
  0x2b   : > { %p8214_p1 = scmp.lt.s32.totalorder %s8205_s28, %s8205_s28 }
  0x2c   : > { %p8208_p12 = pnand %p8206_p11, %p8519_p6 }
  0x2d   : > { %p8215_p4 = por %p8214_p1, %p8213_p0 }
  0x2e   : > { %8073 = dma.hbm_to_vmem [thread:$0]  (!%p8513_p5), %s9974_s4, 1024, %s8509_s20, [#allocation10], %s9929_s25, %s9929_s25, %s9931_s26  }
  0x2f   : > { %p8209_p13 = pneg %p8208_p12 }
  0x31   : > { %p8216_p7 = pnand %p8215_p4, %p8209_p13 }
  0x33   : > { %8219 = shalt.err (!%p8216_p7)
}
  0x34   : > { %s9933_s30 = smov 256   ;;  %s8385_s1 = smov 16  }
  0x35   : > { %8079 = dma.hbm_to_vmem [thread:$0]  (!%p8513_p5), %s9916_s6, 2048, %s527_s2, [#allocation13], %s9933_s30, %s9933_s30, %s8385_s1  }
  0x36   : > { %s8231_s24 = scalar_lea.vmem %s462_s27, 65536  ;;  %p8239_p11 = scmp.lt.s32.totalorder %s462_s27, %s462_s27 }
  0x37   : > { %p8232_p8 = scmp.ne.s32.totalorder %s462_s27, %s8231_s24  ;;  %p8240_p12 = scmp.lt.s32.totalorder %s8231_s24, %s8231_s24 }
  0x39   : > { %p8234_p9 = pnand %p8232_p8, %p8519_p6  ;;  %p8241_p13 = por %p8240_p12, %p8239_p11 }
  0x3b   : > { %p8235_p10 = pneg %p8234_p9 }
  0x3d   : > { %p8242_p0 = pnand %p8241_p13, %p8235_p10 }
  0x3f   : > { %8245 = shalt.err (!%p8242_p0)
}
  0x40   : > { %s9975_s20 = sld [smem:[#allocation47_spill]]  ;;  %s8386_s2 = smov [#allocation8]  }
  0x41   : > { %s487_s22 = sshll.u32 %s8386_s2, 4  ;;  %s8387_s25 = smov [#allocation11]   ;;  %s488_s22 = int_to_ptr.vmem [resolvable:$true] %s487_s22 }
  0x42   : > { %s513_s26 = sshll.u32 %s8387_s25, 4  ;;  %s8257_s4 = scalar_lea.vmem %s488_s22, 4096  ;;  %s514_s26 = int_to_ptr.vmem [resolvable:$true] %s513_s26 }
  0x43   : > { %p8258_p1 = scmp.ne.s32.totalorder %s488_s22, %s8257_s4  ;;  %p8265_p8 = scmp.lt.s32.totalorder %s488_s22, %s488_s22 }
  0x44   : > { %p8266_p9 = scmp.lt.s32.totalorder %s8257_s4, %s8257_s4 }
  0x45   : > { %p8260_p4 = pnand %p8258_p1, %p8519_p6 }
  0x46   : > { %8064 = dma.hbm_to_vmem [thread:$0]  (!%p8513_p5), %s9975_s20, 65536, %s462_s27, [#allocation5], %s9933_s30, %s9933_s30, %s8385_s1  }
  0x47   : > { %p8261_p7 = pneg %p8260_p4  ;;  %p8267_p10 = por %p8266_p9, %p8265_p8 }
  0x49   : > { %p8268_p11 = pnand %p8267_p10, %p8261_p7 }
  0x4b   : > { %8271 = shalt.err (!%p8268_p11)
}
  0x4c   : > { %s9976_s24 = smov 8   ;;  %s9977_s0 = smov 128  }
  0x4d   : > { %8070 = dma.hbm_to_vmem [thread:$0]  (!%p8513_p5), %s9913_s3, 4096, %s488_s22, [#allocation7], %s9977_s0, %s9977_s0, %s9976_s24  }
  0x4e   : > { %s8283_s25 = scalar_lea.vmem %s514_s26, 256  ;;  %p8291_p1 = scmp.lt.s32.totalorder %s514_s26, %s514_s26 }
  0x4f   : > { %p8284_p12 = scmp.ne.s32.totalorder %s514_s26, %s8283_s25  ;;  %p8292_p4 = scmp.lt.s32.totalorder %s8283_s25, %s8283_s25 }
  0x51   : > { %p8286_p13 = pnand %p8284_p12, %p8519_p6  ;;  %p8293_p7 = por %p8292_p4, %p8291_p1 }
  0x53   : > { %p8287_p0 = pneg %p8286_p13 }
  0x55   : > { %p8294_p8 = pnand %p8293_p7, %p8287_p0 }
  0x57   : > { %8297 = shalt.err (!%p8294_p8)
}
  0x58   : > { %8076 = dma.hbm_to_vmem [thread:$0]  (!%p8513_p5), %s9915_s5, 256, %s514_s26, [#allocation10], %s9977_s0, %s9977_s0, %s9976_s24  }
  0x59   : > { %s8388_s2 = smov [#allocation14]   ;;  %s8389_s27 = smov [#allocation15]  }
  0x5a   : > { %s539_s22 = sshll.u32 %s8388_s2, 4  ;;  %s552_s28 = sshll.u32 %s8389_s27, 4  ;;  %s540_s22 = int_to_ptr.vmem [resolvable:$true] %s539_s22  ;;  %s553_s28 = int_to_ptr.vmem [resolvable:$true] %s552_s28 }
  0x5b   : > { %s8309_s30 = scalar_lea.vmem %s540_s22, 4096  ;;  %p8317_p12 = scmp.lt.s32.totalorder %s540_s22, %s540_s22 }
  0x5c   : > { %p8310_p9 = scmp.ne.s32.totalorder %s540_s22, %s8309_s30  ;;  %p8318_p13 = scmp.lt.s32.totalorder %s8309_s30, %s8309_s30 }
  0x5e   : > { %p8312_p10 = pnand %p8310_p9, %p8519_p6  ;;  %p8319_p0 = por %p8318_p13, %p8317_p12 }
  0x60   : > { %p8313_p11 = pneg %p8312_p10 }
  0x62   : > { %p8320_p1 = pnand %p8319_p0, %p8313_p11 }
  0x64   : > { %8323 = shalt.err (!%p8320_p1)
}
  0x65   : > { %8082 = dma.hbm_to_vmem [thread:$0]  (!%p8513_p5), %s9917_s7, 4096, %s540_s22, [#allocation13], %s9977_s0, %s9977_s0, %s9976_s24  }
  0x66   : > { %s8335_s4 = scalar_lea.vmem %s553_s28, 512  ;;  %p8343_p9 = scmp.lt.s32.totalorder %s553_s28, %s553_s28 }
  0x67   : > { %p8336_p4 = scmp.ne.s32.totalorder %s553_s28, %s8335_s4  ;;  %p8344_p10 = scmp.lt.s32.totalorder %s8335_s4, %s8335_s4 }
  0x69   : > { %p8338_p7 = pnand %p8336_p4, %p8519_p6  ;;  %p8345_p11 = por %p8344_p10, %p8343_p9 }
  0x6b   : > { %p8339_p8 = pneg %p8338_p7 }
  0x6d   : > { %p8346_p12 = pnand %p8345_p11, %p8339_p8 }
  0x6f   : > { %8349 = shalt.err (!%p8346_p12)
}
  0x70   : > { %s9978_s30 = smov 256   ;;  %603 = sbr.rel (%p8503_p3) target bundleno = 5861 (0x16e5), region = 92 }
  0x71   : > { %8085 = dma.hbm_to_vmem [thread:$0]  (!%p8513_p5), %s9918_s8, 512, %s553_s28, [#allocation16], %s9978_s30, %s9978_s30, %s8385_s1  }
  0x75   : > { %8355 = dma.done.wait (%p8086_p2), [#allocation5], 65536  }
  0x76   : > { %8357 = vsyncadd (%p8086_p2), [#allocation5], 4294901760 }
  0x77   : > { %8359 = dma.done.wait (%p8086_p2), [#allocation7], 12288  }
  0x78   : > { %8361 = vsyncadd (%p8086_p2), [#allocation7], 4294955008 }
  0x79   : > { %8363 = dma.done.wait (%p8086_p2), [#allocation10], 1280  }
  0x7a   : > { %8365 = vsyncadd (%p8086_p2), [#allocation10], 4294966016 }
  0x7b   : > { %8367 = dma.done.wait (%p8086_p2), [#allocation13], 6144  }
  0x7c   : > { %8369 = vsyncadd (%p8086_p2), [#allocation13], 4294961152 }
  0x7d   : > { %8371 = dma.done.wait (%p8086_p2), [#allocation16], 512  }
  0x7e   : > { %8373 = vsyncadd (%p8086_p2), [#allocation16], 4294966784  ;;  %v8390_v1 = vmov 0.0   ;;  %v745_v2 = vld [vmem:[#allocation4 + $0xf8] sm:$0xff]  ;;  %v744_v4 = vld [vmem:[#allocation4 + $0xf0] sm:$0xff]  ;;  %p684_p2 = scmp.lt.s32.totalorder %s8498_s19, 1 }
  0x7f   : > { %704 = vst [vmem:[#allocation2 + $0x58] sm:$0xff] %v8390_v1  ;;  %693 = vst [vmem:[#allocation2] sm:$0xff] %v8390_v1  ;;  %v886_v3 = vld [vmem:[#allocation4 + $0x2f8] sm:$0xff]  ;;  %781 = vmatprep.subr.mxu0 %v745_v2  ;;  %v885_v5 = vld [vmem:[#allocation4 + $0x2f0] sm:$0xff]  ;;  %s9979_s1 = sld [smem:[#allocation46_spill]]  ;;  %vm1281_vm0 = vcmask 326656  }
  0x80   : > { %694 = vst [vmem:[#allocation2 + $0x8] sm:$0xff] %v8390_v1  ;;  %695 = vst [vmem:[#allocation2 + $0x10] sm:$0xff] %v8390_v1  ;;  %919 = vmatprep.subr.mxu1 %v886_v3  ;;  %v743_v6 = vld [vmem:[#allocation4 + $0xe8] sm:$0xff]  ;;  %782 = vmatpush1.msra.mxu0 %v744_v4  ;;  %v742_v8 = vld [vmem:[#allocation4 + $0xe0] sm:$0xff]  ;;  %s10045_s19 = smov (!%p684_p2, %s8498_s19), 1  ;;  %vm8392_vm1 = vmmov 0  }
  0x81   : > { %696 = vst [vmem:[#allocation2 + $0x18] sm:$0xff] %v8390_v1  ;;  %697 = vst [vmem:[#allocation2 + $0x20] sm:$0xff] %v8390_v1  ;;  %v884_v7 = vld [vmem:[#allocation4 + $0x2e8] sm:$0xff]  ;;  %920 = vmatpush1.msra.mxu1 %v885_v5  ;;  %v883_v9 = vld [vmem:[#allocation4 + $0x2e0] sm:$0xff]  ;;  %783 = vmatprep.subr.mxu0 %v743_v6  ;;  %s7134_s17 = sshll.u32 %s10045_s19, 3  ;;  %vm2540_vm2 = vcmask 523264  }
  0x82   : > { %698 = vst [vmem:[#allocation2 + $0x28] sm:$0xff] %v8390_v1  ;;  %699 = vst [vmem:[#allocation2 + $0x30] sm:$0xff] %v8390_v1  ;;  %v741_v10 = vld [vmem:[#allocation4 + $0xd8] sm:$0xff]  ;;  %921 = vmatprep.subr.mxu1 %v884_v7  ;;  %v740_v12 = vld [vmem:[#allocation4 + $0xd0] sm:$0xff]  ;;  %784 = vmatpush1.msra.mxu0 %v742_v8  ;;  %vm2614_vm3 = vcmask 519168   ;;  %vm3928_vm4 = vcmask 130048  }
  0x83   : > { %700 = vst [vmem:[#allocation2 + $0x38] sm:$0xff] %v8390_v1  ;;  %701 = vst [vmem:[#allocation2 + $0x40] sm:$0xff] %v8390_v1  ;;  %v882_v11 = vld [vmem:[#allocation4 + $0x2d8] sm:$0xff]  ;;  %v881_v13 = vld [vmem:[#allocation4 + $0x2d0] sm:$0xff]  ;;  %922 = vmatpush1.msra.mxu1 %v883_v9  ;;  %785 = vmatprep.subr.mxu0 %v741_v10  ;;  %vm4369_vm5 = vcmask 654336   ;;  %vm6779_vm6 = vcmask 122880  }
  0x84   : > { %702 = vst [vmem:[#allocation2 + $0x48] sm:$0xff] %v8390_v1  ;;  %703 = vst [vmem:[#allocation2 + $0x50] sm:$0xff] %v8390_v1  ;;  %v739_v14 = vld [vmem:[#allocation4 + $0xc8] sm:$0xff]  ;;  %923 = vmatprep.subr.mxu1 %v882_v11  ;;  %v738_v16 = vld [vmem:[#allocation4 + $0xc0] sm:$0xff]  ;;  %786 = vmatpush1.msra.mxu0 %v740_v12  ;;  %s7050_s0 = sshll.u32 %s10045_s19, 1 }
  0x85   : > { %705 = vst [vmem:[#allocation2 + $0x60] sm:$0xff] %v8390_v1  ;;  %707 = vst [vmem:[#allocation2 + $0x70] sm:$0xff] %v8390_v1  ;;  %v880_v15 = vld [vmem:[#allocation4 + $0x2c8] sm:$0xff]  ;;  %v879_v17 = vld [vmem:[#allocation4 + $0x2c0] sm:$0xff]  ;;  %924 = vmatpush1.msra.mxu1 %v881_v13  ;;  %787 = vmatprep.subr.mxu0 %v739_v14  ;;  %s688_s24 = scalar_lea.vmem %s9979_s1, %s7134_s17  ;;  %s692_s28 = scalar_lea.vmem %s9928_s18, %s7050_s0 }
  0x86   : > { %709 = vst [vmem:[#allocation2 + $0x80] sm:$0xff] %v8390_v1  ;;  %711 = vst [vmem:[#allocation2 + $0x90] sm:$0xff] %v8390_v1  ;;  %v737_v18 = vld [vmem:[#allocation4 + $0xb8] sm:$0xff]  ;;  %925 = vmatprep.subr.mxu1 %v880_v15  ;;  %v736_v20 = vld [vmem:[#allocation4 + $0xb0] sm:$0xff]  ;;  %788 = vmatpush1.msra.mxu0 %v738_v16 }
  0x87   : > { %v878_v19 = vld [vmem:[#allocation4 + $0x2b8] sm:$0xff]  ;;  %v877_v21 = vld [vmem:[#allocation4 + $0x2b0] sm:$0xff]  ;;  %926 = vmatpush1.msra.mxu1 %v879_v17  ;;  %v735_v22 = vld [vmem:[#allocation4 + $0xa8] sm:$0xff]  ;;  %789 = vmatprep.subr.mxu0 %v737_v18 }
  0x88   : > { %v876_v23 = vld [vmem:[#allocation4 + $0x2a8] sm:$0xff]  ;;  %927 = vmatprep.subr.mxu1 %v878_v19  ;;  %v734_v24 = vld [vmem:[#allocation4 + $0xa0] sm:$0xff]  ;;  %790 = vmatpush1.msra.mxu0 %v736_v20  ;;  %v733_v26 = vld [vmem:[#allocation4 + $0x98] sm:$0xff] }
  0x89   : > { %v875_v25 = vld [vmem:[#allocation4 + $0x2a0] sm:$0xff]  ;;  %928 = vmatpush1.msra.mxu1 %v877_v21  ;;  %v874_v27 = vld [vmem:[#allocation4 + $0x298] sm:$0xff]  ;;  %791 = vmatprep.subr.mxu0 %v735_v22  ;;  %v732_v28 = vld [vmem:[#allocation4 + $0x90] sm:$0xff] }
  0x8a   : > { %929 = vmatprep.subr.mxu1 %v876_v23  ;;  %v873_v29 = vld [vmem:[#allocation4 + $0x290] sm:$0xff]  ;;  %792 = vmatpush1.msra.mxu0 %v734_v24  ;;  %v731_v30 = vld [vmem:[#allocation4 + $0x88] sm:$0xff]  ;;  %v730_v32 = vld [vmem:[#allocation4 + $0x80] sm:$0xff] }
  0x8b   : > { %930 = vmatpush1.msra.mxu1 %v875_v25  ;;  %v872_v31 = vld [vmem:[#allocation4 + $0x288] sm:$0xff]  ;;  %793 = vmatprep.subr.mxu0 %v733_v26  ;;  %v871_v33 = vld [vmem:[#allocation4 + $0x280] sm:$0xff]  ;;  %v729_v34 = vld [vmem:[#allocation4 + $0x78] sm:$0xff] }
  0x8c   : > { %931 = vmatprep.subr.mxu1 %v874_v27  ;;  %794 = vmatpush1.msra.mxu0 %v732_v28  ;;  %v870_v35 = vld [vmem:[#allocation4 + $0x278] sm:$0xff]  ;;  %v728_v36 = vld [vmem:[#allocation4 + $0x70] sm:$0xff]  ;;  %v727_v38 = vld [vmem:[#allocation4 + $0x68] sm:$0xff] }
  0x8d   : > { %932 = vmatpush1.msra.mxu1 %v873_v29  ;;  %795 = vmatprep.subr.mxu0 %v731_v30  ;;  %v869_v37 = vld [vmem:[#allocation4 + $0x270] sm:$0xff]  ;;  %v868_v39 = vld [vmem:[#allocation4 + $0x268] sm:$0xff]  ;;  %v726_v40 = vld [vmem:[#allocation4 + $0x60] sm:$0xff] }
  0x8e   : > { %933 = vmatprep.subr.mxu1 %v872_v31  ;;  %796 = vmatpush1.msra.mxu0 %v730_v32  ;;  %v867_v41 = vld [vmem:[#allocation4 + $0x260] sm:$0xff]  ;;  %v725_v42 = vld [vmem:[#allocation4 + $0x58] sm:$0xff]  ;;  %v724_v44 = vld [vmem:[#allocation4 + $0x50] sm:$0xff] }
  0x8f   : > { %934 = vmatpush1.msra.mxu1 %v871_v33  ;;  %797 = vmatprep.subr.mxu0 %v729_v34  ;;  %v866_v43 = vld [vmem:[#allocation4 + $0x258] sm:$0xff]  ;;  %v865_v45 = vld [vmem:[#allocation4 + $0x250] sm:$0xff]  ;;  %v723_v46 = vld [vmem:[#allocation4 + $0x48] sm:$0xff] }
  0x90   : > { %935 = vmatprep.subr.mxu1 %v870_v35  ;;  %798 = vmatpush1.msra.mxu0 %v728_v36  ;;  %v864_v47 = vld [vmem:[#allocation4 + $0x248] sm:$0xff]  ;;  %v722_v48 = vld [vmem:[#allocation4 + $0x40] sm:$0xff]  ;;  %v721_v50 = vld [vmem:[#allocation4 + $0x38] sm:$0xff] }
  0x91   : > { %936 = vmatpush1.msra.mxu1 %v869_v37  ;;  %799 = vmatprep.subr.mxu0 %v727_v38  ;;  %v863_v49 = vld [vmem:[#allocation4 + $0x240] sm:$0xff]  ;;  %v862_v51 = vld [vmem:[#allocation4 + $0x238] sm:$0xff]  ;;  %v720_v52 = vld [vmem:[#allocation4 + $0x30] sm:$0xff] }
  0x92   : > { %937 = vmatprep.subr.mxu1 %v868_v39  ;;  %800 = vmatpush1.msra.mxu0 %v726_v40  ;;  %v861_v53 = vld [vmem:[#allocation4 + $0x230] sm:$0xff]  ;;  %v719_v54 = vld [vmem:[#allocation4 + $0x28] sm:$0xff]  ;;  %v718_v56 = vld [vmem:[#allocation4 + $0x20] sm:$0xff] }
  0x93   : > { %938 = vmatpush1.msra.mxu1 %v867_v41  ;;  %801 = vmatprep.subr.mxu0 %v725_v42  ;;  %v860_v55 = vld [vmem:[#allocation4 + $0x228] sm:$0xff]  ;;  %v859_v57 = vld [vmem:[#allocation4 + $0x220] sm:$0xff]  ;;  %v717_v58 = vld [vmem:[#allocation4 + $0x18] sm:$0xff] }
  0x94   : > { %939 = vmatprep.subr.mxu1 %v866_v43  ;;  %802 = vmatpush1.msra.mxu0 %v724_v44  ;;  %v858_v59 = vld [vmem:[#allocation4 + $0x218] sm:$0xff]  ;;  %v716_v60 = vld [vmem:[#allocation4 + $0x10] sm:$0xff]  ;;  %v715_v62 = vld [vmem:[#allocation4 + $0x8] sm:$0xff] }
  0x95   : > { %940 = vmatpush1.msra.mxu1 %v865_v45  ;;  %803 = vmatprep.subr.mxu0 %v723_v46  ;;  %v857_v61 = vld [vmem:[#allocation4 + $0x210] sm:$0xff]  ;;  %v856_v63 = vld [vmem:[#allocation4 + $0x208] sm:$0xff]  ;;  %v714_v0 = vld [vmem:[#allocation4] sm:$0xff] }
  0x96   : > { %941 = vmatprep.subr.mxu1 %v864_v47  ;;  %804 = vmatpush1.msra.mxu0 %v722_v48  ;;  %v855_v1 = vld [vmem:[#allocation4 + $0x200] sm:$0xff]  ;;  %v777_v2 = vld [vmem:[#allocation4 + $0x1f8] sm:$0xff]  ;;  %v776_v4 = vld [vmem:[#allocation4 + $0x1f0] sm:$0xff] }
  0x97   : > { %942 = vmatpush1.msra.mxu1 %v863_v49  ;;  %805 = vmatprep.subr.mxu0 %v721_v50  ;;  %v918_v3 = vld [vmem:[#allocation4 + $0x3f8] sm:$0xff]  ;;  %v917_v5 = vld [vmem:[#allocation4 + $0x3f0] sm:$0xff]  ;;  %v775_v6 = vld [vmem:[#allocation4 + $0x1e8] sm:$0xff] }
  0x98   : > { %943 = vmatprep.subr.mxu1 %v862_v51  ;;  %806 = vmatpush1.msra.mxu0 %v720_v52  ;;  %v916_v7 = vld [vmem:[#allocation4 + $0x3e8] sm:$0xff]  ;;  %v774_v8 = vld [vmem:[#allocation4 + $0x1e0] sm:$0xff]  ;;  %v773_v10 = vld [vmem:[#allocation4 + $0x1d8] sm:$0xff] }
  0x99   : > { %944 = vmatpush1.msra.mxu1 %v861_v53  ;;  %807 = vmatprep.subr.mxu0 %v719_v54  ;;  %v915_v9 = vld [vmem:[#allocation4 + $0x3e0] sm:$0xff]  ;;  %v914_v11 = vld [vmem:[#allocation4 + $0x3d8] sm:$0xff]  ;;  %v772_v12 = vld [vmem:[#allocation4 + $0x1d0] sm:$0xff] }
  0x9a   : > { %945 = vmatprep.subr.mxu1 %v860_v55  ;;  %808 = vmatpush1.msra.mxu0 %v718_v56  ;;  %v913_v13 = vld [vmem:[#allocation4 + $0x3d0] sm:$0xff]  ;;  %v771_v14 = vld [vmem:[#allocation4 + $0x1c8] sm:$0xff]  ;;  %v770_v16 = vld [vmem:[#allocation4 + $0x1c0] sm:$0xff] }
  0x9b   : > { %946 = vmatpush1.msra.mxu1 %v859_v57  ;;  %809 = vmatprep.subr.mxu0 %v717_v58  ;;  %v912_v15 = vld [vmem:[#allocation4 + $0x3c8] sm:$0xff]  ;;  %v911_v17 = vld [vmem:[#allocation4 + $0x3c0] sm:$0xff]  ;;  %v769_v18 = vld [vmem:[#allocation4 + $0x1b8] sm:$0xff] }
  0x9c   : > { %947 = vmatprep.subr.mxu1 %v858_v59  ;;  %810 = vmatpush1.msra.mxu0 %v716_v60  ;;  %v910_v19 = vld [vmem:[#allocation4 + $0x3b8] sm:$0xff]  ;;  %v768_v20 = vld [vmem:[#allocation4 + $0x1b0] sm:$0xff]  ;;  %v767_v22 = vld [vmem:[#allocation4 + $0x1a8] sm:$0xff] }
  0x9d   : > { %948 = vmatpush1.msra.mxu1 %v857_v61  ;;  %811 = vmatprep.subr.mxu0 %v715_v62  ;;  %v909_v21 = vld [vmem:[#allocation4 + $0x3b0] sm:$0xff]  ;;  %v908_v23 = vld [vmem:[#allocation4 + $0x3a8] sm:$0xff]  ;;  %v766_v24 = vld [vmem:[#allocation4 + $0x1a0] sm:$0xff] }
  0x9e   : > { %949 = vmatprep.subr.mxu1 %v856_v63  ;;  %812 = vmatpush1.msra.mxu0 %v714_v0  ;;  %v907_v25 = vld [vmem:[#allocation4 + $0x3a0] sm:$0xff]  ;;  %v765_v26 = vld [vmem:[#allocation4 + $0x198] sm:$0xff]  ;;  %v764_v29 = vld [vmem:[#allocation4 + $0x190] sm:$0xff] }
  0x9f   : > { %950 = vmatpush1.msra.mxu1 %v855_v1  ;;  %813 = vmatprep.subr.mxu0 %v777_v2  ;;  %v906_v27 = vld [vmem:[#allocation4 + $0x398] sm:$0xff]  ;;  %v905_v30 = vld [vmem:[#allocation4 + $0x390] sm:$0xff]  ;;  %v763_v32 = vld [vmem:[#allocation4 + $0x188] sm:$0xff] }
  0xa0   : > { %951 = vmatprep.subr.mxu1 %v918_v3  ;;  %814 = vmatpush2.msra.mxu0 %v776_v4  ;;  %v8640_v28 = vld [vmem:[%s688_s24] sm:$0xff]  ;;  %v904_v33 = vld [vmem:[#allocation4 + $0x388] sm:$0xff]  ;;  %v760_v38 = vld [vmem:[#allocation4 + $0x170] sm:$0xff] }
  0xa1   : > { %952 = vmatpush2.msra.mxu1 %v917_v5  ;;  %815 = vmatprep.subr.mxu0 %v775_v6  ;;  %v8644_v31 = vcombine.high %v8640_v28, %v8640_v28  ;;  %992 = vst [vmem:[#allocation2 + $0x20] sm:$0xf] %v8640_v28  ;;  %v762_v34 = vld [vmem:[#allocation4 + $0x180] sm:$0xff]  ;;  %v761_v36 = vld [vmem:[#allocation4 + $0x178] sm:$0xff]  ;;  %v901_v39 = vld [vmem:[#allocation4 + $0x370] sm:$0xff] }
  0xa2   : > { %953 = vmatprep.subr.mxu1 %v916_v7  ;;  %816 = vmatpush2.msra.mxu0 %v774_v8  ;;  %v903_v35 = vld [vmem:[#allocation4 + $0x380] sm:$0xff]  ;;  %v902_v37 = vld [vmem:[#allocation4 + $0x378] sm:$0xff]  ;;  %v759_v40 = vld [vmem:[#allocation4 + $0x168] sm:$0xff] }
  0xa3   : > { %954 = vmatpush2.msra.mxu1 %v915_v9  ;;  %817 = vmatprep.subr.mxu0 %v773_v10  ;;  %993 = vst [vmem:[#allocation2 + $0x28] sm:$0xf] %v8644_v31  ;;  %v900_v41 = vld [vmem:[#allocation4 + $0x368] sm:$0xff]  ;;  %v758_v42 = vld [vmem:[#allocation4 + $0x160] sm:$0xff]  ;;  %v757_v44 = vld [vmem:[#allocation4 + $0x158] sm:$0xff] }
  0xa4   : > { %955 = vmatprep.subr.mxu1 %v914_v11  ;;  %818 = vmatpush2.msra.mxu0 %v772_v12  ;;  %v899_v43 = vld [vmem:[#allocation4 + $0x360] sm:$0xff]  ;;  %v898_v45 = vld [vmem:[#allocation4 + $0x358] sm:$0xff]  ;;  %v756_v46 = vld [vmem:[#allocation4 + $0x150] sm:$0xff] }
  0xa5   : > { %956 = vmatpush2.msra.mxu1 %v913_v13  ;;  %819 = vmatprep.subr.mxu0 %v771_v14  ;;  %v897_v47 = vld [vmem:[#allocation4 + $0x350] sm:$0xff]  ;;  %v755_v48 = vld [vmem:[#allocation4 + $0x148] sm:$0xff]  ;;  %v754_v50 = vld [vmem:[#allocation4 + $0x140] sm:$0xff] }
  0xa6   : > { %957 = vmatprep.subr.mxu1 %v912_v15  ;;  %820 = vmatpush2.msra.mxu0 %v770_v16  ;;  %v896_v49 = vld [vmem:[#allocation4 + $0x348] sm:$0xff]  ;;  %v895_v51 = vld [vmem:[#allocation4 + $0x340] sm:$0xff]  ;;  %v753_v52 = vld [vmem:[#allocation4 + $0x138] sm:$0xff] }
  0xa7   : > { %958 = vmatpush2.msra.mxu1 %v911_v17  ;;  %821 = vmatprep.subr.mxu0 %v769_v18  ;;  %v894_v53 = vld [vmem:[#allocation4 + $0x338] sm:$0xff]  ;;  %v752_v54 = vld [vmem:[#allocation4 + $0x130] sm:$0xff]  ;;  %v751_v56 = vld [vmem:[#allocation4 + $0x128] sm:$0xff] }
  0xa8   : > { %959 = vmatprep.subr.mxu1 %v910_v19  ;;  %822 = vmatpush2.msra.mxu0 %v768_v20  ;;  %v893_v55 = vld [vmem:[#allocation4 + $0x330] sm:$0xff]  ;;  %v892_v57 = vld [vmem:[#allocation4 + $0x328] sm:$0xff]  ;;  %v750_v58 = vld [vmem:[#allocation4 + $0x120] sm:$0xff] }
  0xa9   : > { %960 = vmatpush2.msra.mxu1 %v909_v21  ;;  %823 = vmatprep.subr.mxu0 %v767_v22  ;;  %v891_v59 = vld [vmem:[#allocation4 + $0x320] sm:$0xff]  ;;  %v749_v60 = vld [vmem:[#allocation4 + $0x118] sm:$0xff]  ;;  %v748_v62 = vld [vmem:[#allocation4 + $0x110] sm:$0xff] }
  0xaa   : > { %961 = vmatprep.subr.mxu1 %v908_v23  ;;  %824 = vmatpush2.msra.mxu0 %v766_v24  ;;  %v890_v61 = vld [vmem:[#allocation4 + $0x318] sm:$0xff]  ;;  %v889_v63 = vld [vmem:[#allocation4 + $0x310] sm:$0xff]  ;;  %v747_v0 = vld [vmem:[#allocation4 + $0x108] sm:$0xff] }
  0xab   : > { %962 = vmatpush2.msra.mxu1 %v907_v25  ;;  %825 = vmatprep.subr.mxu0 %v765_v26  ;;  %v888_v1 = vld [vmem:[#allocation4 + $0x308] sm:$0xff]  ;;  %v746_v2 = vld [vmem:[#allocation4 + $0x100] sm:$0xff]  ;;  %v1026_v4 = vld [vmem:[#allocation4 + $0x4f8] sm:$0xff] }
  0xac   : > { %963 = vmatprep.subr.mxu1 %v906_v27  ;;  %826 = vmatpush2.msra.mxu0 %v764_v29  ;;  %v887_v3 = vld [vmem:[#allocation4 + $0x300] sm:$0xff]  ;;  %v1164_v5 = vld [vmem:[#allocation4 + $0x6f8] sm:$0xff]  ;;  %v1025_v6 = vld [vmem:[#allocation4 + $0x4f0] sm:$0xff] }
  0xad   : > { %964 = vmatpush2.msra.mxu1 %v905_v30  ;;  %827 = vmatprep.subr.mxu0 %v763_v32  ;;  %v1163_v7 = vld [vmem:[#allocation4 + $0x6f0] sm:$0xff]  ;;  %v1024_v8 = vld [vmem:[#allocation4 + $0x4e8] sm:$0xff]  ;;  %v1023_v10 = vld [vmem:[#allocation4 + $0x4e0] sm:$0xff] }
  0xae   : > { %965 = vmatprep.subr.mxu1 %v904_v33  ;;  %828 = vmatpush2.msra.mxu0 %v762_v34  ;;  %v1162_v9 = vld [vmem:[#allocation4 + $0x6e8] sm:$0xff]  ;;  %v1161_v11 = vld [vmem:[#allocation4 + $0x6e0] sm:$0xff]  ;;  %v1022_v12 = vld [vmem:[#allocation4 + $0x4d8] sm:$0xff] }
  0xaf   : > { %966 = vmatpush2.msra.mxu1 %v903_v35  ;;  %829 = vmatprep.subr.mxu0 %v761_v36  ;;  %v1160_v13 = vld [vmem:[#allocation4 + $0x6d8] sm:$0xff]  ;;  %v1021_v14 = vld [vmem:[#allocation4 + $0x4d0] sm:$0xff]  ;;  %v1020_v16 = vld [vmem:[#allocation4 + $0x4c8] sm:$0xff] }
  0xb0   : > { %967 = vmatprep.subr.mxu1 %v902_v37  ;;  %830 = vmatpush2.msra.mxu0 %v760_v38  ;;  %v1159_v15 = vld [vmem:[#allocation4 + $0x6d0] sm:$0xff]  ;;  %v1158_v17 = vld [vmem:[#allocation4 + $0x6c8] sm:$0xff]  ;;  %v1019_v18 = vld [vmem:[#allocation4 + $0x4c0] sm:$0xff] }
  0xb1   : > { %968 = vmatpush2.msra.mxu1 %v901_v39  ;;  %831 = vmatprep.subr.mxu0 %v759_v40  ;;  %v1157_v19 = vld [vmem:[#allocation4 + $0x6c0] sm:$0xff]  ;;  %v1018_v20 = vld [vmem:[#allocation4 + $0x4b8] sm:$0xff]  ;;  %v1017_v22 = vld [vmem:[#allocation4 + $0x4b0] sm:$0xff] }
  0xb2   : > { %969 = vmatprep.subr.mxu1 %v900_v41  ;;  %832 = vmatpush2.msra.mxu0 %v758_v42  ;;  %v1156_v21 = vld [vmem:[#allocation4 + $0x6b8] sm:$0xff]  ;;  %v1155_v23 = vld [vmem:[#allocation4 + $0x6b0] sm:$0xff]  ;;  %v1016_v24 = vld [vmem:[#allocation4 + $0x4a8] sm:$0xff] }
  0xb3   : > { %970 = vmatpush2.msra.mxu1 %v899_v43  ;;  %833 = vmatprep.subr.mxu0 %v757_v44  ;;  %v1154_v25 = vld [vmem:[#allocation4 + $0x6a8] sm:$0xff]  ;;  %v1015_v26 = vld [vmem:[#allocation4 + $0x4a0] sm:$0xff]  ;;  %v1014_v29 = vld [vmem:[#allocation4 + $0x498] sm:$0xff] }
  0xb4   : > { %971 = vmatprep.subr.mxu1 %v898_v45  ;;  %834 = vmatpush2.msra.mxu0 %v756_v46  ;;  %v1153_v27 = vld [vmem:[#allocation4 + $0x6a0] sm:$0xff]  ;;  %v1152_v30 = vld [vmem:[#allocation4 + $0x698] sm:$0xff]  ;;  %v1013_v32 = vld [vmem:[#allocation4 + $0x490] sm:$0xff] }
  0xb5   : > { %972 = vmatpush2.msra.mxu1 %v897_v47  ;;  %835 = vmatprep.subr.mxu0 %v755_v48  ;;  %v1151_v33 = vld [vmem:[#allocation4 + $0x690] sm:$0xff]  ;;  %v1012_v34 = vld [vmem:[#allocation4 + $0x488] sm:$0xff]  ;;  %v1011_v36 = vld [vmem:[#allocation4 + $0x480] sm:$0xff] }
  0xb6   : > { %973 = vmatprep.subr.mxu1 %v896_v49  ;;  %836 = vmatpush2.msra.mxu0 %v754_v50  ;;  %v1150_v35 = vld [vmem:[#allocation4 + $0x688] sm:$0xff]  ;;  %v1149_v37 = vld [vmem:[#allocation4 + $0x680] sm:$0xff]  ;;  %v1010_v38 = vld [vmem:[#allocation4 + $0x478] sm:$0xff] }
  0xb7   : > { %974 = vmatpush2.msra.mxu1 %v895_v51  ;;  %837 = vmatprep.subr.mxu0 %v753_v52  ;;  %v1148_v39 = vld [vmem:[#allocation4 + $0x678] sm:$0xff]  ;;  %v1009_v40 = vld [vmem:[#allocation4 + $0x470] sm:$0xff]  ;;  %v1008_v42 = vld [vmem:[#allocation4 + $0x468] sm:$0xff] }
  0xb8   : > { %975 = vmatprep.subr.mxu1 %v894_v53  ;;  %838 = vmatpush2.msra.mxu0 %v752_v54  ;;  %v1147_v41 = vld [vmem:[#allocation4 + $0x670] sm:$0xff]  ;;  %v1146_v43 = vld [vmem:[#allocation4 + $0x668] sm:$0xff]  ;;  %v1007_v44 = vld [vmem:[#allocation4 + $0x460] sm:$0xff] }
  0xb9   : > { %976 = vmatpush2.msra.mxu1 %v893_v55  ;;  %839 = vmatprep.subr.mxu0 %v751_v56  ;;  %v1145_v45 = vld [vmem:[#allocation4 + $0x660] sm:$0xff]  ;;  %v1006_v46 = vld [vmem:[#allocation4 + $0x458] sm:$0xff]  ;;  %v1005_v48 = vld [vmem:[#allocation4 + $0x450] sm:$0xff] }
  0xba   : > { %977 = vmatprep.subr.mxu1 %v892_v57  ;;  %840 = vmatpush2.msra.mxu0 %v750_v58  ;;  %v1144_v47 = vld [vmem:[#allocation4 + $0x658] sm:$0xff]  ;;  %v1143_v49 = vld [vmem:[#allocation4 + $0x650] sm:$0xff]  ;;  %v1004_v50 = vld [vmem:[#allocation4 + $0x448] sm:$0xff] }
  0xbb   : > { %978 = vmatpush2.msra.mxu1 %v891_v59  ;;  %841 = vmatprep.subr.mxu0 %v749_v60  ;;  %v1142_v51 = vld [vmem:[#allocation4 + $0x648] sm:$0xff]  ;;  %v1003_v52 = vld [vmem:[#allocation4 + $0x440] sm:$0xff]  ;;  %v1002_v54 = vld [vmem:[#allocation4 + $0x438] sm:$0xff] }
  0xbc   : > { %979 = vmatprep.subr.mxu1 %v890_v61  ;;  %842 = vmatpush2.msra.mxu0 %v748_v62  ;;  %v1141_v53 = vld [vmem:[#allocation4 + $0x640] sm:$0xff]  ;;  %v1140_v55 = vld [vmem:[#allocation4 + $0x638] sm:$0xff]  ;;  %v1001_v56 = vld [vmem:[#allocation4 + $0x430] sm:$0xff] }
  0xbd   : > { %980 = vmatpush2.msra.mxu1 %v889_v63  ;;  %843 = vmatprep.subr.mxu0 %v747_v0  ;;  %v1139_v57 = vld [vmem:[#allocation4 + $0x630] sm:$0xff]  ;;  %v1000_v58 = vld [vmem:[#allocation4 + $0x428] sm:$0xff]  ;;  %v999_v60 = vld [vmem:[#allocation4 + $0x420] sm:$0xff] }
  0xbe   : > { %981 = vmatprep.subr.mxu1 %v888_v1  ;;  %844 = vmatpush2.msra.mxu0 %v746_v2  ;;  %v1138_v59 = vld [vmem:[#allocation4 + $0x628] sm:$0xff]  ;;  %v1137_v61 = vld [vmem:[#allocation4 + $0x620] sm:$0xff]  ;;  %v998_v62 = vld [vmem:[#allocation4 + $0x418] sm:$0xff] }
  0xbf   : > { %982 = vmatpush2.msra.mxu1 %v887_v3  ;;  %983 = vmatprep.mubr.f32.mxu1 %v8644_v31  ;;  %v1136_v63 = vld [vmem:[#allocation4 + $0x618] sm:$0xff]  ;;  %v997_v0 = vld [vmem:[#allocation4 + $0x410] sm:$0xff]  ;;  %v996_v2 = vld [vmem:[#allocation4 + $0x408] sm:$0xff] }
  0xc0   : > { %845 = vmatprep.mubr.f32.mxu0 %v8644_v31  ;;  %984 = vmatmul.mubr.f32.vlgmr.msra.gmra.mxu1 %v8640_v28  ;;  %v1135_v1 = vld [vmem:[#allocation4 + $0x610] sm:$0xff]  ;;  %v1134_v3 = vld [vmem:[#allocation4 + $0x608] sm:$0xff] }
  0xc1   : > { %1059 = vmatprep.subr.mxu0 %v1026_v4  ;;  %1197 = vmatprep.subr.mxu1 %v1164_v5  ;;  %v995_v4 = vld [vmem:[#allocation4 + $0x400] sm:$0xff] }
  0xc2   : > { %846 = vmatmul.mubr.f32.vlgmr.msra.gmra.mxu0 %v8640_v28  ;;  %1198 = vmatpush1.msra.mxu1 %v1163_v7  ;;  %v1133_v5 = vld [vmem:[#allocation4 + $0x600] sm:$0xff]  ;;  %v1196_v7 = vld [vmem:[#allocation4 + $0x7f8] sm:$0xff] }
  0xc3   : > { %1060 = vmatpush1.msra.mxu0 %v1025_v6  ;;  %1199 = vmatprep.subr.mxu1 %v1162_v9  ;;  %v1058_v6 = vld [vmem:[#allocation4 + $0x5f8] sm:$0xff]  ;;  %v1195_v9 = vld [vmem:[#allocation4 + $0x7f0] sm:$0xff] }
  0xc4   : > { %1061 = vmatprep.subr.mxu0 %v1024_v8  ;;  %1200 = vmatpush1.msra.mxu1 %v1161_v11  ;;  %v1057_v8 = vld [vmem:[#allocation4 + $0x5f0] sm:$0xff]  ;;  %v1194_v11 = vld [vmem:[#allocation4 + $0x7e8] sm:$0xff] }
  0xc5   : > { %1062 = vmatpush1.msra.mxu0 %v1023_v10  ;;  %1201 = vmatprep.subr.mxu1 %v1160_v13  ;;  %v1056_v10 = vld [vmem:[#allocation4 + $0x5e8] sm:$0xff]  ;;  %v1193_v13 = vld [vmem:[#allocation4 + $0x7e0] sm:$0xff] }
  0xc6   : > { %1063 = vmatprep.subr.mxu0 %v1022_v12  ;;  %1202 = vmatpush1.msra.mxu1 %v1159_v15  ;;  %v1055_v12 = vld [vmem:[#allocation4 + $0x5e0] sm:$0xff]  ;;  %v1192_v15 = vld [vmem:[#allocation4 + $0x7d8] sm:$0xff] }
  0xc7   : > { %1064 = vmatpush1.msra.mxu0 %v1021_v14  ;;  %1203 = vmatprep.subr.mxu1 %v1158_v17  ;;  %v1054_v14 = vld [vmem:[#allocation4 + $0x5d8] sm:$0xff]  ;;  %v1191_v17 = vld [vmem:[#allocation4 + $0x7d0] sm:$0xff] }
  0xc8   : > { %1065 = vmatprep.subr.mxu0 %v1020_v16  ;;  %1204 = vmatpush1.msra.mxu1 %v1157_v19  ;;  %v1053_v16 = vld [vmem:[#allocation4 + $0x5d0] sm:$0xff]  ;;  %v1190_v19 = vld [vmem:[#allocation4 + $0x7c8] sm:$0xff] }
  0xc9   : > { %1066 = vmatpush1.msra.mxu0 %v1019_v18  ;;  %1205 = vmatprep.subr.mxu1 %v1156_v21  ;;  %v1052_v18 = vld [vmem:[#allocation4 + $0x5c8] sm:$0xff]  ;;  %v1189_v21 = vld [vmem:[#allocation4 + $0x7c0] sm:$0xff] }
  0xca   : > { %1067 = vmatprep.subr.mxu0 %v1018_v20  ;;  %1206 = vmatpush1.msra.mxu1 %v1155_v23  ;;  %v1051_v20 = vld [vmem:[#allocation4 + $0x5c0] sm:$0xff]  ;;  %v1188_v23 = vld [vmem:[#allocation4 + $0x7b8] sm:$0xff] }
  0xcb   : > { %1068 = vmatpush1.msra.mxu0 %v1017_v22  ;;  %1207 = vmatprep.subr.mxu1 %v1154_v25  ;;  %v1050_v22 = vld [vmem:[#allocation4 + $0x5b8] sm:$0xff]  ;;  %v1187_v25 = vld [vmem:[#allocation4 + $0x7b0] sm:$0xff] }
  0xcc   : > { %1069 = vmatprep.subr.mxu0 %v1016_v24  ;;  %1208 = vmatpush1.msra.mxu1 %v1153_v27  ;;  %v1049_v24 = vld [vmem:[#allocation4 + $0x5b0] sm:$0xff]  ;;  %v1186_v27 = vld [vmem:[#allocation4 + $0x7a8] sm:$0xff] }
  0xcd   : > { %1070 = vmatpush1.msra.mxu0 %v1015_v26  ;;  %1209 = vmatprep.subr.mxu1 %v1152_v30  ;;  %v1048_v26 = vld [vmem:[#allocation4 + $0x5a8] sm:$0xff]  ;;  %v1185_v30 = vld [vmem:[#allocation4 + $0x7a0] sm:$0xff] }
  0xce   : > { %1071 = vmatprep.subr.mxu0 %v1014_v29  ;;  %1210 = vmatpush1.msra.mxu1 %v1151_v33  ;;  %v1047_v29 = vld [vmem:[#allocation4 + $0x5a0] sm:$0xff]  ;;  %v1184_v33 = vld [vmem:[#allocation4 + $0x798] sm:$0xff] }
  0xcf   : > { %1072 = vmatpush1.msra.mxu0 %v1013_v32  ;;  %1211 = vmatprep.subr.mxu1 %v1150_v35  ;;  %v1046_v32 = vld [vmem:[#allocation4 + $0x598] sm:$0xff]  ;;  %v1183_v35 = vld [vmem:[#allocation4 + $0x790] sm:$0xff] }
  0xd0   : > { %1073 = vmatprep.subr.mxu0 %v1012_v34  ;;  %1212 = vmatpush1.msra.mxu1 %v1149_v37  ;;  %v1045_v34 = vld [vmem:[#allocation4 + $0x590] sm:$0xff]  ;;  %v1182_v37 = vld [vmem:[#allocation4 + $0x788] sm:$0xff] }
  0xd1   : > { %1074 = vmatpush1.msra.mxu0 %v1011_v36  ;;  %1213 = vmatprep.subr.mxu1 %v1148_v39  ;;  %v1044_v36 = vld [vmem:[#allocation4 + $0x588] sm:$0xff]  ;;  %v1181_v39 = vld [vmem:[#allocation4 + $0x780] sm:$0xff] }
  0xd2   : > { %1075 = vmatprep.subr.mxu0 %v1010_v38  ;;  %1214 = vmatpush1.msra.mxu1 %v1147_v41  ;;  %v1043_v38 = vld [vmem:[#allocation4 + $0x580] sm:$0xff]  ;;  %v1180_v41 = vld [vmem:[#allocation4 + $0x778] sm:$0xff] }
  0xd3   : > { %1076 = vmatpush1.msra.mxu0 %v1009_v40  ;;  %1215 = vmatprep.subr.mxu1 %v1146_v43  ;;  %v1042_v40 = vld [vmem:[#allocation4 + $0x578] sm:$0xff]  ;;  %v1179_v43 = vld [vmem:[#allocation4 + $0x770] sm:$0xff] }
  0xd4   : > { %1077 = vmatprep.subr.mxu0 %v1008_v42  ;;  %1216 = vmatpush1.msra.mxu1 %v1145_v45  ;;  %v1041_v42 = vld [vmem:[#allocation4 + $0x570] sm:$0xff]  ;;  %v1178_v45 = vld [vmem:[#allocation4 + $0x768] sm:$0xff] }
  0xd5   : > { %1078 = vmatpush1.msra.mxu0 %v1007_v44  ;;  %1217 = vmatprep.subr.mxu1 %v1144_v47  ;;  %v1040_v44 = vld [vmem:[#allocation4 + $0x568] sm:$0xff]  ;;  %v1177_v47 = vld [vmem:[#allocation4 + $0x760] sm:$0xff] }
  0xd6   : > { %1079 = vmatprep.subr.mxu0 %v1006_v46  ;;  %1218 = vmatpush1.msra.mxu1 %v1143_v49  ;;  %v1039_v46 = vld [vmem:[#allocation4 + $0x560] sm:$0xff]  ;;  %v1176_v49 = vld [vmem:[#allocation4 + $0x758] sm:$0xff] }
  0xd7   : > { %1080 = vmatpush1.msra.mxu0 %v1005_v48  ;;  %1219 = vmatprep.subr.mxu1 %v1142_v51  ;;  %v1038_v48 = vld [vmem:[#allocation4 + $0x558] sm:$0xff]  ;;  %v1175_v51 = vld [vmem:[#allocation4 + $0x750] sm:$0xff] }
  0xd8   : > { %1081 = vmatprep.subr.mxu0 %v1004_v50  ;;  %1220 = vmatpush1.msra.mxu1 %v1141_v53  ;;  %v1037_v50 = vld [vmem:[#allocation4 + $0x550] sm:$0xff]  ;;  %v1174_v53 = vld [vmem:[#allocation4 + $0x748] sm:$0xff] }
  0xd9   : > { %1082 = vmatpush1.msra.mxu0 %v1003_v52  ;;  %1221 = vmatprep.subr.mxu1 %v1140_v55  ;;  %v1036_v52 = vld [vmem:[#allocation4 + $0x548] sm:$0xff]  ;;  %v1173_v55 = vld [vmem:[#allocation4 + $0x740] sm:$0xff] }
  0xda   : > { %1083 = vmatprep.subr.mxu0 %v1002_v54  ;;  %1222 = vmatpush1.msra.mxu1 %v1139_v57  ;;  %v1035_v54 = vld [vmem:[#allocation4 + $0x540] sm:$0xff]  ;;  %v1172_v57 = vld [vmem:[#allocation4 + $0x738] sm:$0xff] }
  0xdb   : > { %1084 = vmatpush1.msra.mxu0 %v1001_v56  ;;  %1223 = vmatprep.subr.mxu1 %v1138_v59  ;;  %v1034_v56 = vld [vmem:[#allocation4 + $0x538] sm:$0xff]  ;;  %v1171_v59 = vld [vmem:[#allocation4 + $0x730] sm:$0xff] }
  0xdc   : > { %1085 = vmatprep.subr.mxu0 %v1000_v58  ;;  %1224 = vmatpush1.msra.mxu1 %v1137_v61  ;;  %v1033_v58 = vld [vmem:[#allocation4 + $0x530] sm:$0xff]  ;;  %v1170_v61 = vld [vmem:[#allocation4 + $0x728] sm:$0xff] }
  0xdd   : > { %1086 = vmatpush1.msra.mxu0 %v999_v60  ;;  %1225 = vmatprep.subr.mxu1 %v1136_v63  ;;  %v1032_v60 = vld [vmem:[#allocation4 + $0x528] sm:$0xff]  ;;  %v1169_v63 = vld [vmem:[#allocation4 + $0x720] sm:$0xff] }
  0xde   : > { %1087 = vmatprep.subr.mxu0 %v998_v62  ;;  %1226 = vmatpush1.msra.mxu1 %v1135_v1  ;;  %v1031_v62 = vld [vmem:[#allocation4 + $0x520] sm:$0xff]  ;;  %v1168_v1 = vld [vmem:[#allocation4 + $0x718] sm:$0xff] }
  0xdf   : > { %1088 = vmatpush1.msra.mxu0 %v997_v0  ;;  %1227 = vmatprep.subr.mxu1 %v1134_v3  ;;  %v1030_v0 = vld [vmem:[#allocation4 + $0x518] sm:$0xff]  ;;  %v1167_v3 = vld [vmem:[#allocation4 + $0x710] sm:$0xff] }
  0xe0   : > { %1089 = vmatprep.subr.mxu0 %v996_v2  ;;  %1228 = vmatpush1.msra.mxu1 %v1133_v5  ;;  %v1029_v2 = vld [vmem:[#allocation4 + $0x510] sm:$0xff]  ;;  %v1166_v5 = vld [vmem:[#allocation4 + $0x708] sm:$0xff] }
  0xe1   : > { %1090 = vmatpush1.msra.mxu0 %v995_v4  ;;  %1229 = vmatprep.subr.mxu1 %v1196_v7  ;;  %v1028_v4 = vld [vmem:[#allocation4 + $0x508] sm:$0xff]  ;;  %v1165_v7 = vld [vmem:[#allocation4 + $0x700] sm:$0xff] }
  0xe2   : > { %1091 = vmatprep.subr.mxu0 %v1058_v6  ;;  %1230 = vmatpush2.msra.mxu1 %v1195_v9  ;;  %v1027_v6 = vld [vmem:[#allocation4 + $0x500] sm:$0xff]  ;;  %v1529_v9 = vld [vmem:[#allocation4 + $0xaf8] sm:$0xff] }
  0xe3   : > { %1092 = vmatpush2.msra.mxu0 %v1057_v8  ;;  %1231 = vmatprep.subr.mxu1 %v1194_v11  ;;  %v8656_v8 = vld [vmem:[#allocation2 + $0x58] sm:$0xff]  ;;  %v1527_v11 = vld [vmem:[#allocation4 + $0xae8] sm:$0xff] }
  0xe4   : > { %1093 = vmatprep.subr.mxu0 %v1056_v10  ;;  %1232 = vmatpush2.msra.mxu1 %v1193_v13  ;;  %v1528_v10 = vld [vmem:[#allocation4 + $0xaf0] sm:$0xff]  ;;  %v1525_v13 = vld [vmem:[#allocation4 + $0xad8] sm:$0xff] }
  0xe5   : > { %1094 = vmatpush2.msra.mxu0 %v1055_v12  ;;  %1233 = vmatprep.subr.mxu1 %v1192_v15  ;;  %v1526_v12 = vld [vmem:[#allocation4 + $0xae0] sm:$0xff]  ;;  %v1523_v15 = vld [vmem:[#allocation4 + $0xac8] sm:$0xff] }
  0xe6   : > { %1095 = vmatprep.subr.mxu0 %v1054_v14  ;;  %1234 = vmatpush2.msra.mxu1 %v1191_v17  ;;  %v1524_v14 = vld [vmem:[#allocation4 + $0xad0] sm:$0xff]  ;;  %v1519_v17 = vld [vmem:[#allocation4 + $0xaa8] sm:$0xff] }
  0xe7   : > { %1096 = vmatpush2.msra.mxu0 %v1053_v16  ;;  %1235 = vmatprep.subr.mxu1 %v1190_v19  ;;  %v1521_v16 = vld [vmem:[#allocation4 + $0xab8] sm:$0xff] }
  0xe8   : > { %1097 = vmatprep.subr.mxu0 %v1052_v18  ;;  %1236 = vmatpush2.msra.mxu1 %v1189_v21  ;;  %v1518_v18 = vld [vmem:[#allocation4 + $0xaa0] sm:$0xff]  ;;  %v1517_v19 = vld [vmem:[#allocation4 + $0xa98] sm:$0xff]  ;;  %v1515_v21 = vld [vmem:[#allocation4 + $0xa88] sm:$0xff] }
  0xe9   : > { %1098 = vmatpush2.msra.mxu0 %v1051_v20  ;;  %1237 = vmatprep.subr.mxu1 %v1188_v23  ;;  %v1516_v20 = vld [vmem:[#allocation4 + $0xa90] sm:$0xff]  ;;  %v1513_v23 = vld [vmem:[#allocation4 + $0xa78] sm:$0xff] }
  0xea   : > { %1099 = vmatprep.subr.mxu0 %v1050_v22  ;;  %1238 = vmatpush2.msra.mxu1 %v1187_v25  ;;  %v1514_v22 = vld [vmem:[#allocation4 + $0xa80] sm:$0xff]  ;;  %v1511_v25 = vld [vmem:[#allocation4 + $0xa68] sm:$0xff] }
  0xeb   : > { %1100 = vmatpush2.msra.mxu0 %v1049_v24  ;;  %1239 = vmatprep.subr.mxu1 %v1186_v27  ;;  %v1512_v24 = vld [vmem:[#allocation4 + $0xa70] sm:$0xff]  ;;  %v1509_v27 = vld [vmem:[#allocation4 + $0xa58] sm:$0xff] }
  0xec   : > { %1101 = vmatprep.subr.mxu0 %v1048_v26  ;;  %1240 = vmatpush2.msra.mxu1 %v1185_v30  ;;  %v1510_v26 = vld [vmem:[#allocation4 + $0xa60] sm:$0xff]  ;;  %v1507_v30 = vld [vmem:[#allocation4 + $0xa48] sm:$0xff] }
  0xed   : > { %1102 = vmatpush2.msra.mxu0 %v1047_v29  ;;  %1241 = vmatprep.subr.mxu1 %v1184_v33  ;;  %v1508_v29 = vld [vmem:[#allocation4 + $0xa50] sm:$0xff]  ;;  %v1505_v33 = vld [vmem:[#allocation4 + $0xa38] sm:$0xff] }
  0xee   : > { %1103 = vmatprep.subr.mxu0 %v1046_v32  ;;  %1242 = vmatpush2.msra.mxu1 %v1183_v35  ;;  %v1506_v32 = vld [vmem:[#allocation4 + $0xa40] sm:$0xff]  ;;  %v1503_v35 = vld [vmem:[#allocation4 + $0xa28] sm:$0xff] }
  0xef   : > { %1104 = vmatpush2.msra.mxu0 %v1045_v34  ;;  %1243 = vmatprep.subr.mxu1 %v1182_v37  ;;  %v1504_v34 = vld [vmem:[#allocation4 + $0xa30] sm:$0xff]  ;;  %v1501_v37 = vld [vmem:[#allocation4 + $0xa18] sm:$0xff] }
  0xf0   : > { %1105 = vmatprep.subr.mxu0 %v1044_v36  ;;  %1244 = vmatpush2.msra.mxu1 %v1181_v39  ;;  %v1502_v36 = vld [vmem:[#allocation4 + $0xa20] sm:$0xff]  ;;  %v1499_v39 = vld [vmem:[#allocation4 + $0xa08] sm:$0xff] }
  0xf1   : > { %1106 = vmatpush2.msra.mxu0 %v1043_v38  ;;  %1245 = vmatprep.subr.mxu1 %v1180_v41  ;;  %v1500_v38 = vld [vmem:[#allocation4 + $0xa10] sm:$0xff]  ;;  %v1561_v41 = vld [vmem:[#allocation4 + $0xbf8] sm:$0xff] }
  0xf2   : > { %1107 = vmatprep.subr.mxu0 %v1042_v40  ;;  %1246 = vmatpush2.msra.mxu1 %v1179_v43  ;;  %v1498_v40 = vld [vmem:[#allocation4 + $0xa00] sm:$0xff]  ;;  %v1559_v43 = vld [vmem:[#allocation4 + $0xbe8] sm:$0xff] }
  0xf3   : > { %1108 = vmatpush2.msra.mxu0 %v1041_v42  ;;  %1247 = vmatprep.subr.mxu1 %v1178_v45  ;;  %v1560_v42 = vld [vmem:[#allocation4 + $0xbf0] sm:$0xff]  ;;  %v1557_v45 = vld [vmem:[#allocation4 + $0xbd8] sm:$0xff] }
  0xf4   : > { %1109 = vmatprep.subr.mxu0 %v1040_v44  ;;  %1248 = vmatpush2.msra.mxu1 %v1177_v47  ;;  %v1558_v44 = vld [vmem:[#allocation4 + $0xbe0] sm:$0xff]  ;;  %v1555_v47 = vld [vmem:[#allocation4 + $0xbc8] sm:$0xff] }
  0xf5   : > { %1110 = vmatpush2.msra.mxu0 %v1039_v46  ;;  %1249 = vmatprep.subr.mxu1 %v1176_v49  ;;  %v1556_v46 = vld [vmem:[#allocation4 + $0xbd0] sm:$0xff]  ;;  %v1553_v49 = vld [vmem:[#allocation4 + $0xbb8] sm:$0xff] }
  0xf6   : > { %1111 = vmatprep.subr.mxu0 %v1038_v48  ;;  %1250 = vmatpush2.msra.mxu1 %v1175_v51  ;;  %v1554_v48 = vld [vmem:[#allocation4 + $0xbc0] sm:$0xff]  ;;  %v1551_v51 = vld [vmem:[#allocation4 + $0xba8] sm:$0xff] }
  0xf7   : > { %1112 = vmatpush2.msra.mxu0 %v1037_v50  ;;  %1251 = vmatprep.subr.mxu1 %v1174_v53  ;;  %v1552_v50 = vld [vmem:[#allocation4 + $0xbb0] sm:$0xff]  ;;  %v1549_v53 = vld [vmem:[#allocation4 + $0xb98] sm:$0xff] }
  0xf8   : > { %1113 = vmatprep.subr.mxu0 %v1036_v52  ;;  %1252 = vmatpush2.msra.mxu1 %v1173_v55  ;;  %v1550_v52 = vld [vmem:[#allocation4 + $0xba0] sm:$0xff]  ;;  %v1547_v55 = vld [vmem:[#allocation4 + $0xb88] sm:$0xff] }
  0xf9   : > { %1114 = vmatpush2.msra.mxu0 %v1035_v54  ;;  %1253 = vmatprep.subr.mxu1 %v1172_v57  ;;  %v1548_v54 = vld [vmem:[#allocation4 + $0xb90] sm:$0xff]  ;;  %v1545_v57 = vld [vmem:[#allocation4 + $0xb78] sm:$0xff] }
  0xfa   : > { %1115 = vmatprep.subr.mxu0 %v1034_v56  ;;  %1254 = vmatpush2.msra.mxu1 %v1171_v59  ;;  %v1546_v56 = vld [vmem:[#allocation4 + $0xb80] sm:$0xff]  ;;  %v1543_v59 = vld [vmem:[#allocation4 + $0xb68] sm:$0xff] }
  0xfb   : > { %1116 = vmatpush2.msra.mxu0 %v1033_v58  ;;  %1255 = vmatprep.subr.mxu1 %v1170_v61  ;;  %v1544_v58 = vld [vmem:[#allocation4 + $0xb70] sm:$0xff]  ;;  %v1541_v61 = vld [vmem:[#allocation4 + $0xb58] sm:$0xff] }
  0xfc   : > { %1117 = vmatprep.subr.mxu0 %v1032_v60  ;;  %1256 = vmatpush2.msra.mxu1 %v1169_v63  ;;  %v1542_v60 = vld [vmem:[#allocation4 + $0xb60] sm:$0xff]  ;;  %v1539_v63 = vld [vmem:[#allocation4 + $0xb48] sm:$0xff] }
  0xfd   : > { %1118 = vmatpush2.msra.mxu0 %v1031_v62  ;;  %1257 = vmatprep.subr.mxu1 %v1168_v1  ;;  %v1540_v62 = vld [vmem:[#allocation4 + $0xb50] sm:$0xff]  ;;  %v1537_v1 = vld [vmem:[#allocation4 + $0xb38] sm:$0xff] }
  0xfe   : > { %1119 = vmatprep.subr.mxu0 %v1030_v0  ;;  %1258 = vmatpush2.msra.mxu1 %v1167_v3  ;;  %v1538_v0 = vld [vmem:[#allocation4 + $0xb40] sm:$0xff]  ;;  %v1535_v3 = vld [vmem:[#allocation4 + $0xb28] sm:$0xff] }
  0xff   : > { %1120 = vmatpush2.msra.mxu0 %v1029_v2  ;;  %1259 = vmatprep.subr.mxu1 %v1166_v5  ;;  %v1536_v2 = vld [vmem:[#allocation4 + $0xb30] sm:$0xff]  ;;  %v1533_v5 = vld [vmem:[#allocation4 + $0xb18] sm:$0xff] }
 0x100   : > { %1121 = vmatprep.subr.mxu0 %v1028_v4  ;;  %1123 = vmatprep.mubr.f32.mxu0 %v8644_v31  ;;  %v1534_v4 = vld [vmem:[#allocation4 + $0xb20] sm:$0xff] }
 0x101   : > { %1122 = vmatpush2.msra.mxu0 %v1027_v6  ;;  %1260 = vmatpush2.msra.mxu1 %v1165_v7  ;;  %v1532_v6 = vld [vmem:[#allocation4 + $0xb10] sm:$0xff]  ;;  %v1531_v7 = vld [vmem:[#allocation4 + $0xb08] sm:$0xff] }
 0x102   : > { %1261 = vmatprep.mubr.f32.mxu1 %v8644_v31  ;;  %1124 = vmatmul.mubr.f32.vlgmr.msra.gmra.mxu0 %v8640_v28  ;;  %v1522_v31 = vld [vmem:[#allocation4 + $0xac0] sm:$0xff] }
 0x103   : > { %1262 = vmatmul.mubr.f32.vlgmr.msra.gmra.mxu1 %v8640_v28  ;;  %1562 = vmatprep.subr.mxu0 %v1529_v9  ;;  %v1520_v28 = vld [vmem:[#allocation4 + $0xab0] sm:$0xff]  ;;  %v1530_v9 = vld [vmem:[#allocation4 + $0xb00] sm:$0xff] }
 0x104   : > { %1349 = vmatprep.mubr.f32.mxu1 %v8656_v8  ;;  %1563 = vmatpush1.msra.mxu0 %v1528_v10 }
 0x105   : > { %1564 = vmatprep.subr.mxu0 %v1527_v11 }
 0x106   : > { %1565 = vmatpush1.msra.mxu0 %v1526_v12 }
 0x107   : > { %1566 = vmatprep.subr.mxu0 %v1525_v13 }
 0x108   : > { %1567 = vmatpush1.msra.mxu0 %v1524_v14 }
 0x109   : > { %1568 = vmatprep.subr.mxu0 %v1523_v15 }
 0x10a   : > { %1569 = vmatpush1.msra.mxu0 %v1522_v31 }
 0x10b   : > { %1570 = vmatprep.subr.mxu0 %v1521_v16 }
 0x10c   : > { %1571 = vmatpush1.msra.mxu0 %v1520_v28 }
 0x10d   : > { %1572 = vmatprep.subr.mxu0 %v1519_v17 }
 0x10e   : > { %1573 = vmatpush1.msra.mxu0 %v1518_v18 }
 0x10f   : > { %1574 = vmatprep.subr.mxu0 %v1517_v19  ;;  %v8668_v19 = vld [vmem:[#allocation2 + $0x28] sm:$0xff] }
 0x110   : > { %1575 = vmatpush1.msra.mxu0 %v1516_v20 }
 0x111   : > { %1576 = vmatprep.subr.mxu0 %v1515_v21  ;;  %v8673_v21 = vld [vmem:[#allocation2 + $0x20] sm:$0xff] }
 0x112   : > { %1577 = vmatpush1.msra.mxu0 %v1514_v22 }
 0x113   : > { %1578 = vmatprep.subr.mxu0 %v1513_v23 }
 0x114   : > { %1579 = vmatpush1.msra.mxu0 %v1512_v24 }
 0x115   : > { %1580 = vmatprep.subr.mxu0 %v1511_v25  ;;  %v1280_v25 = vld [vmem:[%s9920_s10] sm:$0xf] }
 0x116   : > { %1581 = vmatpush1.msra.mxu0 %v1510_v26 }
 0x117   : > { %1582 = vmatprep.subr.mxu0 %v1509_v27  ;;  %v7052_v27 = vld [vmem:[%s9920_s10 + $0x4] sm:$0xf] }
 0x118   : > { %1583 = vmatpush1.msra.mxu0 %v1508_v29  ;;  %v1388_v29 = vld [vmem:[#allocation4 + $0x8f8] sm:$0xff] }
 0x119   : > { %1584 = vmatprep.subr.mxu0 %v1507_v30  ;;  %v1387_v30 = vld [vmem:[#allocation4 + $0x8f0] sm:$0xff] }
 0x11a   : > { %1585 = vmatpush1.msra.mxu0 %v1506_v32  ;;  %v1386_v32 = vld [vmem:[#allocation4 + $0x8e8] sm:$0xff] }
 0x11b   : > { %1586 = vmatprep.subr.mxu0 %v1505_v33  ;;  %v1385_v33 = vld [vmem:[#allocation4 + $0x8e0] sm:$0xff] }
 0x11c   : > { %1587 = vmatpush1.msra.mxu0 %v1504_v34  ;;  %v1384_v34 = vld [vmem:[#allocation4 + $0x8d8] sm:$0xff] }
 0x11d   : > { %1588 = vmatprep.subr.mxu0 %v1503_v35  ;;  %v1383_v35 = vld [vmem:[#allocation4 + $0x8d0] sm:$0xff] }
 0x11e   : > { %1589 = vmatpush1.msra.mxu0 %v1502_v36  ;;  %v1382_v36 = vld [vmem:[#allocation4 + $0x8c8] sm:$0xff] }
 0x11f   : > { %1590 = vmatprep.subr.mxu0 %v1501_v37  ;;  %v1381_v37 = vld [vmem:[#allocation4 + $0x8c0] sm:$0xff] }
 0x120   : > { %1591 = vmatpush1.msra.mxu0 %v1500_v38  ;;  %v1380_v38 = vld [vmem:[#allocation4 + $0x8b8] sm:$0xff] }
 0x121   : > { %1592 = vmatprep.subr.mxu0 %v1499_v39  ;;  %v1379_v39 = vld [vmem:[#allocation4 + $0x8b0] sm:$0xff] }
 0x122   : > { %1593 = vmatpush1.msra.mxu0 %v1498_v40  ;;  %v1378_v40 = vld [vmem:[#allocation4 + $0x8a8] sm:$0xff] }
 0x123   : > { %1594 = vmatprep.subr.mxu0 %v1561_v41  ;;  %v1377_v41 = vld [vmem:[#allocation4 + $0x8a0] sm:$0xff] }
 0x124   : > { %1595 = vmatpush2.msra.mxu0 %v1560_v42  ;;  %v1376_v42 = vld [vmem:[#allocation4 + $0x898] sm:$0xff] }
 0x125   : > { %1596 = vmatprep.subr.mxu0 %v1559_v43  ;;  %v1375_v43 = vld [vmem:[#allocation4 + $0x890] sm:$0xff] }
 0x126   : > { %1597 = vmatpush2.msra.mxu0 %v1558_v44  ;;  %v1374_v44 = vld [vmem:[#allocation4 + $0x888] sm:$0xff] }
 0x127   : > { %1598 = vmatprep.subr.mxu0 %v1557_v45  ;;  %v1373_v45 = vld [vmem:[#allocation4 + $0x880] sm:$0xff] }
 0x128   : > { %1599 = vmatpush2.msra.mxu0 %v1556_v46  ;;  %v1372_v46 = vld [vmem:[#allocation4 + $0x878] sm:$0xff] }
 0x129   : > { %1600 = vmatprep.subr.mxu0 %v1555_v47  ;;  %v1371_v47 = vld [vmem:[#allocation4 + $0x870] sm:$0xff] }
 0x12a   : > { %1601 = vmatpush2.msra.mxu0 %v1554_v48  ;;  %v1370_v48 = vld [vmem:[#allocation4 + $0x868] sm:$0xff] }
 0x12b   : > { %1602 = vmatprep.subr.mxu0 %v1553_v49  ;;  %v1369_v49 = vld [vmem:[#allocation4 + $0x860] sm:$0xff] }
 0x12c   : > { %1603 = vmatpush2.msra.mxu0 %v1552_v50  ;;  %v1368_v50 = vld [vmem:[#allocation4 + $0x858] sm:$0xff] }
 0x12d   : > { %1604 = vmatprep.subr.mxu0 %v1551_v51  ;;  %v1367_v51 = vld [vmem:[#allocation4 + $0x850] sm:$0xff] }
 0x12e   : > { %1605 = vmatpush2.msra.mxu0 %v1550_v52  ;;  %v1366_v52 = vld [vmem:[#allocation4 + $0x848] sm:$0xff] }
 0x12f   : > { %1606 = vmatprep.subr.mxu0 %v1549_v53  ;;  %v1365_v53 = vld [vmem:[#allocation4 + $0x840] sm:$0xff] }
 0x130   : > { %1607 = vmatpush2.msra.mxu0 %v1548_v54  ;;  %v1364_v54 = vld [vmem:[#allocation4 + $0x838] sm:$0xff] }
 0x131   : > { %1608 = vmatprep.subr.mxu0 %v1547_v55  ;;  %v1363_v55 = vld [vmem:[#allocation4 + $0x830] sm:$0xff] }
 0x132   : > { %1609 = vmatpush2.msra.mxu0 %v1546_v56  ;;  %v1362_v56 = vld [vmem:[#allocation4 + $0x828] sm:$0xff] }
 0x133   : > { %1610 = vmatprep.subr.mxu0 %v1545_v57  ;;  %v1361_v57 = vld [vmem:[#allocation4 + $0x820] sm:$0xff] }
 0x134   : > { %1611 = vmatpush2.msra.mxu0 %v1544_v58  ;;  %v1360_v58 = vld [vmem:[#allocation4 + $0x818] sm:$0xff] }
 0x135   : > { %1612 = vmatprep.subr.mxu0 %v1543_v59  ;;  %v1359_v59 = vld [vmem:[#allocation4 + $0x810] sm:$0xff] }
 0x136   : > { %1613 = vmatpush2.msra.mxu0 %v1542_v60  ;;  %v1358_v60 = vld [vmem:[#allocation4 + $0x808] sm:$0xff] }
 0x137   : > { %1614 = vmatprep.subr.mxu0 %v1541_v61  ;;  %v1357_v61 = vld [vmem:[#allocation4 + $0x800] sm:$0xff] }
 0x138   : > { %1615 = vmatpush2.msra.mxu0 %v1540_v62  ;;  %v1420_v62 = vld [vmem:[#allocation4 + $0x9f8] sm:$0xff] }
 0x139   : > { %1616 = vmatprep.subr.mxu0 %v1539_v63  ;;  %v1419_v63 = vld [vmem:[#allocation4 + $0x9f0] sm:$0xff] }
 0x13a   : > { %1617 = vmatpush2.msra.mxu0 %v1538_v0  ;;  %v1418_v0 = vld [vmem:[#allocation4 + $0x9e8] sm:$0xff] }
 0x13b   : > { %1618 = vmatprep.subr.mxu0 %v1537_v1  ;;  %v1417_v1 = vld [vmem:[#allocation4 + $0x9e0] sm:$0xff] }
 0x13c   : > { %1619 = vmatpush2.msra.mxu0 %v1536_v2  ;;  %v1416_v2 = vld [vmem:[#allocation4 + $0x9d8] sm:$0xff] }
 0x13d   : > { %1620 = vmatprep.subr.mxu0 %v1535_v3  ;;  %v1415_v3 = vld [vmem:[#allocation4 + $0x9d0] sm:$0xff] }
 0x13e   : > { %1621 = vmatpush2.msra.mxu0 %v1534_v4  ;;  %v1414_v4 = vld [vmem:[#allocation4 + $0x9c8] sm:$0xff] }
 0x13f   : > { %1622 = vmatprep.subr.mxu0 %v1533_v5  ;;  %v1413_v5 = vld [vmem:[#allocation4 + $0x9c0] sm:$0xff] }
 0x140   : > { %1623 = vmatpush2.msra.mxu0 %v1532_v6  ;;  %v1412_v6 = vld [vmem:[#allocation4 + $0x9b8] sm:$0xff] }
 0x141   : > { %1624 = vmatprep.subr.mxu0 %v1531_v7  ;;  %v1411_v7 = vld [vmem:[#allocation4 + $0x9b0] sm:$0xff] }
 0x142   : > { %1625 = vmatpush2.msra.mxu0 %v1530_v9  ;;  %v1410_v9 = vld [vmem:[#allocation4 + $0x9a8] sm:$0xff] }
 0x180   : > { %v985_v10 = vpop.f32.mrf.mxu1 }
 0x181   : > { %990 = vst [vmem:[#allocation2 + $0x10] sm:$0xf] %v985_v10  ;;  %v1409_v10 = vld [vmem:[#allocation4 + $0x9a0] sm:$0xff] }
 0x182   : > { %v847_v11 = vpop.f32.mrf.mxu0  ;;  %v987_v12 = vpop.f32.mrf.mxu1 }
 0x183   : > { %852 = vst [vmem:[#allocation2] sm:$0xf] %v847_v11  ;;  %991 = vst [vmem:[#allocation2 + $0x18] sm:$0xf] %v987_v12  ;;  %v1408_v11 = vld [vmem:[#allocation4 + $0x998] sm:$0xff]  ;;  %v1407_v12 = vld [vmem:[#allocation4 + $0x990] sm:$0xff] }
 0x184   : > { %v849_v13 = vpop.f32.mrf.mxu0 }
 0x185   : > { %853 = vst [vmem:[#allocation2 + $0x8] sm:$0xf] %v849_v13  ;;  %v1406_v13 = vld [vmem:[#allocation4 + $0x988] sm:$0xff] }
 0x188   : > { %v8681_v23 = vld [vmem:[#allocation2 + $0x10] sm:$0xff] }
 0x18a   : > { %v8678_v22 = vld [vmem:[#allocation2 + $0x18] sm:$0xff]  ;;  %v8690_v26 = vld [vmem:[#allocation2] sm:$0xff] }
 0x18c   : > { %v8684_v24 = vld [vmem:[#allocation2 + $0x8] sm:$0xff] }
 0x1c2   : > { %v1125_v14 = vpop.f32.mrf.mxu0 }
 0x1c3   : > { %v1263_v15 = vpop.f32.mrf.mxu1  ;;  %1130 = vst [vmem:[#allocation2 + $0x30] sm:$0xf] %v1125_v14  ;;  %v1405_v14 = vld [vmem:[#allocation4 + $0x980] sm:$0xff] }
 0x1c4   : > { %1268 = vst [vmem:[#allocation2 + $0x40] sm:$0xf] %v1263_v15  ;;  %v1127_v31 = vpop.f32.mrf.mxu0  ;;  %v1404_v15 = vld [vmem:[#allocation4 + $0x978] sm:$0xff] }
 0x1c5   : > { %v1265_v16 = vpop.f32.mrf.mxu1  ;;  %1131 = vst [vmem:[#allocation2 + $0x38] sm:$0xf] %v1127_v31  ;;  %v1403_v31 = vld [vmem:[#allocation4 + $0x970] sm:$0xff] }
 0x1c6   : > { %1269 = vst [vmem:[#allocation2 + $0x48] sm:$0xf] %v1265_v16  ;;  %v1402_v16 = vld [vmem:[#allocation4 + $0x968] sm:$0xff] }
 0x1ca   : > { %v8671_v20 = vld [vmem:[#allocation2 + $0x30] sm:$0xff] }
 0x1cb   : > { %v8663_v17 = vld [vmem:[#allocation2 + $0x40] sm:$0xff] }
 0x1cc   : > { %v8666_v18 = vld [vmem:[#allocation2 + $0x38] sm:$0xff] }
 0x1cd   : > { %v8659_v28 = vld [vmem:[#allocation2 + $0x48] sm:$0xff] }
 0x1ce   : > { %1307 = vmatprep.subr.mxu1 %v8659_v28  ;;  %1731 = vmatprep.subr.mxu0 %v8659_v28 }
 0x1cf   : > { %1308 = vmatpush1.msra.mxu1 %v8663_v17 }
 0x1d0   : > { %1309 = vmatprep.subr.mxu1 %v8666_v18 }
 0x1d1   : > { %1310 = vmatpush1.msra.mxu1 %v8671_v20 }
 0x1d2   : > { %1311 = vmatprep.subr.mxu1 %v8668_v19 }
 0x1d3   : > { %1312 = vmatpush1.msra.mxu1 %v8673_v21 }
 0x1d4   : > { %1313 = vmatprep.subr.mxu1 %v8678_v22 }
 0x1d5   : > { %1314 = vmatpush1.msra.mxu1 %v8681_v23 }
 0x1d6   : > { %1315 = vmatprep.subr.mxu1 %v8684_v24 }
 0x1d7   : > { %1316 = vmatpush1.msra.mxu1 %v8690_v26 }
 0x1d8   : > { %7051 = vmatmul.mubr.msk.f32.vlgmr.msra.gmra.mxu1 %vm1281_vm0, %v1280_v25  ;;  %1448 = vmatprep.subr.mxu1 %v8659_v28  ;;  %v1401_v25 = vld [vmem:[#allocation4 + $0x960] sm:$0xff] }
 0x1d9   : > { %1449 = vmatpush1.msra.mxu1 %v8663_v17  ;;  %1490 = vmatprep.mubr.f32.mxu1 %v8656_v8 }
 0x1da   : > { %1450 = vmatprep.subr.mxu1 %v8666_v18 }
 0x1db   : > { %1451 = vmatpush1.msra.mxu1 %v8671_v20 }
 0x1dc   : > { %1452 = vmatprep.subr.mxu1 %v8668_v19 }
 0x1dd   : > { %1453 = vmatpush1.msra.mxu1 %v8673_v21 }
 0x1de   : > { %1454 = vmatprep.subr.mxu1 %v8678_v22 }
 0x1df   : > { %1455 = vmatpush1.msra.mxu1 %v8681_v23 }
 0x1e0   : > { %1456 = vmatprep.subr.mxu1 %v8684_v24 }
 0x1e1   : > { %1457 = vmatpush1.msra.mxu1 %v8690_v26 }
 0x1e2   : > { %7053 = vmatmul.mubr.msk.f32.vlgmr.msra.gmra.mxu1 %vm1281_vm0, %v7052_v27  ;;  %1633 = vmatprep.subr.mxu1 %v1388_v29  ;;  %v1400_v27 = vld [vmem:[#allocation4 + $0x958] sm:$0xff]  ;;  %v1399_v29 = vld [vmem:[#allocation4 + $0x950] sm:$0xff] }
 0x1e3   : > { %1634 = vmatpush1.msra.mxu1 %v1387_v30  ;;  %v1398_v30 = vld [vmem:[#allocation4 + $0x948] sm:$0xff] }
 0x1e4   : > { %1635 = vmatprep.subr.mxu1 %v1386_v32  ;;  %v1397_v32 = vld [vmem:[#allocation4 + $0x940] sm:$0xff] }
 0x1e5   : > { %1636 = vmatpush1.msra.mxu1 %v1385_v33  ;;  %v1396_v33 = vld [vmem:[#allocation4 + $0x938] sm:$0xff] }
 0x1e6   : > { %1637 = vmatprep.subr.mxu1 %v1384_v34  ;;  %v1395_v34 = vld [vmem:[#allocation4 + $0x930] sm:$0xff] }
 0x1e7   : > { %1638 = vmatpush1.msra.mxu1 %v1383_v35  ;;  %v1394_v35 = vld [vmem:[#allocation4 + $0x928] sm:$0xff] }
 0x1e8   : > { %1639 = vmatprep.subr.mxu1 %v1382_v36  ;;  %v1393_v36 = vld [vmem:[#allocation4 + $0x920] sm:$0xff] }
 0x1e9   : > { %1640 = vmatpush1.msra.mxu1 %v1381_v37  ;;  %v1392_v37 = vld [vmem:[#allocation4 + $0x918] sm:$0xff] }
 0x1ea   : > { %1641 = vmatprep.subr.mxu1 %v1380_v38  ;;  %v1391_v38 = vld [vmem:[#allocation4 + $0x910] sm:$0xff] }
 0x1eb   : > { %1642 = vmatpush1.msra.mxu1 %v1379_v39  ;;  %v1390_v39 = vld [vmem:[#allocation4 + $0x908] sm:$0xff] }
 0x1ec   : > { %1643 = vmatprep.subr.mxu1 %v1378_v40  ;;  %v1389_v40 = vld [vmem:[#allocation4 + $0x900] sm:$0xff] }
 0x1ed   : > { %1644 = vmatpush1.msra.mxu1 %v1377_v41 }
 0x1ee   : > { %1645 = vmatprep.subr.mxu1 %v1376_v42 }
 0x1ef   : > { %1646 = vmatpush1.msra.mxu1 %v1375_v43 }
 0x1f0   : > { %1647 = vmatprep.subr.mxu1 %v1374_v44  ;;  %v7056_v44 = vld [vmem:[%s9920_s10 + $0xc] sm:$0xf] }
 0x1f1   : > { %1648 = vmatpush1.msra.mxu1 %v1373_v45 }
 0x1f2   : > { %1649 = vmatprep.subr.mxu1 %v1372_v46  ;;  %v2101_v46 = vld [vmem:[#allocation4 + $0xee0] sm:$0xff] }
 0x1f3   : > { %1650 = vmatpush1.msra.mxu1 %v1371_v47  ;;  %v2100_v47 = vld [vmem:[#allocation4 + $0xed8] sm:$0xff] }
 0x1f4   : > { %1651 = vmatprep.subr.mxu1 %v1370_v48  ;;  %v8769_v48 = vld [vmem:[#allocation4 + $0xcc8] sm:$0xff] }
 0x1f5   : > { %1652 = vmatpush1.msra.mxu1 %v1369_v49  ;;  %v2099_v49 = vld [vmem:[#allocation4 + $0xed0] sm:$0xff] }
 0x1f6   : > { %1653 = vmatprep.subr.mxu1 %v1368_v50  ;;  %v8772_v50 = vld [vmem:[#allocation4 + $0xcc0] sm:$0xff] }
 0x1f7   : > { %1654 = vmatpush1.msra.mxu1 %v1367_v51  ;;  %v2098_v51 = vld [vmem:[#allocation4 + $0xec8] sm:$0xff] }
 0x1f8   : > { %1655 = vmatprep.subr.mxu1 %v1366_v52  ;;  %v8775_v52 = vld [vmem:[#allocation4 + $0xcb8] sm:$0xff] }
 0x1f9   : > { %1656 = vmatpush1.msra.mxu1 %v1365_v53  ;;  %v2097_v53 = vld [vmem:[#allocation4 + $0xec0] sm:$0xff] }
 0x1fa   : > { %1657 = vmatprep.subr.mxu1 %v1364_v54  ;;  %v8778_v54 = vld [vmem:[#allocation4 + $0xcb0] sm:$0xff] }
 0x1fb   : > { %1658 = vmatpush1.msra.mxu1 %v1363_v55  ;;  %v2096_v55 = vld [vmem:[#allocation4 + $0xeb8] sm:$0xff] }
 0x1fc   : > { %1659 = vmatprep.subr.mxu1 %v1362_v56  ;;  %v8781_v56 = vld [vmem:[#allocation4 + $0xca8] sm:$0xff] }
 0x1fd   : > { %1660 = vmatpush1.msra.mxu1 %v1361_v57  ;;  %v2095_v57 = vld [vmem:[#allocation4 + $0xeb0] sm:$0xff] }
 0x1fe   : > { %1661 = vmatprep.subr.mxu1 %v1360_v58  ;;  %v8784_v58 = vld [vmem:[#allocation4 + $0xca0] sm:$0xff] }
 0x1ff   : > { %1662 = vmatpush1.msra.mxu1 %v1359_v59  ;;  %v2094_v59 = vld [vmem:[#allocation4 + $0xea8] sm:$0xff] }
 0x200   : > { %1663 = vmatprep.subr.mxu1 %v1358_v60  ;;  %v8787_v60 = vld [vmem:[#allocation4 + $0xc98] sm:$0xff] }
 0x201   : > { %1664 = vmatpush1.msra.mxu1 %v1357_v61  ;;  %v2093_v61 = vld [vmem:[#allocation4 + $0xea0] sm:$0xff] }
 0x202   : > { %1665 = vmatprep.subr.mxu1 %v1420_v62  ;;  %v8790_v62 = vld [vmem:[#allocation4 + $0xc90] sm:$0xff] }
 0x203   : > { %1666 = vmatpush2.msra.mxu1 %v1419_v63  ;;  %v2092_v63 = vld [vmem:[#allocation4 + $0xe98] sm:$0xff] }
 0x204   : > { %1667 = vmatprep.subr.mxu1 %v1418_v0  ;;  %v8793_v0 = vld [vmem:[#allocation4 + $0xc88] sm:$0xff] }
 0x205   : > { %1668 = vmatpush2.msra.mxu1 %v1417_v1  ;;  %v2091_v1 = vld [vmem:[#allocation4 + $0xe90] sm:$0xff] }
 0x206   : > { %1669 = vmatprep.subr.mxu1 %v1416_v2  ;;  %v8796_v2 = vld [vmem:[#allocation4 + $0xc80] sm:$0xff] }
 0x207   : > { %1670 = vmatpush2.msra.mxu1 %v1415_v3  ;;  %v2090_v3 = vld [vmem:[#allocation4 + $0xe88] sm:$0xff] }
 0x208   : > { %1671 = vmatprep.subr.mxu1 %v1414_v4  ;;  %v8799_v4 = vld [vmem:[#allocation4 + $0xc78] sm:$0xff] }
 0x209   : > { %1672 = vmatpush2.msra.mxu1 %v1413_v5  ;;  %v2089_v5 = vld [vmem:[#allocation4 + $0xe80] sm:$0xff] }
 0x20a   : > { %1673 = vmatprep.subr.mxu1 %v1412_v6  ;;  %v8802_v6 = vld [vmem:[#allocation4 + $0xc70] sm:$0xff] }
 0x20b   : > { %1674 = vmatpush2.msra.mxu1 %v1411_v7  ;;  %v2088_v7 = vld [vmem:[#allocation4 + $0xe78] sm:$0xff] }
 0x20c   : > { %1675 = vmatprep.subr.mxu1 %v1410_v9  ;;  %v8805_v9 = vld [vmem:[#allocation4 + $0xc68] sm:$0xff] }
 0x20d   : > { %1676 = vmatpush2.msra.mxu1 %v1409_v10  ;;  %v2087_v10 = vld [vmem:[#allocation4 + $0xe70] sm:$0xff] }
 0x20e   : > { %1677 = vmatprep.subr.mxu1 %v1408_v11  ;;  %v8808_v11 = vld [vmem:[#allocation4 + $0xc60] sm:$0xff] }
 0x20f   : > { %1678 = vmatpush2.msra.mxu1 %v1407_v12  ;;  %v2086_v12 = vld [vmem:[#allocation4 + $0xe68] sm:$0xff] }
 0x210   : > { %1679 = vmatprep.subr.mxu1 %v1406_v13  ;;  %v8811_v13 = vld [vmem:[#allocation4 + $0xc58] sm:$0xff] }
 0x211   : > { %1680 = vmatpush2.msra.mxu1 %v1405_v14  ;;  %v2085_v14 = vld [vmem:[#allocation4 + $0xe60] sm:$0xff] }
 0x212   : > { %1681 = vmatprep.subr.mxu1 %v1404_v15  ;;  %v8814_v15 = vld [vmem:[#allocation4 + $0xc50] sm:$0xff] }
 0x213   : > { %1682 = vmatpush2.msra.mxu1 %v1403_v31  ;;  %v2084_v31 = vld [vmem:[#allocation4 + $0xe58] sm:$0xff] }
 0x214   : > { %1683 = vmatprep.subr.mxu1 %v1402_v16  ;;  %v8817_v16 = vld [vmem:[#allocation4 + $0xc48] sm:$0xff] }
 0x215   : > { %1684 = vmatpush2.msra.mxu1 %v1401_v25  ;;  %v2083_v25 = vld [vmem:[#allocation4 + $0xe50] sm:$0xff] }
 0x216   : > { %1685 = vmatprep.subr.mxu1 %v1400_v27  ;;  %v8820_v27 = vld [vmem:[#allocation4 + $0xc40] sm:$0xff] }
 0x217   : > { %1686 = vmatpush2.msra.mxu1 %v1399_v29  ;;  %v2082_v29 = vld [vmem:[#allocation4 + $0xe48] sm:$0xff] }
 0x218   : > { %1687 = vmatprep.subr.mxu1 %v1398_v30  ;;  %v8823_v30 = vld [vmem:[#allocation4 + $0xc38] sm:$0xff] }
 0x219   : > { %1688 = vmatpush2.msra.mxu1 %v1397_v32  ;;  %v2081_v32 = vld [vmem:[#allocation4 + $0xe40] sm:$0xff] }
 0x21a   : > { %1689 = vmatprep.subr.mxu1 %v1396_v33  ;;  %v8826_v33 = vld [vmem:[#allocation4 + $0xc30] sm:$0xff] }
 0x21b   : > { %1690 = vmatpush2.msra.mxu1 %v1395_v34  ;;  %v2080_v34 = vld [vmem:[#allocation4 + $0xe38] sm:$0xff] }
 0x21c   : > { %1691 = vmatprep.subr.mxu1 %v1394_v35  ;;  %v8829_v35 = vld [vmem:[#allocation4 + $0xc28] sm:$0xff] }
 0x21d   : > { %1692 = vmatpush2.msra.mxu1 %v1393_v36  ;;  %v2079_v36 = vld [vmem:[#allocation4 + $0xe30] sm:$0xff] }
 0x21e   : > { %1693 = vmatprep.subr.mxu1 %v1392_v37  ;;  %v8832_v37 = vld [vmem:[#allocation4 + $0xc20] sm:$0xff] }
 0x21f   : > { %1694 = vmatpush2.msra.mxu1 %v1391_v38  ;;  %v2078_v38 = vld [vmem:[#allocation4 + $0xe28] sm:$0xff] }
 0x220   : > { %1695 = vmatprep.subr.mxu1 %v1390_v39  ;;  %v8835_v39 = vld [vmem:[#allocation4 + $0xc18] sm:$0xff] }
 0x221   : > { %1696 = vmatpush2.msra.mxu1 %v1389_v40  ;;  %v2077_v40 = vld [vmem:[#allocation4 + $0xe20] sm:$0xff] }
 0x222   : > { %1809 = vmatprep.subr.mxu1 %v8659_v28 }
 0x298   : > { %v1351_v41 = vpop.f32.mrf.mxu1 }
 0x29a   : > { %v1353_v42 = vpop.f32.mrf.mxu1 }
 0x29b   : > { %1697 = vmatprep.mubr.f32.mxu1 %v1353_v42  ;;  %v2076_v42 = vld [vmem:[#allocation4 + $0xe18] sm:$0xff] }
 0x29c   : > { %1698 = vmatmul.mubr.f32.vlgmr.msra.gmra.mxu1 %v1351_v41  ;;  %v8838_v41 = vld [vmem:[#allocation4 + $0xc10] sm:$0xff] }
 0x29d   : > { %1810 = vmatpush1.msra.mxu1 %v8663_v17  ;;  %1851 = vmatprep.mubr.f32.mxu1 %v8656_v8 }
 0x29e   : > { %1811 = vmatprep.subr.mxu1 %v8666_v18 }
 0x29f   : > { %1812 = vmatpush1.msra.mxu1 %v8671_v20 }
 0x2a0   : > { %1813 = vmatprep.subr.mxu1 %v8668_v19 }
 0x2a1   : > { %1814 = vmatpush1.msra.mxu1 %v8673_v21 }
 0x2a2   : > { %1815 = vmatprep.subr.mxu1 %v8678_v22  ;;  %v1492_v43 = vpop.f32.mrf.mxu1 }
 0x2a3   : > { %1816 = vmatpush1.msra.mxu1 %v8681_v23 }
 0x2a4   : > { %1817 = vmatprep.subr.mxu1 %v8684_v24  ;;  %v1494_v45 = vpop.f32.mrf.mxu1 }
 0x2a5   : > { %1818 = vmatpush1.msra.mxu1 %v8690_v26  ;;  %1626 = vmatprep.mubr.f32.mxu0 %v1494_v45  ;;  %v8844_v45 = vld [vmem:[#allocation4 + $0xc00] sm:$0xff] }
 0x2a6   : > { %7057 = vmatmul.mubr.msk.f32.vlgmr.msra.gmra.mxu1 %vm1281_vm0, %v7056_v44  ;;  %2023 = vmatprep.subr.mxu1 %v8659_v28  ;;  %v7054_v28 = vld [vmem:[%s9920_s10 + $0x8] sm:$0xf]  ;;  %v2075_v44 = vld [vmem:[#allocation4 + $0xe10] sm:$0xff] }
 0x2a7   : > { %1627 = vmatmul.mubr.f32.vlgmr.msra.gmra.mxu0 %v1492_v43  ;;  %2024 = vmatpush1.msra.mxu1 %v8663_v17  ;;  %v8841_v43 = vld [vmem:[#allocation4 + $0xc08] sm:$0xff] }
 0x2a8   : > { %1732 = vmatpush1.msra.mxu0 %v8663_v17  ;;  %2025 = vmatprep.subr.mxu1 %v8666_v18  ;;  %v7058_v17 = vld [vmem:[%s9920_s10 + $0x10] sm:$0xf] }
 0x2a9   : > { %1733 = vmatprep.subr.mxu0 %v8666_v18  ;;  %2026 = vmatpush1.msra.mxu1 %v8671_v20  ;;  %v8748_v18 = vld [vmem:[#allocation4 + $0xcf8] sm:$0xff] }
 0x2aa   : > { %1734 = vmatpush1.msra.mxu0 %v8671_v20  ;;  %2027 = vmatprep.subr.mxu1 %v8668_v19  ;;  %v2104_v20 = vld [vmem:[#allocation4 + $0xef8] sm:$0xff] }
 0x2ab   : > { %1735 = vmatprep.subr.mxu0 %v8668_v19  ;;  %2028 = vmatpush1.msra.mxu1 %v8673_v21  ;;  %v8752_v19 = vld [vmem:[#allocation4 + $0xcf0] sm:$0xff] }
 0x2ac   : > { %1736 = vmatpush1.msra.mxu0 %v8673_v21  ;;  %2029 = vmatprep.subr.mxu1 %v8678_v22  ;;  %v8756_v21 = vld [vmem:[#allocation4 + $0xce8] sm:$0xff] }
 0x2ad   : > { %1737 = vmatprep.subr.mxu0 %v8678_v22  ;;  %2030 = vmatpush1.msra.mxu1 %v8681_v23  ;;  %v2103_v22 = vld [vmem:[#allocation4 + $0xef0] sm:$0xff] }
 0x2ae   : > { %1738 = vmatpush1.msra.mxu0 %v8681_v23  ;;  %2031 = vmatprep.subr.mxu1 %v8684_v24  ;;  %v8760_v23 = vld [vmem:[#allocation4 + $0xce0] sm:$0xff] }
 0x2af   : > { %1739 = vmatprep.subr.mxu0 %v8684_v24  ;;  %1773 = vmatprep.mubr.f32.mxu0 %v8656_v8  ;;  %v2102_v24 = vld [vmem:[#allocation4 + $0xee8] sm:$0xff] }
 0x2b0   : > { %1740 = vmatpush1.msra.mxu0 %v8690_v26  ;;  %2032 = vmatpush1.msra.mxu1 %v8690_v26  ;;  %v8763_v26 = vld [vmem:[#allocation4 + $0xcd8] sm:$0xff] }
 0x2b1   : > { %2065 = vmatprep.mubr.f32.mxu1 %v8656_v8  ;;  %7055 = vmatmul.mubr.msk.f32.vlgmr.msra.gmra.mxu0 %vm1281_vm0, %v7054_v28  ;;  %v8766_v8 = vld [vmem:[#allocation4 + $0xcd0] sm:$0xff]  ;;  %v2074_v28 = vld [vmem:[#allocation4 + $0xe08] sm:$0xff] }
 0x2b2   : > { %7059 = vmatmul.mubr.msk.f32.vlgmr.msra.gmra.mxu1 %vm1281_vm0, %v7058_v17  ;;  %1923 = vmatprep.subr.mxu0 %v8748_v18  ;;  %v8847_v17 = vld [vmem:[#allocation4 + $0xdf8] sm:$0xff] }
 0x2b3   : > { %1924 = vmatpush1.msra.mxu0 %v8752_v19  ;;  %2137 = vmatprep.subr.mxu1 %v2104_v20  ;;  %v2073_v20 = vld [vmem:[#allocation4 + $0xe00] sm:$0xff] }
 0x2b4   : > { %1925 = vmatprep.subr.mxu0 %v8756_v21  ;;  %2138 = vmatpush1.msra.mxu1 %v2103_v22  ;;  %v8850_v22 = vld [vmem:[#allocation4 + $0xdf0] sm:$0xff] }
 0x2b5   : > { %1926 = vmatpush1.msra.mxu0 %v8760_v23  ;;  %2139 = vmatprep.subr.mxu1 %v2102_v24  ;;  %v2136_v24 = vld [vmem:[#allocation4 + $0xff8] sm:$0xff] }
 0x2b6   : > { %1927 = vmatprep.subr.mxu0 %v8763_v26  ;;  %2140 = vmatpush1.msra.mxu1 %v2101_v46  ;;  %v8853_v46 = vld [vmem:[#allocation4 + $0xde8] sm:$0xff] }
 0x2b7   : > { %1928 = vmatpush1.msra.mxu0 %v8766_v8  ;;  %2141 = vmatprep.subr.mxu1 %v2100_v47  ;;  %v2135_v47 = vld [vmem:[#allocation4 + $0xff0] sm:$0xff] }
 0x2b8   : > { %1929 = vmatprep.subr.mxu0 %v8769_v48  ;;  %2142 = vmatpush1.msra.mxu1 %v2099_v49  ;;  %v8856_v49 = vld [vmem:[#allocation4 + $0xde0] sm:$0xff] }
 0x2b9   : > { %1930 = vmatpush1.msra.mxu0 %v8772_v50  ;;  %2143 = vmatprep.subr.mxu1 %v2098_v51  ;;  %v2134_v51 = vld [vmem:[#allocation4 + $0xfe8] sm:$0xff] }
 0x2ba   : > { %1931 = vmatprep.subr.mxu0 %v8775_v52  ;;  %2144 = vmatpush1.msra.mxu1 %v2097_v53  ;;  %v8859_v53 = vld [vmem:[#allocation4 + $0xdd8] sm:$0xff] }
 0x2bb   : > { %1932 = vmatpush1.msra.mxu0 %v8778_v54  ;;  %2145 = vmatprep.subr.mxu1 %v2096_v55  ;;  %v2133_v55 = vld [vmem:[#allocation4 + $0xfe0] sm:$0xff] }
 0x2bc   : > { %1933 = vmatprep.subr.mxu0 %v8781_v56  ;;  %2146 = vmatpush1.msra.mxu1 %v2095_v57  ;;  %v8862_v57 = vld [vmem:[#allocation4 + $0xdd0] sm:$0xff] }
 0x2bd   : > { %1934 = vmatpush1.msra.mxu0 %v8784_v58  ;;  %2147 = vmatprep.subr.mxu1 %v2094_v59  ;;  %v2132_v59 = vld [vmem:[#allocation4 + $0xfd8] sm:$0xff] }
 0x2be   : > { %1935 = vmatprep.subr.mxu0 %v8787_v60  ;;  %2148 = vmatpush1.msra.mxu1 %v2093_v61  ;;  %v8865_v61 = vld [vmem:[#allocation4 + $0xdc8] sm:$0xff] }
 0x2bf   : > { %1936 = vmatpush1.msra.mxu0 %v8790_v62  ;;  %2149 = vmatprep.subr.mxu1 %v2092_v63  ;;  %v2131_v63 = vld [vmem:[#allocation4 + $0xfd0] sm:$0xff] }
 0x2c0   : > { %1937 = vmatprep.subr.mxu0 %v8793_v0  ;;  %2150 = vmatpush1.msra.mxu1 %v2091_v1  ;;  %v8868_v1 = vld [vmem:[#allocation4 + $0xdc0] sm:$0xff] }
 0x2c1   : > { %1938 = vmatpush1.msra.mxu0 %v8796_v2  ;;  %2151 = vmatprep.subr.mxu1 %v2090_v3  ;;  %v2130_v3 = vld [vmem:[#allocation4 + $0xfc8] sm:$0xff] }
 0x2c2   : > { %1939 = vmatprep.subr.mxu0 %v8799_v4  ;;  %2152 = vmatpush1.msra.mxu1 %v2089_v5  ;;  %v8871_v5 = vld [vmem:[#allocation4 + $0xdb8] sm:$0xff] }
 0x2c3   : > { %1940 = vmatpush1.msra.mxu0 %v8802_v6  ;;  %2153 = vmatprep.subr.mxu1 %v2088_v7  ;;  %v2129_v7 = vld [vmem:[#allocation4 + $0xfc0] sm:$0xff] }
 0x2c4   : > { %1941 = vmatprep.subr.mxu0 %v8805_v9  ;;  %2154 = vmatpush1.msra.mxu1 %v2087_v10  ;;  %v8874_v10 = vld [vmem:[#allocation4 + $0xdb0] sm:$0xff] }
 0x2c5   : > { %1942 = vmatpush1.msra.mxu0 %v8808_v11  ;;  %2155 = vmatprep.subr.mxu1 %v2086_v12  ;;  %v2128_v12 = vld [vmem:[#allocation4 + $0xfb8] sm:$0xff] }
 0x2c6   : > { %1943 = vmatprep.subr.mxu0 %v8811_v13  ;;  %2156 = vmatpush1.msra.mxu1 %v2085_v14  ;;  %v8877_v14 = vld [vmem:[#allocation4 + $0xda8] sm:$0xff] }
 0x2c7   : > { %1944 = vmatpush1.msra.mxu0 %v8814_v15  ;;  %2157 = vmatprep.subr.mxu1 %v2084_v31  ;;  %v8880_v31 = vld [vmem:[#allocation4 + $0xda0] sm:$0xff] }
 0x2c8   : > { %1945 = vmatprep.subr.mxu0 %v8817_v16  ;;  %2158 = vmatpush1.msra.mxu1 %v2083_v25  ;;  %v8883_v25 = vld [vmem:[#allocation4 + $0xd98] sm:$0xff] }
 0x2c9   : > { %1946 = vmatpush1.msra.mxu0 %v8820_v27  ;;  %2159 = vmatprep.subr.mxu1 %v2082_v29  ;;  %v8886_v29 = vld [vmem:[#allocation4 + $0xd90] sm:$0xff] }
 0x2ca   : > { %1947 = vmatprep.subr.mxu0 %v8823_v30  ;;  %2160 = vmatpush1.msra.mxu1 %v2081_v32  ;;  %v2127_v32 = vld [vmem:[#allocation4 + $0xfb0] sm:$0xff] }
 0x2cb   : > { %1948 = vmatpush1.msra.mxu0 %v8826_v33  ;;  %2161 = vmatprep.subr.mxu1 %v2080_v34  ;;  %v8889_v34 = vld [vmem:[#allocation4 + $0xd88] sm:$0xff] }
 0x2cc   : > { %1949 = vmatprep.subr.mxu0 %v8829_v35  ;;  %2162 = vmatpush1.msra.mxu1 %v2079_v36  ;;  %v2126_v36 = vld [vmem:[#allocation4 + $0xfa8] sm:$0xff] }
 0x2cd   : > { %1950 = vmatpush1.msra.mxu0 %v8832_v37  ;;  %2163 = vmatprep.subr.mxu1 %v2078_v38  ;;  %v8892_v38 = vld [vmem:[#allocation4 + $0xd80] sm:$0xff] }
 0x2ce   : > { %1951 = vmatprep.subr.mxu0 %v8835_v39  ;;  %2164 = vmatpush1.msra.mxu1 %v2077_v40  ;;  %v2125_v40 = vld [vmem:[#allocation4 + $0xfa0] sm:$0xff] }
 0x2cf   : > { %1952 = vmatpush1.msra.mxu0 %v8838_v41  ;;  %2165 = vmatprep.subr.mxu1 %v2076_v42  ;;  %v8895_v42 = vld [vmem:[#allocation4 + $0xd78] sm:$0xff] }
 0x2d0   : > { %1953 = vmatprep.subr.mxu0 %v8841_v43  ;;  %2166 = vmatpush1.msra.mxu1 %v2075_v44  ;;  %v2124_v44 = vld [vmem:[#allocation4 + $0xf98] sm:$0xff] }
 0x2d1   : > { %1954 = vmatpush1.msra.mxu0 %v8844_v45  ;;  %2167 = vmatprep.subr.mxu1 %v2074_v28  ;;  %v2123_v28 = vld [vmem:[#allocation4 + $0xf90] sm:$0xff] }
 0x2d2   : > { %1955 = vmatprep.subr.mxu0 %v8847_v17  ;;  %2168 = vmatpush1.msra.mxu1 %v2073_v20  ;;  %v8898_v20 = vld [vmem:[#allocation4 + $0xd70] sm:$0xff] }
 0x2d3   : > { %1956 = vmatpush2.msra.mxu0 %v8850_v22  ;;  %2169 = vmatprep.subr.mxu1 %v2136_v24  ;;  %v2122_v24 = vld [vmem:[#allocation4 + $0xf88] sm:$0xff] }
 0x2d4   : > { %1957 = vmatprep.subr.mxu0 %v8853_v46  ;;  %2170 = vmatpush2.msra.mxu1 %v2135_v47  ;;  %v8901_v47 = vld [vmem:[#allocation4 + $0xd68] sm:$0xff] }
 0x2d5   : > { %1958 = vmatpush2.msra.mxu0 %v8856_v49  ;;  %2171 = vmatprep.subr.mxu1 %v2134_v51  ;;  %v2121_v51 = vld [vmem:[#allocation4 + $0xf80] sm:$0xff] }
 0x2d6   : > { %1959 = vmatprep.subr.mxu0 %v8859_v53  ;;  %2172 = vmatpush2.msra.mxu1 %v2133_v55  ;;  %v2120_v55 = vld [vmem:[#allocation4 + $0xf78] sm:$0xff] }
 0x2d7   : > { %1960 = vmatpush2.msra.mxu0 %v8862_v57  ;;  %2173 = vmatprep.subr.mxu1 %v2132_v59  ;;  %v8904_v59 = vld [vmem:[#allocation4 + $0xd60] sm:$0xff] }
 0x2d8   : > { %1961 = vmatprep.subr.mxu0 %v8865_v61  ;;  %2174 = vmatpush2.msra.mxu1 %v2131_v63  ;;  %v2119_v63 = vld [vmem:[#allocation4 + $0xf70] sm:$0xff] }
 0x2d9   : > { %1962 = vmatpush2.msra.mxu0 %v8868_v1  ;;  %2175 = vmatprep.subr.mxu1 %v2130_v3  ;;  %v8907_v3 = vld [vmem:[#allocation4 + $0xd58] sm:$0xff] }
 0x2da   : > { %1963 = vmatprep.subr.mxu0 %v8871_v5  ;;  %2176 = vmatpush2.msra.mxu1 %v2129_v7  ;;  %9980 = vst [vmem:[#allocation22_spill] sm:$0xff] %v8907_v3  ;;  %v8910_v7 = vld [vmem:[#allocation4 + $0xd50] sm:$0xff] }
 0x2db   : > { %1964 = vmatpush2.msra.mxu0 %v8874_v10  ;;  %2177 = vmatprep.subr.mxu1 %v2128_v12  ;;  %9981 = vst [vmem:[#allocation23_spill] sm:$0xff] %v8910_v7  ;;  %v8913_v12 = vld [vmem:[#allocation4 + $0xd48] sm:$0xff] }
 0x2dc   : > { %1965 = vmatprep.subr.mxu0 %v8877_v14  ;;  %2178 = vmatpush2.msra.mxu1 %v2127_v32  ;;  %9982 = vst [vmem:[#allocation24_spill] sm:$0xff] %v8913_v12  ;;  %v8916_v32 = vld [vmem:[#allocation4 + $0xd40] sm:$0xff] }
 0x2dd   : > { %1966 = vmatpush2.msra.mxu0 %v8880_v31  ;;  %2179 = vmatprep.subr.mxu1 %v2126_v36  ;;  %9983 = vst [vmem:[#allocation25_spill] sm:$0xff] %v8916_v32  ;;  %v2118_v36 = vld [vmem:[#allocation4 + $0xf68] sm:$0xff] }
 0x2de   : > { %1967 = vmatprep.subr.mxu0 %v8883_v25  ;;  %2180 = vmatpush2.msra.mxu1 %v2125_v40  ;;  %v8919_v40 = vld [vmem:[#allocation4 + $0xd38] sm:$0xff] }
 0x2df   : > { %1968 = vmatpush2.msra.mxu0 %v8886_v29  ;;  %2181 = vmatprep.subr.mxu1 %v2124_v44  ;;  %9984 = vst [vmem:[#allocation26_spill] sm:$0xff] %v8919_v40  ;;  %v8922_v44 = vld [vmem:[#allocation4 + $0xd30] sm:$0xff] }
 0x2e0   : > { %1969 = vmatprep.subr.mxu0 %v8889_v34  ;;  %2182 = vmatpush2.msra.mxu1 %v2123_v28  ;;  %9985 = vst [vmem:[#allocation27_spill] sm:$0xff] %v8922_v44  ;;  %v2117_v28 = vld [vmem:[#allocation4 + $0xf60] sm:$0xff] }
 0x2e1   : > { %1970 = vmatpush2.msra.mxu0 %v8892_v38  ;;  %2183 = vmatprep.subr.mxu1 %v2122_v24  ;;  %v8925_v24 = vld [vmem:[#allocation4 + $0xd28] sm:$0xff] }
 0x2e2   : > { %1971 = vmatprep.subr.mxu0 %v8895_v42  ;;  %2184 = vmatpush2.msra.mxu1 %v2121_v51  ;;  %v2116_v51 = vld [vmem:[#allocation4 + $0xf58] sm:$0xff] }
 0x2e3   : > { %1972 = vmatpush2.msra.mxu0 %v8898_v20  ;;  %2185 = vmatprep.subr.mxu1 %v2120_v55  ;;  %v8928_v55 = vld [vmem:[#allocation4 + $0xd20] sm:$0xff] }
 0x2e4   : > { %1973 = vmatprep.subr.mxu0 %v8901_v47  ;;  %2186 = vmatpush2.msra.mxu1 %v2119_v63  ;;  %9986 = vst [vmem:[#allocation28_spill] sm:$0xff] %v8928_v55  ;;  %v2115_v63 = vld [vmem:[#allocation4 + $0xf50] sm:$0xff] }
 0x2e5   : > { %1974 = vmatpush2.msra.mxu0 %v8904_v59  ;;  %2187 = vmatprep.subr.mxu1 %v2118_v36  ;;  %v8931_v36 = vld [vmem:[#allocation4 + $0xd18] sm:$0xff] }
 0x2e6   : > { %1975 = vmatprep.subr.mxu0 %v8907_v3  ;;  %2188 = vmatpush2.msra.mxu1 %v2117_v28  ;;  %9987 = vst [vmem:[#allocation29_spill] sm:$0xff] %v8931_v36  ;;  %v2112_v3 = vld [vmem:[#allocation4 + $0xf38] sm:$0xff]  ;;  %v2111_v28 = vld [vmem:[#allocation4 + $0xf30] sm:$0xff] }
 0x2e7   : > { %1976 = vmatpush2.msra.mxu0 %v8910_v7  ;;  %2189 = vmatprep.subr.mxu1 %v2116_v51  ;;  %v2114_v7 = vld [vmem:[#allocation4 + $0xf48] sm:$0xff] }
 0x2e8   : > { %1977 = vmatprep.subr.mxu0 %v8913_v12  ;;  %2190 = vmatpush2.msra.mxu1 %v2115_v63  ;;  %v2113_v12 = vld [vmem:[#allocation4 + $0xf40] sm:$0xff]  ;;  %v2110_v51 = vld [vmem:[#allocation4 + $0xf28] sm:$0xff] }
 0x2e9   : > { %1978 = vmatpush2.msra.mxu0 %v8916_v32  ;;  %v8934_v32 = vld [vmem:[#allocation4 + $0xd10] sm:$0xff]  ;;  %2191 = vmatprep.subr.mxu1 %v2114_v7  ;;  %v2109_v63 = vld [vmem:[#allocation4 + $0xf20] sm:$0xff]  ;;  %v2108_v7 = vld [vmem:[#allocation4 + $0xf18] sm:$0xff] }
 0x2ea   : > { %1979 = vmatprep.subr.mxu0 %v8919_v40  ;;  %v8937_v40 = vld [vmem:[#allocation4 + $0xd08] sm:$0xff]  ;;  %2192 = vmatpush2.msra.mxu1 %v2113_v12 }
 0x2eb   : > { %1980 = vmatpush2.msra.mxu0 %v8922_v44  ;;  %v8940_v44 = vld [vmem:[#allocation4 + $0xd00] sm:$0xff]  ;;  %2193 = vmatprep.subr.mxu1 %v2112_v3  ;;  %v2106_v12 = vld [vmem:[#allocation4 + $0xf08] sm:$0xff] }
 0x2ec   : > { %1981 = vmatprep.subr.mxu0 %v8925_v24  ;;  %2194 = vmatpush2.msra.mxu1 %v2111_v28  ;;  %v2210_v3 = vld [vmem:[%s9921_s11] sm:$0xf]  ;;  %v8391_v28 = vmov 0  }
 0x2ed   : > { %1982 = vmatpush2.msra.mxu0 %v8928_v55  ;;  %2195 = vmatprep.subr.mxu1 %v2110_v51  ;;  %v2107_v55 = vld [vmem:[#allocation4 + $0xf10] sm:$0xff]  ;;  %v3647_v51 = vld [vmem:[%s9923_s13] sm:$0xff] }
 0x2ee   : > { %1983 = vmatprep.subr.mxu0 %v8931_v36  ;;  %2196 = vmatpush2.msra.mxu1 %v2109_v63  ;;  %v2105_v36 = vld [vmem:[#allocation4 + $0xf00] sm:$0xff]  ;;  %v6653_v63 = vld [vmem:[#allocation3] sm:$0x1] }
 0x2ef   : > { %1984 = vmatpush2.msra.mxu0 %v8934_v32  ;;  %2197 = vmatprep.subr.mxu1 %v2108_v7 }
 0x2f0   : > { %1985 = vmatprep.subr.mxu0 %v8937_v40  ;;  %2198 = vmatpush2.msra.mxu1 %v2107_v55 }
 0x2f1   : > { %1986 = vmatpush2.msra.mxu0 %v8940_v44  ;;  %2199 = vmatprep.subr.mxu1 %v2106_v12 }
 0x2f2   : > { %2220 = vmatprep.subr.mxu0 %v8748_v18  ;;  %2200 = vmatpush2.msra.mxu1 %v2105_v36 }
 0x2f3   : > { %8126 = vset.pattern.permute.xlu0 %v8391_v28  ;;  %8127 = vset.pattern.permute.xlu1 %v8391_v28  ;;  %v2341_v28 = vld [vmem:[#allocation4 + $0x580] sm:$0xff] }
 0x2f4   : > { %2213 = vperm.xlu0 %8126, %v2210_v3  }
 0x2f8   : > { %3651 = vperm.xlu0 %8126, %v3647_v51   ;;  %v2340_v51 = vld [vmem:[#allocation4 + $0x578] sm:$0xff] }
 0x2fc   : > { %6656 = vperm.xlu0 %8126, %v6653_v63   ;;  %v2339_v63 = vld [vmem:[#allocation4 + $0x570] sm:$0xff] }
 0x35c   : > { %v8952_v18 = vpop.f32.mrf.mxu1 }
 0x35e   : > { %v8954_v55 = vpop.f32.mrf.mxu1 }
 0x366   : > { %v1853_v36 = vpop.f32.mrf.mxu1 }
 0x368   : > { %v1855_v7 = vpop.f32.mrf.mxu1 }
 0x369   : > { %1987 = vmatprep.mubr.f32.mxu0 %v1855_v7  ;;  %v2337_v7 = vld [vmem:[#allocation4 + $0x560] sm:$0xff] }
 0x36a   : > { %1988 = vmatmul.mubr.f32.vlgmr.msra.gmra.mxu0 %v1853_v36  ;;  %v2338_v36 = vld [vmem:[#allocation4 + $0x568] sm:$0xff] }
 0x36b   : > { %2221 = vmatpush1.msra.mxu0 %v8752_v19  ;;  %v9988_v19 = vld [vmem:[#allocation22_spill] sm:$0xff] }
 0x36c   : > { %2222 = vmatprep.subr.mxu0 %v8756_v21  ;;  %v9989_v21 = vld [vmem:[#allocation23_spill] sm:$0xff] }
 0x36d   : > { %2223 = vmatpush1.msra.mxu0 %v8760_v23  ;;  %v9990_v23 = vld [vmem:[#allocation24_spill] sm:$0xff] }
 0x36e   : > { %2224 = vmatprep.subr.mxu0 %v8763_v26  ;;  %v9991_v26 = vld [vmem:[#allocation25_spill] sm:$0xff] }
 0x36f   : > { %2225 = vmatpush1.msra.mxu0 %v8766_v8  ;;  %v9992_v8 = vld [vmem:[#allocation26_spill] sm:$0xff] }
 0x370   : > { %2226 = vmatprep.subr.mxu0 %v8769_v48  ;;  %v9993_v48 = vld [vmem:[#allocation27_spill] sm:$0xff] }
 0x371   : > { %2227 = vmatpush1.msra.mxu0 %v8772_v50  ;;  %v9994_v50 = vld [vmem:[#allocation28_spill] sm:$0xff] }
 0x372   : > { %v2067_v12 = vpop.f32.mrf.mxu1  ;;  %2228 = vmatprep.subr.mxu0 %v8775_v52  ;;  %v9995_v52 = vld [vmem:[#allocation29_spill] sm:$0xff] }
 0x373   : > { %2229 = vmatpush1.msra.mxu0 %v8778_v54  ;;  %v2324_v54 = vld [vmem:[#allocation4 + $0x4f8] sm:$0xff] }
 0x374   : > { %v2069_v3 = vpop.f32.mrf.mxu1  ;;  %2230 = vmatprep.subr.mxu0 %v8781_v56  ;;  %v2323_v56 = vld [vmem:[#allocation4 + $0x4f0] sm:$0xff]  ;;  %2357 = vmatprep.subr.mxu1 %v2324_v54 }
 0x375   : > { %2201 = vmatprep.mubr.f32.mxu1 %v2069_v3  ;;  %2231 = vmatpush1.msra.mxu0 %v8784_v58  ;;  %v2322_v58 = vld [vmem:[#allocation4 + $0x4e8] sm:$0xff]  ;;  %v2335_v3 = vld [vmem:[#allocation4 + $0x550] sm:$0xff] }
 0x376   : > { %2202 = vmatmul.mubr.f32.vlgmr.msra.gmra.mxu1 %v2067_v12  ;;  %2232 = vmatprep.subr.mxu0 %v8787_v60  ;;  %v2321_v60 = vld [vmem:[#allocation4 + $0x4e0] sm:$0xff]  ;;  %v2336_v12 = vld [vmem:[#allocation4 + $0x558] sm:$0xff] }
 0x377   : > { %2233 = vmatpush1.msra.mxu0 %v8790_v62  ;;  %2358 = vmatpush1.msra.mxu1 %v2323_v56  ;;  %v2320_v62 = vld [vmem:[#allocation4 + $0x4d8] sm:$0xff] }
 0x378   : > { %2234 = vmatprep.subr.mxu0 %v8793_v0  ;;  %2359 = vmatprep.subr.mxu1 %v2322_v58  ;;  %v2319_v0 = vld [vmem:[#allocation4 + $0x4d0] sm:$0xff] }
 0x379   : > { %2235 = vmatpush1.msra.mxu0 %v8796_v2  ;;  %2360 = vmatpush1.msra.mxu1 %v2321_v60  ;;  %v2318_v2 = vld [vmem:[#allocation4 + $0x4c8] sm:$0xff] }
 0x37a   : > { %2236 = vmatprep.subr.mxu0 %v8799_v4  ;;  %2361 = vmatprep.subr.mxu1 %v2320_v62  ;;  %v2317_v4 = vld [vmem:[#allocation4 + $0x4c0] sm:$0xff] }
 0x37b   : > { %2237 = vmatpush1.msra.mxu0 %v8802_v6  ;;  %2362 = vmatpush1.msra.mxu1 %v2319_v0  ;;  %v2316_v6 = vld [vmem:[#allocation4 + $0x4b8] sm:$0xff] }
 0x37c   : > { %2238 = vmatprep.subr.mxu0 %v8805_v9  ;;  %2363 = vmatprep.subr.mxu1 %v2318_v2  ;;  %v2315_v9 = vld [vmem:[#allocation4 + $0x4b0] sm:$0xff] }
 0x37d   : > { %2239 = vmatpush1.msra.mxu0 %v8808_v11  ;;  %2364 = vmatpush1.msra.mxu1 %v2317_v4  ;;  %v2314_v11 = vld [vmem:[#allocation4 + $0x4a8] sm:$0xff] }
 0x37e   : > { %2240 = vmatprep.subr.mxu0 %v8811_v13  ;;  %2365 = vmatprep.subr.mxu1 %v2316_v6  ;;  %v2313_v13 = vld [vmem:[#allocation4 + $0x4a0] sm:$0xff] }
 0x37f   : > { %2241 = vmatpush1.msra.mxu0 %v8814_v15  ;;  %2366 = vmatpush1.msra.mxu1 %v2315_v9  ;;  %v2312_v15 = vld [vmem:[#allocation4 + $0x498] sm:$0xff] }
 0x380   : > { %2242 = vmatprep.subr.mxu0 %v8817_v16  ;;  %2367 = vmatprep.subr.mxu1 %v2314_v11  ;;  %v2311_v16 = vld [vmem:[#allocation4 + $0x490] sm:$0xff] }
 0x381   : > { %2243 = vmatpush1.msra.mxu0 %v8820_v27  ;;  %2368 = vmatpush1.msra.mxu1 %v2313_v13  ;;  %v2310_v27 = vld [vmem:[#allocation4 + $0x488] sm:$0xff]  ;;  %v2214_v13 = vpop.permute.xlu0 %2213 }
 0x382   : > { %2244 = vmatprep.subr.mxu0 %v8823_v30  ;;  %2369 = vmatprep.subr.mxu1 %v2312_v15  ;;  %v2309_v30 = vld [vmem:[#allocation4 + $0x480] sm:$0xff] }
 0x383   : > { %2245 = vmatpush1.msra.mxu0 %v8826_v33  ;;  %2370 = vmatpush1.msra.mxu1 %v2311_v16  ;;  %v2308_v33 = vld [vmem:[#allocation4 + $0x478] sm:$0xff] }
 0x384   : > { %2246 = vmatprep.subr.mxu0 %v8829_v35  ;;  %2371 = vmatprep.subr.mxu1 %v2310_v27  ;;  %v2307_v35 = vld [vmem:[#allocation4 + $0x470] sm:$0xff] }
 0x385   : > { %2247 = vmatpush1.msra.mxu0 %v8832_v37  ;;  %2372 = vmatpush1.msra.mxu1 %v2309_v30  ;;  %v2306_v37 = vld [vmem:[#allocation4 + $0x468] sm:$0xff] }
 0x386   : > { %2248 = vmatprep.subr.mxu0 %v8835_v39  ;;  %2373 = vmatprep.subr.mxu1 %v2308_v33  ;;  %v2305_v39 = vld [vmem:[#allocation4 + $0x460] sm:$0xff] }
 0x387   : > { %2249 = vmatpush1.msra.mxu0 %v8838_v41  ;;  %2374 = vmatpush1.msra.mxu1 %v2307_v35  ;;  %v2304_v41 = vld [vmem:[#allocation4 + $0x458] sm:$0xff]  ;;  %v2329_v33 = vld [vmem:[#allocation4 + $0x520] sm:$0xff] }
 0x388   : > { %2250 = vmatprep.subr.mxu0 %v8841_v43  ;;  %2375 = vmatprep.subr.mxu1 %v2306_v37  ;;  %v2303_v43 = vld [vmem:[#allocation4 + $0x450] sm:$0xff]  ;;  %v2328_v35 = vld [vmem:[#allocation4 + $0x518] sm:$0xff] }
 0x389   : > { %2251 = vmatpush1.msra.mxu0 %v8844_v45  ;;  %2376 = vmatpush1.msra.mxu1 %v2305_v39  ;;  %v2302_v45 = vld [vmem:[#allocation4 + $0x448] sm:$0xff]  ;;  %v2327_v37 = vld [vmem:[#allocation4 + $0x510] sm:$0xff] }
 0x38a   : > { %2252 = vmatprep.subr.mxu0 %v8847_v17  ;;  %2377 = vmatprep.subr.mxu1 %v2304_v41  ;;  %v2301_v17 = vld [vmem:[#allocation4 + $0x440] sm:$0xff]  ;;  %v2326_v39 = vld [vmem:[#allocation4 + $0x508] sm:$0xff] }
 0x38b   : > { %2253 = vmatpush2.msra.mxu0 %v8850_v22  ;;  %2378 = vmatpush1.msra.mxu1 %v2303_v43  ;;  %v2300_v22 = vld [vmem:[#allocation4 + $0x438] sm:$0xff]  ;;  %v2325_v41 = vld [vmem:[#allocation4 + $0x500] sm:$0xff] }
 0x38c   : > { %2254 = vmatprep.subr.mxu0 %v8853_v46  ;;  %2379 = vmatprep.subr.mxu1 %v2302_v45  ;;  %v2299_v46 = vld [vmem:[#allocation4 + $0x430] sm:$0xff]  ;;  %v2461_v43 = vld [vmem:[#allocation8 + $0xf8] sm:$0xff] }
 0x38d   : > { %2255 = vmatpush2.msra.mxu0 %v8856_v49  ;;  %2380 = vmatpush1.msra.mxu1 %v2301_v17  ;;  %v2298_v49 = vld [vmem:[#allocation4 + $0x428] sm:$0xff]  ;;  %v2445_v45 = vld [vmem:[#allocation8 + $0x78] sm:$0xff]  ;;  %v2460_v17 = vld [vmem:[#allocation8 + $0xf0] sm:$0xff] }
 0x38e   : > { %2256 = vmatprep.subr.mxu0 %v8859_v53  ;;  %2381 = vmatprep.subr.mxu1 %v2300_v22  ;;  %v2297_v53 = vld [vmem:[#allocation4 + $0x420] sm:$0xff]  ;;  %v9031_v22 = vld [vmem:[#allocation2 + $0x58] sm:$0xff] }
 0x38f   : > { %2257 = vmatpush2.msra.mxu0 %v8862_v57  ;;  %2382 = vmatpush1.msra.mxu1 %v2299_v46  ;;  %v2296_v57 = vld [vmem:[#allocation4 + $0x418] sm:$0xff]  ;;  %v2444_v46 = vld [vmem:[#allocation8 + $0x70] sm:$0xff] }
 0x390   : > { %2258 = vmatprep.subr.mxu0 %v8865_v61  ;;  %2383 = vmatprep.subr.mxu1 %v2298_v49  ;;  %v2295_v61 = vld [vmem:[#allocation4 + $0x410] sm:$0xff]  ;;  %v2459_v49 = vld [vmem:[#allocation8 + $0xe8] sm:$0xff] }
 0x391   : > { %2259 = vmatpush2.msra.mxu0 %v8868_v1  ;;  %2384 = vmatpush1.msra.mxu1 %v2297_v53  ;;  %v2294_v1 = vld [vmem:[#allocation4 + $0x408] sm:$0xff] }
 0x392   : > { %2260 = vmatprep.subr.mxu0 %v8871_v5  ;;  %2385 = vmatprep.subr.mxu1 %v2296_v57  ;;  %v2293_v5 = vld [vmem:[#allocation4 + $0x400] sm:$0xff]  ;;  %v2443_v53 = vld [vmem:[#allocation8 + $0x68] sm:$0xff] }
 0x393   : > { %2261 = vmatpush2.msra.mxu0 %v8874_v10  ;;  %2386 = vmatpush1.msra.mxu1 %v2295_v61  ;;  %v2356_v10 = vld [vmem:[#allocation4 + $0x5f8] sm:$0xff]  ;;  %v2458_v57 = vld [vmem:[#allocation8 + $0xe0] sm:$0xff] }
 0x394   : > { %2262 = vmatprep.subr.mxu0 %v8877_v14  ;;  %2387 = vmatprep.subr.mxu1 %v2294_v1  ;;  %v2355_v14 = vld [vmem:[#allocation4 + $0x5f0] sm:$0xff]  ;;  %v2442_v61 = vld [vmem:[#allocation8 + $0x60] sm:$0xff]  ;;  %v2457_v1 = vld [vmem:[#allocation8 + $0xd8] sm:$0xff] }
 0x395   : > { %2263 = vmatpush2.msra.mxu0 %v8880_v31  ;;  %2388 = vmatpush1.msra.mxu1 %v2293_v5  ;;  %v2354_v31 = vld [vmem:[#allocation4 + $0x5e8] sm:$0xff]  ;;  %v2441_v5 = vld [vmem:[#allocation8 + $0x58] sm:$0xff] }
 0x396   : > { %2264 = vmatprep.subr.mxu0 %v8883_v25  ;;  %2389 = vmatprep.subr.mxu1 %v2356_v10  ;;  %v2353_v25 = vld [vmem:[#allocation4 + $0x5e0] sm:$0xff]  ;;  %v2456_v10 = vld [vmem:[#allocation8 + $0xd0] sm:$0xff] }
 0x397   : > { %2265 = vmatpush2.msra.mxu0 %v8886_v29  ;;  %2390 = vmatpush2.msra.mxu1 %v2355_v14  ;;  %v2352_v29 = vld [vmem:[#allocation4 + $0x5d8] sm:$0xff]  ;;  %v2440_v14 = vld [vmem:[#allocation8 + $0x50] sm:$0xff] }
 0x398   : > { %2266 = vmatprep.subr.mxu0 %v8889_v34  ;;  %2391 = vmatprep.subr.mxu1 %v2354_v31  ;;  %v2351_v34 = vld [vmem:[#allocation4 + $0x5d0] sm:$0xff]  ;;  %v2455_v31 = vld [vmem:[#allocation8 + $0xc8] sm:$0xff] }
 0x399   : > { %2267 = vmatpush2.msra.mxu0 %v8892_v38  ;;  %2392 = vmatpush2.msra.mxu1 %v2353_v25  ;;  %v2350_v38 = vld [vmem:[#allocation4 + $0x5c8] sm:$0xff] }
 0x39a   : > { %2268 = vmatprep.subr.mxu0 %v8895_v42  ;;  %2393 = vmatprep.subr.mxu1 %v2352_v29  ;;  %v2349_v42 = vld [vmem:[#allocation4 + $0x5c0] sm:$0xff]  ;;  %v2439_v25 = vld [vmem:[#allocation8 + $0x48] sm:$0xff] }
 0x39b   : > { %2269 = vmatpush2.msra.mxu0 %v8898_v20  ;;  %2394 = vmatpush2.msra.mxu1 %v2351_v34  ;;  %v2348_v20 = vld [vmem:[#allocation4 + $0x5b8] sm:$0xff]  ;;  %v2454_v29 = vld [vmem:[#allocation8 + $0xc0] sm:$0xff] }
 0x39c   : > { %2270 = vmatprep.subr.mxu0 %v8901_v47  ;;  %2395 = vmatprep.subr.mxu1 %v2350_v38  ;;  %v2347_v47 = vld [vmem:[#allocation4 + $0x5b0] sm:$0xff]  ;;  %v2438_v34 = vld [vmem:[#allocation8 + $0x40] sm:$0xff]  ;;  %v2453_v38 = vld [vmem:[#allocation8 + $0xb8] sm:$0xff] }
 0x39d   : > { %2271 = vmatpush2.msra.mxu0 %v8904_v59  ;;  %2396 = vmatpush2.msra.mxu1 %v2349_v42  ;;  %v2346_v59 = vld [vmem:[#allocation4 + $0x5a8] sm:$0xff]  ;;  %v2437_v42 = vld [vmem:[#allocation8 + $0x38] sm:$0xff] }
 0x39e   : > { %2272 = vmatprep.subr.mxu0 %v9988_v19  ;;  %2397 = vmatprep.subr.mxu1 %v2348_v20  ;;  %v2334_v19 = vld [vmem:[#allocation4 + $0x548] sm:$0xff]  ;;  %v2452_v20 = vld [vmem:[#allocation8 + $0xb0] sm:$0xff] }
 0x39f   : > { %2273 = vmatpush2.msra.mxu0 %v9989_v21  ;;  %2398 = vmatpush2.msra.mxu1 %v2347_v47  ;;  %v2333_v21 = vld [vmem:[#allocation4 + $0x540] sm:$0xff]  ;;  %v2436_v47 = vld [vmem:[#allocation8 + $0x30] sm:$0xff] }
 0x3a0   : > { %2274 = vmatprep.subr.mxu0 %v9990_v23  ;;  %2399 = vmatprep.subr.mxu1 %v2346_v59  ;;  %v2332_v23 = vld [vmem:[#allocation4 + $0x538] sm:$0xff]  ;;  %v2451_v59 = vld [vmem:[#allocation8 + $0xa8] sm:$0xff] }
 0x3a1   : > { %2275 = vmatpush2.msra.mxu0 %v9991_v26  ;;  %v2331_v26 = vld [vmem:[#allocation4 + $0x530] sm:$0xff] }
 0x3a2   : > { %2276 = vmatprep.subr.mxu0 %v9992_v8  ;;  %v1628_v8 = vpop.f32.mrf.mxu0 }
 0x3a3   : > { %2277 = vmatpush2.msra.mxu0 %v9993_v48  ;;  %v1700_v56 = vadd.f32 %v8952_v18, %v1628_v8  ;;  %v9038_v8 = vld [vmem:[#allocation6 + $0x38] sm:$0xff] }
 0x3a4   : > { %2278 = vmatprep.subr.mxu0 %v8925_v24  ;;  %v2342_v24 = vld [vmem:[#allocation4 + $0x588] sm:$0xff]  ;;  %v1630_v48 = vpop.f32.mrf.mxu0 }
 0x3a5   : > { %2279 = vmatpush2.msra.mxu0 %v9994_v50  ;;  %v1702_v58 = vadd.f32 %v8954_v55, %v1630_v48  ;;  %v2330_v55 = vld [vmem:[#allocation4 + $0x528] sm:$0xff]  ;;  %v9042_v48 = vld [vmem:[#allocation6 + $0x30] sm:$0xff] }
 0x3a6   : > { %2280 = vmatprep.subr.mxu0 %v9995_v52  ;;  %v1775_v50 = vpop.f32.mrf.mxu0 }
 0x3a7   : > { %2281 = vmatpush2.msra.mxu0 %v8934_v32  ;;  %v2345_v32 = vld [vmem:[#allocation4 + $0x5a0] sm:$0xff]  ;;  %v1780_v60 = vadd.f32 %v1775_v50, %v1700_v56  ;;  %v9046_v50 = vld [vmem:[#allocation6 + $0x28] sm:$0xff]  ;;  %v9058_v56 = vld [vmem:[#allocation6 + $0x10] sm:$0xff] }
 0x3a8   : > { %2282 = vmatprep.subr.mxu0 %v8937_v40  ;;  %v2344_v40 = vld [vmem:[#allocation4 + $0x598] sm:$0xff]  ;;  %2400 = vmatpush2.msra.mxu1 %v2345_v32  ;;  %v1777_v52 = vpop.f32.mrf.mxu0  ;;  %v2435_v32 = vld [vmem:[#allocation8 + $0x28] sm:$0xff] }
 0x3a9   : > { %2283 = vmatpush2.msra.mxu0 %v8940_v44  ;;  %v2343_v44 = vld [vmem:[#allocation4 + $0x590] sm:$0xff]  ;;  %2401 = vmatprep.subr.mxu1 %v2344_v40  ;;  %v1781_v0 = vadd.f32 %v1777_v52, %v1702_v58  ;;  %v2450_v40 = vld [vmem:[#allocation8 + $0xa0] sm:$0xff] }
 0x3aa   : > { %2402 = vmatpush2.msra.mxu1 %v2343_v44  ;;  %7135 = vmatprep.subr.mxu0 %v2461_v43  ;;  %v2434_v44 = vld [vmem:[#allocation8 + $0x20] sm:$0xff]  ;;  %v9125_v43 = vld [vmem:[#allocation6 + $0x58] sm:$0xff] }
 0x3ab   : > { %2403 = vmatprep.subr.mxu1 %v2342_v24  ;;  %v2449_v24 = vld [vmem:[#allocation8 + $0x98] sm:$0xff]  ;;  %v9050_v52 = vld [vmem:[#allocation6 + $0x20] sm:$0xff] }
 0x3ac   : > { %2404 = vmatpush2.msra.mxu1 %v2341_v28  ;;  %v2433_v28 = vld [vmem:[#allocation8 + $0x18] sm:$0xff] }
 0x3ad   : > { %2405 = vmatprep.subr.mxu1 %v2340_v51 }
 0x3ae   : > { %2406 = vmatpush2.msra.mxu1 %v2339_v63 }
 0x3af   : > { %2407 = vmatprep.subr.mxu1 %v2338_v36 }
 0x3b0   : > { %2408 = vmatpush2.msra.mxu1 %v2337_v7 }
 0x3b1   : > { %2409 = vmatprep.subr.mxu1 %v2336_v12  ;;  %v2448_v12 = vld [vmem:[#allocation8 + $0x90] sm:$0xff] }
 0x3b2   : > { %2410 = vmatpush2.msra.mxu1 %v2335_v3  ;;  %v2432_v3 = vld [vmem:[#allocation8 + $0x10] sm:$0xff] }
 0x3b3   : > { %2411 = vmatprep.subr.mxu1 %v2334_v19  ;;  %v2447_v19 = vld [vmem:[#allocation8 + $0x88] sm:$0xff] }
 0x3b4   : > { %2412 = vmatpush2.msra.mxu1 %v2333_v21  ;;  %v2431_v21 = vld [vmem:[#allocation8 + $0x8] sm:$0xff] }
 0x3b5   : > { %2413 = vmatprep.subr.mxu1 %v2332_v23  ;;  %v2446_v23 = vld [vmem:[#allocation8 + $0x80] sm:$0xff] }
 0x3b6   : > { %2414 = vmatpush2.msra.mxu1 %v2331_v26  ;;  %v2430_v26 = vld [vmem:[#allocation8] sm:$0xff] }
 0x3b7   : > { %2415 = vmatprep.subr.mxu1 %v2330_v55 }
 0x3b8   : > { %2416 = vmatpush2.msra.mxu1 %v2329_v33 }
 0x3b9   : > { %2417 = vmatprep.subr.mxu1 %v2328_v35  ;;  %v9106_v35 = vld [vmem:[#allocation6 + $0x78] sm:$0xff] }
 0x3ba   : > { %2418 = vmatpush2.msra.mxu1 %v2327_v37  ;;  %v9110_v37 = vld [vmem:[#allocation6 + $0x70] sm:$0xff] }
 0x3bb   : > { %2419 = vmatprep.subr.mxu1 %v2326_v39  ;;  %v9117_v39 = vld [vmem:[#allocation6 + $0x68] sm:$0xff] }
 0x3bc   : > { %2420 = vmatpush2.msra.mxu1 %v2325_v41  ;;  %v9121_v41 = vld [vmem:[#allocation6 + $0x60] sm:$0xff] }
 0x3bd   : > { %7481 = vmatprep.subr.mxu1 %v9031_v22 }
 0x42a   : > { %v1989_v54 = vpop.f32.mrf.mxu0 }
 0x42b   : > { %v1994_v2 = vadd.f32 %v1989_v54, %v1780_v60  ;;  %v9054_v54 = vld [vmem:[#allocation6 + $0x18] sm:$0xff] }
 0x42c   : > { %v1991_v62 = vpop.f32.mrf.mxu0 }
 0x42d   : > { %v1995_v6 = vadd.f32 %v1991_v62, %v1781_v0 }
 0x436   : > { %v2203_v4 = vpop.f32.mrf.mxu1 }
 0x437   : > { %v2208_v9 = vadd.f32 %v2203_v4, %v1994_v2  ;;  %v9063_v2 = vld [vmem:[#allocation6 + $0xb8] sm:$0xff]  ;;  %v9065_v4 = vld [vmem:[#allocation6 + $0xb0] sm:$0xff] }
 0x438   : > { %v2205_v11 = vpop.f32.mrf.mxu1 }
 0x439   : > { %v2209_v15 = vadd.f32 %v2205_v11, %v1995_v6  ;;  %v9021_v16 = vadd.f32 %v2214_v13, %v2208_v9  ;;  %v9069_v6 = vld [vmem:[#allocation6 + $0xa8] sm:$0xff]  ;;  %v9073_v9 = vld [vmem:[#allocation6 + $0xa0] sm:$0xff]  ;;  %v9077_v11 = vld [vmem:[#allocation6 + $0x98] sm:$0xff] }
 0x43b   : > { %v9023_v27 = vadd.f32 %v2214_v13, %v2209_v15  ;;  %v2218_v18 = vmax.f32 %v9021_v16, 0.0  ;;  %v9083_v13 = vld [vmem:[#allocation6 + $0x90] sm:$0xff]  ;;  %v9086_v15 = vld [vmem:[#allocation6 + $0x8] sm:$0xff] }
 0x43c   : > { %v9090_v16 = vld [vmem:[#allocation6 + $0x88] sm:$0xff] }
 0x43d   : > { %v2219_v30 = vmax.f32 %v9023_v27, 0.0  ;;  %v9094_v27 = vld [vmem:[#allocation6] sm:$0xff] }
 0x43f   : > { %2284 = vmatprep.mubr.f32.mxu0 %v2219_v30 }
 0x440   : > { %2285 = vmatmul.mubr.f32.vlgmr.msra.gmra.mxu0 %v2218_v18 }
 0x441   : > { %7136 = vmatpush3.msra.mxu0 %v2445_v45  ;;  %v9129_v45 = vld [vmem:[#allocation6 + $0x50] sm:$0xff] }
 0x442   : > { %7137 = vmatprep.subr.mxu0 %v2460_v17  ;;  %v9133_v17 = vld [vmem:[#allocation6 + $0x48] sm:$0xff] }
 0x443   : > { %7138 = vmatpush3.msra.mxu0 %v2444_v46  ;;  %v9137_v46 = vld [vmem:[#allocation6 + $0x40] sm:$0xff] }
 0x444   : > { %7139 = vmatprep.subr.mxu0 %v2459_v49  ;;  %v9141_v49 = vld [vmem:[#allocation6 + $0xf8] sm:$0xff] }
 0x445   : > { %7140 = vmatpush3.msra.mxu0 %v2443_v53  ;;  %v9146_v53 = vld [vmem:[#allocation6 + $0xf0] sm:$0xff] }
 0x446   : > { %7141 = vmatprep.subr.mxu0 %v2458_v57  ;;  %v9152_v57 = vld [vmem:[#allocation6 + $0xe8] sm:$0xff] }
 0x447   : > { %7142 = vmatpush3.msra.mxu0 %v2442_v61  ;;  %v9156_v61 = vld [vmem:[#allocation6 + $0xe0] sm:$0xff] }
 0x448   : > { %7143 = vmatprep.subr.mxu0 %v2457_v1  ;;  %v9160_v1 = vld [vmem:[#allocation6 + $0xd8] sm:$0xff] }
 0x449   : > { %7144 = vmatpush3.msra.mxu0 %v2441_v5  ;;  %v9164_v5 = vld [vmem:[#allocation6 + $0xd0] sm:$0xff] }
 0x44a   : > { %7145 = vmatprep.subr.mxu0 %v2456_v10  ;;  %v9168_v10 = vld [vmem:[#allocation6 + $0xc8] sm:$0xff] }
 0x44b   : > { %7146 = vmatpush3.msra.mxu0 %v2440_v14  ;;  %v9172_v14 = vld [vmem:[#allocation6 + $0xc0] sm:$0xff] }
 0x44c   : > { %7147 = vmatprep.subr.mxu0 %v2455_v31  ;;  %v9178_v31 = vld [vmem:[#allocation6 + $0x178] sm:$0xff] }
 0x44d   : > { %7148 = vmatpush3.msra.mxu0 %v2439_v25  ;;  %v9180_v25 = vld [vmem:[#allocation6 + $0x170] sm:$0xff] }
 0x44e   : > { %7149 = vmatprep.subr.mxu0 %v2454_v29  ;;  %v9184_v29 = vld [vmem:[#allocation6 + $0x168] sm:$0xff] }
 0x44f   : > { %7150 = vmatpush3.msra.mxu0 %v2438_v34  ;;  %v9188_v34 = vld [vmem:[#allocation6 + $0x160] sm:$0xff] }
 0x450   : > { %7151 = vmatprep.subr.mxu0 %v2453_v38  ;;  %v9198_v38 = vld [vmem:[#allocation6 + $0x150] sm:$0xff] }
 0x451   : > { %7152 = vmatpush3.msra.mxu0 %v2437_v42  ;;  %9997 = vst [vmem:[#allocation23_spill] sm:$0xff] %v9198_v38  ;;  %v9200_v42 = vld [vmem:[#allocation6 + $0x148] sm:$0xff] }
 0x452   : > { %7153 = vmatprep.subr.mxu0 %v2452_v20  ;;  %9998 = vst [vmem:[#allocation24_spill] sm:$0xff] %v9200_v42  ;;  %v9204_v20 = vld [vmem:[#allocation6 + $0x140] sm:$0xff] }
 0x453   : > { %7154 = vmatpush3.msra.mxu0 %v2436_v47  ;;  %9999 = vst [vmem:[#allocation25_spill] sm:$0xff] %v9204_v20  ;;  %v2862_v47 = vld [vmem:[%s9922_s12] sm:$0xff] }
 0x454   : > { %7155 = vmatprep.subr.mxu0 %v2451_v59 }
 0x455   : > { %7156 = vmatpush3.msra.mxu0 %v2435_v32 }
 0x456   : > { %7157 = vmatprep.subr.mxu0 %v2450_v40 }
 0x457   : > { %7158 = vmatpush3.msra.mxu0 %v2434_v44 }
 0x458   : > { %7159 = vmatprep.subr.mxu0 %v2449_v24 }
 0x459   : > { %7160 = vmatpush3.msra.mxu0 %v2433_v28 }
 0x45a   : > { %7161 = vmatprep.subr.mxu0 %v2448_v12 }
 0x45b   : > { %7162 = vmatpush3.msra.mxu0 %v2432_v3 }
 0x45c   : > { %7163 = vmatprep.subr.mxu0 %v2447_v19 }
 0x45d   : > { %7164 = vmatpush3.msra.mxu0 %v2431_v21  ;;  %v2863_v21 = vld [vmem:[%s9922_s12 + $0x8] sm:$0xff] }
 0x45e   : > { %7165 = vmatprep.subr.mxu0 %v2446_v23  ;;  %v7066_v23 = vld [vmem:[%s9922_s12 + $0x10] sm:$0xff] }
 0x45f   : > { %7166 = vmatpush3.msra.mxu0 %v2430_v26  ;;  %v7067_v26 = vld [vmem:[%s9922_s12 + $0x18] sm:$0xff] }
 0x460   : > { %7519 = vmatprep.subr.mxu0 %v9031_v22 }
 0x500   : > { %v2286_v51 = vpop.f32.mrf.mxu0 }
 0x501   : > { %v2291_v7 = vmax.f32 %v2218_v18, %v2286_v51 }
 0x502   : > { %v2288_v63 = vpop.f32.mrf.mxu0 }
 0x503   : > { %v2292_v36 = vmax.f32 %v2219_v30, %v2288_v63  ;;  %v9098_v30 = vld [vmem:[#allocation6 + $0x80] sm:$0xff] }
 0x505   : > { %2421 = vmatprep.mubr.f32.mxu1 %v2292_v36 }
 0x506   : > { %2422 = vmatmul.mubr.f32.vlgmr.msra.gmra.mxu1 %v2291_v7 }
 0x507   : > { %7482 = vmatpush3.msra.mxu1 %v9038_v8  ;;  %7497 = vmatprep.mubr.msk.f32.mxu1 %vm8392_vm1, %v9031_v22 }
 0x508   : > { %7483 = vmatprep.subr.mxu1 %v9031_v22 }
 0x509   : > { %7484 = vmatpush3.msra.mxu1 %v9042_v48 }
 0x50a   : > { %7485 = vmatprep.subr.mxu1 %v9031_v22 }
 0x50b   : > { %7486 = vmatpush3.msra.mxu1 %v9046_v50 }
 0x50c   : > { %7487 = vmatprep.subr.mxu1 %v9031_v22 }
 0x50d   : > { %7488 = vmatpush3.msra.mxu1 %v9050_v52 }
 0x50e   : > { %7489 = vmatprep.subr.mxu1 %v9031_v22 }
 0x50f   : > { %7490 = vmatpush3.msra.mxu1 %v9054_v54 }
 0x510   : > { %7491 = vmatprep.subr.mxu1 %v9031_v22 }
 0x511   : > { %7492 = vmatpush3.msra.mxu1 %v9058_v56 }
 0x512   : > { %7493 = vmatprep.subr.mxu1 %v9031_v22 }
 0x513   : > { %7494 = vmatpush3.msra.mxu1 %v9086_v15 }
 0x514   : > { %7495 = vmatprep.subr.mxu1 %v9031_v22 }
 0x515   : > { %7496 = vmatpush3.msra.mxu1 %v9094_v27 }
 0x516   : > { %7500 = vmatprep.subr.mxu1 %v9031_v22 }
 0x5c6   : > { %v2423_v58 = vpop.f32.mrf.mxu1 }
 0x5c7   : > { %v2428_v0 = vmax.f32 %v2291_v7, %v2423_v58  ;;  %v9258_v58 = vld [vmem:[#allocation6 + $0x138] sm:$0xff] }
 0x5c8   : > { %v2425_v60 = vpop.f32.mrf.mxu1 }
 0x5c9   : > { %v2429_v62 = vmax.f32 %v2292_v36, %v2425_v60  ;;  %v9262_v60 = vld [vmem:[#allocation6 + $0x130] sm:$0xff] }
 0x5cb   : > { %2526 = vmatprep.mubr.f32.mxu0 %v2429_v62  ;;  %v9267_v62 = vld [vmem:[#allocation6 + $0x128] sm:$0xff] }
 0x5cc   : > { %2527 = vmatmul.mubr.f32.vlgmr.msra.gmra.mxu0 %v2428_v0  ;;  %v9271_v0 = vld [vmem:[#allocation6 + $0x120] sm:$0xff] }
 0x5cd   : > { %7520 = vmatpush3.msra.mxu0 %v9063_v2  ;;  %7535 = vmatprep.mubr.msk.f32.mxu0 %vm8392_vm1, %v9031_v22 }
 0x5ce   : > { %7521 = vmatprep.subr.mxu0 %v9031_v22 }
 0x5cf   : > { %7522 = vmatpush3.msra.mxu0 %v9065_v4 }
 0x5d0   : > { %7523 = vmatprep.subr.mxu0 %v9031_v22 }
 0x5d1   : > { %7524 = vmatpush3.msra.mxu0 %v9069_v6 }
 0x5d2   : > { %7525 = vmatprep.subr.mxu0 %v9031_v22 }
 0x5d3   : > { %7526 = vmatpush3.msra.mxu0 %v9073_v9 }
 0x5d4   : > { %7527 = vmatprep.subr.mxu0 %v9031_v22 }
 0x5d5   : > { %7528 = vmatpush3.msra.mxu0 %v9077_v11 }
 0x5d6   : > { %7529 = vmatprep.subr.mxu0 %v9031_v22 }
 0x5d7   : > { %7530 = vmatpush3.msra.mxu0 %v9083_v13 }
 0x5d8   : > { %7531 = vmatprep.subr.mxu0 %v9031_v22 }
 0x5d9   : > { %7532 = vmatpush3.msra.mxu0 %v9090_v16 }
 0x5da   : > { %7533 = vmatprep.subr.mxu0 %v9031_v22 }
 0x5db   : > { %7534 = vmatpush3.msra.mxu0 %v9098_v30 }
 0x68c   : > { %v7167_v18 = vpop.f32.mrf.mxu0 }
 0x68e   : > { %v7168_v55 = vpop.f32.mrf.mxu0 }
 0x68f   : > { %v7169_v33 = vadd.f32 %v7168_v55, %v7167_v18  ;;  %v9275_v18 = vld [vmem:[#allocation6 + $0x118] sm:$0xff]  ;;  %v9279_v55 = vld [vmem:[#allocation6 + $0x110] sm:$0xff] }
 0x690   : > { %10000 = vst [vmem:[#allocation26_spill] sm:$0xff] %v9275_v18  ;;  %10001 = vst [vmem:[#allocation27_spill] sm:$0xff] %v9279_v55 }
 0x691   : > { %7498 = vmatmul.mubr.msk.f32.vlgmr.msra.gmra.mxu1 %vm2540_vm2, %v7169_v33  ;;  %7536 = vmatmul.mubr.msk.f32.vlgmr.msra.gmra.mxu0 %vm2540_vm2, %v7169_v33  ;;  %2696 = vst.msk [vmem:[#allocation2 + $0x20] sm:$0xf] %vm2614_vm3, %v7169_v33 }
 0x692   : > { %7501 = vmatpush3.msra.mxu1 %v9106_v35  ;;  %7516 = vmatprep.mubr.msk.f32.mxu1 %vm8392_vm1, %v9031_v22 }
 0x693   : > { %7502 = vmatprep.subr.mxu1 %v9031_v22  ;;  %7567 = vmatprep.mubr.msk.f32.mxu0 %vm1281_vm0, %v2862_v47  ;;  %v9287_v47 = vld [vmem:[#allocation6 + $0x100] sm:$0xff] }
 0x694   : > { %7503 = vmatpush3.msra.mxu1 %v9110_v37  ;;  %10003 = vst [vmem:[#allocation29_spill] sm:$0xff] %v9287_v47 }
 0x695   : > { %7504 = vmatprep.subr.mxu1 %v9031_v22 }
 0x696   : > { %7505 = vmatpush3.msra.mxu1 %v9117_v39 }
 0x697   : > { %7506 = vmatprep.subr.mxu1 %v9031_v22 }
 0x698   : > { %7507 = vmatpush3.msra.mxu1 %v9121_v41  ;;  %v9227_v12 = vld [vmem:[#allocation2 + $0x20] sm:$0xff] }
 0x699   : > { %7508 = vmatprep.subr.mxu1 %v9031_v22 }
 0x69a   : > { %7509 = vmatpush3.msra.mxu1 %v9125_v43 }
 0x69b   : > { %7510 = vmatprep.subr.mxu1 %v9031_v22 }
 0x69c   : > { %7511 = vmatpush3.msra.mxu1 %v9129_v45 }
 0x69d   : > { %7512 = vmatprep.subr.mxu1 %v9031_v22 }
 0x69e   : > { %7513 = vmatpush3.msra.mxu1 %v9133_v17 }
 0x69f   : > { %7514 = vmatprep.subr.mxu1 %v9031_v22 }
 0x6a0   : > { %7515 = vmatpush3.msra.mxu1 %v9137_v46 }
 0x6a1   : > { %7517 = vmatmul.mubr.msk.f32.vlgmr.msra.gmra.mxu1 %vm2540_vm2, %v7169_v33  ;;  %7538 = vmatprep.subr.mxu1 %v9031_v22 }
 0x6a2   : > { %7539 = vmatpush3.msra.mxu1 %v9141_v49  ;;  %7554 = vmatprep.mubr.msk.f32.mxu1 %vm8392_vm1, %v9031_v22 }
 0x6a3   : > { %7540 = vmatprep.subr.mxu1 %v9031_v22 }
 0x6a4   : > { %7541 = vmatpush3.msra.mxu1 %v9146_v53 }
 0x6a5   : > { %7542 = vmatprep.subr.mxu1 %v9031_v22 }
 0x6a6   : > { %7543 = vmatpush3.msra.mxu1 %v9152_v57 }
 0x6a7   : > { %7544 = vmatprep.subr.mxu1 %v9031_v22 }
 0x6a8   : > { %7545 = vmatpush3.msra.mxu1 %v9156_v61 }
 0x6a9   : > { %7546 = vmatprep.subr.mxu1 %v9031_v22 }
 0x6aa   : > { %7547 = vmatpush3.msra.mxu1 %v9160_v1 }
 0x6ab   : > { %7548 = vmatprep.subr.mxu1 %v9031_v22 }
 0x6ac   : > { %7549 = vmatpush3.msra.mxu1 %v9164_v5 }
 0x6ad   : > { %7550 = vmatprep.subr.mxu1 %v9031_v22 }
 0x6ae   : > { %7551 = vmatpush3.msra.mxu1 %v9168_v10 }
 0x6af   : > { %7552 = vmatprep.subr.mxu1 %v9031_v22  ;;  %v9194_v22 = vld [vmem:[#allocation6 + $0x158] sm:$0xff] }
 0x6b0   : > { %7553 = vmatpush3.msra.mxu1 %v9172_v14  ;;  %9996 = vst [vmem:[#allocation22_spill] sm:$0xff] %v9194_v22 }
 0x6b1   : > { %7555 = vmatmul.mubr.msk.f32.vlgmr.msra.gmra.mxu1 %vm2540_vm2, %v7169_v33  ;;  %7583 = vmatprep.subr.mxu1 %v9178_v31  ;;  %v9283_v33 = vld [vmem:[#allocation6 + $0x108] sm:$0xff] }
 0x6b2   : > { %7584 = vmatpush3.msra.mxu1 %v9178_v31  ;;  %10002 = vst [vmem:[#allocation28_spill] sm:$0xff] %v9283_v33 }
 0x6b3   : > { %7585 = vmatprep.subr.mxu1 %v9180_v25 }
 0x6b4   : > { %7586 = vmatpush3.msra.mxu1 %v9180_v25 }
 0x6b5   : > { %7587 = vmatprep.subr.mxu1 %v9184_v29 }
 0x6b6   : > { %7588 = vmatpush3.msra.mxu1 %v9184_v29 }
 0x6b7   : > { %7589 = vmatprep.subr.mxu1 %v9188_v34 }
 0x6b8   : > { %7590 = vmatpush3.msra.mxu1 %v9188_v34 }
 0x6b9   : > { %7591 = vmatprep.subr.mxu1 %v9194_v22 }
 0x6ba   : > { %7592 = vmatpush3.msra.mxu1 %v9194_v22 }
 0x6bb   : > { %7593 = vmatprep.subr.mxu1 %v9198_v38 }
 0x6bc   : > { %7594 = vmatpush3.msra.mxu1 %v9198_v38 }
 0x6bd   : > { %7595 = vmatprep.subr.mxu1 %v9200_v42 }
 0x6be   : > { %7596 = vmatpush3.msra.mxu1 %v9200_v42  ;;  %v3652_v42 = vpop.permute.xlu0 %3651 }
 0x6bf   : > { %7597 = vmatprep.subr.mxu1 %v9204_v20 }
 0x6c0   : > { %7598 = vmatpush3.msra.mxu1 %v9204_v20 }
 0x751   : > { %v2610_v59 = vpop.f32.mrf.mxu1  ;;  %v2772_v32 = vpop.f32.mrf.mxu0 }
 0x752   : > { %2615 = vst.msk [vmem:[#allocation2] sm:$0xf] %vm2614_vm3, %v2610_v59  ;;  %2776 = vst.msk [vmem:[#allocation2 + $0x30] sm:$0xf] %vm2614_vm3, %v2772_v32 }
 0x753   : > { %v7499_v40 = vpop.f32.mrf.mxu1  ;;  %v7537_v44 = vpop.f32.mrf.mxu0 }
 0x754   : > { %v7078_v40 = vld [vmem:[%s9922_s12 + $0x30] sm:$0xff] }
 0x759   : > { %v9223_v7 = vld [vmem:[#allocation2 + $0x30] sm:$0xff]  ;;  %v9235_v19 = vld [vmem:[#allocation2] sm:$0xff] }
 0x761   : > { %v2691_v24 = vpop.f32.mrf.mxu1 }
 0x762   : > { %2695 = vst.msk [vmem:[#allocation2 + $0x10] sm:$0xf] %vm2614_vm3, %v2691_v24  ;;  %v7079_v24 = vld [vmem:[%s9922_s12 + $0x38] sm:$0xff] }
 0x763   : > { %v7518_v28 = vpop.f32.mrf.mxu1 }
 0x769   : > { %v9231_v3 = vld [vmem:[#allocation2 + $0x10] sm:$0xff] }
 0x771   : > { %v2852_v51 = vpop.f32.mrf.mxu1 }
 0x772   : > { %2856 = vst.msk [vmem:[#allocation2 + $0x40] sm:$0xf] %vm2614_vm3, %v2852_v51  ;;  %v7074_v51 = vld [vmem:[%s9922_s12 + $0x20] sm:$0xff] }
 0x773   : > { %v7556_v63 = vpop.f32.mrf.mxu1 }
 0x774   : > { %v7075_v63 = vld [vmem:[%s9922_s12 + $0x28] sm:$0xff] }
 0x779   : > { %v9218_v36 = vld [vmem:[#allocation2 + $0x40] sm:$0xff] }
 0x77a   : > { %7557 = vmatprep.subr.mxu0 %v9218_v36  ;;  %7621 = vmatprep.subr.mxu1 %v9218_v36 }
 0x77b   : > { %7558 = vmatpush3.msra.mxu0 %v9218_v36 }
 0x77c   : > { %7559 = vmatprep.subr.mxu0 %v9223_v7 }
 0x77d   : > { %7560 = vmatpush3.msra.mxu0 %v9223_v7 }
 0x77e   : > { %7561 = vmatprep.subr.mxu0 %v9227_v12 }
 0x77f   : > { %7562 = vmatpush3.msra.mxu0 %v9227_v12 }
 0x780   : > { %7563 = vmatprep.subr.mxu0 %v9231_v3 }
 0x781   : > { %7564 = vmatpush3.msra.mxu0 %v9231_v3 }
 0x782   : > { %7565 = vmatprep.subr.mxu0 %v9235_v19 }
 0x783   : > { %7566 = vmatpush3.msra.mxu0 %v9235_v19 }
 0x784   : > { %7568 = vmatmul.mubr.msk.f32.vlgmr.msra.gmra.mxu0 %vm1281_vm0, %v2863_v21  ;;  %7570 = vmatprep.subr.mxu0 %v9218_v36  ;;  %v9367_v21 = vld [vmem:[#allocation6 + $0x1a0] sm:$0xff] }
 0x785   : > { %7571 = vmatpush3.msra.mxu0 %v9218_v36  ;;  %7580 = vmatprep.mubr.msk.f32.mxu0 %vm1281_vm0, %v7066_v23  ;;  %10007 = vst [vmem:[#allocation33_spill] sm:$0xff] %v9367_v21  ;;  %v9369_v23 = vld [vmem:[#allocation6 + $0x198] sm:$0xff] }
 0x786   : > { %7572 = vmatprep.subr.mxu0 %v9223_v7  ;;  %10008 = vst [vmem:[#allocation34_spill] sm:$0xff] %v9369_v23 }
 0x787   : > { %7573 = vmatpush3.msra.mxu0 %v9223_v7 }
 0x788   : > { %7574 = vmatprep.subr.mxu0 %v9227_v12 }
 0x789   : > { %7575 = vmatpush3.msra.mxu0 %v9227_v12 }
 0x78a   : > { %7576 = vmatprep.subr.mxu0 %v9231_v3 }
 0x78b   : > { %7577 = vmatpush3.msra.mxu0 %v9231_v3 }
 0x78c   : > { %7578 = vmatprep.subr.mxu0 %v9235_v19 }
 0x78d   : > { %7579 = vmatpush3.msra.mxu0 %v9235_v19 }
 0x78e   : > { %7581 = vmatmul.mubr.msk.f32.vlgmr.msra.gmra.mxu0 %vm1281_vm0, %v7067_v26  ;;  %7602 = vmatprep.subr.mxu0 %v9258_v58  ;;  %v9375_v26 = vld [vmem:[#allocation6 + $0x190] sm:$0xff] }
 0x78f   : > { %7603 = vmatpush3.msra.mxu0 %v9258_v58  ;;  %10009 = vst [vmem:[#allocation35_spill] sm:$0xff] %v9375_v26 }
 0x790   : > { %7604 = vmatprep.subr.mxu0 %v9262_v60 }
 0x791   : > { %7605 = vmatpush3.msra.mxu0 %v9262_v60 }
 0x792   : > { %7606 = vmatprep.subr.mxu0 %v9267_v62 }
 0x793   : > { %7607 = vmatpush3.msra.mxu0 %v9267_v62 }
 0x794   : > { %7608 = vmatprep.subr.mxu0 %v9271_v0 }
 0x795   : > { %7609 = vmatpush3.msra.mxu0 %v9271_v0 }
 0x796   : > { %7610 = vmatprep.subr.mxu0 %v9275_v18 }
 0x797   : > { %7611 = vmatpush3.msra.mxu0 %v9275_v18 }
 0x798   : > { %7612 = vmatprep.subr.mxu0 %v9279_v55 }
 0x799   : > { %7613 = vmatpush3.msra.mxu0 %v9279_v55 }
 0x79a   : > { %7614 = vmatprep.subr.mxu0 %v9283_v33 }
 0x79b   : > { %7615 = vmatpush3.msra.mxu0 %v9283_v33 }
 0x79c   : > { %7616 = vmatprep.subr.mxu0 %v9287_v47 }
 0x79d   : > { %7617 = vmatpush3.msra.mxu0 %v9287_v47 }
 0x79e   : > { %7634 = vmatprep.subr.mxu0 %v9218_v36 }
 0x844   : > { %v7569_v59 = vpop.f32.mrf.mxu0 }
 0x846   : > { %v2936_v32 = vpop.f32.mrf.mxu0 }
 0x847   : > { %7618 = vmatprep.mubr.msk.f32.mxu0 %vm2540_vm2, %v2936_v32  ;;  %v9392_v32 = vld [vmem:[#allocation6 + $0x180] sm:$0xff] }
 0x848   : > { %7619 = vmatmul.mubr.msk.f32.vlgmr.msra.gmra.mxu0 %vm2540_vm2, %v7569_v59  ;;  %v9381_v59 = vld [vmem:[#allocation6 + $0x188] sm:$0xff]  ;;  %10011 = vst [vmem:[#allocation37_spill] sm:$0xff] %v9392_v32 }
 0x849   : > { %7635 = vmatpush3.msra.mxu0 %v9218_v36  ;;  %7644 = vmatprep.mubr.msk.f32.mxu0 %vm1281_vm0, %v7078_v40  ;;  %10010 = vst [vmem:[#allocation36_spill] sm:$0xff] %v9381_v59  ;;  %v9397_v40 = vld [vmem:[#allocation6 + $0x1f8] sm:$0xff] }
 0x84a   : > { %7636 = vmatprep.subr.mxu0 %v9223_v7  ;;  %10012 = vst [vmem:[#allocation38_spill] sm:$0xff] %v9397_v40 }
 0x84b   : > { %7637 = vmatpush3.msra.mxu0 %v9223_v7 }
 0x84c   : > { %7638 = vmatprep.subr.mxu0 %v9227_v12 }
 0x84d   : > { %7639 = vmatpush3.msra.mxu0 %v9227_v12 }
 0x84e   : > { %7640 = vmatprep.subr.mxu0 %v9231_v3  ;;  %v7582_v44 = vpop.f32.mrf.mxu0 }
 0x84f   : > { %7641 = vmatpush3.msra.mxu0 %v9231_v3 }
 0x850   : > { %7642 = vmatprep.subr.mxu0 %v9235_v19  ;;  %v3029_v28 = vpop.f32.mrf.mxu0 }
 0x851   : > { %7643 = vmatpush3.msra.mxu0 %v9235_v19  ;;  %7599 = vmatprep.mubr.msk.f32.mxu1 %vm2540_vm2, %v3029_v28 }
 0x852   : > { %7645 = vmatmul.mubr.msk.f32.vlgmr.msra.gmra.mxu0 %vm1281_vm0, %v7079_v24  ;;  %7666 = vmatprep.subr.mxu0 %v9218_v36  ;;  %v5070_v24 = vld [vmem:[%s9925_s15] sm:$0xf] }
 0x853   : > { %7600 = vmatmul.mubr.msk.f32.vlgmr.msra.gmra.mxu1 %vm2540_vm2, %v7582_v44  ;;  %7667 = vmatpush3.msra.mxu0 %v9218_v36  ;;  %v3648_v44 = vld [vmem:[%s9923_s13 + $0x8] sm:$0xff] }
 0x854   : > { %7622 = vmatpush3.msra.mxu1 %v9218_v36  ;;  %7668 = vmatprep.subr.mxu0 %v9223_v7  ;;  %v7084_v36 = vld [vmem:[%s9922_s12 + $0x40] sm:$0xff] }
 0x855   : > { %7623 = vmatprep.subr.mxu1 %v9223_v7  ;;  %7669 = vmatpush3.msra.mxu0 %v9223_v7 }
 0x856   : > { %7624 = vmatpush3.msra.mxu1 %v9223_v7  ;;  %7670 = vmatprep.subr.mxu0 %v9227_v12  ;;  %v7085_v7 = vld [vmem:[%s9922_s12 + $0x48] sm:$0xff] }
 0x857   : > { %7625 = vmatprep.subr.mxu1 %v9227_v12  ;;  %7671 = vmatpush3.msra.mxu0 %v9227_v12 }
 0x858   : > { %7626 = vmatpush3.msra.mxu1 %v9227_v12  ;;  %7672 = vmatprep.subr.mxu0 %v9231_v3  ;;  %v9345_v12 = vld [vmem:[#allocation6 + $0x1b8] sm:$0xff] }
 0x859   : > { %7627 = vmatprep.subr.mxu1 %v9231_v3  ;;  %7673 = vmatpush3.msra.mxu0 %v9231_v3  ;;  %10004 = vst [vmem:[#allocation30_spill] sm:$0xff] %v9345_v12 }
 0x85a   : > { %7628 = vmatpush3.msra.mxu1 %v9231_v3  ;;  %7674 = vmatprep.subr.mxu0 %v9235_v19  ;;  %v9351_v3 = vld [vmem:[#allocation6 + $0x1b0] sm:$0xff] }
 0x85b   : > { %7629 = vmatprep.subr.mxu1 %v9235_v19  ;;  %7631 = vmatprep.mubr.msk.f32.mxu1 %vm1281_vm0, %v7074_v51  ;;  %10005 = vst [vmem:[#allocation31_spill] sm:$0xff] %v9351_v3 }
 0x85c   : > { %7630 = vmatpush3.msra.mxu1 %v9235_v19  ;;  %7675 = vmatpush3.msra.mxu0 %v9235_v19  ;;  %v9362_v19 = vld [vmem:[#allocation6 + $0x1a8] sm:$0xff] }
 0x85d   : > { %7632 = vmatmul.mubr.msk.f32.vlgmr.msra.gmra.mxu1 %vm1281_vm0, %v7075_v63  ;;  %7676 = vmatprep.mubr.msk.f32.mxu0 %vm1281_vm0, %v7084_v36  ;;  %10006 = vst [vmem:[#allocation32_spill] sm:$0xff] %v9362_v19 }
 0x85e   : > { %7677 = vmatmul.mubr.msk.f32.vlgmr.msra.gmra.mxu0 %vm1281_vm0, %v7085_v7  ;;  %7647 = vmatprep.subr.mxu1 %v9345_v12  ;;  %v9408_v7 = vld [vmem:[#allocation6 + $0x1f0] sm:$0xff] }
 0x85f   : > { %7648 = vmatpush3.msra.mxu1 %v9345_v12  ;;  %7698 = vmatprep.subr.mxu0 %v9345_v12  ;;  %10013 = vst [vmem:[#allocation39_spill] sm:$0xff] %v9408_v7 }
 0x860   : > { %7649 = vmatprep.subr.mxu1 %v9351_v3  ;;  %7699 = vmatpush3.msra.mxu0 %v9345_v12 }
 0x861   : > { %7650 = vmatpush3.msra.mxu1 %v9351_v3  ;;  %7700 = vmatprep.subr.mxu0 %v9351_v3 }
 0x862   : > { %7701 = vmatpush3.msra.mxu0 %v9351_v3  ;;  %7651 = vmatprep.subr.mxu1 %v9362_v19 }
 0x863   : > { %7702 = vmatprep.subr.mxu0 %v9362_v19  ;;  %7652 = vmatpush3.msra.mxu1 %v9362_v19 }
 0x864   : > { %7703 = vmatpush3.msra.mxu0 %v9362_v19  ;;  %7653 = vmatprep.subr.mxu1 %v9367_v21 }
 0x865   : > { %7704 = vmatprep.subr.mxu0 %v9367_v21  ;;  %7654 = vmatpush3.msra.mxu1 %v9367_v21 }
 0x866   : > { %7705 = vmatpush3.msra.mxu0 %v9367_v21  ;;  %7655 = vmatprep.subr.mxu1 %v9369_v23 }
 0x867   : > { %7706 = vmatprep.subr.mxu0 %v9369_v23  ;;  %7656 = vmatpush3.msra.mxu1 %v9369_v23 }
 0x868   : > { %7707 = vmatpush3.msra.mxu0 %v9369_v23  ;;  %7657 = vmatprep.subr.mxu1 %v9375_v26 }
 0x869   : > { %7708 = vmatprep.subr.mxu0 %v9375_v26  ;;  %7658 = vmatpush3.msra.mxu1 %v9375_v26 }
 0x86a   : > { %7709 = vmatpush3.msra.mxu0 %v9375_v26  ;;  %7659 = vmatprep.subr.mxu1 %v9381_v59 }
 0x86b   : > { %7710 = vmatprep.subr.mxu0 %v9381_v59  ;;  %7660 = vmatpush3.msra.mxu1 %v9381_v59 }
 0x86c   : > { %7711 = vmatpush3.msra.mxu0 %v9381_v59  ;;  %7661 = vmatprep.subr.mxu1 %v9392_v32 }
 0x86d   : > { %7712 = vmatprep.subr.mxu0 %v9392_v32  ;;  %7662 = vmatpush3.msra.mxu1 %v9392_v32 }
 0x86e   : > { %7713 = vmatpush3.msra.mxu0 %v9392_v32  ;;  %7679 = vmatprep.subr.mxu1 %v9397_v40  ;;  %v9412_v32 = vld [vmem:[#allocation6 + $0x1e8] sm:$0xff] }
 0x86f   : > { %3656 = vperm.xlu1 %8127, %v3648_v44   ;;  %10014 = vst [vmem:[#allocation40_spill] sm:$0xff] %v9412_v32  ;;  %v9416_v44 = vld [vmem:[#allocation6 + $0x1e0] sm:$0xff] }
 0x870   : > { %10015 = vst [vmem:[#allocation41_spill] sm:$0xff] %v9416_v44 }
 0x873   : > { %5073 = vperm.xlu1 %8127, %v5070_v24   ;;  %v9420_v24 = vld [vmem:[#allocation6 + $0x1d8] sm:$0xff] }
 0x874   : > { %10016 = vst [vmem:[#allocation42_spill] sm:$0xff] %v9420_v24 }
 0x8ea   : > { %v3657_v47 = vpop.permute.xlu1 %3656 }
 0x908   : > { %v7620_v28 = vpop.f32.mrf.mxu0 }
 0x90a   : > { %v3200_v51 = vpop.f32.mrf.mxu0 }
 0x912   : > { %v7646_v63 = vpop.f32.mrf.mxu0 }
 0x914   : > { %v3370_v36 = vpop.f32.mrf.mxu0 }
 0x915   : > { %7663 = vmatprep.mubr.msk.f32.mxu1 %vm2540_vm2, %v3370_v36 }
 0x916   : > { %7664 = vmatmul.mubr.msk.f32.vlgmr.msra.gmra.mxu1 %vm2540_vm2, %v7646_v63  ;;  %v9424_v63 = vld [vmem:[#allocation6 + $0x1d0] sm:$0xff] }
 0x917   : > { %7680 = vmatpush3.msra.mxu1 %v9397_v40  ;;  %10017 = vst [vmem:[#allocation43_spill] sm:$0xff] %v9424_v63 }
 0x918   : > { %7681 = vmatprep.subr.mxu1 %v9408_v7 }
 0x919   : > { %7682 = vmatpush3.msra.mxu1 %v9408_v7  ;;  %v9428_v7 = vld [vmem:[#allocation6 + $0x1c8] sm:$0xff] }
 0x91a   : > { %7683 = vmatprep.subr.mxu1 %v9412_v32  ;;  %10018 = vst [vmem:[#allocation44_spill] sm:$0xff] %v9428_v7 }
 0x91b   : > { %7684 = vmatpush3.msra.mxu1 %v9412_v32  ;;  %v9433_v32 = vld [vmem:[#allocation6 + $0x1c0] sm:$0xff] }
 0x91c   : > { %7685 = vmatprep.subr.mxu1 %v9416_v44  ;;  %10019 = vst [vmem:[#allocation45_spill] sm:$0xff] %v9433_v32 }
 0x91d   : > { %7686 = vmatpush3.msra.mxu1 %v9416_v44 }
 0x91e   : > { %7687 = vmatprep.subr.mxu1 %v9420_v24  ;;  %v7678_v36 = vpop.f32.mrf.mxu0 }
 0x91f   : > { %7688 = vmatpush3.msra.mxu1 %v9420_v24 }
 0x920   : > { %7689 = vmatprep.subr.mxu1 %v9424_v63  ;;  %v3546_v40 = vpop.f32.mrf.mxu0 }
 0x921   : > { %7690 = vmatpush3.msra.mxu1 %v9424_v63  ;;  %7695 = vmatprep.mubr.msk.f32.mxu1 %vm2540_vm2, %v3546_v40  ;;  %v7601_v40 = vpop.f32.mrf.mxu1 }
 0x922   : > { %7691 = vmatprep.subr.mxu1 %v9428_v7  ;;  %v3206_v24 = vadd.f32 %v7620_v28, %v7601_v40  ;;  %v3844_v28 = vld [vmem:[#allocation9 + $0x38] sm:$0xff] }
 0x923   : > { %7692 = vmatpush3.msra.mxu1 %v9428_v7  ;;  %7736 = vmatprep.subr.mxu0 %v3844_v28  ;;  %v10033_v40 = vld [vmem:[#allocation35_spill] sm:$0xff] }
 0x924   : > { %7693 = vmatprep.subr.mxu1 %v9433_v32 }
 0x925   : > { %7694 = vmatpush3.msra.mxu1 %v9433_v32 }
 0x926   : > { %7696 = vmatmul.mubr.msk.f32.vlgmr.msra.gmra.mxu1 %vm2540_vm2, %v7678_v36  ;;  %7717 = vmatprep.subr.mxu1 %v9063_v2  ;;  %v3119_v36 = vpop.f32.mrf.mxu1 }
 0x927   : > { %7718 = vmatpush3.msra.mxu1 %v9063_v2  ;;  %v3201_v44 = vadd.f32 %v3200_v51, %v3119_v36  ;;  %v10028_v51 = vld [vmem:[#allocation30_spill] sm:$0xff]  ;;  %v10034_v36 = vld [vmem:[#allocation36_spill] sm:$0xff] }
 0x928   : > { %7719 = vmatprep.subr.mxu1 %v9065_v4  ;;  %v7633_v32 = vpop.f32.mrf.mxu1 }
 0x929   : > { %7720 = vmatpush3.msra.mxu1 %v9065_v4  ;;  %v3294_v59 = vadd.f32 %v7633_v32, %v3206_v24  ;;  %v3843_v32 = vld [vmem:[#allocation9 + $0x30] sm:$0xff]  ;;  %v10031_v24 = vld [vmem:[#allocation33_spill] sm:$0xff] }
 0x92a   : > { %7721 = vmatprep.subr.mxu1 %v9069_v6  ;;  %v3284_v7 = vpop.f32.mrf.mxu1 }
 0x92b   : > { %7722 = vmatpush3.msra.mxu1 %v9069_v6  ;;  %v3293_v23 = vadd.f32 %v3284_v7, %v3201_v44  ;;  %v10029_v7 = vld [vmem:[#allocation31_spill] sm:$0xff]  ;;  %v10030_v44 = vld [vmem:[#allocation32_spill] sm:$0xff] }
 0x92c   : > { %7723 = vmatprep.subr.mxu1 %v9073_v9 }
 0x92d   : > { %7724 = vmatpush3.msra.mxu1 %v9073_v9 }
 0x92e   : > { %7725 = vmatprep.subr.mxu1 %v9077_v11 }
 0x92f   : > { %7726 = vmatpush3.msra.mxu1 %v9077_v11 }
 0x930   : > { %7727 = vmatprep.subr.mxu1 %v9083_v13 }
 0x931   : > { %7728 = vmatpush3.msra.mxu1 %v9083_v13 }
 0x932   : > { %7729 = vmatprep.subr.mxu1 %v9090_v16 }
 0x933   : > { %7730 = vmatpush3.msra.mxu1 %v9090_v16 }
 0x934   : > { %7731 = vmatprep.subr.mxu1 %v9098_v30 }
 0x935   : > { %7732 = vmatpush3.msra.mxu1 %v9098_v30 }
 0x936   : > { %7781 = vmatprep.subr.mxu1 %v9106_v35 }
 0x9d6   : > { %v7665_v63 = vpop.f32.mrf.mxu1 }
 0x9d7   : > { %v3470_v21 = vadd.f32 %v7665_v63, %v3294_v59  ;;  %v3842_v59 = vld [vmem:[#allocation9 + $0x28] sm:$0xff]  ;;  %v10032_v63 = vld [vmem:[#allocation34_spill] sm:$0xff] }
 0x9d8   : > { %v3460_v26 = vpop.f32.mrf.mxu1 }
 0x9d9   : > { %v3469_v3 = vadd.f32 %v3460_v26, %v3293_v23  ;;  %v7111_v23 = vld [vmem:[%s9924_s14 + $0x8] sm:$0xf]  ;;  %v7113_v26 = vld [vmem:[%s9924_s14 + $0xc] sm:$0xf] }
 0x9e6   : > { %v7697_v19 = vpop.f32.mrf.mxu1 }
 0x9e7   : > { %v3646_v12 = vadd.f32 %v7697_v19, %v3470_v21  ;;  %v3841_v19 = vld [vmem:[#allocation9 + $0x20] sm:$0xff] }
 0x9e8   : > { %v3636_v20 = vpop.f32.mrf.mxu1 }
 0x9e9   : > { %v3645_v33 = vadd.f32 %v3636_v20, %v3469_v3  ;;  %v3660_v55 = vadd.f32 %v3657_v47, %v3646_v12  ;;  %v3840_v20 = vld [vmem:[#allocation9 + $0x18] sm:$0xff] }
 0x9eb   : > { %v3659_v38 = vadd.f32 %v3652_v42, %v3645_v33  ;;  %v3662_v22 = vmax.f32 %v3660_v55, 0.0 }
 0x9ed   : > { %v3661_v18 = vmax.f32 %v3659_v38, 0.0 }
 0x9ef   : > { %7714 = vmatprep.mubr.msk.f32.mxu0 %vm2540_vm2, %v3661_v18 }
 0x9f0   : > { %7715 = vmatmul.mubr.msk.f32.vlgmr.msra.gmra.mxu0 %vm2540_vm2, %v3662_v22 }
 0x9f1   : > { %7737 = vmatpush3.msra.mxu0 %v3844_v28  ;;  %v10035_v28 = vld [vmem:[#allocation37_spill] sm:$0xff] }
 0x9f2   : > { %7738 = vmatprep.subr.mxu0 %v3843_v32 }
 0x9f3   : > { %7739 = vmatpush3.msra.mxu0 %v3843_v32  ;;  %v7116_v32 = vld [vmem:[%s9924_s14 + $0x10] sm:$0xf] }
 0x9f4   : > { %7740 = vmatprep.subr.mxu0 %v3842_v59 }
 0x9f5   : > { %7741 = vmatpush3.msra.mxu0 %v3842_v59 }
 0x9f6   : > { %7742 = vmatprep.subr.mxu0 %v3841_v19 }
 0x9f7   : > { %7743 = vmatpush3.msra.mxu0 %v3841_v19 }
 0x9f8   : > { %7744 = vmatprep.subr.mxu0 %v3840_v20 }
 0x9f9   : > { %7745 = vmatpush3.msra.mxu0 %v3840_v20 }
 0xab0   : > { %v7716_v38 = vpop.f32.mrf.mxu0 }
 0xab1   : > { %v3745_v33 = vmax.f32 %v3662_v22, %v7716_v38 }
 0xab2   : > { %v3735_v42 = vpop.f32.mrf.mxu0 }
 0xab3   : > { %v3744_v55 = vmax.f32 %v3661_v18, %v3735_v42 }
 0xab5   : > { %7733 = vmatprep.mubr.msk.f32.mxu1 %vm2540_vm2, %v3744_v55 }
 0xab6   : > { %7734 = vmatmul.mubr.msk.f32.vlgmr.msra.gmra.mxu1 %vm2540_vm2, %v3745_v33 }
 0xab7   : > { %7782 = vmatpush3.msra.mxu1 %v9106_v35  ;;  %v3839_v35 = vld [vmem:[#allocation9 + $0x10] sm:$0xff] }
 0xab8   : > { %7783 = vmatprep.subr.mxu1 %v9110_v37  ;;  %7746 = vmatprep.subr.mxu0 %v3839_v35 }
 0xab9   : > { %7784 = vmatpush3.msra.mxu1 %v9110_v37  ;;  %7747 = vmatpush3.msra.mxu0 %v3839_v35  ;;  %v3838_v37 = vld [vmem:[#allocation9 + $0x8] sm:$0xff] }
 0xaba   : > { %7785 = vmatprep.subr.mxu1 %v9117_v39  ;;  %7748 = vmatprep.subr.mxu0 %v3838_v37 }
 0xabb   : > { %7786 = vmatpush3.msra.mxu1 %v9117_v39  ;;  %7749 = vmatpush3.msra.mxu0 %v3838_v37  ;;  %v3837_v39 = vld [vmem:[#allocation9] sm:$0xff] }
 0xabc   : > { %7787 = vmatprep.subr.mxu1 %v9121_v41  ;;  %7750 = vmatprep.subr.mxu0 %v3837_v39 }
 0xabd   : > { %7788 = vmatpush3.msra.mxu1 %v9121_v41  ;;  %7751 = vmatpush3.msra.mxu0 %v3837_v39  ;;  %v3927_v41 = vld [vmem:[#allocation11 + $0x8] sm:$0xff]  ;;  %v10036_v39 = vld [vmem:[#allocation38_spill] sm:$0xff] }
 0xabe   : > { %7789 = vmatprep.subr.mxu1 %v9125_v43  ;;  %7755 = vmatprep.subr.mxu0 %v3927_v41 }
 0xabf   : > { %7790 = vmatpush3.msra.mxu1 %v9125_v43 }
 0xac0   : > { %7791 = vmatprep.subr.mxu1 %v9129_v45 }
 0xac1   : > { %7792 = vmatpush3.msra.mxu1 %v9129_v45 }
 0xac2   : > { %7793 = vmatprep.subr.mxu1 %v9133_v17 }
 0xac3   : > { %7794 = vmatpush3.msra.mxu1 %v9133_v17 }
 0xac4   : > { %7795 = vmatprep.subr.mxu1 %v9137_v46 }
 0xac5   : > { %7796 = vmatpush3.msra.mxu1 %v9137_v46  ;;  %v3926_v46 = vld [vmem:[#allocation11] sm:$0xff] }
 0xac6   : > { %7819 = vmatprep.subr.mxu1 %v9141_v49 }
 0xb76   : > { %v7735_v43 = vpop.f32.mrf.mxu1 }
 0xb77   : > { %v3836_v22 = vmax.f32 %v3745_v33, %v7735_v43  ;;  %v10037_v43 = vld [vmem:[#allocation39_spill] sm:$0xff] }
 0xb78   : > { %v3826_v45 = vpop.f32.mrf.mxu1 }
 0xb79   : > { %v3835_v17 = vmax.f32 %v3744_v55, %v3826_v45  ;;  %v10038_v45 = vld [vmem:[#allocation40_spill] sm:$0xff] }
 0xb7b   : > { %7752 = vmatprep.mubr.msk.f32.mxu0 %vm2540_vm2, %v3835_v17  ;;  %v10039_v17 = vld [vmem:[#allocation41_spill] sm:$0xff] }
 0xb7c   : > { %7753 = vmatmul.mubr.msk.f32.vlgmr.msra.gmra.mxu0 %vm2540_vm2, %v3836_v22  ;;  %v10040_v22 = vld [vmem:[#allocation42_spill] sm:$0xff] }
 0xb7d   : > { %7756 = vmatpush3.msra.mxu0 %v3927_v41 }
 0xb7e   : > { %7757 = vmatprep.subr.mxu0 %v3926_v46 }
 0xb7f   : > { %7758 = vmatpush3.msra.mxu0 %v3926_v46  ;;  %v10041_v46 = vld [vmem:[#allocation43_spill] sm:$0xff] }
 0xb80   : > { %7762 = vmatprep.subr.mxu0 %v9038_v8 }
 0xc3c   : > { %v7754_v18 = vpop.f32.mrf.mxu0 }
 0xc3e   : > { %v3917_v47 = vpop.f32.mrf.mxu0 }
 0xc3f   : > { %7759 = vmatprep.mubr.msk.f32.mxu0 %vm3928_vm4, %v3917_v47  ;;  %v10043_v47 = vld [vmem:[#allocation45_spill] sm:$0xff] }
 0xc40   : > { %7760 = vmatmul.mubr.msk.f32.vlgmr.msra.gmra.mxu0 %vm3928_vm4, %v7754_v18  ;;  %v10042_v18 = vld [vmem:[#allocation44_spill] sm:$0xff] }
 0xc41   : > { %7763 = vmatpush3.msra.mxu0 %v9038_v8 }
 0xc42   : > { %7764 = vmatprep.subr.mxu0 %v9042_v48 }
 0xc43   : > { %7765 = vmatpush3.msra.mxu0 %v9042_v48 }
 0xc44   : > { %7766 = vmatprep.subr.mxu0 %v9046_v50 }
 0xc45   : > { %7767 = vmatpush3.msra.mxu0 %v9046_v50  ;;  %v9538_v50 = vld [vmem:[#allocation2 + $0x58] sm:$0xff] }
 0xc46   : > { %7768 = vmatprep.subr.mxu0 %v9050_v52 }
 0xc47   : > { %7769 = vmatpush3.msra.mxu0 %v9050_v52 }
 0xc48   : > { %7770 = vmatprep.subr.mxu0 %v9054_v54 }
 0xc49   : > { %7771 = vmatpush3.msra.mxu0 %v9054_v54 }
 0xc4a   : > { %7772 = vmatprep.subr.mxu0 %v9058_v56 }
 0xc4b   : > { %7773 = vmatpush3.msra.mxu0 %v9058_v56 }
 0xc4c   : > { %7774 = vmatprep.subr.mxu0 %v9086_v15 }
 0xc4d   : > { %7775 = vmatpush3.msra.mxu0 %v9086_v15 }
 0xc4e   : > { %7776 = vmatprep.subr.mxu0 %v9094_v27 }
 0xc4f   : > { %7777 = vmatpush3.msra.mxu0 %v9094_v27 }
 0xc50   : > { %7800 = vmatprep.subr.mxu0 %v9063_v2 }
 0xd00   : > { %v7761_v8 = vpop.f32.mrf.mxu0 }
 0xd01   : > { %4187 = vst.msk [vmem:[#allocation2 + $0x50] sm:$0xff] %vm2540_vm2, %v7761_v8 }
 0xd02   : > { %v4001_v48 = vpop.f32.mrf.mxu0 }
 0xd03   : > { %4186 = vst.msk [vmem:[#allocation2 + $0x40] sm:$0xff] %vm2540_vm2, %v4001_v48  ;;  %7778 = vmatprep.mubr.msk.f32.mxu0 %vm2540_vm2, %v4001_v48  ;;  %7797 = vmatprep.mubr.msk.f32.mxu1 %vm2540_vm2, %v4001_v48 }
 0xd04   : > { %7779 = vmatmul.mubr.msk.f32.vlgmr.msra.gmra.mxu0 %vm2540_vm2, %v7761_v8  ;;  %7798 = vmatmul.mubr.msk.f32.vlgmr.msra.gmra.mxu1 %vm2540_vm2, %v7761_v8 }
 0xd05   : > { %7801 = vmatpush3.msra.mxu0 %v9063_v2  ;;  %7820 = vmatpush3.msra.mxu1 %v9141_v49 }
 0xd06   : > { %7802 = vmatprep.subr.mxu0 %v9065_v4  ;;  %7816 = vmatprep.mubr.msk.f32.mxu0 %vm2540_vm2, %v4001_v48 }
 0xd07   : > { %7821 = vmatprep.subr.mxu1 %v9146_v53  ;;  %7835 = vmatprep.mubr.msk.f32.mxu1 %vm2540_vm2, %v4001_v48 }
 0xd08   : > { %7803 = vmatpush3.msra.mxu0 %v9065_v4  ;;  %7822 = vmatpush3.msra.mxu1 %v9146_v53 }
 0xd09   : > { %7804 = vmatprep.subr.mxu0 %v9069_v6  ;;  %7823 = vmatprep.subr.mxu1 %v9152_v57 }
 0xd0a   : > { %7805 = vmatpush3.msra.mxu0 %v9069_v6  ;;  %7824 = vmatpush3.msra.mxu1 %v9152_v57  ;;  %v9584_v49 = vld [vmem:[#allocation2 + $0x40] sm:$0xff] }
 0xd0b   : > { %7806 = vmatprep.subr.mxu0 %v9073_v9  ;;  %7825 = vmatprep.subr.mxu1 %v9156_v61 }
 0xd0c   : > { %7807 = vmatpush3.msra.mxu0 %v9073_v9  ;;  %7826 = vmatpush3.msra.mxu1 %v9156_v61 }
 0xd0d   : > { %7808 = vmatprep.subr.mxu0 %v9077_v11  ;;  %7827 = vmatprep.subr.mxu1 %v9160_v1 }
 0xd0e   : > { %7809 = vmatpush3.msra.mxu0 %v9077_v11  ;;  %7828 = vmatpush3.msra.mxu1 %v9160_v1  ;;  %v4368_v1 = vld [vmem:[%s9924_s14] sm:$0xf] }
 0xd0f   : > { %7810 = vmatprep.subr.mxu0 %v9083_v13  ;;  %7829 = vmatprep.subr.mxu1 %v9164_v5 }
 0xd10   : > { %7811 = vmatpush3.msra.mxu0 %v9083_v13  ;;  %7830 = vmatpush3.msra.mxu1 %v9164_v5  ;;  %v7107_v5 = vld [vmem:[%s9924_s14 + $0x4] sm:$0xf] }
 0xd11   : > { %7812 = vmatprep.subr.mxu0 %v9090_v16  ;;  %7831 = vmatprep.subr.mxu1 %v9168_v10 }
 0xd12   : > { %7813 = vmatpush3.msra.mxu0 %v9090_v16  ;;  %7832 = vmatpush3.msra.mxu1 %v9168_v10 }
 0xd13   : > { %7814 = vmatprep.subr.mxu0 %v9098_v30  ;;  %7833 = vmatprep.subr.mxu1 %v9172_v14 }
 0xd14   : > { %7815 = vmatpush3.msra.mxu0 %v9098_v30  ;;  %7834 = vmatpush3.msra.mxu1 %v9172_v14  ;;  %v9578_v30 = vld [vmem:[#allocation2 + $0x50] sm:$0xff] }
 0xd15   : > { %7817 = vmatmul.mubr.msk.f32.vlgmr.msra.gmra.mxu0 %vm2540_vm2, %v7761_v8  ;;  %7836 = vmatmul.mubr.msk.f32.vlgmr.msra.gmra.mxu1 %vm2540_vm2, %v7761_v8  ;;  %v10020_v14 = vld [vmem:[#allocation22_spill] sm:$0xff] }
 0xd16   : > { %7838 = vmatprep.subr.mxu0 %v9538_v50  ;;  %7861 = vmatprep.subr.mxu1 %v9538_v50 }
 0xd17   : > { %7858 = vmatprep.mubr.msk.f32.mxu0 %vm8392_vm1, %v9538_v50  ;;  %7881 = vmatprep.mubr.msk.f32.mxu1 %vm8392_vm1, %v9538_v50 }
 0xdc4   : > { %v7780_v52 = vpop.f32.mrf.mxu0  ;;  %v7799_v54 = vpop.f32.mrf.mxu1 }
 0xdc5   : > { %4100 = vst.msk [vmem:[#allocation2 + $0x10] sm:$0xff] %vm2540_vm2, %v7780_v52  ;;  %4185 = vst.msk [vmem:[#allocation2 + $0x30] sm:$0xff] %vm2540_vm2, %v7799_v54  ;;  %v5093_v52 = vld [vmem:[#allocation12 + $0x78] sm:$0xff]  ;;  %v5092_v54 = vld [vmem:[#allocation12 + $0x70] sm:$0xff] }
 0xdc6   : > { %v4090_v56 = vpop.f32.mrf.mxu0  ;;  %v4175_v2 = vpop.f32.mrf.mxu1 }
 0xdc7   : > { %4099 = vst.msk [vmem:[#allocation2] sm:$0xff] %vm2540_vm2, %v4090_v56  ;;  %4184 = vst.msk [vmem:[#allocation2 + $0x20] sm:$0xff] %vm2540_vm2, %v4175_v2  ;;  %v5091_v56 = vld [vmem:[#allocation12 + $0x68] sm:$0xff]  ;;  %v5090_v2 = vld [vmem:[#allocation12 + $0x60] sm:$0xff] }
 0xdcc   : > { %v9590_v53 = vld [vmem:[#allocation2 + $0x30] sm:$0xff] }
 0xdcd   : > { %v9602_v61 = vld [vmem:[#allocation2 + $0x10] sm:$0xff] }
 0xdce   : > { %v9596_v57 = vld [vmem:[#allocation2 + $0x20] sm:$0xff] }
 0xdcf   : > { %v9614_v10 = vld [vmem:[#allocation2] sm:$0xff] }
 0xdd5   : > { %v7818_v4 = vpop.f32.mrf.mxu0  ;;  %v7837_v6 = vpop.f32.mrf.mxu1 }
 0xdd6   : > { %4272 = vst.msk [vmem:[#allocation2 + $0x70] sm:$0xff] %vm2540_vm2, %v7818_v4  ;;  %4357 = vst.msk [vmem:[#allocation2 + $0x90] sm:$0xff] %vm2540_vm2, %v7837_v6  ;;  %v5089_v4 = vld [vmem:[#allocation12 + $0x58] sm:$0xff]  ;;  %v5088_v6 = vld [vmem:[#allocation12 + $0x50] sm:$0xff] }
 0xdd7   : > { %v4262_v9 = vpop.f32.mrf.mxu0  ;;  %v4347_v11 = vpop.f32.mrf.mxu1 }
 0xdd8   : > { %4271 = vst.msk [vmem:[#allocation2 + $0x60] sm:$0xff] %vm2540_vm2, %v4262_v9  ;;  %4356 = vst.msk [vmem:[#allocation2 + $0x80] sm:$0xff] %vm2540_vm2, %v4347_v11  ;;  %v5087_v9 = vld [vmem:[#allocation12 + $0x48] sm:$0xff]  ;;  %v5086_v11 = vld [vmem:[#allocation12 + $0x40] sm:$0xff] }
 0xddd   : > { %v9554_v13 = vld [vmem:[#allocation2 + $0x90] sm:$0xff] }
 0xdde   : > { %7839 = vmatpush3.msra.mxu0 %v9554_v13  ;;  %7862 = vmatpush3.msra.mxu1 %v9554_v13  ;;  %v9566_v16 = vld [vmem:[#allocation2 + $0x70] sm:$0xff] }
 0xddf   : > { %7840 = vmatprep.subr.mxu0 %v9538_v50  ;;  %7863 = vmatprep.subr.mxu1 %v9538_v50  ;;  %v9560_v15 = vld [vmem:[#allocation2 + $0x80] sm:$0xff] }
 0xde0   : > { %7841 = vmatpush3.msra.mxu0 %v9560_v15  ;;  %7864 = vmatpush3.msra.mxu1 %v9560_v15  ;;  %v9572_v27 = vld [vmem:[#allocation2 + $0x60] sm:$0xff] }
 0xde1   : > { %7842 = vmatprep.subr.mxu0 %v9538_v50  ;;  %7865 = vmatprep.subr.mxu1 %v9538_v50 }
 0xde2   : > { %7843 = vmatpush3.msra.mxu0 %v9566_v16  ;;  %7866 = vmatpush3.msra.mxu1 %v9566_v16 }
 0xde3   : > { %7844 = vmatprep.subr.mxu0 %v9538_v50  ;;  %7867 = vmatprep.subr.mxu1 %v9538_v50 }
 0xde4   : > { %7845 = vmatpush3.msra.mxu0 %v9572_v27  ;;  %7868 = vmatpush3.msra.mxu1 %v9572_v27 }
 0xde5   : > { %7846 = vmatprep.subr.mxu0 %v9538_v50  ;;  %7869 = vmatprep.subr.mxu1 %v9538_v50 }
 0xde6   : > { %7847 = vmatpush3.msra.mxu0 %v9578_v30  ;;  %7870 = vmatpush3.msra.mxu1 %v9578_v30 }
 0xde7   : > { %7848 = vmatprep.subr.mxu0 %v9538_v50  ;;  %7871 = vmatprep.subr.mxu1 %v9538_v50 }
 0xde8   : > { %7849 = vmatpush3.msra.mxu0 %v9584_v49  ;;  %7872 = vmatpush3.msra.mxu1 %v9584_v49 }
 0xde9   : > { %7850 = vmatprep.subr.mxu0 %v9538_v50  ;;  %7873 = vmatprep.subr.mxu1 %v9538_v50 }
 0xdea   : > { %7851 = vmatpush3.msra.mxu0 %v9590_v53  ;;  %7874 = vmatpush3.msra.mxu1 %v9590_v53 }
 0xdeb   : > { %7852 = vmatprep.subr.mxu0 %v9538_v50  ;;  %7875 = vmatprep.subr.mxu1 %v9538_v50 }
 0xdec   : > { %7853 = vmatpush3.msra.mxu0 %v9596_v57  ;;  %7876 = vmatpush3.msra.mxu1 %v9596_v57 }
 0xded   : > { %7854 = vmatprep.subr.mxu0 %v9538_v50  ;;  %7877 = vmatprep.subr.mxu1 %v9538_v50 }
 0xdee   : > { %7855 = vmatpush3.msra.mxu0 %v9602_v61  ;;  %7878 = vmatpush3.msra.mxu1 %v9602_v61 }
 0xdef   : > { %7856 = vmatprep.subr.mxu0 %v9538_v50  ;;  %7879 = vmatprep.subr.mxu1 %v9538_v50 }
 0xdf0   : > { %7857 = vmatpush3.msra.mxu0 %v9614_v10  ;;  %7880 = vmatpush3.msra.mxu1 %v9614_v10 }
 0xdf1   : > { %7859 = vmatmul.mubr.msk.f32.vlgmr.msra.gmra.mxu0 %vm4369_vm5, %v4368_v1  ;;  %7882 = vmatmul.mubr.msk.f32.vlgmr.msra.gmra.mxu1 %vm4369_vm5, %v7107_v5  ;;  %v5198_v1 = vld [vmem:[#allocation4 + $0xf0] sm:$0xff]  ;;  %v5197_v5 = vld [vmem:[#allocation4 + $0xe8] sm:$0xff] }
 0xdf2   : > { %7884 = vmatprep.subr.mxu0 %v9538_v50  ;;  %7903 = vmatprep.subr.mxu1 %v9538_v50 }
 0xdf3   : > { %7885 = vmatpush3.msra.mxu0 %v9178_v31  ;;  %7904 = vmatpush3.msra.mxu1 %v9258_v58  ;;  %v10021_v31 = vld [vmem:[#allocation26_spill] sm:$0xff]  ;;  %v10025_v58 = vld [vmem:[#allocation28_spill] sm:$0xff] }
 0xdf4   : > { %7886 = vmatprep.subr.mxu0 %v9538_v50  ;;  %7905 = vmatprep.subr.mxu1 %v9538_v50 }
 0xdf5   : > { %7887 = vmatpush3.msra.mxu0 %v9180_v25  ;;  %7906 = vmatpush3.msra.mxu1 %v9262_v60  ;;  %v10022_v25 = vld [vmem:[#allocation23_spill] sm:$0xff]  ;;  %v10026_v60 = vld [vmem:[#allocation25_spill] sm:$0xff] }
 0xdf6   : > { %7888 = vmatprep.subr.mxu0 %v9538_v50  ;;  %7907 = vmatprep.subr.mxu1 %v9538_v50 }
 0xdf7   : > { %7889 = vmatpush3.msra.mxu0 %v9184_v29  ;;  %7908 = vmatpush3.msra.mxu1 %v9267_v62  ;;  %v10023_v29 = vld [vmem:[#allocation27_spill] sm:$0xff]  ;;  %v10027_v62 = vld [vmem:[#allocation29_spill] sm:$0xff] }
 0xdf8   : > { %7890 = vmatprep.subr.mxu0 %v9538_v50  ;;  %7909 = vmatprep.subr.mxu1 %v9538_v50 }
 0xdf9   : > { %7891 = vmatpush3.msra.mxu0 %v9188_v34  ;;  %7910 = vmatpush3.msra.mxu1 %v9271_v0  ;;  %v10024_v34 = vld [vmem:[#allocation24_spill] sm:$0xff] }
 0xdfa   : > { %7892 = vmatprep.subr.mxu0 %v9538_v50  ;;  %7911 = vmatprep.subr.mxu1 %v9538_v50 }
 0xdfb   : > { %7893 = vmatpush3.msra.mxu0 %v10020_v14  ;;  %7912 = vmatpush3.msra.mxu1 %v10021_v31  ;;  %v5195_v14 = vld [vmem:[#allocation4 + $0xd8] sm:$0xff]  ;;  %v5194_v31 = vld [vmem:[#allocation4 + $0xd0] sm:$0xff] }
 0xdfc   : > { %7894 = vmatprep.subr.mxu0 %v9538_v50  ;;  %7913 = vmatprep.subr.mxu1 %v9538_v50 }
 0xdfd   : > { %7895 = vmatpush3.msra.mxu0 %v10022_v25  ;;  %7914 = vmatpush3.msra.mxu1 %v10023_v29  ;;  %v5193_v25 = vld [vmem:[#allocation4 + $0xc8] sm:$0xff]  ;;  %v5192_v29 = vld [vmem:[#allocation4 + $0xc0] sm:$0xff] }
 0xdfe   : > { %7896 = vmatprep.subr.mxu0 %v9538_v50  ;;  %7915 = vmatprep.subr.mxu1 %v9538_v50 }
 0xdff   : > { %7897 = vmatpush3.msra.mxu0 %v10024_v34  ;;  %7916 = vmatpush3.msra.mxu1 %v10025_v58  ;;  %v5191_v34 = vld [vmem:[#allocation4 + $0xb8] sm:$0xff]  ;;  %v5190_v58 = vld [vmem:[#allocation4 + $0xb0] sm:$0xff] }
 0xe00   : > { %7898 = vmatprep.subr.mxu0 %v9538_v50  ;;  %7917 = vmatprep.subr.mxu1 %v9538_v50 }
 0xe01   : > { %7899 = vmatpush3.msra.mxu0 %v10026_v60  ;;  %7918 = vmatpush3.msra.mxu1 %v10027_v62  ;;  %v5189_v60 = vld [vmem:[#allocation4 + $0xa8] sm:$0xff]  ;;  %v5188_v62 = vld [vmem:[#allocation4 + $0xa0] sm:$0xff] }
 0xe02   : > { %7900 = vmatprep.mubr.msk.f32.mxu0 %vm8392_vm1, %v9538_v50  ;;  %7919 = vmatprep.mubr.msk.f32.mxu1 %vm8392_vm1, %v9538_v50 }
 0xe03   : > { %7922 = vmatprep.subr.mxu0 %v9538_v50  ;;  %7945 = vmatprep.subr.mxu1 %v9538_v50 }
 0xeb1   : > { %v4439_v0 = vpop.f32.mrf.mxu0  ;;  %v4522_v12 = vpop.f32.mrf.mxu1 }
 0xeb2   : > { %7901 = vmatmul.mubr.msk.f32.vlgmr.msra.gmra.mxu0 %vm2540_vm2, %v4522_v12  ;;  %7920 = vmatmul.mubr.msk.f32.vlgmr.msra.gmra.mxu1 %vm2540_vm2, %v4439_v0  ;;  %v5187_v0 = vld [vmem:[#allocation4 + $0x98] sm:$0xff]  ;;  %v5186_v12 = vld [vmem:[#allocation4 + $0x90] sm:$0xff] }
 0xeb3   : > { %7923 = vmatpush3.msra.mxu0 %v9554_v13  ;;  %7946 = vmatpush3.msra.mxu1 %v9554_v13  ;;  %v7860_v3 = vpop.f32.mrf.mxu0  ;;  %v7883_v21 = vpop.f32.mrf.mxu1 }
 0xeb4   : > { %7924 = vmatprep.subr.mxu0 %v9538_v50  ;;  %7947 = vmatprep.subr.mxu1 %v9538_v50  ;;  %v5185_v3 = vld [vmem:[#allocation4 + $0x88] sm:$0xff]  ;;  %v5184_v21 = vld [vmem:[#allocation4 + $0x80] sm:$0xff] }
 0xeb5   : > { %7925 = vmatpush3.msra.mxu0 %v9560_v15  ;;  %7948 = vmatpush3.msra.mxu1 %v9560_v15 }
 0xeb6   : > { %7926 = vmatprep.subr.mxu0 %v9538_v50  ;;  %7949 = vmatprep.subr.mxu1 %v9538_v50 }
 0xeb7   : > { %7927 = vmatpush3.msra.mxu0 %v9566_v16  ;;  %7950 = vmatpush3.msra.mxu1 %v9566_v16 }
 0xeb8   : > { %7928 = vmatprep.subr.mxu0 %v9538_v50  ;;  %7951 = vmatprep.subr.mxu1 %v9538_v50 }
 0xeb9   : > { %7929 = vmatpush3.msra.mxu0 %v9572_v27  ;;  %7952 = vmatpush3.msra.mxu1 %v9572_v27 }
 0xeba   : > { %7930 = vmatprep.subr.mxu0 %v9538_v50  ;;  %7953 = vmatprep.subr.mxu1 %v9538_v50 }
 0xebb   : > { %7931 = vmatpush3.msra.mxu0 %v9578_v30  ;;  %7954 = vmatpush3.msra.mxu1 %v9578_v30 }
 0xebc   : > { %7932 = vmatprep.subr.mxu0 %v9538_v50  ;;  %7955 = vmatprep.subr.mxu1 %v9538_v50 }
 0xebd   : > { %7933 = vmatpush3.msra.mxu0 %v9584_v49  ;;  %7956 = vmatpush3.msra.mxu1 %v9584_v49 }
 0xebe   : > { %7934 = vmatprep.subr.mxu0 %v9538_v50  ;;  %7957 = vmatprep.subr.mxu1 %v9538_v50 }
 0xebf   : > { %7935 = vmatpush3.msra.mxu0 %v9590_v53  ;;  %7958 = vmatpush3.msra.mxu1 %v9590_v53 }
 0xec0   : > { %7936 = vmatprep.subr.mxu0 %v9538_v50  ;;  %7959 = vmatprep.subr.mxu1 %v9538_v50 }
 0xec1   : > { %7937 = vmatpush3.msra.mxu0 %v9596_v57  ;;  %7960 = vmatpush3.msra.mxu1 %v9596_v57 }
 0xec2   : > { %7938 = vmatprep.subr.mxu0 %v9538_v50  ;;  %7961 = vmatprep.subr.mxu1 %v9538_v50 }
 0xec3   : > { %7939 = vmatpush3.msra.mxu0 %v9602_v61  ;;  %7962 = vmatpush3.msra.mxu1 %v9602_v61 }
 0xec4   : > { %7940 = vmatprep.subr.mxu0 %v9538_v50  ;;  %7963 = vmatprep.subr.mxu1 %v9538_v50 }
 0xec5   : > { %7941 = vmatpush3.msra.mxu0 %v9614_v10  ;;  %7942 = vmatprep.mubr.msk.f32.mxu0 %vm8392_vm1, %v9538_v50 }
 0xec6   : > { %7964 = vmatpush3.msra.mxu1 %v9614_v10  ;;  %7965 = vmatprep.mubr.msk.f32.mxu1 %vm8392_vm1, %v9538_v50 }
 0xec7   : > { %7943 = vmatmul.mubr.msk.f32.vlgmr.msra.gmra.mxu0 %vm4369_vm5, %v7111_v23  ;;  %7966 = vmatmul.mubr.msk.f32.vlgmr.msra.gmra.mxu1 %vm4369_vm5, %v7113_v26  ;;  %v5183_v23 = vld [vmem:[#allocation4 + $0x78] sm:$0xff]  ;;  %v5182_v26 = vld [vmem:[#allocation4 + $0x70] sm:$0xff] }
 0xec8   : > { %7987 = vmatprep.subr.mxu1 %v9538_v50  ;;  %8007 = vmatprep.mubr.msk.f32.mxu1 %vm8392_vm1, %v9538_v50 }
 0xec9   : > { %7988 = vmatpush3.msra.mxu1 %v9554_v13  ;;  %7968 = vmatprep.subr.mxu0 %v9538_v50  ;;  %v5084_v13 = vld [vmem:[#allocation12 + $0x30] sm:$0xff] }
 0xeca   : > { %7989 = vmatprep.subr.mxu1 %v9538_v50  ;;  %7969 = vmatpush3.msra.mxu0 %v10028_v51  ;;  %v5181_v51 = vld [vmem:[#allocation4 + $0x68] sm:$0xff] }
 0xecb   : > { %7990 = vmatpush3.msra.mxu1 %v9560_v15  ;;  %7970 = vmatprep.subr.mxu0 %v9538_v50  ;;  %v5083_v15 = vld [vmem:[#allocation12 + $0x28] sm:$0xff] }
 0xecc   : > { %7991 = vmatprep.subr.mxu1 %v9538_v50  ;;  %7971 = vmatpush3.msra.mxu0 %v10029_v7  ;;  %v5180_v7 = vld [vmem:[#allocation4 + $0x60] sm:$0xff] }
 0xecd   : > { %7992 = vmatpush3.msra.mxu1 %v9566_v16  ;;  %7972 = vmatprep.subr.mxu0 %v9538_v50  ;;  %v5082_v16 = vld [vmem:[#allocation12 + $0x20] sm:$0xff] }
 0xece   : > { %7993 = vmatprep.subr.mxu1 %v9538_v50  ;;  %7973 = vmatpush3.msra.mxu0 %v10030_v44  ;;  %v5179_v44 = vld [vmem:[#allocation4 + $0x58] sm:$0xff] }
 0xecf   : > { %7994 = vmatpush3.msra.mxu1 %v9572_v27  ;;  %7974 = vmatprep.subr.mxu0 %v9538_v50  ;;  %v5081_v27 = vld [vmem:[#allocation12 + $0x18] sm:$0xff] }
 0xed0   : > { %7995 = vmatprep.subr.mxu1 %v9538_v50  ;;  %7975 = vmatpush3.msra.mxu0 %v10031_v24  ;;  %v5178_v24 = vld [vmem:[#allocation4 + $0x50] sm:$0xff] }
 0xed1   : > { %7996 = vmatpush3.msra.mxu1 %v9578_v30  ;;  %7976 = vmatprep.subr.mxu0 %v9538_v50  ;;  %v5080_v30 = vld [vmem:[#allocation12 + $0x10] sm:$0xff] }
 0xed2   : > { %7997 = vmatprep.subr.mxu1 %v9538_v50  ;;  %7977 = vmatpush3.msra.mxu0 %v10032_v63  ;;  %v5177_v63 = vld [vmem:[#allocation4 + $0x48] sm:$0xff] }
 0xed3   : > { %7998 = vmatpush3.msra.mxu1 %v9584_v49  ;;  %7978 = vmatprep.subr.mxu0 %v9538_v50  ;;  %v5079_v49 = vld [vmem:[#allocation12 + $0x8] sm:$0xff] }
 0xed4   : > { %7999 = vmatprep.subr.mxu1 %v9538_v50  ;;  %7979 = vmatpush3.msra.mxu0 %v10033_v40  ;;  %v5176_v40 = vld [vmem:[#allocation4 + $0x40] sm:$0xff] }
 0xed5   : > { %8000 = vmatpush3.msra.mxu1 %v9590_v53  ;;  %7980 = vmatprep.subr.mxu0 %v9538_v50  ;;  %v5078_v53 = vld [vmem:[#allocation12] sm:$0xff] }
 0xed6   : > { %8001 = vmatprep.subr.mxu1 %v9538_v50  ;;  %7981 = vmatpush3.msra.mxu0 %v10034_v36  ;;  %v5175_v36 = vld [vmem:[#allocation4 + $0x38] sm:$0xff] }
 0xed7   : > { %8002 = vmatpush3.msra.mxu1 %v9596_v57  ;;  %7982 = vmatprep.subr.mxu0 %v9538_v50  ;;  %v5199_v57 = vld [vmem:[#allocation4 + $0xf8] sm:$0xff] }
 0xed8   : > { %8003 = vmatprep.subr.mxu1 %v9538_v50  ;;  %7983 = vmatpush3.msra.mxu0 %v10035_v28  ;;  %v5174_v28 = vld [vmem:[#allocation4 + $0x30] sm:$0xff] }
 0xed9   : > { %8004 = vmatpush3.msra.mxu1 %v9602_v61  ;;  %7984 = vmatprep.mubr.msk.f32.mxu0 %vm8392_vm1, %v9538_v50  ;;  %v5336_v61 = vld [vmem:[#allocation4 + $0x2f8] sm:$0xff] }
 0xeda   : > { %8005 = vmatprep.subr.mxu1 %v9538_v50  ;;  %8010 = vmatprep.subr.mxu0 %v9538_v50 }
 0xedb   : > { %8006 = vmatpush3.msra.mxu1 %v9614_v10  ;;  %v5196_v10 = vld [vmem:[#allocation4 + $0xe0] sm:$0xff] }
 0xedc   : > { %8008 = vmatmul.mubr.msk.f32.vlgmr.msra.gmra.mxu1 %vm4369_vm5, %v7116_v32  ;;  %5113 = vmatprep.subr.mxu1 %v5093_v52  ;;  %v5173_v32 = vld [vmem:[#allocation4 + $0x28] sm:$0xff] }
 0xedd   : > { %5161 = vmatprep.mubr.f32.mxu1 %v9538_v50  ;;  %5114 = vmatpush1.msra.mxu1 %v5092_v54  ;;  %v5217_v52 = vld [vmem:[#allocation4 + $0x188] sm:$0xff]  ;;  %v5216_v54 = vld [vmem:[#allocation4 + $0x180] sm:$0xff] }
 0xede   : > { %5115 = vmatprep.subr.mxu1 %v5091_v56  ;;  %v5215_v56 = vld [vmem:[#allocation4 + $0x178] sm:$0xff] }
 0xedf   : > { %5116 = vmatpush1.msra.mxu1 %v5090_v2  ;;  %v5214_v2 = vld [vmem:[#allocation4 + $0x170] sm:$0xff] }
 0xee0   : > { %5117 = vmatprep.subr.mxu1 %v5089_v4  ;;  %v5213_v4 = vld [vmem:[#allocation4 + $0x168] sm:$0xff] }
 0xee1   : > { %5118 = vmatpush1.msra.mxu1 %v5088_v6  ;;  %v5212_v6 = vld [vmem:[#allocation4 + $0x160] sm:$0xff] }
 0xee2   : > { %5119 = vmatprep.subr.mxu1 %v5087_v9  ;;  %v5211_v9 = vld [vmem:[#allocation4 + $0x158] sm:$0xff] }
 0xee3   : > { %5120 = vmatpush1.msra.mxu1 %v5086_v11  ;;  %v5210_v11 = vld [vmem:[#allocation4 + $0x150] sm:$0xff] }
 0xf72   : > { %v4603_v59 = vpop.f32.mrf.mxu0  ;;  %v4676_v19 = vpop.f32.mrf.mxu1 }
 0xf73   : > { %v4677_v20 = vadd.f32 %v4676_v19, %v4603_v59  ;;  %v5172_v59 = vld [vmem:[#allocation4 + $0x20] sm:$0xff]  ;;  %v5171_v19 = vld [vmem:[#allocation4 + $0x18] sm:$0xff] }
 0xf74   : > { %v7921_v38 = vpop.f32.mrf.mxu1  ;;  %v7902_v42 = vpop.f32.mrf.mxu0 }
 0xf75   : > { %v5169_v38 = vld [vmem:[#allocation4 + $0x8] sm:$0xff]  ;;  %v5168_v42 = vld [vmem:[#allocation4] sm:$0xff] }
 0xf87   : > { %v4751_v55 = vpop.f32.mrf.mxu0  ;;  %v4827_v33 = vpop.f32.mrf.mxu1 }
 0xf88   : > { %v9756_v35 = vadd.f32 %v4751_v55, %v4677_v20  ;;  %7985 = vmatmul.mubr.msk.f32.vlgmr.msra.gmra.mxu0 %vm2540_vm2, %v4827_v33  ;;  %v5170_v20 = vld [vmem:[#allocation4 + $0x10] sm:$0xff]  ;;  %v5231_v55 = vld [vmem:[#allocation4 + $0x1f8] sm:$0xff] }
 0xf89   : > { %v7967_v37 = vpop.f32.mrf.mxu1  ;;  %8011 = vmatpush3.msra.mxu0 %v10036_v39  ;;  %8026 = vmatprep.mubr.msk.f32.mxu0 %vm8392_vm1, %v9538_v50  ;;  %v7944_v41 = vpop.f32.mrf.mxu0  ;;  %v5230_v33 = vld [vmem:[#allocation4 + $0x1f0] sm:$0xff]  ;;  %v5228_v39 = vld [vmem:[#allocation4 + $0x1e0] sm:$0xff] }
 0xf8a   : > { %8012 = vmatprep.subr.mxu0 %v9538_v50  ;;  %v5229_v37 = vld [vmem:[#allocation4 + $0x1e8] sm:$0xff]  ;;  %v5227_v41 = vld [vmem:[#allocation4 + $0x1d8] sm:$0xff] }
 0xf8b   : > { %8013 = vmatpush3.msra.mxu0 %v10037_v43  ;;  %v5226_v43 = vld [vmem:[#allocation4 + $0x1d0] sm:$0xff] }
 0xf8c   : > { %8014 = vmatprep.subr.mxu0 %v9538_v50 }
 0xf8d   : > { %8015 = vmatpush3.msra.mxu0 %v10038_v45  ;;  %v5225_v45 = vld [vmem:[#allocation4 + $0x1c8] sm:$0xff] }
 0xf8e   : > { %8016 = vmatprep.subr.mxu0 %v9538_v50 }
 0xf8f   : > { %8017 = vmatpush3.msra.mxu0 %v10039_v17  ;;  %v5224_v17 = vld [vmem:[#allocation4 + $0x1c0] sm:$0xff] }
 0xf90   : > { %8018 = vmatprep.subr.mxu0 %v9538_v50 }
 0xf91   : > { %8019 = vmatpush3.msra.mxu0 %v10040_v22  ;;  %v5223_v22 = vld [vmem:[#allocation4 + $0x1b8] sm:$0xff] }
 0xf92   : > { %8020 = vmatprep.subr.mxu0 %v9538_v50 }
 0xf93   : > { %8021 = vmatpush3.msra.mxu0 %v10041_v46  ;;  %v5222_v46 = vld [vmem:[#allocation4 + $0x1b0] sm:$0xff] }
 0xf94   : > { %8022 = vmatprep.subr.mxu0 %v9538_v50 }
 0xf95   : > { %8023 = vmatpush3.msra.mxu0 %v10042_v18  ;;  %v5221_v18 = vld [vmem:[#allocation4 + $0x1a8] sm:$0xff] }
 0xf96   : > { %8024 = vmatprep.subr.mxu0 %v9538_v50  ;;  %v5085_v50 = vld [vmem:[#allocation12 + $0x38] sm:$0xff] }
 0xf97   : > { %8025 = vmatpush3.msra.mxu0 %v10043_v47  ;;  %5121 = vmatprep.subr.mxu1 %v5085_v50  ;;  %v5220_v47 = vld [vmem:[#allocation4 + $0x1a0] sm:$0xff]  ;;  %v5209_v50 = vld [vmem:[#allocation4 + $0x148] sm:$0xff] }
 0xf98   : > { %5122 = vmatpush1.msra.mxu1 %v5084_v13  ;;  %5232 = vmatprep.subr.mxu0 %v5199_v57  ;;  %v5208_v13 = vld [vmem:[#allocation4 + $0x140] sm:$0xff] }
 0xf99   : > { %5123 = vmatprep.subr.mxu1 %v5083_v15  ;;  %v5207_v15 = vld [vmem:[#allocation4 + $0x138] sm:$0xff] }
 0xf9a   : > { %5124 = vmatpush1.msra.mxu1 %v5082_v16  ;;  %v5206_v16 = vld [vmem:[#allocation4 + $0x130] sm:$0xff] }
 0xf9b   : > { %5125 = vmatprep.subr.mxu1 %v5081_v27  ;;  %v5205_v27 = vld [vmem:[#allocation4 + $0x128] sm:$0xff] }
 0xf9c   : > { %v4984_v8 = vpop.f32.mrf.mxu1  ;;  %5126 = vmatpush1.msra.mxu1 %v5080_v30  ;;  %v5204_v30 = vld [vmem:[#allocation4 + $0x120] sm:$0xff] }
 0xf9d   : > { %8027 = vmatmul.mubr.msk.f32.vlgmr.msra.gmra.mxu0 %vm2540_vm2, %v4984_v8  ;;  %5127 = vmatprep.subr.mxu1 %v5079_v49  ;;  %v5219_v8 = vld [vmem:[#allocation4 + $0x198] sm:$0xff] }
 0xf9e   : > { %v8009_v48 = vpop.f32.mrf.mxu1  ;;  %5128 = vmatpush1.msra.mxu1 %v5078_v53  ;;  %5233 = vmatpush1.msra.mxu0 %v5198_v1  ;;  %v5203_v49 = vld [vmem:[#allocation4 + $0x118] sm:$0xff] }
 0xf9f   : > { %5369 = vmatprep.subr.mxu1 %v5336_v61  ;;  %5234 = vmatprep.subr.mxu0 %v5197_v5  ;;  %v5218_v48 = vld [vmem:[#allocation4 + $0x190] sm:$0xff] }
 0xfa0   : > { %5235 = vmatpush1.msra.mxu0 %v5196_v10  ;;  %v5074_v10 = vpop.permute.xlu1 %5073 }
 0xfa1   : > { %5236 = vmatprep.subr.mxu0 %v5195_v14 }
 0xfa2   : > { %5237 = vmatpush1.msra.mxu0 %v5194_v31 }
 0xfa3   : > { %5238 = vmatprep.subr.mxu0 %v5193_v25 }
 0xfa4   : > { %5239 = vmatpush1.msra.mxu0 %v5192_v29  ;;  %v5335_v29 = vld [vmem:[#allocation4 + $0x2f0] sm:$0xff] }
 0xfa5   : > { %5240 = vmatprep.subr.mxu0 %v5191_v34  ;;  %v5334_v34 = vld [vmem:[#allocation4 + $0x2e8] sm:$0xff] }
 0xfa6   : > { %5241 = vmatpush1.msra.mxu0 %v5190_v58  ;;  %v5333_v58 = vld [vmem:[#allocation4 + $0x2e0] sm:$0xff] }
 0xfa7   : > { %5242 = vmatprep.subr.mxu0 %v5189_v60  ;;  %v5332_v60 = vld [vmem:[#allocation4 + $0x2d8] sm:$0xff] }
 0xfa8   : > { %5243 = vmatpush1.msra.mxu0 %v5188_v62  ;;  %v5331_v62 = vld [vmem:[#allocation4 + $0x2d0] sm:$0xff] }
 0xfa9   : > { %5244 = vmatprep.subr.mxu0 %v5187_v0  ;;  %v5330_v0 = vld [vmem:[#allocation4 + $0x2c8] sm:$0xff] }
 0xfaa   : > { %5245 = vmatpush1.msra.mxu0 %v5186_v12  ;;  %v5329_v12 = vld [vmem:[#allocation4 + $0x2c0] sm:$0xff] }
 0xfab   : > { %5246 = vmatprep.subr.mxu0 %v5185_v3  ;;  %v5327_v3 = vld [vmem:[#allocation4 + $0x2b0] sm:$0xff] }
 0xfac   : > { %5247 = vmatpush1.msra.mxu0 %v5184_v21  ;;  %v5326_v21 = vld [vmem:[#allocation4 + $0x2a8] sm:$0xff] }
 0xfad   : > { %5248 = vmatprep.subr.mxu0 %v5183_v23  ;;  %v5325_v23 = vld [vmem:[#allocation4 + $0x2a0] sm:$0xff] }
 0xfae   : > { %5249 = vmatpush1.msra.mxu0 %v5182_v26  ;;  %v5324_v26 = vld [vmem:[#allocation4 + $0x298] sm:$0xff] }
 0xfaf   : > { %5250 = vmatprep.subr.mxu0 %v5181_v51  ;;  %v5323_v51 = vld [vmem:[#allocation4 + $0x290] sm:$0xff] }
 0xfb0   : > { %5251 = vmatpush1.msra.mxu0 %v5180_v7  ;;  %v5322_v7 = vld [vmem:[#allocation4 + $0x288] sm:$0xff] }
 0xfb1   : > { %5252 = vmatprep.subr.mxu0 %v5179_v44  ;;  %v5321_v44 = vld [vmem:[#allocation4 + $0x280] sm:$0xff] }
 0xfb2   : > { %5253 = vmatpush1.msra.mxu0 %v5178_v24  ;;  %v5320_v24 = vld [vmem:[#allocation4 + $0x278] sm:$0xff] }
 0xfb3   : > { %5254 = vmatprep.subr.mxu0 %v5177_v63  ;;  %v5319_v63 = vld [vmem:[#allocation4 + $0x270] sm:$0xff] }
 0xfb4   : > { %5255 = vmatpush1.msra.mxu0 %v5176_v40  ;;  %v5318_v40 = vld [vmem:[#allocation4 + $0x268] sm:$0xff] }
 0xfb5   : > { %5256 = vmatprep.subr.mxu0 %v5175_v36  ;;  %v5317_v36 = vld [vmem:[#allocation4 + $0x260] sm:$0xff] }
 0xfb6   : > { %5257 = vmatpush1.msra.mxu0 %v5174_v28  ;;  %v5316_v28 = vld [vmem:[#allocation4 + $0x258] sm:$0xff] }
 0xfb7   : > { %5258 = vmatprep.subr.mxu0 %v5173_v32  ;;  %v5315_v32 = vld [vmem:[#allocation4 + $0x250] sm:$0xff] }
 0xfb8   : > { %5259 = vmatpush1.msra.mxu0 %v5172_v59  ;;  %v5314_v59 = vld [vmem:[#allocation4 + $0x248] sm:$0xff] }
 0xfb9   : > { %5260 = vmatprep.subr.mxu0 %v5171_v19  ;;  %v5313_v19 = vld [vmem:[#allocation4 + $0x240] sm:$0xff] }
 0xfba   : > { %5261 = vmatpush1.msra.mxu0 %v5170_v20  ;;  %v5312_v20 = vld [vmem:[#allocation4 + $0x238] sm:$0xff] }
 0xfbb   : > { %5262 = vmatprep.subr.mxu0 %v5169_v38  ;;  %v5311_v38 = vld [vmem:[#allocation4 + $0x230] sm:$0xff] }
 0xfbc   : > { %5263 = vmatpush1.msra.mxu0 %v5168_v42  ;;  %v5310_v42 = vld [vmem:[#allocation4 + $0x228] sm:$0xff] }
 0xfbd   : > { %5264 = vmatprep.subr.mxu0 %v5231_v55  ;;  %v5309_v55 = vld [vmem:[#allocation4 + $0x220] sm:$0xff] }
 0xfbe   : > { %5265 = vmatpush2.msra.mxu0 %v5230_v33  ;;  %v5308_v33 = vld [vmem:[#allocation4 + $0x218] sm:$0xff] }
 0xfbf   : > { %5266 = vmatprep.subr.mxu0 %v5229_v37  ;;  %v5307_v37 = vld [vmem:[#allocation4 + $0x210] sm:$0xff] }
 0xfc0   : > { %5267 = vmatpush2.msra.mxu0 %v5228_v39  ;;  %v5306_v39 = vld [vmem:[#allocation4 + $0x208] sm:$0xff] }
 0xfc1   : > { %5268 = vmatprep.subr.mxu0 %v5227_v41  ;;  %v5305_v41 = vld [vmem:[#allocation4 + $0x200] sm:$0xff] }
 0xfc2   : > { %5269 = vmatpush2.msra.mxu0 %v5226_v43  ;;  %v5368_v43 = vld [vmem:[#allocation4 + $0x3f8] sm:$0xff] }
 0xfc3   : > { %5270 = vmatprep.subr.mxu0 %v5225_v45  ;;  %v5367_v45 = vld [vmem:[#allocation4 + $0x3f0] sm:$0xff] }
 0xfc4   : > { %5271 = vmatpush2.msra.mxu0 %v5224_v17  ;;  %v5366_v17 = vld [vmem:[#allocation4 + $0x3e8] sm:$0xff] }
 0xfc5   : > { %5272 = vmatprep.subr.mxu0 %v5223_v22  ;;  %v5365_v22 = vld [vmem:[#allocation4 + $0x3e0] sm:$0xff] }
 0xfc6   : > { %5273 = vmatpush2.msra.mxu0 %v5222_v46  ;;  %v5364_v46 = vld [vmem:[#allocation4 + $0x3d8] sm:$0xff] }
 0xfc7   : > { %5274 = vmatprep.subr.mxu0 %v5221_v18  ;;  %v5363_v18 = vld [vmem:[#allocation4 + $0x3d0] sm:$0xff] }
 0xfc8   : > { %5275 = vmatpush2.msra.mxu0 %v5220_v47  ;;  %v5362_v47 = vld [vmem:[#allocation4 + $0x3c8] sm:$0xff] }
 0xfc9   : > { %5276 = vmatprep.subr.mxu0 %v5219_v8  ;;  %v5361_v8 = vld [vmem:[#allocation4 + $0x3c0] sm:$0xff] }
 0xfca   : > { %5277 = vmatpush2.msra.mxu0 %v5218_v48  ;;  %v5360_v48 = vld [vmem:[#allocation4 + $0x3b8] sm:$0xff] }
 0xfcb   : > { %5278 = vmatprep.subr.mxu0 %v5217_v52  ;;  %v5359_v52 = vld [vmem:[#allocation4 + $0x3b0] sm:$0xff] }
 0xfcc   : > { %5279 = vmatpush2.msra.mxu0 %v5216_v54  ;;  %v5358_v54 = vld [vmem:[#allocation4 + $0x3a8] sm:$0xff] }
 0xfcd   : > { %5280 = vmatprep.subr.mxu0 %v5215_v56  ;;  %v5357_v56 = vld [vmem:[#allocation4 + $0x3a0] sm:$0xff] }
 0xfce   : > { %5281 = vmatpush2.msra.mxu0 %v5214_v2  ;;  %v5356_v2 = vld [vmem:[#allocation4 + $0x398] sm:$0xff] }
 0xfcf   : > { %5282 = vmatprep.subr.mxu0 %v5213_v4  ;;  %v5355_v4 = vld [vmem:[#allocation4 + $0x390] sm:$0xff] }
 0xfd0   : > { %5283 = vmatpush2.msra.mxu0 %v5212_v6  ;;  %v5354_v6 = vld [vmem:[#allocation4 + $0x388] sm:$0xff] }
 0xfd1   : > { %5284 = vmatprep.subr.mxu0 %v5211_v9  ;;  %v5353_v9 = vld [vmem:[#allocation4 + $0x380] sm:$0xff] }
 0xfd2   : > { %5285 = vmatpush2.msra.mxu0 %v5210_v11  ;;  %v5352_v11 = vld [vmem:[#allocation4 + $0x378] sm:$0xff] }
 0xfd3   : > { %5286 = vmatprep.subr.mxu0 %v5209_v50  ;;  %v5351_v50 = vld [vmem:[#allocation4 + $0x370] sm:$0xff] }
 0xfd4   : > { %5287 = vmatpush2.msra.mxu0 %v5208_v13  ;;  %v5350_v13 = vld [vmem:[#allocation4 + $0x368] sm:$0xff] }
 0xfd5   : > { %5288 = vmatprep.subr.mxu0 %v5207_v15  ;;  %v5349_v15 = vld [vmem:[#allocation4 + $0x360] sm:$0xff] }
 0xfd6   : > { %5289 = vmatpush2.msra.mxu0 %v5206_v16  ;;  %v5348_v16 = vld [vmem:[#allocation4 + $0x358] sm:$0xff] }
 0xfd7   : > { %5290 = vmatprep.subr.mxu0 %v5205_v27  ;;  %v5347_v27 = vld [vmem:[#allocation4 + $0x350] sm:$0xff] }
 0xfd8   : > { %5291 = vmatpush2.msra.mxu0 %v5204_v30  ;;  %v5346_v30 = vld [vmem:[#allocation4 + $0x348] sm:$0xff] }
 0xfd9   : > { %5292 = vmatprep.subr.mxu0 %v5203_v49  ;;  %v5345_v49 = vld [vmem:[#allocation4 + $0x340] sm:$0xff] }
0x1048   : > { %v4908_v53 = vpop.f32.mrf.mxu0 }
0x1049   : > { %v4912_v61 = vadd.f32 %v4908_v53, %v9756_v35  ;;  %v5328_v35 = vld [vmem:[#allocation4 + $0x2b8] sm:$0xff] }
0x104a   : > { %v7986_v57 = vpop.f32.mrf.mxu0  ;;  %v5344_v53 = vld [vmem:[#allocation4 + $0x338] sm:$0xff] }
0x104b   : > { %v5343_v57 = vld [vmem:[#allocation4 + $0x330] sm:$0xff] }
0x105d   : > { %v5065_v1 = vpop.f32.mrf.mxu0 }
0x105e   : > { %v5069_v5 = vadd.f32 %v5065_v1, %v4912_v61  ;;  %v5342_v61 = vld [vmem:[#allocation4 + $0x328] sm:$0xff]  ;;  %v5341_v1 = vld [vmem:[#allocation4 + $0x320] sm:$0xff] }
0x105f   : > { %v8028_v14 = vpop.f32.mrf.mxu0 }
0x1060   : > { %v5076_v31 = vadd.f32 %v5074_v10, %v5069_v5  ;;  %v5340_v5 = vld [vmem:[#allocation4 + $0x318] sm:$0xff]  ;;  %v5202_v10 = vld [vmem:[#allocation4 + $0x110] sm:$0xff] }
0x1061   : > { %v5339_v14 = vld [vmem:[#allocation4 + $0x310] sm:$0xff]  ;;  %5293 = vmatpush2.msra.mxu0 %v5202_v10  ;;  %v5447_v10 = vld [vmem:[#allocation4 + $0x418] sm:$0xff] }
0x1062   : > { %v5077_v25 = vmax.f32 %v5076_v31, 0.0  ;;  %v5201_v31 = vld [vmem:[#allocation4 + $0x108] sm:$0xff] }
0x1063   : > { %5294 = vmatprep.subr.mxu0 %v5201_v31  ;;  %v5446_v31 = vld [vmem:[#allocation4 + $0x410] sm:$0xff] }
0x1064   : > { %7119 = vmatmul.mubr.msk.f32.vlgmr.msra.gmra.mxu1 %vm2540_vm2, %v5077_v25  ;;  %v5338_v25 = vld [vmem:[#allocation4 + $0x308] sm:$0xff] }
0x1065   : > { %5370 = vmatpush1.msra.mxu1 %v5335_v29  ;;  %v5200_v29 = vld [vmem:[#allocation4 + $0x100] sm:$0xff] }
0x1066   : > { %5371 = vmatprep.subr.mxu1 %v5334_v34  ;;  %v5337_v34 = vld [vmem:[#allocation4 + $0x300] sm:$0xff]  ;;  %5295 = vmatpush2.msra.mxu0 %v5200_v29  ;;  %v5445_v29 = vld [vmem:[#allocation4 + $0x408] sm:$0xff] }
0x1067   : > { %5372 = vmatpush1.msra.mxu1 %v5333_v58  ;;  %v5475_v58 = vld [vmem:[#allocation4 + $0x4f8] sm:$0xff] }
0x1068   : > { %5373 = vmatprep.subr.mxu1 %v5332_v60  ;;  %v5612_v60 = vld [vmem:[#allocation4 + $0x6f8] sm:$0xff]  ;;  %5508 = vmatprep.subr.mxu0 %v5475_v58  ;;  %v5444_v58 = vld [vmem:[#allocation4 + $0x400] sm:$0xff] }
0x1069   : > { %5374 = vmatpush1.msra.mxu1 %v5331_v62 }
0x106a   : > { %5375 = vmatprep.subr.mxu1 %v5330_v0 }
0x106b   : > { %5376 = vmatpush1.msra.mxu1 %v5329_v12  ;;  %v5474_v12 = vld [vmem:[#allocation4 + $0x4f0] sm:$0xff] }
0x106c   : > { %5377 = vmatprep.subr.mxu1 %v5328_v35  ;;  %v5611_v35 = vld [vmem:[#allocation4 + $0x6f0] sm:$0xff] }
0x106d   : > { %5378 = vmatpush1.msra.mxu1 %v5327_v3  ;;  %v5473_v3 = vld [vmem:[#allocation4 + $0x4e8] sm:$0xff] }
0x106e   : > { %5379 = vmatprep.subr.mxu1 %v5326_v21  ;;  %v5610_v21 = vld [vmem:[#allocation4 + $0x6e8] sm:$0xff] }
0x106f   : > { %5380 = vmatpush1.msra.mxu1 %v5325_v23  ;;  %v5472_v23 = vld [vmem:[#allocation4 + $0x4e0] sm:$0xff] }
0x1070   : > { %5381 = vmatprep.subr.mxu1 %v5324_v26  ;;  %v5609_v26 = vld [vmem:[#allocation4 + $0x6e0] sm:$0xff] }
0x1071   : > { %5382 = vmatpush1.msra.mxu1 %v5323_v51  ;;  %v5471_v51 = vld [vmem:[#allocation4 + $0x4d8] sm:$0xff] }
0x1072   : > { %5383 = vmatprep.subr.mxu1 %v5322_v7  ;;  %v5608_v7 = vld [vmem:[#allocation4 + $0x6d8] sm:$0xff] }
0x1073   : > { %5384 = vmatpush1.msra.mxu1 %v5321_v44  ;;  %v5470_v44 = vld [vmem:[#allocation4 + $0x4d0] sm:$0xff] }
0x1074   : > { %5385 = vmatprep.subr.mxu1 %v5320_v24  ;;  %v5607_v24 = vld [vmem:[#allocation4 + $0x6d0] sm:$0xff] }
0x1075   : > { %5386 = vmatpush1.msra.mxu1 %v5319_v63  ;;  %v5469_v63 = vld [vmem:[#allocation4 + $0x4c8] sm:$0xff] }
0x1076   : > { %5387 = vmatprep.subr.mxu1 %v5318_v40  ;;  %v5606_v40 = vld [vmem:[#allocation4 + $0x6c8] sm:$0xff] }
0x1077   : > { %5388 = vmatpush1.msra.mxu1 %v5317_v36  ;;  %v5468_v36 = vld [vmem:[#allocation4 + $0x4c0] sm:$0xff] }
0x1078   : > { %5389 = vmatprep.subr.mxu1 %v5316_v28  ;;  %v5605_v28 = vld [vmem:[#allocation4 + $0x6c0] sm:$0xff] }
0x1079   : > { %5390 = vmatpush1.msra.mxu1 %v5315_v32  ;;  %v5467_v32 = vld [vmem:[#allocation4 + $0x4b8] sm:$0xff] }
0x107a   : > { %5391 = vmatprep.subr.mxu1 %v5314_v59  ;;  %v5604_v59 = vld [vmem:[#allocation4 + $0x6b8] sm:$0xff] }
0x107b   : > { %5392 = vmatpush1.msra.mxu1 %v5313_v19  ;;  %v5466_v19 = vld [vmem:[#allocation4 + $0x4b0] sm:$0xff] }
0x107c   : > { %5393 = vmatprep.subr.mxu1 %v5312_v20  ;;  %v5603_v20 = vld [vmem:[#allocation4 + $0x6b0] sm:$0xff] }
0x107d   : > { %5394 = vmatpush1.msra.mxu1 %v5311_v38  ;;  %v5465_v38 = vld [vmem:[#allocation4 + $0x4a8] sm:$0xff] }
0x107e   : > { %5395 = vmatprep.subr.mxu1 %v5310_v42  ;;  %v5602_v42 = vld [vmem:[#allocation4 + $0x6a8] sm:$0xff] }
0x107f   : > { %5396 = vmatpush1.msra.mxu1 %v5309_v55  ;;  %v5464_v55 = vld [vmem:[#allocation4 + $0x4a0] sm:$0xff] }
0x1080   : > { %5397 = vmatprep.subr.mxu1 %v5308_v33  ;;  %v5601_v33 = vld [vmem:[#allocation4 + $0x6a0] sm:$0xff] }
0x1081   : > { %5398 = vmatpush1.msra.mxu1 %v5307_v37  ;;  %v5463_v37 = vld [vmem:[#allocation4 + $0x498] sm:$0xff] }
0x1082   : > { %5399 = vmatprep.subr.mxu1 %v5306_v39  ;;  %v5600_v39 = vld [vmem:[#allocation4 + $0x698] sm:$0xff] }
0x1083   : > { %5400 = vmatpush1.msra.mxu1 %v5305_v41  ;;  %v5462_v41 = vld [vmem:[#allocation4 + $0x490] sm:$0xff] }
0x1084   : > { %5401 = vmatprep.subr.mxu1 %v5368_v43  ;;  %v5599_v43 = vld [vmem:[#allocation4 + $0x690] sm:$0xff] }
0x1085   : > { %5402 = vmatpush2.msra.mxu1 %v5367_v45  ;;  %v5461_v45 = vld [vmem:[#allocation4 + $0x488] sm:$0xff] }
0x1086   : > { %5403 = vmatprep.subr.mxu1 %v5366_v17  ;;  %v5598_v17 = vld [vmem:[#allocation4 + $0x688] sm:$0xff] }
0x1087   : > { %5404 = vmatpush2.msra.mxu1 %v5365_v22  ;;  %v5460_v22 = vld [vmem:[#allocation4 + $0x480] sm:$0xff] }
0x1088   : > { %5405 = vmatprep.subr.mxu1 %v5364_v46  ;;  %v5597_v46 = vld [vmem:[#allocation4 + $0x680] sm:$0xff] }
0x1089   : > { %5406 = vmatpush2.msra.mxu1 %v5363_v18  ;;  %v5459_v18 = vld [vmem:[#allocation4 + $0x478] sm:$0xff] }
0x108a   : > { %5407 = vmatprep.subr.mxu1 %v5362_v47  ;;  %v5596_v47 = vld [vmem:[#allocation4 + $0x678] sm:$0xff] }
0x108b   : > { %5408 = vmatpush2.msra.mxu1 %v5361_v8  ;;  %v5458_v8 = vld [vmem:[#allocation4 + $0x470] sm:$0xff] }
0x108c   : > { %5409 = vmatprep.subr.mxu1 %v5360_v48  ;;  %v5595_v48 = vld [vmem:[#allocation4 + $0x670] sm:$0xff] }
0x108d   : > { %5410 = vmatpush2.msra.mxu1 %v5359_v52  ;;  %v5457_v52 = vld [vmem:[#allocation4 + $0x468] sm:$0xff] }
0x108e   : > { %5411 = vmatprep.subr.mxu1 %v5358_v54  ;;  %v5594_v54 = vld [vmem:[#allocation4 + $0x668] sm:$0xff] }
0x108f   : > { %5412 = vmatpush2.msra.mxu1 %v5357_v56  ;;  %v5456_v56 = vld [vmem:[#allocation4 + $0x460] sm:$0xff] }
0x1090   : > { %5413 = vmatprep.subr.mxu1 %v5356_v2  ;;  %v5593_v2 = vld [vmem:[#allocation4 + $0x660] sm:$0xff] }
0x1091   : > { %5414 = vmatpush2.msra.mxu1 %v5355_v4  ;;  %v5455_v4 = vld [vmem:[#allocation4 + $0x458] sm:$0xff] }
0x1092   : > { %5415 = vmatprep.subr.mxu1 %v5354_v6  ;;  %v5592_v6 = vld [vmem:[#allocation4 + $0x658] sm:$0xff] }
0x1093   : > { %5416 = vmatpush2.msra.mxu1 %v5353_v9  ;;  %v5454_v9 = vld [vmem:[#allocation4 + $0x450] sm:$0xff] }
0x1094   : > { %5417 = vmatprep.subr.mxu1 %v5352_v11  ;;  %v5591_v11 = vld [vmem:[#allocation4 + $0x650] sm:$0xff] }
0x1095   : > { %5418 = vmatpush2.msra.mxu1 %v5351_v50  ;;  %v5453_v50 = vld [vmem:[#allocation4 + $0x448] sm:$0xff] }
0x1096   : > { %5419 = vmatprep.subr.mxu1 %v5350_v13  ;;  %v5590_v13 = vld [vmem:[#allocation4 + $0x648] sm:$0xff] }
0x1097   : > { %5420 = vmatpush2.msra.mxu1 %v5349_v15  ;;  %v5452_v15 = vld [vmem:[#allocation4 + $0x440] sm:$0xff] }
0x1098   : > { %5421 = vmatprep.subr.mxu1 %v5348_v16  ;;  %v5589_v16 = vld [vmem:[#allocation4 + $0x640] sm:$0xff] }
0x1099   : > { %5422 = vmatpush2.msra.mxu1 %v5347_v27  ;;  %v5451_v27 = vld [vmem:[#allocation4 + $0x438] sm:$0xff] }
0x109a   : > { %5423 = vmatprep.subr.mxu1 %v5346_v30  ;;  %v5588_v30 = vld [vmem:[#allocation4 + $0x638] sm:$0xff] }
0x109b   : > { %5424 = vmatpush2.msra.mxu1 %v5345_v49  ;;  %v5450_v49 = vld [vmem:[#allocation4 + $0x430] sm:$0xff] }
0x109c   : > { %5425 = vmatprep.subr.mxu1 %v5344_v53  ;;  %v5587_v53 = vld [vmem:[#allocation4 + $0x630] sm:$0xff] }
0x109d   : > { %5426 = vmatpush2.msra.mxu1 %v5343_v57  ;;  %v5449_v57 = vld [vmem:[#allocation4 + $0x428] sm:$0xff] }
0x109e   : > { %5427 = vmatprep.subr.mxu1 %v5342_v61  ;;  %v5586_v61 = vld [vmem:[#allocation4 + $0x628] sm:$0xff] }
0x109f   : > { %5428 = vmatpush2.msra.mxu1 %v5341_v1  ;;  %v5448_v1 = vld [vmem:[#allocation4 + $0x420] sm:$0xff] }
0x10a0   : > { %5429 = vmatprep.subr.mxu1 %v5340_v5  ;;  %v5585_v5 = vld [vmem:[#allocation4 + $0x620] sm:$0xff] }
0x10a1   : > { %5430 = vmatpush2.msra.mxu1 %v5339_v14  ;;  %v5584_v14 = vld [vmem:[#allocation4 + $0x618] sm:$0xff] }
0x10a2   : > { %5431 = vmatprep.subr.mxu1 %v5338_v25  ;;  %v5583_v25 = vld [vmem:[#allocation4 + $0x610] sm:$0xff] }
0x10a3   : > { %5432 = vmatpush2.msra.mxu1 %v5337_v34  ;;  %v5582_v34 = vld [vmem:[#allocation4 + $0x608] sm:$0xff] }
0x10a4   : > { %5645 = vmatprep.subr.mxu1 %v5612_v60  ;;  %v5581_v60 = vld [vmem:[#allocation4 + $0x600] sm:$0xff] }
0x1124   : > { %v9779_v62 = vpop.f32.mrf.mxu1 }
0x1125   : > { %5442 = vst [vmem:[#allocation2 + $0x20] sm:$0xf] %v9779_v62 }
0x1126   : > { %v5165_v0 = vpop.f32.mrf.mxu1 }
0x1127   : > { %5443 = vst [vmem:[#allocation2 + $0x28] sm:$0xf] %v5165_v0  ;;  %5296 = vmatprep.mubr.f32.mxu0 %v5165_v0  ;;  %5433 = vmatprep.mubr.f32.mxu1 %v5165_v0 }
0x1128   : > { %5297 = vmatmul.mubr.f32.vlgmr.msra.gmra.mxu0 %v9779_v62  ;;  %5434 = vmatmul.mubr.f32.vlgmr.msra.gmra.mxu1 %v9779_v62 }
0x1129   : > { %5509 = vmatpush1.msra.mxu0 %v5474_v12  ;;  %5646 = vmatpush1.msra.mxu1 %v5611_v35  ;;  %v5644_v12 = vld [vmem:[#allocation4 + $0x7f8] sm:$0xff]  ;;  %v5506_v35 = vld [vmem:[#allocation4 + $0x5f0] sm:$0xff] }
0x112a   : > { %5510 = vmatprep.subr.mxu0 %v5473_v3  ;;  %5572 = vmatprep.mubr.f32.mxu0 %v5165_v0  ;;  %v5643_v3 = vld [vmem:[#allocation4 + $0x7f0] sm:$0xff] }
0x112b   : > { %5647 = vmatprep.subr.mxu1 %v5610_v21  ;;  %5709 = vmatprep.mubr.f32.mxu1 %v5165_v0  ;;  %v5507_v0 = vld [vmem:[#allocation4 + $0x5f8] sm:$0xff]  ;;  %v5505_v21 = vld [vmem:[#allocation4 + $0x5e8] sm:$0xff] }
0x112c   : > { %5511 = vmatpush1.msra.mxu0 %v5472_v23  ;;  %5648 = vmatpush1.msra.mxu1 %v5609_v26  ;;  %v5642_v23 = vld [vmem:[#allocation4 + $0x7e8] sm:$0xff]  ;;  %v5504_v26 = vld [vmem:[#allocation4 + $0x5e0] sm:$0xff] }
0x112d   : > { %5512 = vmatprep.subr.mxu0 %v5471_v51  ;;  %5649 = vmatprep.subr.mxu1 %v5608_v7  ;;  %v5641_v51 = vld [vmem:[#allocation4 + $0x7e0] sm:$0xff]  ;;  %v5503_v7 = vld [vmem:[#allocation4 + $0x5d8] sm:$0xff] }
0x112e   : > { %5513 = vmatpush1.msra.mxu0 %v5470_v44  ;;  %5650 = vmatpush1.msra.mxu1 %v5607_v24  ;;  %v5640_v44 = vld [vmem:[#allocation4 + $0x7d8] sm:$0xff]  ;;  %v5502_v24 = vld [vmem:[#allocation4 + $0x5d0] sm:$0xff] }
0x112f   : > { %5514 = vmatprep.subr.mxu0 %v5469_v63  ;;  %5651 = vmatprep.subr.mxu1 %v5606_v40  ;;  %v5639_v63 = vld [vmem:[#allocation4 + $0x7d0] sm:$0xff]  ;;  %v5501_v40 = vld [vmem:[#allocation4 + $0x5c8] sm:$0xff] }
0x1130   : > { %5515 = vmatpush1.msra.mxu0 %v5468_v36  ;;  %5652 = vmatpush1.msra.mxu1 %v5605_v28  ;;  %v5638_v36 = vld [vmem:[#allocation4 + $0x7c8] sm:$0xff]  ;;  %v5500_v28 = vld [vmem:[#allocation4 + $0x5c0] sm:$0xff] }
0x1131   : > { %5516 = vmatprep.subr.mxu0 %v5467_v32  ;;  %5653 = vmatprep.subr.mxu1 %v5604_v59  ;;  %v5637_v32 = vld [vmem:[#allocation4 + $0x7c0] sm:$0xff]  ;;  %v5499_v59 = vld [vmem:[#allocation4 + $0x5b8] sm:$0xff] }
0x1132   : > { %5517 = vmatpush1.msra.mxu0 %v5466_v19  ;;  %5654 = vmatpush1.msra.mxu1 %v5603_v20  ;;  %v5636_v19 = vld [vmem:[#allocation4 + $0x7b8] sm:$0xff]  ;;  %v5498_v20 = vld [vmem:[#allocation4 + $0x5b0] sm:$0xff] }
0x1133   : > { %5518 = vmatprep.subr.mxu0 %v5465_v38  ;;  %5655 = vmatprep.subr.mxu1 %v5602_v42  ;;  %v5635_v38 = vld [vmem:[#allocation4 + $0x7b0] sm:$0xff]  ;;  %v5497_v42 = vld [vmem:[#allocation4 + $0x5a8] sm:$0xff] }
0x1134   : > { %5519 = vmatpush1.msra.mxu0 %v5464_v55  ;;  %5656 = vmatpush1.msra.mxu1 %v5601_v33  ;;  %v5634_v55 = vld [vmem:[#allocation4 + $0x7a8] sm:$0xff]  ;;  %v5496_v33 = vld [vmem:[#allocation4 + $0x5a0] sm:$0xff] }
0x1135   : > { %5520 = vmatprep.subr.mxu0 %v5463_v37  ;;  %5657 = vmatprep.subr.mxu1 %v5600_v39  ;;  %v5633_v37 = vld [vmem:[#allocation4 + $0x7a0] sm:$0xff]  ;;  %v5495_v39 = vld [vmem:[#allocation4 + $0x598] sm:$0xff] }
0x1136   : > { %5521 = vmatpush1.msra.mxu0 %v5462_v41  ;;  %5658 = vmatpush1.msra.mxu1 %v5599_v43  ;;  %v5632_v41 = vld [vmem:[#allocation4 + $0x798] sm:$0xff]  ;;  %v5494_v43 = vld [vmem:[#allocation4 + $0x590] sm:$0xff] }
0x1137   : > { %5522 = vmatprep.subr.mxu0 %v5461_v45  ;;  %5659 = vmatprep.subr.mxu1 %v5598_v17  ;;  %v5631_v45 = vld [vmem:[#allocation4 + $0x790] sm:$0xff]  ;;  %v5493_v17 = vld [vmem:[#allocation4 + $0x588] sm:$0xff] }
0x1138   : > { %5523 = vmatpush1.msra.mxu0 %v5460_v22  ;;  %5660 = vmatpush1.msra.mxu1 %v5597_v46  ;;  %v5630_v22 = vld [vmem:[#allocation4 + $0x788] sm:$0xff]  ;;  %v5492_v46 = vld [vmem:[#allocation4 + $0x580] sm:$0xff] }
0x1139   : > { %5524 = vmatprep.subr.mxu0 %v5459_v18  ;;  %5661 = vmatprep.subr.mxu1 %v5596_v47  ;;  %v5629_v18 = vld [vmem:[#allocation4 + $0x780] sm:$0xff]  ;;  %v5491_v47 = vld [vmem:[#allocation4 + $0x578] sm:$0xff] }
0x113a   : > { %5525 = vmatpush1.msra.mxu0 %v5458_v8  ;;  %5662 = vmatpush1.msra.mxu1 %v5595_v48  ;;  %v5628_v8 = vld [vmem:[#allocation4 + $0x778] sm:$0xff]  ;;  %v5490_v48 = vld [vmem:[#allocation4 + $0x570] sm:$0xff] }
0x113b   : > { %5526 = vmatprep.subr.mxu0 %v5457_v52  ;;  %5663 = vmatprep.subr.mxu1 %v5594_v54  ;;  %v5627_v52 = vld [vmem:[#allocation4 + $0x770] sm:$0xff]  ;;  %v5489_v54 = vld [vmem:[#allocation4 + $0x568] sm:$0xff] }
0x113c   : > { %5527 = vmatpush1.msra.mxu0 %v5456_v56  ;;  %5664 = vmatpush1.msra.mxu1 %v5593_v2  ;;  %v5626_v56 = vld [vmem:[#allocation4 + $0x768] sm:$0xff]  ;;  %v5488_v2 = vld [vmem:[#allocation4 + $0x560] sm:$0xff] }
0x113d   : > { %5528 = vmatprep.subr.mxu0 %v5455_v4  ;;  %5665 = vmatprep.subr.mxu1 %v5592_v6  ;;  %v5625_v4 = vld [vmem:[#allocation4 + $0x760] sm:$0xff]  ;;  %v5487_v6 = vld [vmem:[#allocation4 + $0x558] sm:$0xff] }
0x113e   : > { %5529 = vmatpush1.msra.mxu0 %v5454_v9  ;;  %5666 = vmatpush1.msra.mxu1 %v5591_v11  ;;  %v5624_v9 = vld [vmem:[#allocation4 + $0x758] sm:$0xff]  ;;  %v5486_v11 = vld [vmem:[#allocation4 + $0x550] sm:$0xff] }
0x113f   : > { %5530 = vmatprep.subr.mxu0 %v5453_v50  ;;  %5667 = vmatprep.subr.mxu1 %v5590_v13  ;;  %v5623_v50 = vld [vmem:[#allocation4 + $0x750] sm:$0xff]  ;;  %v5485_v13 = vld [vmem:[#allocation4 + $0x548] sm:$0xff] }
0x1140   : > { %5531 = vmatpush1.msra.mxu0 %v5452_v15  ;;  %5668 = vmatpush1.msra.mxu1 %v5589_v16  ;;  %v5622_v15 = vld [vmem:[#allocation4 + $0x748] sm:$0xff]  ;;  %v5484_v16 = vld [vmem:[#allocation4 + $0x540] sm:$0xff] }
0x1141   : > { %5532 = vmatprep.subr.mxu0 %v5451_v27  ;;  %5669 = vmatprep.subr.mxu1 %v5588_v30  ;;  %v5621_v27 = vld [vmem:[#allocation4 + $0x740] sm:$0xff]  ;;  %v5483_v30 = vld [vmem:[#allocation4 + $0x538] sm:$0xff] }
0x1142   : > { %5533 = vmatpush1.msra.mxu0 %v5450_v49  ;;  %5670 = vmatpush1.msra.mxu1 %v5587_v53  ;;  %v5620_v49 = vld [vmem:[#allocation4 + $0x738] sm:$0xff]  ;;  %v5482_v53 = vld [vmem:[#allocation4 + $0x530] sm:$0xff] }
0x1143   : > { %5534 = vmatprep.subr.mxu0 %v5449_v57  ;;  %5671 = vmatprep.subr.mxu1 %v5586_v61  ;;  %v5619_v57 = vld [vmem:[#allocation4 + $0x730] sm:$0xff]  ;;  %v5481_v61 = vld [vmem:[#allocation4 + $0x528] sm:$0xff] }
0x1144   : > { %5535 = vmatpush1.msra.mxu0 %v5448_v1  ;;  %5672 = vmatpush1.msra.mxu1 %v5585_v5  ;;  %v5618_v1 = vld [vmem:[#allocation4 + $0x728] sm:$0xff]  ;;  %v5480_v5 = vld [vmem:[#allocation4 + $0x520] sm:$0xff] }
0x1145   : > { %5536 = vmatprep.subr.mxu0 %v5447_v10  ;;  %5673 = vmatprep.subr.mxu1 %v5584_v14  ;;  %v5617_v10 = vld [vmem:[#allocation4 + $0x720] sm:$0xff]  ;;  %v5479_v14 = vld [vmem:[#allocation4 + $0x518] sm:$0xff] }
0x1146   : > { %5537 = vmatpush1.msra.mxu0 %v5446_v31  ;;  %5674 = vmatpush1.msra.mxu1 %v5583_v25  ;;  %v5616_v31 = vld [vmem:[#allocation4 + $0x718] sm:$0xff]  ;;  %v5478_v25 = vld [vmem:[#allocation4 + $0x510] sm:$0xff] }
0x1147   : > { %5538 = vmatprep.subr.mxu0 %v5445_v29  ;;  %5675 = vmatprep.subr.mxu1 %v5582_v34  ;;  %v5615_v29 = vld [vmem:[#allocation4 + $0x710] sm:$0xff]  ;;  %v5477_v34 = vld [vmem:[#allocation4 + $0x508] sm:$0xff] }
0x1148   : > { %5539 = vmatpush1.msra.mxu0 %v5444_v58  ;;  %5676 = vmatpush1.msra.mxu1 %v5581_v60  ;;  %v5614_v58 = vld [vmem:[#allocation4 + $0x708] sm:$0xff]  ;;  %v5476_v60 = vld [vmem:[#allocation4 + $0x500] sm:$0xff] }
0x1149   : > { %5540 = vmatprep.subr.mxu0 %v5507_v0  ;;  %5677 = vmatprep.subr.mxu1 %v5644_v12  ;;  %v5613_v0 = vld [vmem:[#allocation4 + $0x700] sm:$0xff]  ;;  %v9786_v12 = vld [vmem:[#allocation2 + $0x58] sm:$0xff] }
0x114a   : > { %5541 = vmatpush2.msra.mxu0 %v5506_v35  ;;  %5678 = vmatpush2.msra.mxu1 %v5643_v3 }
0x114b   : > { %5542 = vmatprep.subr.mxu0 %v5505_v21  ;;  %5679 = vmatprep.subr.mxu1 %v5642_v23 }
0x114c   : > { %5543 = vmatpush2.msra.mxu0 %v5504_v26  ;;  %5680 = vmatpush2.msra.mxu1 %v5641_v51 }
0x114d   : > { %5544 = vmatprep.subr.mxu0 %v5503_v7  ;;  %5681 = vmatprep.subr.mxu1 %v5640_v44 }
0x114e   : > { %5545 = vmatpush2.msra.mxu0 %v5502_v24  ;;  %5682 = vmatpush2.msra.mxu1 %v5639_v63 }
0x114f   : > { %5546 = vmatprep.subr.mxu0 %v5501_v40  ;;  %5683 = vmatprep.subr.mxu1 %v5638_v36  ;;  %v9806_v36 = vld [vmem:[#allocation2 + $0x28] sm:$0xff] }
0x1150   : > { %5547 = vmatpush2.msra.mxu0 %v5500_v28  ;;  %5684 = vmatpush2.msra.mxu1 %v5637_v32  ;;  %v9810_v28 = vld [vmem:[#allocation2 + $0x20] sm:$0xff] }
0x1151   : > { %5548 = vmatprep.subr.mxu0 %v5499_v59  ;;  %5685 = vmatprep.subr.mxu1 %v5636_v19 }
0x1152   : > { %5549 = vmatpush2.msra.mxu0 %v5498_v20  ;;  %5686 = vmatpush2.msra.mxu1 %v5635_v38  ;;  %v5728_v20 = vld [vmem:[%s9926_s16] sm:$0x1]  ;;  %v7121_v38 = vld [vmem:[%s9926_s16 + $0x1] sm:$0x1] }
0x1153   : > { %5550 = vmatprep.subr.mxu0 %v5497_v42  ;;  %5687 = vmatprep.subr.mxu1 %v5634_v55  ;;  %v5974_v55 = vld [vmem:[#allocation4 + $0xaf8] sm:$0xff] }
0x1154   : > { %5551 = vmatpush2.msra.mxu0 %v5496_v33  ;;  %5688 = vmatpush2.msra.mxu1 %v5633_v37  ;;  %v5834_v33 = vld [vmem:[#allocation4 + $0x8f8] sm:$0xff]  ;;  %v5973_v37 = vld [vmem:[#allocation4 + $0xaf0] sm:$0xff] }
0x1155   : > { %5552 = vmatprep.subr.mxu0 %v5495_v39  ;;  %5689 = vmatprep.subr.mxu1 %v5632_v41  ;;  %v5833_v39 = vld [vmem:[#allocation4 + $0x8f0] sm:$0xff]  ;;  %v5972_v41 = vld [vmem:[#allocation4 + $0xae8] sm:$0xff] }
0x1156   : > { %5553 = vmatpush2.msra.mxu0 %v5494_v43  ;;  %5690 = vmatpush2.msra.mxu1 %v5631_v45  ;;  %v5832_v43 = vld [vmem:[#allocation4 + $0x8e8] sm:$0xff]  ;;  %v5971_v45 = vld [vmem:[#allocation4 + $0xae0] sm:$0xff] }
0x1157   : > { %5554 = vmatprep.subr.mxu0 %v5493_v17  ;;  %5691 = vmatprep.subr.mxu1 %v5630_v22  ;;  %v5831_v17 = vld [vmem:[#allocation4 + $0x8e0] sm:$0xff]  ;;  %v5970_v22 = vld [vmem:[#allocation4 + $0xad8] sm:$0xff] }
0x1158   : > { %5555 = vmatpush2.msra.mxu0 %v5492_v46  ;;  %5692 = vmatpush2.msra.mxu1 %v5629_v18  ;;  %v5830_v46 = vld [vmem:[#allocation4 + $0x8d8] sm:$0xff]  ;;  %v5969_v18 = vld [vmem:[#allocation4 + $0xad0] sm:$0xff] }
0x1159   : > { %5556 = vmatprep.subr.mxu0 %v5491_v47  ;;  %5693 = vmatprep.subr.mxu1 %v5628_v8  ;;  %v5829_v47 = vld [vmem:[#allocation4 + $0x8d0] sm:$0xff]  ;;  %v5968_v8 = vld [vmem:[#allocation4 + $0xac8] sm:$0xff] }
0x115a   : > { %5557 = vmatpush2.msra.mxu0 %v5490_v48  ;;  %5694 = vmatpush2.msra.mxu1 %v5627_v52  ;;  %v5828_v48 = vld [vmem:[#allocation4 + $0x8c8] sm:$0xff]  ;;  %v5967_v52 = vld [vmem:[#allocation4 + $0xac0] sm:$0xff] }
0x115b   : > { %5558 = vmatprep.subr.mxu0 %v5489_v54  ;;  %5695 = vmatprep.subr.mxu1 %v5626_v56  ;;  %v5827_v54 = vld [vmem:[#allocation4 + $0x8c0] sm:$0xff]  ;;  %v5966_v56 = vld [vmem:[#allocation4 + $0xab8] sm:$0xff] }
0x115c   : > { %5559 = vmatpush2.msra.mxu0 %v5488_v2  ;;  %5696 = vmatpush2.msra.mxu1 %v5625_v4  ;;  %v5826_v2 = vld [vmem:[#allocation4 + $0x8b8] sm:$0xff]  ;;  %v5965_v4 = vld [vmem:[#allocation4 + $0xab0] sm:$0xff] }
0x115d   : > { %5560 = vmatprep.subr.mxu0 %v5487_v6  ;;  %5697 = vmatprep.subr.mxu1 %v5624_v9  ;;  %v5825_v6 = vld [vmem:[#allocation4 + $0x8b0] sm:$0xff]  ;;  %v5964_v9 = vld [vmem:[#allocation4 + $0xaa8] sm:$0xff] }
0x115e   : > { %5561 = vmatpush2.msra.mxu0 %v5486_v11  ;;  %5698 = vmatpush2.msra.mxu1 %v5623_v50  ;;  %v5824_v11 = vld [vmem:[#allocation4 + $0x8a8] sm:$0xff]  ;;  %v5963_v50 = vld [vmem:[#allocation4 + $0xaa0] sm:$0xff] }
0x115f   : > { %5562 = vmatprep.subr.mxu0 %v5485_v13  ;;  %5699 = vmatprep.subr.mxu1 %v5622_v15  ;;  %v5823_v13 = vld [vmem:[#allocation4 + $0x8a0] sm:$0xff]  ;;  %v5962_v15 = vld [vmem:[#allocation4 + $0xa98] sm:$0xff] }
0x1160   : > { %5563 = vmatpush2.msra.mxu0 %v5484_v16  ;;  %5700 = vmatpush2.msra.mxu1 %v5621_v27  ;;  %v5822_v16 = vld [vmem:[#allocation4 + $0x898] sm:$0xff]  ;;  %v5961_v27 = vld [vmem:[#allocation4 + $0xa90] sm:$0xff] }
0x1161   : > { %5564 = vmatprep.subr.mxu0 %v5483_v30  ;;  %5701 = vmatprep.subr.mxu1 %v5620_v49  ;;  %v5821_v30 = vld [vmem:[#allocation4 + $0x890] sm:$0xff]  ;;  %v5960_v49 = vld [vmem:[#allocation4 + $0xa88] sm:$0xff] }
0x1162   : > { %5565 = vmatpush2.msra.mxu0 %v5482_v53  ;;  %5702 = vmatpush2.msra.mxu1 %v5619_v57  ;;  %v5820_v53 = vld [vmem:[#allocation4 + $0x888] sm:$0xff]  ;;  %v5959_v57 = vld [vmem:[#allocation4 + $0xa80] sm:$0xff] }
0x1163   : > { %5566 = vmatprep.subr.mxu0 %v5481_v61  ;;  %5703 = vmatprep.subr.mxu1 %v5618_v1  ;;  %v5819_v61 = vld [vmem:[#allocation4 + $0x880] sm:$0xff]  ;;  %v5958_v1 = vld [vmem:[#allocation4 + $0xa78] sm:$0xff] }
0x1164   : > { %5567 = vmatpush2.msra.mxu0 %v5480_v5  ;;  %5704 = vmatpush2.msra.mxu1 %v5617_v10  ;;  %v5818_v5 = vld [vmem:[#allocation4 + $0x878] sm:$0xff]  ;;  %v5957_v10 = vld [vmem:[#allocation4 + $0xa70] sm:$0xff] }
0x1165   : > { %5568 = vmatprep.subr.mxu0 %v5479_v14  ;;  %5705 = vmatprep.subr.mxu1 %v5616_v31  ;;  %v5817_v14 = vld [vmem:[#allocation4 + $0x870] sm:$0xff]  ;;  %v5956_v31 = vld [vmem:[#allocation4 + $0xa68] sm:$0xff] }
0x1166   : > { %5569 = vmatpush2.msra.mxu0 %v5478_v25  ;;  %5706 = vmatpush2.msra.mxu1 %v5615_v29  ;;  %v5816_v25 = vld [vmem:[#allocation4 + $0x868] sm:$0xff]  ;;  %v5955_v29 = vld [vmem:[#allocation4 + $0xa60] sm:$0xff] }
0x1167   : > { %5570 = vmatprep.subr.mxu0 %v5477_v34  ;;  %5707 = vmatprep.subr.mxu1 %v5614_v58  ;;  %v5815_v34 = vld [vmem:[#allocation4 + $0x860] sm:$0xff]  ;;  %v5954_v58 = vld [vmem:[#allocation4 + $0xa58] sm:$0xff] }
0x1168   : > { %5571 = vmatpush2.msra.mxu0 %v5476_v60  ;;  %5708 = vmatpush2.msra.mxu1 %v5613_v0  ;;  %v5814_v60 = vld [vmem:[#allocation4 + $0x858] sm:$0xff]  ;;  %v5953_v0 = vld [vmem:[#allocation4 + $0xa50] sm:$0xff] }
0x1169   : > { %5573 = vmatmul.mubr.f32.vlgmr.msra.gmra.mxu0 %v9779_v62  ;;  %5710 = vmatmul.mubr.f32.vlgmr.msra.gmra.mxu1 %v9779_v62 }
0x116a   : > { %5796 = vmatprep.mubr.f32.mxu0 %v9786_v12  ;;  %5936 = vmatprep.mubr.f32.mxu1 %v9786_v12 }
0x11e8   : > { %v5298_v35 = vpop.f32.mrf.mxu0  ;;  %v5435_v3 = vpop.f32.mrf.mxu1 }
0x11e9   : > { %5303 = vst [vmem:[#allocation2] sm:$0xf] %v5298_v35  ;;  %5440 = vst [vmem:[#allocation2 + $0x10] sm:$0xf] %v5435_v3  ;;  %v5813_v35 = vld [vmem:[#allocation4 + $0x850] sm:$0xff]  ;;  %v5952_v3 = vld [vmem:[#allocation4 + $0xa48] sm:$0xff] }
0x11ea   : > { %v5300_v21 = vpop.f32.mrf.mxu0  ;;  %v5437_v23 = vpop.f32.mrf.mxu1 }
0x11eb   : > { %5304 = vst [vmem:[#allocation2 + $0x8] sm:$0xf] %v5300_v21  ;;  %5441 = vst [vmem:[#allocation2 + $0x18] sm:$0xf] %v5437_v23  ;;  %v5812_v21 = vld [vmem:[#allocation4 + $0x848] sm:$0xff]  ;;  %v5951_v23 = vld [vmem:[#allocation4 + $0xa40] sm:$0xff] }
0x11f0   : > { %v9818_v59 = vld [vmem:[#allocation2 + $0x10] sm:$0xff]  ;;  %v9832_v42 = vld [vmem:[#allocation2] sm:$0xff] }
0x11f2   : > { %v9814_v32 = vld [vmem:[#allocation2 + $0x18] sm:$0xff]  ;;  %v9822_v19 = vld [vmem:[#allocation2 + $0x8] sm:$0xff] }
0x1229   : > { %v5574_v26 = vpop.f32.mrf.mxu0  ;;  %v5711_v51 = vpop.f32.mrf.mxu1 }
0x122a   : > { %5579 = vst [vmem:[#allocation2 + $0x30] sm:$0xf] %v5574_v26  ;;  %5716 = vst [vmem:[#allocation2 + $0x40] sm:$0xf] %v5711_v51  ;;  %v5811_v26 = vld [vmem:[#allocation4 + $0x840] sm:$0xff]  ;;  %v5950_v51 = vld [vmem:[#allocation4 + $0xa38] sm:$0xff] }
0x122b   : > { %v5576_v7 = vpop.f32.mrf.mxu0  ;;  %v5713_v62 = vpop.f32.mrf.mxu1 }
0x122c   : > { %5580 = vst [vmem:[#allocation2 + $0x38] sm:$0xf] %v5576_v7  ;;  %5717 = vst [vmem:[#allocation2 + $0x48] sm:$0xf] %v5713_v62  ;;  %v5810_v7 = vld [vmem:[#allocation4 + $0x838] sm:$0xff]  ;;  %v5949_v62 = vld [vmem:[#allocation4 + $0xa30] sm:$0xff] }
0x1231   : > { %v9794_v24 = vld [vmem:[#allocation2 + $0x40] sm:$0xff]  ;;  %v9802_v40 = vld [vmem:[#allocation2 + $0x30] sm:$0xff] }
0x1233   : > { %v9790_v44 = vld [vmem:[#allocation2 + $0x48] sm:$0xff]  ;;  %v9798_v63 = vld [vmem:[#allocation2 + $0x38] sm:$0xff] }
0x1234   : > { %5754 = vmatprep.subr.mxu0 %v9790_v44  ;;  %5894 = vmatprep.subr.mxu1 %v9790_v44 }
0x1235   : > { %5755 = vmatpush1.msra.mxu0 %v9794_v24  ;;  %5895 = vmatpush1.msra.mxu1 %v9794_v24 }
0x1236   : > { %5756 = vmatprep.subr.mxu0 %v9798_v63  ;;  %5896 = vmatprep.subr.mxu1 %v9798_v63 }
0x1237   : > { %5757 = vmatpush1.msra.mxu0 %v9802_v40  ;;  %5897 = vmatpush1.msra.mxu1 %v9802_v40 }
0x1238   : > { %5758 = vmatprep.subr.mxu0 %v9806_v36  ;;  %5898 = vmatprep.subr.mxu1 %v9806_v36 }
0x1239   : > { %5759 = vmatpush1.msra.mxu0 %v9810_v28  ;;  %5899 = vmatpush1.msra.mxu1 %v9810_v28 }
0x123a   : > { %5760 = vmatprep.subr.mxu0 %v9814_v32  ;;  %5900 = vmatprep.subr.mxu1 %v9814_v32 }
0x123b   : > { %5761 = vmatpush1.msra.mxu0 %v9818_v59  ;;  %5901 = vmatpush1.msra.mxu1 %v9818_v59 }
0x123c   : > { %5762 = vmatprep.subr.mxu0 %v9822_v19  ;;  %5902 = vmatprep.subr.mxu1 %v9822_v19 }
0x123d   : > { %5763 = vmatpush1.msra.mxu0 %v9832_v42  ;;  %5903 = vmatpush1.msra.mxu1 %v9832_v42 }
0x123e   : > { %7120 = vmatmul.mubr.msk.f32.vlgmr.msra.gmra.mxu0 %vm1281_vm0, %v5728_v20  ;;  %7122 = vmatmul.mubr.msk.f32.vlgmr.msra.gmra.mxu1 %vm1281_vm0, %v7121_v38  ;;  %v5809_v20 = vld [vmem:[#allocation4 + $0x830] sm:$0xff]  ;;  %v5948_v38 = vld [vmem:[#allocation4 + $0xa28] sm:$0xff] }
0x123f   : > { %6007 = vmatprep.subr.mxu0 %v5974_v55  ;;  %6078 = vmatprep.subr.mxu1 %v5834_v33  ;;  %v5808_v55 = vld [vmem:[#allocation4 + $0x828] sm:$0xff]  ;;  %v5947_v33 = vld [vmem:[#allocation4 + $0xa20] sm:$0xff] }
0x1240   : > { %6008 = vmatpush1.msra.mxu0 %v5973_v37  ;;  %6079 = vmatpush1.msra.mxu1 %v5833_v39  ;;  %v5807_v37 = vld [vmem:[#allocation4 + $0x820] sm:$0xff]  ;;  %v5946_v39 = vld [vmem:[#allocation4 + $0xa18] sm:$0xff] }
0x1241   : > { %6009 = vmatprep.subr.mxu0 %v5972_v41  ;;  %6080 = vmatprep.subr.mxu1 %v5832_v43  ;;  %v5806_v41 = vld [vmem:[#allocation4 + $0x818] sm:$0xff]  ;;  %v5945_v43 = vld [vmem:[#allocation4 + $0xa10] sm:$0xff] }
0x1242   : > { %6010 = vmatpush1.msra.mxu0 %v5971_v45  ;;  %6081 = vmatpush1.msra.mxu1 %v5831_v17  ;;  %v5805_v45 = vld [vmem:[#allocation4 + $0x810] sm:$0xff]  ;;  %v5944_v17 = vld [vmem:[#allocation4 + $0xa08] sm:$0xff] }
0x1243   : > { %6011 = vmatprep.subr.mxu0 %v5970_v22  ;;  %6082 = vmatprep.subr.mxu1 %v5830_v46  ;;  %v5804_v22 = vld [vmem:[#allocation4 + $0x808] sm:$0xff]  ;;  %v5943_v46 = vld [vmem:[#allocation4 + $0xa00] sm:$0xff] }
0x1244   : > { %6012 = vmatpush1.msra.mxu0 %v5969_v18  ;;  %6083 = vmatpush1.msra.mxu1 %v5829_v47  ;;  %v5803_v18 = vld [vmem:[#allocation4 + $0x800] sm:$0xff]  ;;  %v6006_v47 = vld [vmem:[#allocation4 + $0xbf8] sm:$0xff] }
0x1245   : > { %6013 = vmatprep.subr.mxu0 %v5968_v8  ;;  %6084 = vmatprep.subr.mxu1 %v5828_v48  ;;  %v5866_v8 = vld [vmem:[#allocation4 + $0x9f8] sm:$0xff]  ;;  %v6005_v48 = vld [vmem:[#allocation4 + $0xbf0] sm:$0xff] }
0x1246   : > { %6014 = vmatpush1.msra.mxu0 %v5967_v52  ;;  %6085 = vmatpush1.msra.mxu1 %v5827_v54  ;;  %v5865_v52 = vld [vmem:[#allocation4 + $0x9f0] sm:$0xff]  ;;  %v6004_v54 = vld [vmem:[#allocation4 + $0xbe8] sm:$0xff] }
0x1247   : > { %6015 = vmatprep.subr.mxu0 %v5966_v56  ;;  %6086 = vmatprep.subr.mxu1 %v5826_v2  ;;  %v5864_v56 = vld [vmem:[#allocation4 + $0x9e8] sm:$0xff]  ;;  %v6003_v2 = vld [vmem:[#allocation4 + $0xbe0] sm:$0xff] }
0x1248   : > { %6016 = vmatpush1.msra.mxu0 %v5965_v4  ;;  %6087 = vmatpush1.msra.mxu1 %v5825_v6  ;;  %v5863_v4 = vld [vmem:[#allocation4 + $0x9e0] sm:$0xff]  ;;  %v6002_v6 = vld [vmem:[#allocation4 + $0xbd8] sm:$0xff] }
0x1249   : > { %6017 = vmatprep.subr.mxu0 %v5964_v9  ;;  %6088 = vmatprep.subr.mxu1 %v5824_v11  ;;  %v5862_v9 = vld [vmem:[#allocation4 + $0x9d8] sm:$0xff]  ;;  %v6001_v11 = vld [vmem:[#allocation4 + $0xbd0] sm:$0xff] }
0x124a   : > { %6018 = vmatpush1.msra.mxu0 %v5963_v50  ;;  %6089 = vmatpush1.msra.mxu1 %v5823_v13  ;;  %v5861_v50 = vld [vmem:[#allocation4 + $0x9d0] sm:$0xff]  ;;  %v6000_v13 = vld [vmem:[#allocation4 + $0xbc8] sm:$0xff] }
0x124b   : > { %6019 = vmatprep.subr.mxu0 %v5962_v15  ;;  %6090 = vmatprep.subr.mxu1 %v5822_v16  ;;  %v5860_v15 = vld [vmem:[#allocation4 + $0x9c8] sm:$0xff]  ;;  %v5999_v16 = vld [vmem:[#allocation4 + $0xbc0] sm:$0xff] }
0x124c   : > { %6020 = vmatpush1.msra.mxu0 %v5961_v27  ;;  %6091 = vmatpush1.msra.mxu1 %v5821_v30  ;;  %v5859_v27 = vld [vmem:[#allocation4 + $0x9c0] sm:$0xff]  ;;  %v5998_v30 = vld [vmem:[#allocation4 + $0xbb8] sm:$0xff] }
0x124d   : > { %6021 = vmatprep.subr.mxu0 %v5960_v49  ;;  %6092 = vmatprep.subr.mxu1 %v5820_v53  ;;  %v5858_v49 = vld [vmem:[#allocation4 + $0x9b8] sm:$0xff]  ;;  %v5997_v53 = vld [vmem:[#allocation4 + $0xbb0] sm:$0xff] }
0x124e   : > { %6022 = vmatpush1.msra.mxu0 %v5959_v57  ;;  %6093 = vmatpush1.msra.mxu1 %v5819_v61  ;;  %v5857_v57 = vld [vmem:[#allocation4 + $0x9b0] sm:$0xff]  ;;  %v5996_v61 = vld [vmem:[#allocation4 + $0xba8] sm:$0xff] }
0x124f   : > { %6023 = vmatprep.subr.mxu0 %v5958_v1  ;;  %6094 = vmatprep.subr.mxu1 %v5818_v5  ;;  %v5856_v1 = vld [vmem:[#allocation4 + $0x9a8] sm:$0xff]  ;;  %v5995_v5 = vld [vmem:[#allocation4 + $0xba0] sm:$0xff] }
0x1250   : > { %6024 = vmatpush1.msra.mxu0 %v5957_v10  ;;  %6095 = vmatpush1.msra.mxu1 %v5817_v14  ;;  %v5855_v10 = vld [vmem:[#allocation4 + $0x9a0] sm:$0xff]  ;;  %v5994_v14 = vld [vmem:[#allocation4 + $0xb98] sm:$0xff] }
0x1251   : > { %6025 = vmatprep.subr.mxu0 %v5956_v31  ;;  %6096 = vmatprep.subr.mxu1 %v5816_v25  ;;  %v5854_v31 = vld [vmem:[#allocation4 + $0x998] sm:$0xff]  ;;  %v5993_v25 = vld [vmem:[#allocation4 + $0xb90] sm:$0xff] }
0x1252   : > { %6026 = vmatpush1.msra.mxu0 %v5955_v29  ;;  %6097 = vmatpush1.msra.mxu1 %v5815_v34  ;;  %v5853_v29 = vld [vmem:[#allocation4 + $0x990] sm:$0xff]  ;;  %v5992_v34 = vld [vmem:[#allocation4 + $0xb88] sm:$0xff] }
0x1253   : > { %6027 = vmatprep.subr.mxu0 %v5954_v58  ;;  %6098 = vmatprep.subr.mxu1 %v5814_v60  ;;  %v5852_v58 = vld [vmem:[#allocation4 + $0x988] sm:$0xff]  ;;  %v5991_v60 = vld [vmem:[#allocation4 + $0xb80] sm:$0xff] }
0x1254   : > { %6028 = vmatpush1.msra.mxu0 %v5953_v0  ;;  %6099 = vmatpush1.msra.mxu1 %v5813_v35  ;;  %v5851_v0 = vld [vmem:[#allocation4 + $0x980] sm:$0xff]  ;;  %v5990_v35 = vld [vmem:[#allocation4 + $0xb78] sm:$0xff] }
0x1255   : > { %6029 = vmatprep.subr.mxu0 %v5952_v3  ;;  %6100 = vmatprep.subr.mxu1 %v5812_v21  ;;  %v5850_v3 = vld [vmem:[#allocation4 + $0x978] sm:$0xff]  ;;  %v5989_v21 = vld [vmem:[#allocation4 + $0xb70] sm:$0xff] }
0x1256   : > { %6030 = vmatpush1.msra.mxu0 %v5951_v23  ;;  %6101 = vmatpush1.msra.mxu1 %v5811_v26  ;;  %v5849_v23 = vld [vmem:[#allocation4 + $0x970] sm:$0xff]  ;;  %v5988_v26 = vld [vmem:[#allocation4 + $0xb68] sm:$0xff] }
0x1257   : > { %6031 = vmatprep.subr.mxu0 %v5950_v51  ;;  %6102 = vmatprep.subr.mxu1 %v5810_v7  ;;  %v5848_v51 = vld [vmem:[#allocation4 + $0x968] sm:$0xff]  ;;  %v5987_v7 = vld [vmem:[#allocation4 + $0xb60] sm:$0xff] }
0x1258   : > { %6032 = vmatpush1.msra.mxu0 %v5949_v62  ;;  %6103 = vmatpush1.msra.mxu1 %v5809_v20  ;;  %v5847_v62 = vld [vmem:[#allocation4 + $0x960] sm:$0xff]  ;;  %v5986_v20 = vld [vmem:[#allocation4 + $0xb58] sm:$0xff] }
0x1259   : > { %6033 = vmatprep.subr.mxu0 %v5948_v38  ;;  %6104 = vmatprep.subr.mxu1 %v5808_v55  ;;  %v5846_v38 = vld [vmem:[#allocation4 + $0x958] sm:$0xff]  ;;  %v5985_v55 = vld [vmem:[#allocation4 + $0xb50] sm:$0xff] }
0x125a   : > { %6034 = vmatpush1.msra.mxu0 %v5947_v33  ;;  %6105 = vmatpush1.msra.mxu1 %v5807_v37  ;;  %v5845_v33 = vld [vmem:[#allocation4 + $0x950] sm:$0xff]  ;;  %v5984_v37 = vld [vmem:[#allocation4 + $0xb48] sm:$0xff] }
0x125b   : > { %6035 = vmatprep.subr.mxu0 %v5946_v39  ;;  %6106 = vmatprep.subr.mxu1 %v5806_v41  ;;  %v5844_v39 = vld [vmem:[#allocation4 + $0x948] sm:$0xff]  ;;  %v5983_v41 = vld [vmem:[#allocation4 + $0xb40] sm:$0xff] }
0x125c   : > { %6036 = vmatpush1.msra.mxu0 %v5945_v43  ;;  %6107 = vmatpush1.msra.mxu1 %v5805_v45  ;;  %v5843_v43 = vld [vmem:[#allocation4 + $0x940] sm:$0xff]  ;;  %v5982_v45 = vld [vmem:[#allocation4 + $0xb38] sm:$0xff] }
0x125d   : > { %6037 = vmatprep.subr.mxu0 %v5944_v17  ;;  %6108 = vmatprep.subr.mxu1 %v5804_v22  ;;  %v5842_v17 = vld [vmem:[#allocation4 + $0x938] sm:$0xff]  ;;  %v5981_v22 = vld [vmem:[#allocation4 + $0xb30] sm:$0xff] }
0x125e   : > { %6038 = vmatpush1.msra.mxu0 %v5943_v46  ;;  %6109 = vmatpush1.msra.mxu1 %v5803_v18  ;;  %v5841_v46 = vld [vmem:[#allocation4 + $0x930] sm:$0xff]  ;;  %v5980_v18 = vld [vmem:[#allocation4 + $0xb28] sm:$0xff] }
0x125f   : > { %6039 = vmatprep.subr.mxu0 %v6006_v47  ;;  %6110 = vmatprep.subr.mxu1 %v5866_v8  ;;  %v5840_v47 = vld [vmem:[#allocation4 + $0x928] sm:$0xff]  ;;  %v5979_v8 = vld [vmem:[#allocation4 + $0xb20] sm:$0xff] }
0x1260   : > { %6040 = vmatpush2.msra.mxu0 %v6005_v48  ;;  %6111 = vmatpush2.msra.mxu1 %v5865_v52  ;;  %v5839_v48 = vld [vmem:[#allocation4 + $0x920] sm:$0xff]  ;;  %v5978_v52 = vld [vmem:[#allocation4 + $0xb18] sm:$0xff] }
0x1261   : > { %6041 = vmatprep.subr.mxu0 %v6004_v54  ;;  %6112 = vmatprep.subr.mxu1 %v5864_v56  ;;  %v5838_v54 = vld [vmem:[#allocation4 + $0x918] sm:$0xff]  ;;  %v5977_v56 = vld [vmem:[#allocation4 + $0xb10] sm:$0xff] }
0x1262   : > { %6042 = vmatpush2.msra.mxu0 %v6003_v2  ;;  %6113 = vmatpush2.msra.mxu1 %v5863_v4  ;;  %v5837_v2 = vld [vmem:[#allocation4 + $0x910] sm:$0xff]  ;;  %v5976_v4 = vld [vmem:[#allocation4 + $0xb08] sm:$0xff] }
0x1263   : > { %6043 = vmatprep.subr.mxu0 %v6002_v6  ;;  %6114 = vmatprep.subr.mxu1 %v5862_v9  ;;  %v5836_v6 = vld [vmem:[#allocation4 + $0x908] sm:$0xff]  ;;  %v5975_v9 = vld [vmem:[#allocation4 + $0xb00] sm:$0xff] }
0x1264   : > { %6044 = vmatpush2.msra.mxu0 %v6001_v11  ;;  %6115 = vmatpush2.msra.mxu1 %v5861_v50  ;;  %v5835_v11 = vld [vmem:[#allocation4 + $0x900] sm:$0xff] }
0x1265   : > { %6045 = vmatprep.subr.mxu0 %v6000_v13  ;;  %6116 = vmatprep.subr.mxu1 %v5860_v15 }
0x1266   : > { %6046 = vmatpush2.msra.mxu0 %v5999_v16  ;;  %6117 = vmatpush2.msra.mxu1 %v5859_v27  ;;  %v7123_v27 = vld [vmem:[%s9926_s16 + $0x2] sm:$0x1] }
0x1267   : > { %6047 = vmatprep.subr.mxu0 %v5998_v30  ;;  %6118 = vmatprep.subr.mxu1 %v5858_v49  ;;  %v7125_v30 = vld [vmem:[%s9926_s16 + $0x3] sm:$0x1]  ;;  %v6334_v49 = vld [vmem:[#allocation4 + $0xcf8] sm:$0xff] }
0x1268   : > { %6048 = vmatpush2.msra.mxu0 %v5997_v53  ;;  %6119 = vmatpush2.msra.mxu1 %v5857_v57  ;;  %v6333_v53 = vld [vmem:[#allocation4 + $0xcf0] sm:$0xff]  ;;  %v6332_v57 = vld [vmem:[#allocation4 + $0xce8] sm:$0xff] }
0x1269   : > { %6049 = vmatprep.subr.mxu0 %v5996_v61  ;;  %6120 = vmatprep.subr.mxu1 %v5856_v1  ;;  %v6331_v61 = vld [vmem:[#allocation4 + $0xce0] sm:$0xff]  ;;  %v6330_v1 = vld [vmem:[#allocation4 + $0xcd8] sm:$0xff] }
0x126a   : > { %6050 = vmatpush2.msra.mxu0 %v5995_v5  ;;  %6121 = vmatpush2.msra.mxu1 %v5855_v10  ;;  %v6329_v5 = vld [vmem:[#allocation4 + $0xcd0] sm:$0xff]  ;;  %v6328_v10 = vld [vmem:[#allocation4 + $0xcc8] sm:$0xff] }
0x126b   : > { %6051 = vmatprep.subr.mxu0 %v5994_v14  ;;  %6122 = vmatprep.subr.mxu1 %v5854_v31  ;;  %v6545_v14 = vld [vmem:[#allocation4 + $0xee8] sm:$0xff]  ;;  %v6321_v31 = vld [vmem:[#allocation4 + $0xc90] sm:$0xff] }
0x126c   : > { %6052 = vmatpush2.msra.mxu0 %v5993_v25  ;;  %6123 = vmatpush2.msra.mxu1 %v5853_v29  ;;  %v6544_v25 = vld [vmem:[#allocation4 + $0xee0] sm:$0xff]  ;;  %v6543_v29 = vld [vmem:[#allocation4 + $0xed8] sm:$0xff] }
0x126d   : > { %6053 = vmatprep.subr.mxu0 %v5992_v34  ;;  %6124 = vmatprep.subr.mxu1 %v5852_v58  ;;  %v6319_v34 = vld [vmem:[#allocation4 + $0xc80] sm:$0xff]  ;;  %v6318_v58 = vld [vmem:[#allocation4 + $0xc78] sm:$0xff] }
0x126e   : > { %6054 = vmatpush2.msra.mxu0 %v5991_v60  ;;  %6125 = vmatpush2.msra.mxu1 %v5851_v0  ;;  %v6541_v60 = vld [vmem:[#allocation4 + $0xec8] sm:$0xff]  ;;  %v6317_v0 = vld [vmem:[#allocation4 + $0xc70] sm:$0xff] }
0x126f   : > { %6055 = vmatprep.subr.mxu0 %v5990_v35  ;;  %6126 = vmatprep.subr.mxu1 %v5850_v3  ;;  %v6540_v35 = vld [vmem:[#allocation4 + $0xec0] sm:$0xff]  ;;  %v6316_v3 = vld [vmem:[#allocation4 + $0xc68] sm:$0xff] }
0x1270   : > { %6056 = vmatpush2.msra.mxu0 %v5989_v21  ;;  %6127 = vmatpush2.msra.mxu1 %v5849_v23  ;;  %v6539_v21 = vld [vmem:[#allocation4 + $0xeb8] sm:$0xff]  ;;  %v6315_v23 = vld [vmem:[#allocation4 + $0xc60] sm:$0xff] }
0x1271   : > { %6057 = vmatprep.subr.mxu0 %v5988_v26  ;;  %6128 = vmatprep.subr.mxu1 %v5848_v51  ;;  %v6538_v26 = vld [vmem:[#allocation4 + $0xeb0] sm:$0xff]  ;;  %v6314_v51 = vld [vmem:[#allocation4 + $0xc58] sm:$0xff] }
0x1272   : > { %6058 = vmatpush2.msra.mxu0 %v5987_v7  ;;  %6129 = vmatpush2.msra.mxu1 %v5847_v62  ;;  %v6537_v7 = vld [vmem:[#allocation4 + $0xea8] sm:$0xff]  ;;  %v6313_v62 = vld [vmem:[#allocation4 + $0xc50] sm:$0xff] }
0x1273   : > { %6059 = vmatprep.subr.mxu0 %v5986_v20  ;;  %6130 = vmatprep.subr.mxu1 %v5846_v38  ;;  %v6536_v20 = vld [vmem:[#allocation4 + $0xea0] sm:$0xff]  ;;  %v6312_v38 = vld [vmem:[#allocation4 + $0xc48] sm:$0xff] }
0x1274   : > { %6060 = vmatpush2.msra.mxu0 %v5985_v55  ;;  %6131 = vmatpush2.msra.mxu1 %v5845_v33  ;;  %v6535_v55 = vld [vmem:[#allocation4 + $0xe98] sm:$0xff]  ;;  %v6311_v33 = vld [vmem:[#allocation4 + $0xc40] sm:$0xff] }
0x1275   : > { %6061 = vmatprep.subr.mxu0 %v5984_v37  ;;  %6132 = vmatprep.subr.mxu1 %v5844_v39  ;;  %v6534_v37 = vld [vmem:[#allocation4 + $0xe90] sm:$0xff]  ;;  %v6310_v39 = vld [vmem:[#allocation4 + $0xc38] sm:$0xff] }
0x1276   : > { %6062 = vmatpush2.msra.mxu0 %v5983_v41  ;;  %6133 = vmatpush2.msra.mxu1 %v5843_v43  ;;  %v6533_v41 = vld [vmem:[#allocation4 + $0xe88] sm:$0xff]  ;;  %v6309_v43 = vld [vmem:[#allocation4 + $0xc30] sm:$0xff] }
0x1277   : > { %6063 = vmatprep.subr.mxu0 %v5982_v45  ;;  %6134 = vmatprep.subr.mxu1 %v5842_v17  ;;  %v6532_v45 = vld [vmem:[#allocation4 + $0xe80] sm:$0xff]  ;;  %v6308_v17 = vld [vmem:[#allocation4 + $0xc28] sm:$0xff] }
0x1278   : > { %6064 = vmatpush2.msra.mxu0 %v5981_v22  ;;  %6135 = vmatpush2.msra.mxu1 %v5841_v46  ;;  %v6531_v22 = vld [vmem:[#allocation4 + $0xe78] sm:$0xff]  ;;  %v6307_v46 = vld [vmem:[#allocation4 + $0xc20] sm:$0xff] }
0x1279   : > { %6065 = vmatprep.subr.mxu0 %v5980_v18  ;;  %6136 = vmatprep.subr.mxu1 %v5840_v47  ;;  %v6530_v18 = vld [vmem:[#allocation4 + $0xe70] sm:$0xff]  ;;  %v6306_v47 = vld [vmem:[#allocation4 + $0xc18] sm:$0xff] }
0x127a   : > { %6066 = vmatpush2.msra.mxu0 %v5979_v8  ;;  %6137 = vmatpush2.msra.mxu1 %v5839_v48  ;;  %v6529_v8 = vld [vmem:[#allocation4 + $0xe68] sm:$0xff]  ;;  %v6305_v48 = vld [vmem:[#allocation4 + $0xc10] sm:$0xff] }
0x127b   : > { %6067 = vmatprep.subr.mxu0 %v5978_v52  ;;  %6138 = vmatprep.subr.mxu1 %v5838_v54  ;;  %v6528_v52 = vld [vmem:[#allocation4 + $0xe60] sm:$0xff]  ;;  %v6304_v54 = vld [vmem:[#allocation4 + $0xc08] sm:$0xff] }
0x127c   : > { %6068 = vmatpush2.msra.mxu0 %v5977_v56  ;;  %6139 = vmatpush2.msra.mxu1 %v5837_v2  ;;  %v6527_v56 = vld [vmem:[#allocation4 + $0xe58] sm:$0xff]  ;;  %v6303_v2 = vld [vmem:[#allocation4 + $0xc00] sm:$0xff] }
0x127d   : > { %6069 = vmatprep.subr.mxu0 %v5976_v4  ;;  %6140 = vmatprep.subr.mxu1 %v5836_v6  ;;  %v6526_v4 = vld [vmem:[#allocation4 + $0xe50] sm:$0xff]  ;;  %v6366_v6 = vld [vmem:[#allocation4 + $0xdf8] sm:$0xff] }
0x127e   : > { %6070 = vmatpush2.msra.mxu0 %v5975_v9  ;;  %6141 = vmatpush2.msra.mxu1 %v5835_v11  ;;  %v6525_v9 = vld [vmem:[#allocation4 + $0xe48] sm:$0xff]  ;;  %v6365_v11 = vld [vmem:[#allocation4 + $0xdf0] sm:$0xff] }
0x127f   : > { %6176 = vmatprep.subr.mxu0 %v9790_v44  ;;  %6254 = vmatprep.subr.mxu1 %v9790_v44 }
0x12fe   : > { %v5798_v50 = vpop.f32.mrf.mxu0  ;;  %v5938_v13 = vpop.f32.mrf.mxu1 }
0x1300   : > { %v5800_v15 = vpop.f32.mrf.mxu0  ;;  %v5940_v16 = vpop.f32.mrf.mxu1 }
0x1301   : > { %6071 = vmatprep.mubr.f32.mxu0 %v5940_v16  ;;  %6142 = vmatprep.mubr.f32.mxu1 %v5800_v15  ;;  %v6523_v15 = vld [vmem:[#allocation4 + $0xe38] sm:$0xff]  ;;  %v6363_v16 = vld [vmem:[#allocation4 + $0xde0] sm:$0xff] }
0x1302   : > { %6072 = vmatmul.mubr.f32.vlgmr.msra.gmra.mxu0 %v5938_v13  ;;  %6143 = vmatmul.mubr.f32.vlgmr.msra.gmra.mxu1 %v5798_v50  ;;  %v6524_v50 = vld [vmem:[#allocation4 + $0xe40] sm:$0xff]  ;;  %v6364_v13 = vld [vmem:[#allocation4 + $0xde8] sm:$0xff] }
0x1303   : > { %6177 = vmatpush1.msra.mxu0 %v9794_v24  ;;  %6255 = vmatpush1.msra.mxu1 %v9794_v24 }
0x1304   : > { %6178 = vmatprep.subr.mxu0 %v9798_v63  ;;  %6256 = vmatprep.subr.mxu1 %v9798_v63 }
0x1305   : > { %6179 = vmatpush1.msra.mxu0 %v9802_v40  ;;  %6257 = vmatpush1.msra.mxu1 %v9802_v40 }
0x1306   : > { %6180 = vmatprep.subr.mxu0 %v9806_v36  ;;  %6258 = vmatprep.subr.mxu1 %v9806_v36 }
0x1307   : > { %6181 = vmatpush1.msra.mxu0 %v9810_v28  ;;  %6259 = vmatpush1.msra.mxu1 %v9810_v28 }
0x1308   : > { %6182 = vmatprep.subr.mxu0 %v9814_v32  ;;  %6260 = vmatprep.subr.mxu1 %v9814_v32 }
0x1309   : > { %6183 = vmatpush1.msra.mxu0 %v9818_v59  ;;  %6261 = vmatpush1.msra.mxu1 %v9818_v59 }
0x130a   : > { %6184 = vmatprep.subr.mxu0 %v9822_v19  ;;  %6262 = vmatprep.subr.mxu1 %v9822_v19 }
0x130b   : > { %6185 = vmatpush1.msra.mxu0 %v9832_v42  ;;  %6218 = vmatprep.mubr.f32.mxu0 %v9786_v12 }
0x130c   : > { %6263 = vmatpush1.msra.mxu1 %v9832_v42  ;;  %6296 = vmatprep.mubr.f32.mxu1 %v9786_v12 }
0x130d   : > { %7124 = vmatmul.mubr.msk.f32.vlgmr.msra.gmra.mxu0 %vm1281_vm0, %v7123_v27  ;;  %7126 = vmatmul.mubr.msk.f32.vlgmr.msra.gmra.mxu1 %vm1281_vm0, %v7125_v30  ;;  %v6522_v27 = vld [vmem:[#allocation4 + $0xe30] sm:$0xff]  ;;  %v6362_v30 = vld [vmem:[#allocation4 + $0xdd8] sm:$0xff] }
0x130e   : > { %6467 = vmatprep.subr.mxu1 %v9790_v44  ;;  %6509 = vmatprep.mubr.f32.mxu1 %v9786_v12  ;;  %v6327_v12 = vld [vmem:[#allocation4 + $0xcc0] sm:$0xff]  ;;  %v6326_v44 = vld [vmem:[#allocation4 + $0xcb8] sm:$0xff] }
0x130f   : > { %6468 = vmatpush1.msra.mxu1 %v9794_v24  ;;  %6367 = vmatprep.subr.mxu0 %v6334_v49  ;;  %v7127_v24 = vld [vmem:[%s9926_s16 + $0x4] sm:$0x1]  ;;  %v6521_v49 = vld [vmem:[#allocation4 + $0xe28] sm:$0xff] }
0x1310   : > { %6469 = vmatprep.subr.mxu1 %v9798_v63  ;;  %6368 = vmatpush1.msra.mxu0 %v6333_v53  ;;  %v6325_v63 = vld [vmem:[#allocation4 + $0xcb0] sm:$0xff] }
0x1311   : > { %6470 = vmatpush1.msra.mxu1 %v9802_v40  ;;  %6369 = vmatprep.subr.mxu0 %v6332_v57  ;;  %v6324_v40 = vld [vmem:[#allocation4 + $0xca8] sm:$0xff]  ;;  %v6361_v53 = vld [vmem:[#allocation4 + $0xdd0] sm:$0xff]  ;;  %v6520_v57 = vld [vmem:[#allocation4 + $0xe20] sm:$0xff] }
0x1312   : > { %6471 = vmatprep.subr.mxu1 %v9806_v36  ;;  %6370 = vmatpush1.msra.mxu0 %v6331_v61  ;;  %v6547_v36 = vld [vmem:[#allocation4 + $0xef8] sm:$0xff]  ;;  %v6360_v61 = vld [vmem:[#allocation4 + $0xdc8] sm:$0xff] }
0x1313   : > { %6472 = vmatpush1.msra.mxu1 %v9810_v28  ;;  %6371 = vmatprep.subr.mxu0 %v6330_v1  ;;  %v6323_v28 = vld [vmem:[#allocation4 + $0xca0] sm:$0xff]  ;;  %v6519_v1 = vld [vmem:[#allocation4 + $0xe18] sm:$0xff] }
0x1314   : > { %6473 = vmatprep.subr.mxu1 %v9814_v32  ;;  %6372 = vmatpush1.msra.mxu0 %v6329_v5  ;;  %v6546_v32 = vld [vmem:[#allocation4 + $0xef0] sm:$0xff]  ;;  %v6359_v5 = vld [vmem:[#allocation4 + $0xdc0] sm:$0xff] }
0x1315   : > { %6474 = vmatpush1.msra.mxu1 %v9818_v59  ;;  %6373 = vmatprep.subr.mxu0 %v6328_v10  ;;  %v6322_v59 = vld [vmem:[#allocation4 + $0xc98] sm:$0xff]  ;;  %v6518_v10 = vld [vmem:[#allocation4 + $0xe10] sm:$0xff] }
0x1316   : > { %6475 = vmatprep.subr.mxu1 %v9822_v19  ;;  %6374 = vmatpush1.msra.mxu0 %v6327_v12  ;;  %v6320_v19 = vld [vmem:[#allocation4 + $0xc88] sm:$0xff]  ;;  %v6358_v12 = vld [vmem:[#allocation4 + $0xdb8] sm:$0xff] }
0x1317   : > { %6476 = vmatpush1.msra.mxu1 %v9832_v42  ;;  %6375 = vmatprep.subr.mxu0 %v6326_v44  ;;  %v6542_v42 = vld [vmem:[#allocation4 + $0xed0] sm:$0xff]  ;;  %v6517_v44 = vld [vmem:[#allocation4 + $0xe08] sm:$0xff] }
0x1318   : > { %7128 = vmatmul.mubr.msk.f32.vlgmr.msra.gmra.mxu1 %vm1281_vm0, %v7127_v24  ;;  %6376 = vmatpush1.msra.mxu0 %v6325_v63  ;;  %v6357_v24 = vld [vmem:[#allocation4 + $0xdb0] sm:$0xff]  ;;  %v6516_v63 = vld [vmem:[#allocation4 + $0xe00] sm:$0xff] }
0x1319   : > { %6377 = vmatprep.subr.mxu0 %v6324_v40  ;;  %6580 = vmatprep.subr.mxu1 %v6547_v36  ;;  %v6356_v40 = vld [vmem:[#allocation4 + $0xda8] sm:$0xff]  ;;  %v6579_v36 = vld [vmem:[#allocation4 + $0xff8] sm:$0xff] }
0x131a   : > { %6378 = vmatpush1.msra.mxu0 %v6323_v28  ;;  %6581 = vmatpush1.msra.mxu1 %v6546_v32  ;;  %v6355_v28 = vld [vmem:[#allocation4 + $0xda0] sm:$0xff]  ;;  %v6578_v32 = vld [vmem:[#allocation4 + $0xff0] sm:$0xff] }
0x131b   : > { %6379 = vmatprep.subr.mxu0 %v6322_v59  ;;  %6582 = vmatprep.subr.mxu1 %v6545_v14  ;;  %v6354_v59 = vld [vmem:[#allocation4 + $0xd98] sm:$0xff]  ;;  %v6577_v14 = vld [vmem:[#allocation4 + $0xfe8] sm:$0xff] }
0x131c   : > { %6380 = vmatpush1.msra.mxu0 %v6321_v31  ;;  %6583 = vmatpush1.msra.mxu1 %v6544_v25  ;;  %v6353_v31 = vld [vmem:[#allocation4 + $0xd90] sm:$0xff]  ;;  %v6576_v25 = vld [vmem:[#allocation4 + $0xfe0] sm:$0xff] }
0x131d   : > { %6381 = vmatprep.subr.mxu0 %v6320_v19  ;;  %6584 = vmatprep.subr.mxu1 %v6543_v29  ;;  %v6352_v19 = vld [vmem:[#allocation4 + $0xd88] sm:$0xff]  ;;  %v6575_v29 = vld [vmem:[#allocation4 + $0xfd8] sm:$0xff] }
0x131e   : > { %6382 = vmatpush1.msra.mxu0 %v6319_v34  ;;  %6585 = vmatpush1.msra.mxu1 %v6542_v42  ;;  %v6351_v34 = vld [vmem:[#allocation4 + $0xd80] sm:$0xff]  ;;  %v6574_v42 = vld [vmem:[#allocation4 + $0xfd0] sm:$0xff] }
0x131f   : > { %6383 = vmatprep.subr.mxu0 %v6318_v58  ;;  %6586 = vmatprep.subr.mxu1 %v6541_v60  ;;  %v6350_v58 = vld [vmem:[#allocation4 + $0xd78] sm:$0xff]  ;;  %v6573_v60 = vld [vmem:[#allocation4 + $0xfc8] sm:$0xff] }
0x1320   : > { %6384 = vmatpush1.msra.mxu0 %v6317_v0  ;;  %6587 = vmatpush1.msra.mxu1 %v6540_v35  ;;  %v6349_v0 = vld [vmem:[#allocation4 + $0xd70] sm:$0xff]  ;;  %v6572_v35 = vld [vmem:[#allocation4 + $0xfc0] sm:$0xff] }
0x1321   : > { %6385 = vmatprep.subr.mxu0 %v6316_v3  ;;  %6588 = vmatprep.subr.mxu1 %v6539_v21  ;;  %v6348_v3 = vld [vmem:[#allocation4 + $0xd68] sm:$0xff]  ;;  %v6571_v21 = vld [vmem:[#allocation4 + $0xfb8] sm:$0xff] }
0x1322   : > { %6386 = vmatpush1.msra.mxu0 %v6315_v23  ;;  %6589 = vmatpush1.msra.mxu1 %v6538_v26  ;;  %v6347_v23 = vld [vmem:[#allocation4 + $0xd60] sm:$0xff]  ;;  %v6570_v26 = vld [vmem:[#allocation4 + $0xfb0] sm:$0xff] }
0x1323   : > { %6387 = vmatprep.subr.mxu0 %v6314_v51  ;;  %6590 = vmatprep.subr.mxu1 %v6537_v7  ;;  %v6346_v51 = vld [vmem:[#allocation4 + $0xd58] sm:$0xff]  ;;  %v6569_v7 = vld [vmem:[#allocation4 + $0xfa8] sm:$0xff] }
0x1324   : > { %6388 = vmatpush1.msra.mxu0 %v6313_v62  ;;  %6591 = vmatpush1.msra.mxu1 %v6536_v20  ;;  %v6345_v62 = vld [vmem:[#allocation4 + $0xd50] sm:$0xff]  ;;  %v6568_v20 = vld [vmem:[#allocation4 + $0xfa0] sm:$0xff] }
0x1325   : > { %6389 = vmatprep.subr.mxu0 %v6312_v38  ;;  %6592 = vmatprep.subr.mxu1 %v6535_v55  ;;  %v6344_v38 = vld [vmem:[#allocation4 + $0xd48] sm:$0xff]  ;;  %v6567_v55 = vld [vmem:[#allocation4 + $0xf98] sm:$0xff] }
0x1326   : > { %6390 = vmatpush1.msra.mxu0 %v6311_v33  ;;  %6593 = vmatpush1.msra.mxu1 %v6534_v37  ;;  %v6343_v33 = vld [vmem:[#allocation4 + $0xd40] sm:$0xff]  ;;  %v6566_v37 = vld [vmem:[#allocation4 + $0xf90] sm:$0xff] }
0x1327   : > { %6391 = vmatprep.subr.mxu0 %v6310_v39  ;;  %6594 = vmatprep.subr.mxu1 %v6533_v41  ;;  %v6342_v39 = vld [vmem:[#allocation4 + $0xd38] sm:$0xff]  ;;  %v6565_v41 = vld [vmem:[#allocation4 + $0xf88] sm:$0xff] }
0x1328   : > { %6392 = vmatpush1.msra.mxu0 %v6309_v43  ;;  %6595 = vmatpush1.msra.mxu1 %v6532_v45  ;;  %v6341_v43 = vld [vmem:[#allocation4 + $0xd30] sm:$0xff]  ;;  %v6564_v45 = vld [vmem:[#allocation4 + $0xf80] sm:$0xff] }
0x1329   : > { %6393 = vmatprep.subr.mxu0 %v6308_v17  ;;  %6596 = vmatprep.subr.mxu1 %v6531_v22  ;;  %v6340_v17 = vld [vmem:[#allocation4 + $0xd28] sm:$0xff]  ;;  %v6563_v22 = vld [vmem:[#allocation4 + $0xf78] sm:$0xff] }
0x132a   : > { %6394 = vmatpush1.msra.mxu0 %v6307_v46  ;;  %6597 = vmatpush1.msra.mxu1 %v6530_v18  ;;  %v6339_v46 = vld [vmem:[#allocation4 + $0xd20] sm:$0xff]  ;;  %v6562_v18 = vld [vmem:[#allocation4 + $0xf70] sm:$0xff] }
0x132b   : > { %6395 = vmatprep.subr.mxu0 %v6306_v47  ;;  %6598 = vmatprep.subr.mxu1 %v6529_v8  ;;  %v6338_v47 = vld [vmem:[#allocation4 + $0xd18] sm:$0xff]  ;;  %v6561_v8 = vld [vmem:[#allocation4 + $0xf68] sm:$0xff] }
0x132c   : > { %6396 = vmatpush1.msra.mxu0 %v6305_v48  ;;  %6599 = vmatpush1.msra.mxu1 %v6528_v52  ;;  %v6337_v48 = vld [vmem:[#allocation4 + $0xd10] sm:$0xff]  ;;  %v6560_v52 = vld [vmem:[#allocation4 + $0xf60] sm:$0xff] }
0x132d   : > { %6397 = vmatprep.subr.mxu0 %v6304_v54  ;;  %6600 = vmatprep.subr.mxu1 %v6527_v56  ;;  %v6336_v54 = vld [vmem:[#allocation4 + $0xd08] sm:$0xff]  ;;  %v6559_v56 = vld [vmem:[#allocation4 + $0xf58] sm:$0xff] }
0x132e   : > { %6398 = vmatpush1.msra.mxu0 %v6303_v2  ;;  %6601 = vmatpush1.msra.mxu1 %v6526_v4  ;;  %v6335_v2 = vld [vmem:[#allocation4 + $0xd00] sm:$0xff]  ;;  %v6558_v4 = vld [vmem:[#allocation4 + $0xf50] sm:$0xff] }
0x132f   : > { %6399 = vmatprep.subr.mxu0 %v6366_v6  ;;  %6602 = vmatprep.subr.mxu1 %v6525_v9  ;;  %v6557_v6 = vld [vmem:[#allocation4 + $0xf48] sm:$0xff]  ;;  %v6556_v9 = vld [vmem:[#allocation4 + $0xf40] sm:$0xff] }
0x1330   : > { %6400 = vmatpush2.msra.mxu0 %v6365_v11  ;;  %6603 = vmatpush1.msra.mxu1 %v6524_v50  ;;  %v6555_v11 = vld [vmem:[#allocation4 + $0xf38] sm:$0xff]  ;;  %v6554_v50 = vld [vmem:[#allocation4 + $0xf30] sm:$0xff] }
0x1331   : > { %6401 = vmatprep.subr.mxu0 %v6364_v13  ;;  %6604 = vmatprep.subr.mxu1 %v6523_v15  ;;  %v6553_v13 = vld [vmem:[#allocation4 + $0xf28] sm:$0xff]  ;;  %v6552_v15 = vld [vmem:[#allocation4 + $0xf20] sm:$0xff] }
0x1332   : > { %6402 = vmatpush2.msra.mxu0 %v6363_v16  ;;  %6605 = vmatpush1.msra.mxu1 %v6522_v27  ;;  %v6551_v16 = vld [vmem:[#allocation4 + $0xf18] sm:$0xff]  ;;  %v6550_v27 = vld [vmem:[#allocation4 + $0xf10] sm:$0xff] }
0x1333   : > { %6403 = vmatprep.subr.mxu0 %v6362_v30  ;;  %6606 = vmatprep.subr.mxu1 %v6521_v49  ;;  %v6549_v30 = vld [vmem:[#allocation4 + $0xf08] sm:$0xff]  ;;  %v6548_v49 = vld [vmem:[#allocation4 + $0xf00] sm:$0xff] }
0x1334   : > { %6404 = vmatpush2.msra.mxu0 %v6361_v53  ;;  %6607 = vmatpush1.msra.mxu1 %v6520_v57 }
0x1335   : > { %6405 = vmatprep.subr.mxu0 %v6360_v61  ;;  %6608 = vmatprep.subr.mxu1 %v6519_v1 }
0x1336   : > { %6406 = vmatpush2.msra.mxu0 %v6359_v5  ;;  %6609 = vmatpush1.msra.mxu1 %v6518_v10 }
0x1337   : > { %6407 = vmatprep.subr.mxu0 %v6358_v12  ;;  %6610 = vmatprep.subr.mxu1 %v6517_v44  ;;  %v9887_v12 = vld [vmem:[#allocation2 + $0x58] sm:$0xff]  ;;  %v6708_v44 = vld [vmem:[#allocation14 + $0xf8] sm:$0xff] }
0x1338   : > { %6408 = vmatpush2.msra.mxu0 %v6357_v24  ;;  %6611 = vmatpush1.msra.mxu1 %v6516_v63  ;;  %v6692_v24 = vld [vmem:[#allocation14 + $0x78] sm:$0xff]  ;;  %v6707_v63 = vld [vmem:[#allocation14 + $0xf0] sm:$0xff] }
0x1339   : > { %6409 = vmatprep.subr.mxu0 %v6356_v40  ;;  %6612 = vmatprep.subr.mxu1 %v6579_v36  ;;  %v6691_v40 = vld [vmem:[#allocation14 + $0x70] sm:$0xff]  ;;  %v6706_v36 = vld [vmem:[#allocation14 + $0xe8] sm:$0xff] }
0x133a   : > { %6410 = vmatpush2.msra.mxu0 %v6355_v28  ;;  %6613 = vmatpush2.msra.mxu1 %v6578_v32  ;;  %v6690_v28 = vld [vmem:[#allocation14 + $0x68] sm:$0xff]  ;;  %v6705_v32 = vld [vmem:[#allocation14 + $0xe0] sm:$0xff] }
0x133b   : > { %6411 = vmatprep.subr.mxu0 %v6354_v59  ;;  %6614 = vmatprep.subr.mxu1 %v6577_v14  ;;  %v6689_v59 = vld [vmem:[#allocation14 + $0x60] sm:$0xff]  ;;  %v6704_v14 = vld [vmem:[#allocation14 + $0xd8] sm:$0xff] }
0x133c   : > { %6412 = vmatpush2.msra.mxu0 %v6353_v31  ;;  %6615 = vmatpush2.msra.mxu1 %v6576_v25  ;;  %v6688_v31 = vld [vmem:[#allocation14 + $0x58] sm:$0xff]  ;;  %v6703_v25 = vld [vmem:[#allocation14 + $0xd0] sm:$0xff] }
0x133d   : > { %6413 = vmatprep.subr.mxu0 %v6352_v19  ;;  %6616 = vmatprep.subr.mxu1 %v6575_v29  ;;  %v6687_v19 = vld [vmem:[#allocation14 + $0x50] sm:$0xff]  ;;  %v6702_v29 = vld [vmem:[#allocation14 + $0xc8] sm:$0xff] }
0x133e   : > { %6414 = vmatpush2.msra.mxu0 %v6351_v34  ;;  %6617 = vmatpush2.msra.mxu1 %v6574_v42  ;;  %v6686_v34 = vld [vmem:[#allocation14 + $0x48] sm:$0xff]  ;;  %v6701_v42 = vld [vmem:[#allocation14 + $0xc0] sm:$0xff] }
0x133f   : > { %6415 = vmatprep.subr.mxu0 %v6350_v58  ;;  %6618 = vmatprep.subr.mxu1 %v6573_v60  ;;  %v6685_v58 = vld [vmem:[#allocation14 + $0x40] sm:$0xff]  ;;  %v6700_v60 = vld [vmem:[#allocation14 + $0xb8] sm:$0xff] }
0x1340   : > { %6416 = vmatpush2.msra.mxu0 %v6349_v0  ;;  %6619 = vmatpush2.msra.mxu1 %v6572_v35  ;;  %v6684_v0 = vld [vmem:[#allocation14 + $0x38] sm:$0xff]  ;;  %v6699_v35 = vld [vmem:[#allocation14 + $0xb0] sm:$0xff] }
0x1341   : > { %6417 = vmatprep.subr.mxu0 %v6348_v3  ;;  %6620 = vmatprep.subr.mxu1 %v6571_v21  ;;  %v6683_v3 = vld [vmem:[#allocation14 + $0x30] sm:$0xff]  ;;  %v6698_v21 = vld [vmem:[#allocation14 + $0xa8] sm:$0xff] }
0x1342   : > { %6418 = vmatpush2.msra.mxu0 %v6347_v23  ;;  %6621 = vmatpush2.msra.mxu1 %v6570_v26  ;;  %v6682_v23 = vld [vmem:[#allocation14 + $0x28] sm:$0xff]  ;;  %v6697_v26 = vld [vmem:[#allocation14 + $0xa0] sm:$0xff] }
0x1343   : > { %6419 = vmatprep.subr.mxu0 %v6346_v51  ;;  %6622 = vmatprep.subr.mxu1 %v6569_v7  ;;  %v6681_v51 = vld [vmem:[#allocation14 + $0x20] sm:$0xff]  ;;  %v6696_v7 = vld [vmem:[#allocation14 + $0x98] sm:$0xff] }
0x1344   : > { %6420 = vmatpush2.msra.mxu0 %v6345_v62  ;;  %6623 = vmatpush2.msra.mxu1 %v6568_v20  ;;  %v6680_v62 = vld [vmem:[#allocation14 + $0x18] sm:$0xff]  ;;  %v6695_v20 = vld [vmem:[#allocation14 + $0x90] sm:$0xff] }
0x1345   : > { %6421 = vmatprep.subr.mxu0 %v6344_v38  ;;  %6624 = vmatprep.subr.mxu1 %v6567_v55  ;;  %v6679_v38 = vld [vmem:[#allocation14 + $0x10] sm:$0xff]  ;;  %v6694_v55 = vld [vmem:[#allocation14 + $0x88] sm:$0xff] }
0x1346   : > { %6422 = vmatpush2.msra.mxu0 %v6343_v33  ;;  %6625 = vmatpush2.msra.mxu1 %v6566_v37  ;;  %v6678_v33 = vld [vmem:[#allocation14 + $0x8] sm:$0xff]  ;;  %v6693_v37 = vld [vmem:[#allocation14 + $0x80] sm:$0xff] }
0x1347   : > { %6423 = vmatprep.subr.mxu0 %v6342_v39  ;;  %6626 = vmatprep.subr.mxu1 %v6565_v41  ;;  %v6677_v39 = vld [vmem:[#allocation14] sm:$0xff] }
0x1348   : > { %6424 = vmatpush2.msra.mxu0 %v6341_v43  ;;  %6627 = vmatpush2.msra.mxu1 %v6564_v45 }
0x1349   : > { %6425 = vmatprep.subr.mxu0 %v6340_v17  ;;  %6628 = vmatprep.subr.mxu1 %v6563_v22  ;;  %v6659_v17 = vlaneseq }
0x134a   : > { %6426 = vmatpush2.msra.mxu0 %v6339_v46  ;;  %6629 = vmatpush2.msra.mxu1 %v6562_v18 }
0x134b   : > { %6427 = vmatprep.subr.mxu0 %v6338_v47  ;;  %6630 = vmatprep.subr.mxu1 %v6561_v8  ;;  %v9891_v46 = vshrl.u32 %v6659_v17, 7  ;;  %vm6892_vm10 = vcmp.lt.s32.totalorder %v6659_v17, 256 }
0x134c   : > { %6428 = vmatpush2.msra.mxu0 %v6337_v48  ;;  %6631 = vmatpush2.msra.mxu1 %v6560_v52 }
0x134d   : > { %6429 = vmatprep.subr.mxu0 %v6336_v54  ;;  %6632 = vmatprep.subr.mxu1 %v6559_v56  ;;  %v6661_v8 = vsub.s32 0, %v9891_v46  ;;  %v6657_v54 = vpop.permute.xlu0 %6656 }
0x134e   : > { %6430 = vmatpush2.msra.mxu0 %v6335_v2  ;;  %6633 = vmatpush2.msra.mxu1 %v6558_v4 }
0x134f   : > { %6634 = vmatprep.subr.mxu1 %v6557_v6  ;;  %7446 = vmatprep.subr.mxu0 %v6708_v44 }
0x1350   : > { %6635 = vmatpush2.msra.mxu1 %v6556_v9  ;;  %v6662_v9 = vrot.slane %v6657_v54, %v6661_v8 }
0x1351   : > { %6636 = vmatprep.subr.mxu1 %v6555_v11 }
0x1352   : > { %6637 = vmatpush2.msra.mxu1 %v6554_v50 }
0x1353   : > { %6638 = vmatprep.subr.mxu1 %v6553_v13 }
0x1354   : > { %6639 = vmatpush2.msra.mxu1 %v6552_v15 }
0x1355   : > { %6640 = vmatprep.subr.mxu1 %v6551_v16 }
0x1356   : > { %6641 = vmatpush2.msra.mxu1 %v6550_v27 }
0x1357   : > { %6642 = vmatprep.subr.mxu1 %v6549_v30 }
0x1358   : > { %6643 = vmatpush2.msra.mxu1 %v6548_v49 }
0x13c2   : > { %v9883_v53 = vpop.f32.mrf.mxu1  ;;  %v6073_v41 = vpop.f32.mrf.mxu0 }
0x13c3   : > { %v6145_v47 = vadd.f32 %v9883_v53, %v6073_v41 }
0x13c4   : > { %v9885_v57 = vpop.f32.mrf.mxu1  ;;  %v6075_v43 = vpop.f32.mrf.mxu0 }
0x13c5   : > { %v6147_v48 = vadd.f32 %v9885_v57, %v6075_v43 }
0x13cd   : > { %v6298_v61 = vpop.f32.mrf.mxu1  ;;  %v6220_v45 = vpop.f32.mrf.mxu0 }
0x13ce   : > { %v6225_v52 = vadd.f32 %v6220_v45, %v6145_v47 }
0x13cf   : > { %v6300_v1 = vpop.f32.mrf.mxu1  ;;  %v6222_v22 = vpop.f32.mrf.mxu0 }
0x13d0   : > { %6431 = vmatprep.mubr.f32.mxu0 %v6300_v1  ;;  %v6226_v2 = vadd.f32 %v6222_v22, %v6147_v48 }
0x13d1   : > { %6432 = vmatmul.mubr.f32.vlgmr.msra.gmra.mxu0 %v6298_v61 }
0x13d2   : > { %7447 = vmatpush3.msra.mxu0 %v6692_v24 }
0x13d3   : > { %7448 = vmatprep.subr.mxu0 %v6707_v63 }
0x13d4   : > { %7449 = vmatpush3.msra.mxu0 %v6691_v40 }
0x13d5   : > { %7450 = vmatprep.subr.mxu0 %v6706_v36 }
0x13d6   : > { %7451 = vmatpush3.msra.mxu0 %v6690_v28  ;;  %v6797_v28 = vld [vmem:[#allocation15 + $0x18] sm:$0xff] }
0x13d7   : > { %7452 = vmatprep.subr.mxu0 %v6705_v32  ;;  %6829 = vmatprep.subr.mxu1 %v6797_v28  ;;  %v6796_v32 = vld [vmem:[#allocation15 + $0x10] sm:$0xff] }
0x13d8   : > { %v6511_v5 = vpop.f32.mrf.mxu1  ;;  %7453 = vmatpush3.msra.mxu0 %v6689_v59  ;;  %v6795_v59 = vld [vmem:[#allocation15 + $0x8] sm:$0xff] }
0x13d9   : > { %7454 = vmatprep.subr.mxu0 %v6704_v14  ;;  %v6794_v14 = vld [vmem:[#allocation15] sm:$0xff] }
0x13da   : > { %v6513_v10 = vpop.f32.mrf.mxu1  ;;  %7455 = vmatpush3.msra.mxu0 %v6688_v31 }
0x13db   : > { %6644 = vmatprep.mubr.f32.mxu1 %v6513_v10  ;;  %7456 = vmatprep.subr.mxu0 %v6703_v25  ;;  %v6790_v25 = vld [vmem:[%s9919_s9] sm:$0x1] }
0x13dc   : > { %6645 = vmatmul.mubr.f32.vlgmr.msra.gmra.mxu1 %v6511_v5  ;;  %7457 = vmatpush3.msra.mxu0 %v6687_v19  ;;  %vm6791_vm7 = vcmp.gt.f32.partialorder %v6790_v25, 0.5 }
0x13dd   : > { %6865 = vmatprep.mubr.f32.mxu1 %v9887_v12  ;;  %7458 = vmatprep.subr.mxu0 %v6702_v29 }
0x13de   : > { %7459 = vmatpush3.msra.mxu0 %v6686_v34  ;;  %6830 = vmatpush1.msra.mxu1 %v6796_v32 }
0x13df   : > { %7460 = vmatprep.subr.mxu0 %v6701_v42  ;;  %6831 = vmatprep.subr.mxu1 %v6795_v59 }
0x13e0   : > { %7461 = vmatpush3.msra.mxu0 %v6685_v58  ;;  %6832 = vmatpush1.msra.mxu1 %v6794_v14 }
0x13e1   : > { %7462 = vmatprep.subr.mxu0 %v6700_v60  ;;  %v8393_v60 = vmov 1966171168  }
0x13e2   : > { %7463 = vmatpush3.msra.mxu0 %v6684_v0  ;;  %v6876_v0 = vunpack.c.l.s4 %v8393_v60 }
0x13e3   : > { %7464 = vmatprep.subr.mxu0 %v6699_v35 }
0x13e4   : > { %7465 = vmatpush3.msra.mxu0 %v6683_v3  ;;  %v6877_v35 = vunpack.c.0.s8 %v6876_v0 }
0x13e5   : > { %7466 = vmatprep.subr.mxu0 %v6698_v21 }
0x13e6   : > { %7467 = vmatpush3.msra.mxu0 %v6682_v23  ;;  %v6880_v21 = vsub.s32 %v6877_v35, %v9891_v46 }
0x13e7   : > { %7468 = vmatprep.subr.mxu0 %v6697_v26 }
0x13e8   : > { %7469 = vmatpush3.msra.mxu0 %v6681_v51 }
0x13e9   : > { %7470 = vmatprep.subr.mxu0 %v6696_v7 }
0x13ea   : > { %7471 = vmatpush3.msra.mxu0 %v6680_v62 }
0x13eb   : > { %7472 = vmatprep.subr.mxu0 %v6695_v20 }
0x13ec   : > { %7473 = vmatpush3.msra.mxu0 %v6679_v38 }
0x13ed   : > { %7474 = vmatprep.subr.mxu0 %v6694_v55 }
0x13ee   : > { %7475 = vmatpush3.msra.mxu0 %v6678_v33 }
0x13ef   : > { %7476 = vmatprep.subr.mxu0 %v6693_v37 }
0x13f0   : > { %7477 = vmatpush3.msra.mxu0 %v6677_v39 }
0x1491   : > { %v6433_v18 = vpop.f32.mrf.mxu0 }
0x1492   : > { %v6438_v4 = vadd.f32 %v6433_v18, %v6225_v52 }
0x1493   : > { %v6435_v56 = vpop.f32.mrf.mxu0 }
0x1494   : > { %v6439_v11 = vadd.f32 %v6435_v56, %v6226_v2 }
0x149c   : > { %v6646_v6 = vpop.f32.mrf.mxu1 }
0x149d   : > { %v6651_v50 = vadd.f32 %v6646_v6, %v6438_v4 }
0x149e   : > { %v6648_v13 = vpop.f32.mrf.mxu1 }
0x149f   : > { %v6663_v15 = vadd.f32 %v6662_v9, %v6651_v50  ;;  %v6652_v16 = vadd.f32 %v6648_v13, %v6439_v11 }
0x14a1   : > { %v7129_v27 = vmul.f32 -1.442695, %v6663_v15  ;;  %v6664_v30 = vadd.f32 %v6662_v9, %v6652_v16 }
0x14a3   : > { %8129 = vpow2.f32 %v7129_v27  ;;  %v7130_v49 = vmul.f32 -1.442695, %v6664_v30 }
0x14a5   : > { %8131 = vpow2.f32 %v7130_v49 }
0x14b0   : > { %v8130_v53 = vpop.eup %8129 }
0x14b1   : > { %v6671_v57 = vadd.f32 1.0, %v8130_v53 }
0x14b2   : > { %v8132_v61 = vpop.eup %8131 }
0x14b3   : > { %v6672_v1 = vadd.f32 1.0, %v8132_v61 }
0x14b5   : > { %8133 = vrcp.f32 %v6672_v1 }
0x14b6   : > { %8135 = vrcp.f32 %v6671_v57 }
0x14c2   : > { %v8134_v5 = vpop.eup %8133 }
0x14c3   : > { %v8136_v10 = vpop.eup %8135  ;;  %6773 = vmatprep.mubr.f32.mxu0 %v8134_v5 }
0x14c4   : > { %6774 = vmatmul.mubr.f32.vlgmr.msra.gmra.mxu0 %v8136_v10 }
0x1584   : > { %v7478_v44 = vpop.f32.mrf.mxu0 }
0x1586   : > { %v7479_v24 = vpop.f32.mrf.mxu0 }
0x1587   : > { %v7480_v63 = vadd.f32 %v7479_v24, %v7478_v44 }
0x1589   : > { %v6783_v40 = vsel %vm6779_vm6, %v7480_v63, -inf  ;;  %v6780_v36 = vsel %vm6779_vm6, %v7480_v63, inf }
0x158a   : > { %6784 = vmax.xlane.f32.xlu0 %v6783_v40  ;;  %6781 = vmin.xlane.f32.xlu1 %v6780_v36 }
0x1613   : > { %v6785_v31 = vpop.xlane.xlu0 %6784  ;;  %v6782_v19 = vpop.xlane.xlu1 %6781 }
0x1614   : > { %v6786_v29 = vsub.f32 %v7480_v63, %v6782_v19  ;;  %v6788_v42 = vsub.f32 %v6785_v31, %v6782_v19 }
0x1616   : > { %v6787_v34 = vmul.f32 2.0, %v6786_v29 }
0x1618   : > { %vm6789_vm8 = vcmp.gt.f32.partialorder %v6787_v34, %v6788_v42 }
0x1619   : > { %vm6792_vm9 = vmor %vm6789_vm8, %vm6791_vm7 }
0x161a   : > { %v6793_v58 = vsel %vm6792_vm9, 1.0, %v9887_v12 }
0x161b   : > { %7131 = vmatmul.mubr.msk.f32.vlgmr.msra.gmra.mxu1 %vm3928_vm4, %v6793_v58 }
0x16db   : > { %v6867_v3 = vpop.f32.mrf.mxu1 }
0x16dd   : > { %v6869_v23 = vpop.f32.mrf.mxu1 }
0x16de   : > { %v6874_v26 = vcombine.low %v6867_v3, %v6869_v23 }
0x16e0   : > { %v6881_v51 = vrot.slane %v6874_v26, %v6880_v21 }
0x16e2   : > { %v6888_v7 = vrot.slane %v6881_v51, %v6880_v21 }
0x16e4   : > { %6894 = vst.msk [vmem:[%s692_s28] sm:$0x3] %vm6892_vm10, %v6888_v7 }
0x16e5 PF: > { %s35_s29 = sadd.s32 1, %s8376_s29  }
0x16e6   : > { %p32_p3 = scmp.ge.s32.totalorder %s35_s29, 4  }
0x16e8   :  { %34 = sbr.rel (!%p32_p3) target bundleno = 10 (0xa), region = 185 }
0x16ed   :  { %6914 = vsyncpa [#allocation5], 1 }
0x16ee   :  { %6916 = vsyncpa [#allocation5 + $0x1], 1 }
0x16ef   :  { %6917 = vsyncpa [#allocation7], 1 }
0x16f0   :  { %6918 = vsyncpa [#allocation10], 1 }
0x16f1   :  { %6919 = vsyncpa [#allocation13], 1 }
0x16f2   :  { %6920 = vsyncpa [#allocation16], 1 }

</bundles_post_ra>
